<compile_context>
chip_gen: v6e
topology: v6e:2x2x1
jax: 0.10.0
libtpu: 0.0.40
codegen_flags: <defaults>
</compile_context>

<pallas_src>
import functools

import jax
import jax.numpy as jnp
from jax.experimental import pallas as pl
from jax.experimental.pallas import tpu as pltpu


def bn_relu_conv1x1_kernel(x_ref, gamma_ref, beta_ref, w_ref, o_ref, *, eps):
    """One grid step = one tile of output channels.

    x_ref:     (C_in, M)   full activations, grid-invariant (stays in VMEM)
    gamma_ref: (C_in, 1)
    beta_ref:  (C_in, 1)
    w_ref:     (TN, C_in)  current output-channel tile of the 1x1-conv weight
    o_ref:     (TN, M)     output tile
    """
    x = x_ref[...]                                         # (C_in, M) f32
    m = x.shape[1]

    # Per-channel batch statistics (training-mode BN, biased variance),
    # two-pass form for numerical stability.
    mean = jnp.sum(x, axis=1, keepdims=True) / m           # (C_in, 1)
    centered = x - mean
    var = jnp.sum(centered * centered, axis=1, keepdims=True) / m
    inv = jax.lax.rsqrt(var + eps)                         # (C_in, 1)

    y = jnp.maximum(centered * (inv * gamma_ref[...]) + beta_ref[...], 0.0)

    # 1x1 conv over channels == (TN, C_in) @ (C_in, M) on the MXU.
    o_ref[...] = jnp.dot(
        w_ref[...], y, preferred_element_type=jnp.float32
    ).astype(o_ref.dtype)


def bn_relu_conv1x1(x_nchw, gamma, beta, w_oihw, *, eps=1e-5, tn=512):
    n, c_in, h, w = x_nchw.shape
    c_out = w_oihw.shape[0]
    m = n * h * w

    # (C_in, N*H*W): for N == 1 the transpose is over a size-1 axis, i.e. a
    # free reshape (no HBM data movement).
    x2d = jnp.transpose(x_nchw.reshape(n, c_in, h * w), (1, 0, 2)).reshape(c_in, m)
    w2d = w_oihw.reshape(c_out, c_in)          # untransposed weight
    g2d = gamma.reshape(c_in, 1)
    b2d = beta.reshape(c_in, 1)

    assert c_out % tn == 0, (c_out, tn)
    grid = (c_out // tn,)

    out2d = pl.pallas_call(
        functools.partial(bn_relu_conv1x1_kernel, eps=eps),
        out_shape=jax.ShapeDtypeStruct((c_out, m), x2d.dtype),
        grid_spec=pltpu.PrefetchScalarGridSpec(
            num_scalar_prefetch=0,
            grid=grid,
            in_specs=[
                pl.BlockSpec((c_in, m), lambda j: (0, 0)),   # activations (whole)
                pl.BlockSpec((c_in, 1), lambda j: (0, 0)),   # gamma
                pl.BlockSpec((c_in, 1), lambda j: (0, 0)),   # beta
                pl.BlockSpec((tn, c_in), lambda j: (j, 0)),  # weight tile
            ],
            out_specs=pl.BlockSpec((tn, m), lambda j: (j, 0)),
        ),
        compiler_params=pltpu.CompilerParams(
            # No cross-step state -> channel tiles are independent; v7x can
            # shard the 2 tiles across its 2 TensorCores.
            dimension_semantics=("parallel",),
        ),
    )(x2d, g2d, b2d, w2d)

    # (C_out, N*H*W) -> (N, C_out, H, W); for N == 1 this is a pure reshape.
    return jnp.transpose(out2d.reshape(c_out, n, h, w), (1, 0, 2, 3))


def reference(x_nchw, gamma, beta, w_oihw, eps=1e-5):
    # Pure-JAX reference mirroring PyTorch training-mode BN -> ReLU -> 1x1 conv.
    mean = jnp.mean(x_nchw, axis=(0, 2, 3), keepdims=True)
    var = jnp.mean((x_nchw - mean) ** 2, axis=(0, 2, 3), keepdims=True)  # biased
    xn = (x_nchw - mean) / jnp.sqrt(var + eps)
    xn = xn * gamma[None, :, None, None] + beta[None, :, None, None]
    y = jnp.maximum(xn, 0.0)
    w2d = w_oihw.reshape(w_oihw.shape[0], w_oihw.shape[1])               # (C_out, C_in)
    return jnp.einsum("nchw,oc->nohw", y, w2d)


if __name__ == "__main__":
    key = jax.random.PRNGKey(0)
    k_x, k_g, k_b, k_w = jax.random.split(key, 4)

    N, C, H, W = 1, 1024, 14, 14   # shapes implied by the module
    C_OUT = 1024

    x = jax.random.normal(k_x, (N, C, H, W), dtype=jnp.float32)
    gamma = jax.random.uniform(k_g, (C,), dtype=jnp.float32, minval=0.5, maxval=1.5)
    beta = 0.1 * jax.random.normal(k_b, (C,), dtype=jnp.float32)
    # Conv2d(1024, 1024, 1x1, bias=False) weight, kaiming-ish scale.
    w = jax.random.normal(k_w, (C_OUT, C, 1, 1), dtype=jnp.float32) * (1.0 / jnp.sqrt(C))

    # TODO(synk): running_mean / running_var momentum update (training-mode
    # side effect) is not part of the forward output and is not implemented.

    out = bn_relu_conv1x1(x, gamma, beta, w)
    out = jax.block_until_ready(out)

    ref = reference(x, gamma, beta, w)
    assert out.shape == (N, C_OUT, H, W), out.shape
    assert jnp.allclose(out, ref, atol=1e-3, rtol=1e-3), float(jnp.max(jnp.abs(out - ref)))

    print("KERNEL_OK")
</pallas_src>

<mosaic_0001>
module attributes {stable_mosaic.version = 11 : i64} {
  func.func @bn_relu_conv1x1_kernel(%arg0: i32, %arg1: memref<1024x196xf32, #tpu.memory_space<vmem>>, %arg2: memref<1024x1xf32, #tpu.memory_space<vmem>>, %arg3: memref<1024x1xf32, #tpu.memory_space<vmem>>, %arg4: memref<512x1024xf32, #tpu.memory_space<vmem>>, %arg5: memref<512x196xf32, #tpu.memory_space<vmem>>) attributes {dimension_semantics = [#tpu.dimension_semantics<parallel>], iteration_bounds = array<i64: 2>, scalar_prefetch = 0 : i64, scratch_operands = 0 : i64, tpu.core_type = #tpu.core_type<tc>, window_params = [{pipeline_mode = #tpu.pipeline_mode<synchronous>, transform_indices = @transform_0, window_bounds = array<i64: 1024, 196>}, {pipeline_mode = #tpu.pipeline_mode<synchronous>, transform_indices = @transform_1, window_bounds = array<i64: 1024, 1>}, {pipeline_mode = #tpu.pipeline_mode<synchronous>, transform_indices = @transform_2, window_bounds = array<i64: 1024, 1>}, {transform_indices = @transform_3, window_bounds = array<i64: 512, 1024>}, {transform_indices = @transform_4, window_bounds = array<i64: 512, 196>}]} {
    %c0 = arith.constant 0 : index
    %c0_0 = arith.constant 0 : index
    %0 = vector.load %arg1[%c0, %c0_0] : memref<1024x196xf32, #tpu.memory_space<vmem>>, vector<1024x196xf32>
    %cst = arith.constant dense<0.000000e+00> : vector<1024xf32>
    %1 = vector.multi_reduction <add>, %0, %cst [1] : vector<1024x196xf32> to vector<1024xf32>
    %2 = vector.shape_cast %1 : vector<1024xf32> to vector<1024x1xf32>
    %cst_1 = arith.constant 1.960000e+02 : f32
    %3 = vector.broadcast %cst_1 : f32 to vector<1024x1xf32>
    %4 = arith.divf %2, %3 : vector<1024x1xf32>
    %5 = vector.broadcast %4 : vector<1024x1xf32> to vector<1024x196xf32>
    %6 = arith.subf %0, %5 : vector<1024x196xf32>
    %7 = arith.mulf %6, %6 : vector<1024x196xf32>
    %cst_2 = arith.constant dense<0.000000e+00> : vector<1024xf32>
    %8 = vector.multi_reduction <add>, %7, %cst_2 [1] : vector<1024x196xf32> to vector<1024xf32>
    %9 = vector.shape_cast %8 : vector<1024xf32> to vector<1024x1xf32>
    %cst_3 = arith.constant 1.960000e+02 : f32
    %10 = vector.broadcast %cst_3 : f32 to vector<1024x1xf32>
    %11 = arith.divf %9, %10 : vector<1024x1xf32>
    %cst_4 = arith.constant 9.99999974E-6 : f32
    %12 = vector.broadcast %cst_4 : f32 to vector<1024x1xf32>
    %13 = arith.addf %11, %12 : vector<1024x1xf32>
    %14 = math.rsqrt %13 : vector<1024x1xf32>
    %c0_5 = arith.constant 0 : index
    %c0_6 = arith.constant 0 : index
    %15 = vector.load %arg2[%c0_5, %c0_6] : memref<1024x1xf32, #tpu.memory_space<vmem>>, vector<1024x1xf32>
    %16 = arith.mulf %14, %15 : vector<1024x1xf32>
    %17 = vector.broadcast %16 : vector<1024x1xf32> to vector<1024x196xf32>
    %18 = arith.mulf %6, %17 : vector<1024x196xf32>
    %c0_7 = arith.constant 0 : index
    %c0_8 = arith.constant 0 : index
    %19 = vector.load %arg3[%c0_7, %c0_8] : memref<1024x1xf32, #tpu.memory_space<vmem>>, vector<1024x1xf32>
    %20 = vector.broadcast %19 : vector<1024x1xf32> to vector<1024x196xf32>
    %21 = arith.addf %18, %20 : vector<1024x196xf32>
    %cst_9 = arith.constant 0.000000e+00 : f32
    %22 = vector.broadcast %cst_9 : f32 to vector<1024x196xf32>
    %23 = arith.maximumf %21, %22 : vector<1024x196xf32>
    %c0_10 = arith.constant 0 : index
    %c0_11 = arith.constant 0 : index
    %24 = vector.load %arg4[%c0_10, %c0_11] : memref<512x1024xf32, #tpu.memory_space<vmem>>, vector<512x1024xf32>
    %cst_12 = arith.constant dense<0.000000e+00> : vector<512x196xf32>
    %25 = tpu.matmul %24, %23, %cst_12 {dimension_numbers = #tpu.dot_dimension_numbers<[1], [0], [0], [1], [0, 0, 1, 1], [], []>} : vector<512x1024xf32>, vector<1024x196xf32>, vector<512x196xf32> -> vector<512x196xf32>
    %c0_13 = arith.constant 0 : index
    %c0_14 = arith.constant 0 : index
    %26 = vector.load %arg5[%c0_13, %c0_14] : memref<512x196xf32, #tpu.memory_space<vmem>>, vector<512x196xf32>
    tpu.vector_store %arg5[%c0_13, %c0_14], %25 {strides = array<i32>} : memref<512x196xf32, #tpu.memory_space<vmem>>, vector<512x196xf32>,
    return
  }
  func.func @transform_0(%arg0: i32) -> (i32, i32) {
    %c0_i32 = arith.constant 0 : i32
    %c0_i32_0 = arith.constant 0 : i32
    %c0_i32_1 = arith.constant 0 : i32
    return %c0_i32, %c0_i32_0 : i32, i32
  }
  func.func @transform_1(%arg0: i32) -> (i32, i32) {
    %c0_i32 = arith.constant 0 : i32
    %c0_i32_0 = arith.constant 0 : i32
    %c0_i32_1 = arith.constant 0 : i32
    return %c0_i32, %c0_i32_0 : i32, i32
  }
  func.func @transform_2(%arg0: i32) -> (i32, i32) {
    %c0_i32 = arith.constant 0 : i32
    %c0_i32_0 = arith.constant 0 : i32
    %c0_i32_1 = arith.constant 0 : i32
    return %c0_i32, %c0_i32_0 : i32, i32
  }
  func.func @transform_3(%arg0: i32) -> (i32, i32) {
    %c0_i32 = arith.constant 0 : i32
    %c0_i32_0 = arith.constant 0 : i32
    return %arg0, %c0_i32 : i32, i32
  }
  func.func @transform_4(%arg0: i32) -> (i32, i32) {
    %c0_i32 = arith.constant 0 : i32
    %c0_i32_0 = arith.constant 0 : i32
    return %arg0, %c0_i32 : i32, i32
  }
}

</mosaic_0001>

<bundles_post_ra>
// kernel: tpu_custom_call.1
= control target key start
LH: loop header
LB: loop body
LE: loop exit
PB: predicated region body
PF: predicated region fallthrough
CT: control target
= control target key end

     0   :  { %9 = vsyncpa [#allocation3], 0  ;;  %s14434_s0 = inlined_call_operand.vmem [shape: f32[1024,196], index: 0, kind: input, shape index: {}]   ;;  %s14435_s1 = inlined_call_operand.vmem [shape: f32[1024,1], index: 1, kind: input, shape index: {}]   ;;  %s14436_s2 = inlined_call_operand.vmem [shape: f32[1024,1], index: 2, kind: input, shape index: {}]   ;;  %s14437_s3 = inlined_call_operand.hbm [shape: f32[1024,1024], index: 3, kind: input, shape index: {}]   ;;  %s14438_s4 = inlined_call_operand.vmem [shape: f32[1024,196], index: 4, kind: output, shape index: {}]  }
   0x1   :  { %11 = vsyncpa [#allocation3 + $0x1], 0  ;;  %s8133_s15 = smov 0   ;;  %s8135_s16 = smov 0  }
   0x2   :  { %s8137_s17 = smov 0   ;;  %s8139_s18 = smov 0  }
   0x3 LB: > { %s7466_s19 = sadd.s32 4294967295, %s8102_s18   ;;  %s8153_s20 = sadd.s32 1, %s8102_s18   ;;  %s8102_s18 = sphi %s8139_s18, %s15616_s18   ;;  %s8098_s17 = sphi %s8137_s17, %s15615_s17   ;;  %s8094_s16 = sphi %s8135_s16, %s15614_s16   ;;  %s8090_s15 = sphi %s8133_s15, %s15613_s15  }
   0x4   : > { %s84_s21 = ssub.s32 %s8102_s18, %s8153_s20  ;;  %s87_s22 = sadd.s32 1, %s8098_s17 }
   0x5   : > { %p85_p0 = scmp.eq.s32.totalorder %s84_s21, 0  ;;  %p94_p1 = scmp.ne.s32.totalorder %s8098_s17, %s8094_s16 }
   0x6   : > { %p95_p2 = scmp.eq.s32.totalorder %s8102_s18, 0  ;;  %p100_p3 = scmp.ne.s32.totalorder %s8094_s16, %s8090_s15 }
   0x7   : > { %s8163_s23 = scalar_select %p85_p0, %s8098_s17, %s87_s22  }
   0x8   : > { %p96_p4 = por %p95_p2, %p94_p1  ;;  %p101_p5 = scmp.eq.s32.totalorder %s7466_s19, 0 }
   0x9   : > { %p7490_p6 = scmp.lt.s32.totalorder %s8102_s18, 2  ;;  %s159_s25 = sand.u32 1, %s8098_s17  }
   0xa   : > { %p8168_p7 = por %p101_p5, %p100_p3  ;;  %s7470_s26 = sshll.u32 %s159_s25, 12 }
   0xb   : > { %s7482_s27 = sshll.u32 %s8102_s18, 16  ;;  %s163_s5 = scalar_lea.vmem [#allocation2], %s7470_s26 }
   0xc   : > { %s14719_s24 = scalar_select %p8168_p7, 1, 0 }
   0xd   : > { %s8177_s30 = scalar_lea.hbm %s14437_s3, %s7482_s27  ;;  %s171_s6 = sshll.u32 %s163_s5, 4  ;;  %s8179_s6 = int_to_ptr.vmem [resolvable:$true] %s171_s6 }
   0xe   : > { %p8181_p8 = pnand %p7490_p6, %p96_p4  ;;  %s8186_s8 = scalar_lea.sflag [#allocation3], %s159_s25 }
   0xf   : > { %s8040_s9 = scalar_lea.hbm %s8177_s30, 65536  ;;  %s8045_s12 = scalar_lea.hbm %s14437_s3, 131072 }
  0x10   : > { %p8041_p10 = scmp.ne.s32.totalorder %s8177_s30, %s8040_s9  ;;  %p8042_p11 = pneg %p8181_p8 }
  0x11   : > { %p8046_p0 = scmp.lt.s32.totalorder %s8177_s30, %s14437_s3  ;;  %p8047_p1 = scmp.lt.s32.totalorder %s8045_s12, %s8040_s9 }
  0x12   : > { %p8043_p12 = pnand %p8042_p11, %p8041_p10 }
  0x13   : > { %p8048_p2 = por %p8047_p1, %p8046_p0 }
  0x14   : > { %p8044_p13 = pneg %p8043_p12 }
  0x16   : > { %p8049_p3 = pnand %p8048_p2, %p8044_p13 }
  0x18   : > { %8052 = shalt.err (!%p8049_p3)
}
  0x19   : > { %s8053_s15 = scalar_lea.vmem %s8179_s6, 65536  ;;  %s8104_s21 = smov [#allocation2]  }
  0x1a   : > { %p8054_p4 = scmp.ne.s32.totalorder %s8179_s6, %s8053_s15  ;;  %s8058_s22 = sshll.u32 %s8104_s21, 4  ;;  %s8059_s22 = int_to_ptr.vmem [resolvable:$false] %s8058_s22 }
  0x1b   : > { %s8060_s25 = scalar_lea.vmem %s8059_s22, 131072  ;;  %p8061_p10 = scmp.lt.s32.totalorder %s8179_s6, %s8059_s22 }
  0x1c   : > { %p8056_p5 = pnand %p8054_p4, %p8042_p11  ;;  %p8062_p12 = scmp.lt.s32.totalorder %s8060_s25, %s8053_s15 }
  0x1e   : > { %p8057_p6 = pneg %p8056_p5  ;;  %p8063_p9 = por %p8062_p12, %p8061_p10 }
  0x20   : > { %p8064_p7 = pnand %p8063_p9, %p8057_p6 }
  0x22   : > { %8067 = shalt.err (!%p8064_p7)
}
  0x23   : > { %s8105_s26 = smov 1024   ;;  %s8106_s27 = smov 64  }
  0x24   : > { %7489 = dma.hbm_to_vmem [thread:$0]  (!%p8181_p8), %s8177_s30, 65536, %s8179_s6, %s8186_s8, %s8105_s26, %s8105_s26, %s8106_s27  }
  0x25   : > { %p179_p11 = scmp.lt.s32.totalorder %s8102_s18, 3  ;;  %p14721_p13 = scmp.ge.s32.totalorder %s8102_s18, 1 }
  0x27   : > { %p180_p0 = pnand %p14721_p13, %p179_p11 }
  0x29   : > { %183 = sbr.rel (%p180_p0) target bundleno = 1684 (0x694), region = 36 }
  0x2e   : > { %s185_s28 = sand.u32 1, %s8094_s16   ;;  %p14722_p7 = scmp.ne.s32.totalorder %s14719_s24, 0 }
  0x2f   : > { %s7475_s29 = sshll.u32 %s185_s28, 12  ;;  %s186_s5 = scalar_lea.sflag [#allocation3], %s185_s28 }
  0x30   : > { %s8211_s9 = scalar_lea.vmem [#allocation2], %s7475_s29 }
  0x31   : > { %8085 = dma.done.wait (%p14722_p7), %s186_s5, 65536  }
  0x32   : > { %8087 = vsyncadd (%p14722_p7), %s186_s5, 4294901760  ;;  %vm479_vm0 = vcmask 556032   ;;  %v227_v0 = vld [vmem:[%s14434_s0 + $0x20] sm:$0xff]  ;;  %v228_v1 = vld [vmem:[%s14434_s0 + $0x28] sm:$0xff]  ;;  %s7476_s28 = sshll.u32 %s7466_s19, 6 }
  0x33   : > { %v223_v2 = vld [vmem:[%s14434_s0] sm:$0xff]  ;;  %v488_v3 = vsel %vm479_vm0, %v228_v1, 0.0  ;;  %v224_v4 = vld [vmem:[%s14434_s0 + $0x8] sm:$0xff]  ;;  %v229_v5 = vld [vmem:[%s14434_s0 + $0x30] sm:$0xff]  ;;  %p217_p8 = scmp.lt.s32.totalorder %s7476_s28, 127 }
  0x34   : > { %v230_v6 = vld [vmem:[%s14434_s0 + $0x38] sm:$0xff]  ;;  %v489_v7 = vadd.f32 %v488_v3, %v227_v0  ;;  %v480_v8 = vsel %vm479_vm0, %v224_v4, 0.0  ;;  %v225_v10 = vld [vmem:[%s14434_s0 + $0x10] sm:$0xff]  ;;  %v232_v15 = vld [vmem:[%s14434_s0 + $0x48] sm:$0xff] }
  0x35   : > { %v492_v9 = vsel %vm479_vm0, %v230_v6, 0.0  ;;  %v226_v11 = vld [vmem:[%s14434_s0 + $0x18] sm:$0xff]  ;;  %v481_v12 = vadd.f32 %v480_v8, %v223_v2  ;;  %v233_v18 = vld [vmem:[%s14434_s0 + $0x50] sm:$0xff]  ;;  %v231_v20 = vld [vmem:[%s14434_s0 + $0x40] sm:$0xff]  ;;  %v496_v21 = vsel %vm479_vm0, %v232_v15, 0.0  ;;  %s15618_s28 = smov (!%p217_p8, %s7476_s28), 127 }
  0x36   : > { %v484_v13 = vsel %vm479_vm0, %v226_v11, 0.0  ;;  %v234_v14 = vld [vmem:[%s14434_s0 + $0x58] sm:$0xff]  ;;  %490 = vadd.xlane.f32.xlu1 %v489_v7  ;;  %v493_v16 = vadd.f32 %v492_v9, %v229_v5  ;;  %v236_v23 = vld [vmem:[%s14434_s0 + $0x68] sm:$0xff]  ;;  %v497_v25 = vadd.f32 %v496_v21, %v231_v20  ;;  %v237_v26 = vld [vmem:[%s14434_s0 + $0x70] sm:$0xff]  ;;  %s7483_s18 = sshll.u32 %s15618_s28, 4 }
  0x37   : > { %482 = vadd.xlane.f32.xlu0 %v481_v12  ;;  %v485_v17 = vadd.f32 %v484_v13, %v225_v10  ;;  %v500_v19 = vsel %vm479_vm0, %v234_v14, 0.0  ;;  %v238_v22 = vld [vmem:[%s14434_s0 + $0x78] sm:$0xff]  ;;  %v235_v28 = vld [vmem:[%s14434_s0 + $0x60] sm:$0xff]  ;;  %v504_v29 = vsel %vm479_vm0, %v236_v23, 0.0  ;;  %v240_v31 = vld [vmem:[%s14434_s0 + $0x88] sm:$0xff]  ;;  %s14046_s5 = scalar_lea.vmem %s14438_s4, %s7483_s18 }
  0x38   : > { %v501_v24 = vadd.f32 %v500_v19, %v233_v18  ;;  %v508_v27 = vsel %vm479_vm0, %v238_v22, 0.0  ;;  %v242_v30 = vld [vmem:[%s14434_s0 + $0x98] sm:$0xff]  ;;  %v505_v33 = vadd.f32 %v504_v29, %v235_v28  ;;  %v241_v34 = vld [vmem:[%s14434_s0 + $0x90] sm:$0xff]  ;;  %v239_v36 = vld [vmem:[%s14434_s0 + $0x80] sm:$0xff]  ;;  %v512_v37 = vsel %vm479_vm0, %v240_v31, 0.0 }
  0x39   : > { %v509_v32 = vadd.f32 %v508_v27, %v237_v26  ;;  %v516_v35 = vsel %vm479_vm0, %v242_v30, 0.0  ;;  %v246_v38 = vld [vmem:[%s14434_s0 + $0xb8] sm:$0xff]  ;;  %v244_v39 = vld [vmem:[%s14434_s0 + $0xa8] sm:$0xff]  ;;  %v513_v41 = vadd.f32 %v512_v37, %v239_v36  ;;  %v245_v42 = vld [vmem:[%s14434_s0 + $0xb0] sm:$0xff] }
  0x3a   : > { %494 = vadd.xlane.f32.xlu1 %v493_v16  ;;  %v517_v40 = vadd.f32 %v516_v35, %v241_v34  ;;  %v524_v43 = vsel %vm479_vm0, %v246_v38, 0.0  ;;  %v243_v44 = vld [vmem:[%s14434_s0 + $0xa0] sm:$0xff]  ;;  %v520_v45 = vsel %vm479_vm0, %v244_v39, 0.0  ;;  %v250_v46 = vld [vmem:[%s14434_s0 + $0xd8] sm:$0xff]  ;;  %v248_v47 = vld [vmem:[%s14434_s0 + $0xc8] sm:$0xff] }
  0x3b   : > { %486 = vadd.xlane.f32.xlu0 %v485_v17  ;;  %v525_v48 = vadd.f32 %v524_v43, %v245_v42  ;;  %v521_v49 = vadd.f32 %v520_v45, %v243_v44  ;;  %v249_v50 = vld [vmem:[%s14434_s0 + $0xd0] sm:$0xff]  ;;  %v532_v51 = vsel %vm479_vm0, %v250_v46, 0.0  ;;  %v247_v52 = vld [vmem:[%s14434_s0 + $0xc0] sm:$0xff]  ;;  %v528_v53 = vsel %vm479_vm0, %v248_v47, 0.0  ;;  %v254_v54 = vld [vmem:[%s14434_s0 + $0xf8] sm:$0xff] }
  0x3c   : > { %v252_v55 = vld [vmem:[%s14434_s0 + $0xe8] sm:$0xff]  ;;  %v533_v56 = vadd.f32 %v532_v51, %v249_v50  ;;  %v529_v57 = vadd.f32 %v528_v53, %v247_v52  ;;  %v253_v58 = vld [vmem:[%s14434_s0 + $0xf0] sm:$0xff]  ;;  %v540_v59 = vsel %vm479_vm0, %v254_v54, 0.0  ;;  %v251_v60 = vld [vmem:[%s14434_s0 + $0xe0] sm:$0xff] }
  0x3d   : > { %v536_v61 = vsel %vm479_vm0, %v252_v55, 0.0  ;;  %v258_v62 = vld [vmem:[%s14434_s0 + $0x118] sm:$0xff]  ;;  %v256_v63 = vld [vmem:[%s14434_s0 + $0x108] sm:$0xff]  ;;  %v541_v0 = vadd.f32 %v540_v59, %v253_v58  ;;  %v257_v2 = vld [vmem:[%s14434_s0 + $0x110] sm:$0xff] }
  0x3e   : > { %502 = vadd.xlane.f32.xlu1 %v501_v24  ;;  %v537_v1 = vadd.f32 %v536_v61, %v251_v60  ;;  %v548_v3 = vsel %vm479_vm0, %v258_v62, 0.0  ;;  %v255_v4 = vld [vmem:[%s14434_s0 + $0x100] sm:$0xff]  ;;  %v544_v5 = vsel %vm479_vm0, %v256_v63, 0.0  ;;  %v262_v6 = vld [vmem:[%s14434_s0 + $0x138] sm:$0xff]  ;;  %v260_v7 = vld [vmem:[%s14434_s0 + $0x128] sm:$0xff] }
  0x3f   : > { %498 = vadd.xlane.f32.xlu0 %v497_v25  ;;  %v549_v8 = vadd.f32 %v548_v3, %v257_v2  ;;  %v545_v9 = vadd.f32 %v544_v5, %v255_v4  ;;  %v261_v10 = vld [vmem:[%s14434_s0 + $0x130] sm:$0xff]  ;;  %v556_v11 = vsel %vm479_vm0, %v262_v6, 0.0  ;;  %v259_v12 = vld [vmem:[%s14434_s0 + $0x120] sm:$0xff]  ;;  %v552_v13 = vsel %vm479_vm0, %v260_v7, 0.0  ;;  %v266_v14 = vld [vmem:[%s14434_s0 + $0x158] sm:$0xff] }
  0x40   : > { %v264_v15 = vld [vmem:[%s14434_s0 + $0x148] sm:$0xff]  ;;  %v557_v16 = vadd.f32 %v556_v11, %v261_v10  ;;  %v553_v17 = vadd.f32 %v552_v13, %v259_v12  ;;  %v265_v18 = vld [vmem:[%s14434_s0 + $0x150] sm:$0xff]  ;;  %v564_v19 = vsel %vm479_vm0, %v266_v14, 0.0  ;;  %v263_v20 = vld [vmem:[%s14434_s0 + $0x140] sm:$0xff] }
  0x41   : > { %v560_v21 = vsel %vm479_vm0, %v264_v15, 0.0  ;;  %v270_v22 = vld [vmem:[%s14434_s0 + $0x178] sm:$0xff]  ;;  %v268_v23 = vld [vmem:[%s14434_s0 + $0x168] sm:$0xff]  ;;  %v565_v24 = vadd.f32 %v564_v19, %v265_v18  ;;  %v269_v26 = vld [vmem:[%s14434_s0 + $0x170] sm:$0xff] }
  0x42   : > { %510 = vadd.xlane.f32.xlu1 %v509_v32  ;;  %v561_v25 = vadd.f32 %v560_v21, %v263_v20  ;;  %v572_v27 = vsel %vm479_vm0, %v270_v22, 0.0  ;;  %v267_v28 = vld [vmem:[%s14434_s0 + $0x160] sm:$0xff]  ;;  %v568_v29 = vsel %vm479_vm0, %v268_v23, 0.0  ;;  %v274_v30 = vld [vmem:[%s14434_s0 + $0x198] sm:$0xff]  ;;  %v272_v31 = vld [vmem:[%s14434_s0 + $0x188] sm:$0xff] }
  0x43   : > { %506 = vadd.xlane.f32.xlu0 %v505_v33  ;;  %v573_v32 = vadd.f32 %v572_v27, %v269_v26  ;;  %v569_v33 = vadd.f32 %v568_v29, %v267_v28  ;;  %v273_v34 = vld [vmem:[%s14434_s0 + $0x190] sm:$0xff]  ;;  %v580_v35 = vsel %vm479_vm0, %v274_v30, 0.0  ;;  %v271_v36 = vld [vmem:[%s14434_s0 + $0x180] sm:$0xff]  ;;  %v576_v37 = vsel %vm479_vm0, %v272_v31, 0.0  ;;  %v278_v38 = vld [vmem:[%s14434_s0 + $0x1b8] sm:$0xff] }
  0x44   : > { %v276_v39 = vld [vmem:[%s14434_s0 + $0x1a8] sm:$0xff]  ;;  %v277_v42 = vld [vmem:[%s14434_s0 + $0x1b0] sm:$0xff]  ;;  %v588_v43 = vsel %vm479_vm0, %v278_v38, 0.0  ;;  %v275_v44 = vld [vmem:[%s14434_s0 + $0x1a0] sm:$0xff] }
  0x45   : > { %v584_v45 = vsel %vm479_vm0, %v276_v39, 0.0  ;;  %v282_v46 = vld [vmem:[%s14434_s0 + $0x1d8] sm:$0xff]  ;;  %v280_v47 = vld [vmem:[%s14434_s0 + $0x1c8] sm:$0xff]  ;;  %v281_v50 = vld [vmem:[%s14434_s0 + $0x1d0] sm:$0xff] }
  0x46   : > { %518 = vadd.xlane.f32.xlu1 %v517_v40  ;;  %v581_v40 = vadd.f32 %v580_v35, %v273_v34  ;;  %v596_v51 = vsel %vm479_vm0, %v282_v46, 0.0  ;;  %v279_v52 = vld [vmem:[%s14434_s0 + $0x1c0] sm:$0xff]  ;;  %v592_v53 = vsel %vm479_vm0, %v280_v47, 0.0  ;;  %v286_v54 = vld [vmem:[%s14434_s0 + $0x1f8] sm:$0xff]  ;;  %v284_v55 = vld [vmem:[%s14434_s0 + $0x1e8] sm:$0xff] }
  0x47   : > { %514 = vadd.xlane.f32.xlu0 %v513_v41  ;;  %v577_v41 = vadd.f32 %v576_v37, %v271_v36  ;;  %v285_v58 = vld [vmem:[%s14434_s0 + $0x1f0] sm:$0xff]  ;;  %v604_v59 = vsel %vm479_vm0, %v286_v54, 0.0  ;;  %v283_v60 = vld [vmem:[%s14434_s0 + $0x1e0] sm:$0xff]  ;;  %v600_v61 = vsel %vm479_vm0, %v284_v55, 0.0  ;;  %v290_v62 = vld [vmem:[%s14434_s0 + $0x218] sm:$0xff] }
  0x48   : > { %v288_v63 = vld [vmem:[%s14434_s0 + $0x208] sm:$0xff]  ;;  %v289_v2 = vld [vmem:[%s14434_s0 + $0x210] sm:$0xff]  ;;  %v612_v3 = vsel %vm479_vm0, %v290_v62, 0.0  ;;  %v287_v4 = vld [vmem:[%s14434_s0 + $0x200] sm:$0xff] }
  0x49   : > { %v608_v5 = vsel %vm479_vm0, %v288_v63, 0.0  ;;  %v294_v6 = vld [vmem:[%s14434_s0 + $0x238] sm:$0xff]  ;;  %v292_v7 = vld [vmem:[%s14434_s0 + $0x228] sm:$0xff]  ;;  %v293_v10 = vld [vmem:[%s14434_s0 + $0x230] sm:$0xff] }
  0x4a   : > { %526 = vadd.xlane.f32.xlu1 %v525_v48  ;;  %v589_v48 = vadd.f32 %v588_v43, %v277_v42  ;;  %v620_v11 = vsel %vm479_vm0, %v294_v6, 0.0  ;;  %v291_v12 = vld [vmem:[%s14434_s0 + $0x220] sm:$0xff]  ;;  %v616_v13 = vsel %vm479_vm0, %v292_v7, 0.0  ;;  %v298_v14 = vld [vmem:[%s14434_s0 + $0x258] sm:$0xff]  ;;  %v296_v15 = vld [vmem:[%s14434_s0 + $0x248] sm:$0xff] }
  0x4b   : > { %522 = vadd.xlane.f32.xlu0 %v521_v49  ;;  %v585_v49 = vadd.f32 %v584_v45, %v275_v44  ;;  %v297_v18 = vld [vmem:[%s14434_s0 + $0x250] sm:$0xff]  ;;  %v628_v19 = vsel %vm479_vm0, %v298_v14, 0.0  ;;  %v295_v20 = vld [vmem:[%s14434_s0 + $0x240] sm:$0xff]  ;;  %v624_v21 = vsel %vm479_vm0, %v296_v15, 0.0  ;;  %v302_v22 = vld [vmem:[%s14434_s0 + $0x278] sm:$0xff] }
  0x4c   : > { %v300_v23 = vld [vmem:[%s14434_s0 + $0x268] sm:$0xff]  ;;  %v301_v26 = vld [vmem:[%s14434_s0 + $0x270] sm:$0xff]  ;;  %v636_v27 = vsel %vm479_vm0, %v302_v22, 0.0  ;;  %v299_v28 = vld [vmem:[%s14434_s0 + $0x260] sm:$0xff] }
  0x4d   : > { %v632_v29 = vsel %vm479_vm0, %v300_v23, 0.0  ;;  %v306_v30 = vld [vmem:[%s14434_s0 + $0x298] sm:$0xff]  ;;  %v304_v31 = vld [vmem:[%s14434_s0 + $0x288] sm:$0xff]  ;;  %v305_v34 = vld [vmem:[%s14434_s0 + $0x290] sm:$0xff] }
  0x4e   : > { %534 = vadd.xlane.f32.xlu1 %v533_v56  ;;  %v597_v56 = vadd.f32 %v596_v51, %v281_v50  ;;  %v644_v35 = vsel %vm479_vm0, %v306_v30, 0.0  ;;  %v303_v36 = vld [vmem:[%s14434_s0 + $0x280] sm:$0xff]  ;;  %v640_v37 = vsel %vm479_vm0, %v304_v31, 0.0  ;;  %v310_v38 = vld [vmem:[%s14434_s0 + $0x2b8] sm:$0xff]  ;;  %v308_v39 = vld [vmem:[%s14434_s0 + $0x2a8] sm:$0xff] }
  0x4f   : > { %530 = vadd.xlane.f32.xlu0 %v529_v57  ;;  %v593_v57 = vadd.f32 %v592_v53, %v279_v52  ;;  %v309_v42 = vld [vmem:[%s14434_s0 + $0x2b0] sm:$0xff]  ;;  %v652_v43 = vsel %vm479_vm0, %v310_v38, 0.0  ;;  %v307_v44 = vld [vmem:[%s14434_s0 + $0x2a0] sm:$0xff]  ;;  %v648_v45 = vsel %vm479_vm0, %v308_v39, 0.0  ;;  %v314_v46 = vld [vmem:[%s14434_s0 + $0x2d8] sm:$0xff] }
  0x50   : > { %v312_v47 = vld [vmem:[%s14434_s0 + $0x2c8] sm:$0xff]  ;;  %v313_v50 = vld [vmem:[%s14434_s0 + $0x2d0] sm:$0xff]  ;;  %v660_v51 = vsel %vm479_vm0, %v314_v46, 0.0  ;;  %v311_v52 = vld [vmem:[%s14434_s0 + $0x2c0] sm:$0xff] }
  0x51   : > { %v656_v53 = vsel %vm479_vm0, %v312_v47, 0.0  ;;  %v318_v54 = vld [vmem:[%s14434_s0 + $0x2f8] sm:$0xff]  ;;  %v316_v55 = vld [vmem:[%s14434_s0 + $0x2e8] sm:$0xff] }
  0x52   : > { %542 = vadd.xlane.f32.xlu1 %v541_v0  ;;  %v605_v0 = vadd.f32 %v604_v59, %v285_v58  ;;  %v317_v58 = vld [vmem:[%s14434_s0 + $0x2f0] sm:$0xff]  ;;  %v668_v59 = vsel %vm479_vm0, %v318_v54, 0.0  ;;  %v322_v62 = vld [vmem:[%s14434_s0 + $0x318] sm:$0xff]  ;;  %v320_v63 = vld [vmem:[%s14434_s0 + $0x308] sm:$0xff] }
  0x53   : > { %538 = vadd.xlane.f32.xlu0 %v537_v1  ;;  %v601_v1 = vadd.f32 %v600_v61, %v283_v60  ;;  %v315_v60 = vld [vmem:[%s14434_s0 + $0x2e0] sm:$0xff]  ;;  %v664_v61 = vsel %vm479_vm0, %v316_v55, 0.0  ;;  %v326_v6 = vld [vmem:[%s14434_s0 + $0x338] sm:$0xff]  ;;  %v324_v7 = vld [vmem:[%s14434_s0 + $0x328] sm:$0xff] }
  0x54   : > { %v330_v14 = vld [vmem:[%s14434_s0 + $0x358] sm:$0xff]  ;;  %v328_v15 = vld [vmem:[%s14434_s0 + $0x348] sm:$0xff] }
  0x55   : > { %v334_v22 = vld [vmem:[%s14434_s0 + $0x378] sm:$0xff]  ;;  %v332_v23 = vld [vmem:[%s14434_s0 + $0x368] sm:$0xff] }
  0x56   : > { %550 = vadd.xlane.f32.xlu1 %v549_v8  ;;  %v613_v8 = vadd.f32 %v612_v3, %v289_v2  ;;  %v321_v2 = vld [vmem:[%s14434_s0 + $0x310] sm:$0xff]  ;;  %v676_v3 = vsel %vm479_vm0, %v322_v62, 0.0  ;;  %v338_v30 = vld [vmem:[%s14434_s0 + $0x398] sm:$0xff]  ;;  %v336_v31 = vld [vmem:[%s14434_s0 + $0x388] sm:$0xff] }
  0x57   : > { %546 = vadd.xlane.f32.xlu0 %v545_v9  ;;  %v609_v9 = vadd.f32 %v608_v5, %v287_v4  ;;  %v319_v4 = vld [vmem:[%s14434_s0 + $0x300] sm:$0xff]  ;;  %v672_v5 = vsel %vm479_vm0, %v320_v63, 0.0  ;;  %v342_v38 = vld [vmem:[%s14434_s0 + $0x3b8] sm:$0xff]  ;;  %v340_v39 = vld [vmem:[%s14434_s0 + $0x3a8] sm:$0xff] }
  0x58   : > { %v346_v46 = vld [vmem:[%s14434_s0 + $0x3d8] sm:$0xff]  ;;  %v344_v47 = vld [vmem:[%s14434_s0 + $0x3c8] sm:$0xff] }
  0x59   : > { %v350_v54 = vld [vmem:[%s14434_s0 + $0x3f8] sm:$0xff]  ;;  %v348_v55 = vld [vmem:[%s14434_s0 + $0x3e8] sm:$0xff] }
  0x5a   : > { %558 = vadd.xlane.f32.xlu1 %v557_v16  ;;  %v621_v16 = vadd.f32 %v620_v11, %v293_v10  ;;  %v325_v10 = vld [vmem:[%s14434_s0 + $0x330] sm:$0xff]  ;;  %v684_v11 = vsel %vm479_vm0, %v326_v6, 0.0  ;;  %v354_v62 = vld [vmem:[%s14434_s0 + $0x418] sm:$0xff]  ;;  %v352_v63 = vld [vmem:[%s14434_s0 + $0x408] sm:$0xff] }
  0x5b   : > { %554 = vadd.xlane.f32.xlu0 %v553_v17  ;;  %v617_v17 = vadd.f32 %v616_v13, %v291_v12  ;;  %v323_v12 = vld [vmem:[%s14434_s0 + $0x320] sm:$0xff]  ;;  %v680_v13 = vsel %vm479_vm0, %v324_v7, 0.0  ;;  %v358_v6 = vld [vmem:[%s14434_s0 + $0x438] sm:$0xff]  ;;  %v356_v7 = vld [vmem:[%s14434_s0 + $0x428] sm:$0xff] }
  0x5e   : > { %566 = vadd.xlane.f32.xlu1 %v565_v24  ;;  %v629_v24 = vadd.f32 %v628_v19, %v297_v18  ;;  %v329_v18 = vld [vmem:[%s14434_s0 + $0x350] sm:$0xff]  ;;  %v692_v19 = vsel %vm479_vm0, %v330_v14, 0.0  ;;  %v362_v14 = vld [vmem:[%s14434_s0 + $0x458] sm:$0xff] }
  0x5f   : > { %562 = vadd.xlane.f32.xlu0 %v561_v25  ;;  %v625_v25 = vadd.f32 %v624_v21, %v295_v20  ;;  %v327_v20 = vld [vmem:[%s14434_s0 + $0x340] sm:$0xff]  ;;  %v688_v21 = vsel %vm479_vm0, %v328_v15, 0.0  ;;  %v360_v15 = vld [vmem:[%s14434_s0 + $0x448] sm:$0xff] }
  0x62   : > { %574 = vadd.xlane.f32.xlu1 %v573_v32  ;;  %v637_v32 = vadd.f32 %v636_v27, %v301_v26  ;;  %v333_v26 = vld [vmem:[%s14434_s0 + $0x370] sm:$0xff]  ;;  %v700_v27 = vsel %vm479_vm0, %v334_v22, 0.0  ;;  %v366_v22 = vld [vmem:[%s14434_s0 + $0x478] sm:$0xff] }
  0x63   : > { %570 = vadd.xlane.f32.xlu0 %v569_v33  ;;  %v633_v33 = vadd.f32 %v632_v29, %v299_v28  ;;  %v331_v28 = vld [vmem:[%s14434_s0 + $0x360] sm:$0xff]  ;;  %v696_v29 = vsel %vm479_vm0, %v332_v23, 0.0  ;;  %v364_v23 = vld [vmem:[%s14434_s0 + $0x468] sm:$0xff] }
  0x66   : > { %582 = vadd.xlane.f32.xlu1 %v581_v40  ;;  %v645_v40 = vadd.f32 %v644_v35, %v305_v34  ;;  %v337_v34 = vld [vmem:[%s14434_s0 + $0x390] sm:$0xff]  ;;  %v708_v35 = vsel %vm479_vm0, %v338_v30, 0.0  ;;  %v370_v30 = vld [vmem:[%s14434_s0 + $0x498] sm:$0xff] }
  0x67   : > { %578 = vadd.xlane.f32.xlu0 %v577_v41  ;;  %v641_v41 = vadd.f32 %v640_v37, %v303_v36  ;;  %v335_v36 = vld [vmem:[%s14434_s0 + $0x380] sm:$0xff]  ;;  %v704_v37 = vsel %vm479_vm0, %v336_v31, 0.0  ;;  %v368_v31 = vld [vmem:[%s14434_s0 + $0x488] sm:$0xff] }
  0x6a   : > { %590 = vadd.xlane.f32.xlu1 %v589_v48  ;;  %v653_v48 = vadd.f32 %v652_v43, %v309_v42  ;;  %v341_v42 = vld [vmem:[%s14434_s0 + $0x3b0] sm:$0xff]  ;;  %v716_v43 = vsel %vm479_vm0, %v342_v38, 0.0  ;;  %v367_v38 = vld [vmem:[%s14434_s0 + $0x480] sm:$0xff] }
  0x6b   : > { %586 = vadd.xlane.f32.xlu0 %v585_v49  ;;  %v649_v49 = vadd.f32 %v648_v45, %v307_v44  ;;  %v339_v44 = vld [vmem:[%s14434_s0 + $0x3a0] sm:$0xff]  ;;  %v712_v45 = vsel %vm479_vm0, %v340_v39, 0.0  ;;  %v768_v39 = vsel %vm479_vm0, %v368_v31, 0.0  ;;  %v393_v31 = vld [vmem:[%s14434_s0 + $0x550] sm:$0xff] }
  0x6e   : > { %598 = vadd.xlane.f32.xlu1 %v597_v56  ;;  %v661_v56 = vadd.f32 %v660_v51, %v313_v50  ;;  %v345_v50 = vld [vmem:[%s14434_s0 + $0x3d0] sm:$0xff]  ;;  %v724_v51 = vsel %vm479_vm0, %v346_v46, 0.0 }
  0x6f   : > { %594 = vadd.xlane.f32.xlu0 %v593_v57  ;;  %v657_v57 = vadd.f32 %v656_v53, %v311_v52  ;;  %v343_v52 = vld [vmem:[%s14434_s0 + $0x3c0] sm:$0xff]  ;;  %v720_v53 = vsel %vm479_vm0, %v344_v47, 0.0 }
  0x72   : > { %606 = vadd.xlane.f32.xlu1 %v605_v0  ;;  %v669_v0 = vadd.f32 %v668_v59, %v317_v58  ;;  %v349_v58 = vld [vmem:[%s14434_s0 + $0x3f0] sm:$0xff]  ;;  %v732_v59 = vsel %vm479_vm0, %v350_v54, 0.0 }
  0x73   : > { %602 = vadd.xlane.f32.xlu0 %v601_v1  ;;  %v665_v1 = vadd.f32 %v664_v61, %v315_v60  ;;  %v347_v60 = vld [vmem:[%s14434_s0 + $0x3e0] sm:$0xff]  ;;  %v728_v61 = vsel %vm479_vm0, %v348_v55, 0.0  ;;  %v377_v55 = vld [vmem:[%s14434_s0 + $0x4d0] sm:$0xff] }
  0x76   : > { %614 = vadd.xlane.f32.xlu1 %v613_v8  ;;  %v677_v8 = vadd.f32 %v676_v3, %v321_v2  ;;  %v353_v2 = vld [vmem:[%s14434_s0 + $0x410] sm:$0xff]  ;;  %v740_v3 = vsel %vm479_vm0, %v354_v62, 0.0 }
  0x77   : > { %610 = vadd.xlane.f32.xlu0 %v609_v9  ;;  %v673_v9 = vadd.f32 %v672_v5, %v319_v4  ;;  %v351_v4 = vld [vmem:[%s14434_s0 + $0x400] sm:$0xff]  ;;  %v736_v5 = vsel %vm479_vm0, %v352_v63, 0.0 }
  0x7a   : > { %622 = vadd.xlane.f32.xlu1 %v621_v16  ;;  %v685_v16 = vadd.f32 %v684_v11, %v325_v10  ;;  %v357_v10 = vld [vmem:[%s14434_s0 + $0x430] sm:$0xff]  ;;  %v748_v11 = vsel %vm479_vm0, %v358_v6, 0.0  ;;  %v386_v6 = vld [vmem:[%s14434_s0 + $0x518] sm:$0xff] }
  0x7b   : > { %618 = vadd.xlane.f32.xlu0 %v617_v17  ;;  %v681_v17 = vadd.f32 %v680_v13, %v323_v12  ;;  %v355_v12 = vld [vmem:[%s14434_s0 + $0x420] sm:$0xff]  ;;  %v744_v13 = vsel %vm479_vm0, %v356_v7, 0.0  ;;  %v384_v7 = vld [vmem:[%s14434_s0 + $0x508] sm:$0xff] }
  0x7e   : > { %630 = vadd.xlane.f32.xlu1 %v629_v24  ;;  %v693_v24 = vadd.f32 %v692_v19, %v329_v18  ;;  %v361_v18 = vld [vmem:[%s14434_s0 + $0x450] sm:$0xff]  ;;  %v756_v19 = vsel %vm479_vm0, %v362_v14, 0.0  ;;  %v383_v14 = vld [vmem:[%s14434_s0 + $0x500] sm:$0xff] }
  0x7f   : > { %626 = vadd.xlane.f32.xlu0 %v625_v25  ;;  %v689_v25 = vadd.f32 %v688_v21, %v327_v20  ;;  %v359_v20 = vld [vmem:[%s14434_s0 + $0x440] sm:$0xff]  ;;  %v752_v21 = vsel %vm479_vm0, %v360_v15, 0.0  ;;  %v800_v15 = vsel %vm479_vm0, %v384_v7, 0.0 }
  0x82   : > { %638 = vadd.xlane.f32.xlu1 %v637_v32  ;;  %v701_v32 = vadd.f32 %v700_v27, %v333_v26  ;;  %v365_v26 = vld [vmem:[%s14434_s0 + $0x470] sm:$0xff]  ;;  %v764_v27 = vsel %vm479_vm0, %v366_v22, 0.0 }
  0x83   : > { %634 = vadd.xlane.f32.xlu0 %v633_v33  ;;  %v697_v33 = vadd.f32 %v696_v29, %v331_v28  ;;  %v363_v28 = vld [vmem:[%s14434_s0 + $0x460] sm:$0xff]  ;;  %v760_v29 = vsel %vm479_vm0, %v364_v23, 0.0 }
  0x86   : > { %646 = vadd.xlane.f32.xlu1 %v645_v40  ;;  %v709_v40 = vadd.f32 %v708_v35, %v337_v34  ;;  %v761_v34 = vadd.f32 %v760_v29, %v363_v28  ;;  %v369_v35 = vld [vmem:[%s14434_s0 + $0x490] sm:$0xff] }
  0x87   : > { %642 = vadd.xlane.f32.xlu0 %v641_v41  ;;  %v705_v41 = vadd.f32 %v704_v37, %v335_v36  ;;  %v772_v36 = vsel %vm479_vm0, %v370_v30, 0.0 }
  0x8a   : > { %654 = vadd.xlane.f32.xlu1 %v653_v48  ;;  %v717_v48 = vadd.f32 %v716_v43, %v341_v42  ;;  %v773_v42 = vadd.f32 %v772_v36, %v369_v35  ;;  %v391_v35 = vld [vmem:[%s14434_s0 + $0x540] sm:$0xff] }
  0x8b   : > { %650 = vadd.xlane.f32.xlu0 %v649_v49  ;;  %v713_v49 = vadd.f32 %v712_v45, %v339_v44  ;;  %v769_v44 = vadd.f32 %v768_v39, %v367_v38  ;;  %v373_v45 = vld [vmem:[%s14434_s0 + $0x4b0] sm:$0xff]  ;;  %v398_v38 = vld [vmem:[%s14434_s0 + $0x578] sm:$0xff]  ;;  %v396_v39 = vld [vmem:[%s14434_s0 + $0x568] sm:$0xff] }
  0x8e   : > { %662 = vadd.xlane.f32.xlu1 %v661_v56  ;;  %v725_v56 = vadd.f32 %v724_v51, %v345_v50  ;;  %v378_v50 = vld [vmem:[%s14434_s0 + $0x4d8] sm:$0xff]  ;;  %v376_v51 = vld [vmem:[%s14434_s0 + $0x4c8] sm:$0xff] }
  0x8f   : > { %658 = vadd.xlane.f32.xlu0 %v657_v57  ;;  %v721_v57 = vadd.f32 %v720_v53, %v343_v52 }
  0x92   : > { %670 = vadd.xlane.f32.xlu1 %v669_v0  ;;  %v733_v0 = vadd.f32 %v732_v59, %v349_v58  ;;  %v375_v58 = vld [vmem:[%s14434_s0 + $0x4c0] sm:$0xff]  ;;  %v784_v59 = vsel %vm479_vm0, %v376_v51, 0.0  ;;  %v400_v51 = vld [vmem:[%s14434_s0 + $0x588] sm:$0xff] }
  0x93   : > { %666 = vadd.xlane.f32.xlu0 %v665_v1  ;;  %v729_v1 = vadd.f32 %v728_v61, %v347_v60  ;;  %v382_v60 = vld [vmem:[%s14434_s0 + $0x4f8] sm:$0xff]  ;;  %v380_v61 = vld [vmem:[%s14434_s0 + $0x4e8] sm:$0xff] }
  0x96   : > { %678 = vadd.xlane.f32.xlu1 %v677_v8  ;;  %v741_v8 = vadd.f32 %v740_v3, %v353_v2  ;;  %v796_v2 = vsel %vm479_vm0, %v382_v60, 0.0  ;;  %v399_v60 = vld [vmem:[%s14434_s0 + $0x580] sm:$0xff] }
  0x97   : > { %674 = vadd.xlane.f32.xlu0 %v673_v9  ;;  %v737_v9 = vadd.f32 %v736_v5, %v351_v4  ;;  %v379_v4 = vld [vmem:[%s14434_s0 + $0x4e0] sm:$0xff]  ;;  %v792_v5 = vsel %vm479_vm0, %v380_v61, 0.0  ;;  %v832_v61 = vsel %vm479_vm0, %v400_v51, 0.0 }
  0x9a   : > { %686 = vadd.xlane.f32.xlu1 %v685_v16  ;;  %v749_v16 = vadd.f32 %v748_v11, %v357_v10  ;;  %v793_v10 = vadd.f32 %v792_v5, %v379_v4  ;;  %v385_v11 = vld [vmem:[%s14434_s0 + $0x510] sm:$0xff]  ;;  %v833_v4 = vadd.f32 %v832_v61, %v399_v60 }
  0x9b   : > { %682 = vadd.xlane.f32.xlu0 %v681_v17  ;;  %v745_v17 = vadd.f32 %v744_v13, %v355_v12  ;;  %v804_v12 = vsel %vm479_vm0, %v386_v6, 0.0  ;;  %v405_v5 = vld [vmem:[%s14434_s0 + $0x5b0] sm:$0xff] }
  0x9c   : > { %v421_v61 = vld [vmem:[%s14434_s0 + $0x630] sm:$0xff] }
  0x9e   : > { %694 = vadd.xlane.f32.xlu1 %v693_v24  ;;  %v757_v24 = vadd.f32 %v756_v19, %v361_v18  ;;  %v805_v18 = vadd.f32 %v804_v12, %v385_v11  ;;  %v410_v11 = vld [vmem:[%s14434_s0 + $0x5d8] sm:$0xff]  ;;  %v408_v12 = vld [vmem:[%s14434_s0 + $0x5c8] sm:$0xff] }
  0x9f   : > { %690 = vadd.xlane.f32.xlu0 %v689_v25  ;;  %v753_v25 = vadd.f32 %v752_v21, %v359_v20  ;;  %v801_v20 = vadd.f32 %v800_v15, %v383_v14  ;;  %v389_v21 = vld [vmem:[%s14434_s0 + $0x530] sm:$0xff] }
  0xa2   : > { %702 = vadd.xlane.f32.xlu1 %v701_v32  ;;  %v765_v32 = vadd.f32 %v764_v27, %v365_v26  ;;  %v394_v26 = vld [vmem:[%s14434_s0 + $0x558] sm:$0xff]  ;;  %v392_v27 = vld [vmem:[%s14434_s0 + $0x548] sm:$0xff] }
  0xa3   : > { %698 = vadd.xlane.f32.xlu0 %v697_v33  ;;  %v816_v36 = vsel %vm479_vm0, %v392_v27, 0.0 }
  0xa6   : > { %710 = vadd.xlane.f32.xlu1 %v709_v40  ;;  %v374_v40 = vld [vmem:[%s14434_s0 + $0x4b8] sm:$0xff] }
  0xa7   : > { %706 = vadd.xlane.f32.xlu0 %v705_v41  ;;  %v372_v41 = vld [vmem:[%s14434_s0 + $0x4a8] sm:$0xff]  ;;  %v780_v46 = vsel %vm479_vm0, %v374_v40, 0.0 }
  0xa8   : > { %v781_v52 = vadd.f32 %v780_v46, %v373_v45  ;;  %v828_v45 = vsel %vm479_vm0, %v398_v38, 0.0  ;;  %v418_v38 = vld [vmem:[%s14434_s0 + $0x618] sm:$0xff] }
  0xaa   : > { %718 = vadd.xlane.f32.xlu1 %v717_v48  ;;  %v371_v48 = vld [vmem:[%s14434_s0 + $0x4a0] sm:$0xff] }
  0xab   : > { %714 = vadd.xlane.f32.xlu0 %v713_v49  ;;  %v776_v49 = vsel %vm479_vm0, %v372_v41, 0.0 }
  0xac   : > { %v777_v54 = vadd.f32 %v776_v49, %v371_v48  ;;  %v395_v48 = vld [vmem:[%s14434_s0 + $0x560] sm:$0xff]  ;;  %v824_v49 = vsel %vm479_vm0, %v396_v39, 0.0  ;;  %v416_v39 = vld [vmem:[%s14434_s0 + $0x608] sm:$0xff] }
  0xad   : > { %v864_v51 = vsel %vm479_vm0, %v416_v39, 0.0  ;;  %v432_v39 = vld [vmem:[%s14434_s0 + $0x688] sm:$0xff] }
  0xae   : > { %726 = vadd.xlane.f32.xlu1 %v725_v56  ;;  %v788_v56 = vsel %vm479_vm0, %v378_v50, 0.0  ;;  %v402_v50 = vld [vmem:[%s14434_s0 + $0x598] sm:$0xff] }
  0xaf   : > { %722 = vadd.xlane.f32.xlu0 %v721_v57  ;;  %v789_v62 = vadd.f32 %v788_v56, %v377_v55  ;;  %v825_v55 = vadd.f32 %v824_v49, %v395_v48  ;;  %v401_v56 = vld [vmem:[%s14434_s0 + $0x590] sm:$0xff]  ;;  %v868_v48 = vsel %vm479_vm0, %v418_v38, 0.0  ;;  %v434_v38 = vld [vmem:[%s14434_s0 + $0x698] sm:$0xff] }
  0xb2   : > { %734 = vadd.xlane.f32.xlu1 %v733_v0  ;;  %v785_v0 = vadd.f32 %v784_v59, %v375_v58  ;;  %v836_v58 = vsel %vm479_vm0, %v402_v50, 0.0  ;;  %v415_v50 = vld [vmem:[%s14434_s0 + $0x600] sm:$0xff] }
  0xb3   : > { %730 = vadd.xlane.f32.xlu0 %v729_v1  ;;  %v381_v1 = vld [vmem:[%s14434_s0 + $0x4f0] sm:$0xff]  ;;  %v865_v60 = vadd.f32 %v864_v51, %v415_v50  ;;  %v900_v50 = vsel %vm479_vm0, %v434_v38, 0.0 }
  0xb6   : > { %742 = vadd.xlane.f32.xlu1 %v741_v8  ;;  %v797_v8 = vadd.f32 %v796_v2, %v381_v1  ;;  %v837_v1 = vadd.f32 %v836_v58, %v401_v56 }
  0xb7   : > { %738 = vadd.xlane.f32.xlu0 %v737_v9 }
  0xba   : > { %750 = vadd.xlane.f32.xlu1 %v749_v16  ;;  %v390_v16 = vld [vmem:[%s14434_s0 + $0x538] sm:$0xff] }
  0xbb   : > { %746 = vadd.xlane.f32.xlu0 %v745_v17  ;;  %v388_v17 = vld [vmem:[%s14434_s0 + $0x528] sm:$0xff]  ;;  %v812_v22 = vsel %vm479_vm0, %v390_v16, 0.0 }
  0xbc   : > { %v813_v28 = vadd.f32 %v812_v22, %v389_v21  ;;  %v407_v21 = vld [vmem:[%s14434_s0 + $0x5c0] sm:$0xff]  ;;  %v848_v22 = vsel %vm479_vm0, %v408_v12, 0.0  ;;  %v425_v12 = vld [vmem:[%s14434_s0 + $0x650] sm:$0xff] }
  0xbe   : > { %758 = vadd.xlane.f32.xlu1 %v757_v24  ;;  %v387_v24 = vld [vmem:[%s14434_s0 + $0x520] sm:$0xff] }
  0xbf   : > { %754 = vadd.xlane.f32.xlu0 %v753_v25  ;;  %v8727_v33 = vpop.xlane.xlu1 %490  ;;  %v808_v25 = vsel %vm479_vm0, %v388_v17, 0.0  ;;  %v409_v17 = vld [vmem:[%s14434_s0 + $0x5d0] sm:$0xff] }
  0xc0   : > { %v8733_v37 = vpop.xlane.xlu0 %482  ;;  %v809_v30 = vadd.f32 %v808_v25, %v387_v24  ;;  %v414_v24 = vld [vmem:[%s14434_s0 + $0x5f8] sm:$0xff]  ;;  %v412_v25 = vld [vmem:[%s14434_s0 + $0x5e8] sm:$0xff] }
  0xc2   : > { %766 = vadd.xlane.f32.xlu1 %v765_v32  ;;  %v820_v32 = vsel %vm479_vm0, %v394_v26, 0.0 }
  0xc3   : > { %762 = vadd.xlane.f32.xlu0 %v761_v34  ;;  %v8745_v43 = vpop.xlane.xlu1 %494  ;;  %v821_v40 = vadd.f32 %v820_v32, %v393_v31  ;;  %v860_v31 = vsel %vm479_vm0, %v414_v24, 0.0 }
  0xc4   : > { %v8751_v47 = vpop.xlane.xlu0 %486 }
  0xc6   : > { %774 = vadd.xlane.f32.xlu1 %v773_v42  ;;  %v817_v42 = vadd.f32 %v816_v36, %v391_v35  ;;  %v411_v35 = vld [vmem:[%s14434_s0 + $0x5e0] sm:$0xff]  ;;  %v856_v36 = vsel %vm479_vm0, %v412_v25, 0.0 }
  0xc7   : > { %770 = vadd.xlane.f32.xlu0 %v769_v44  ;;  %v8763_v53 = vpop.xlane.xlu1 %502  ;;  %v397_v44 = vld [vmem:[%s14434_s0 + $0x570] sm:$0xff] }
  0xc8   : > { %v8769_v57 = vpop.xlane.xlu0 %498 }
  0xca   : > { %782 = vadd.xlane.f32.xlu1 %v781_v52  ;;  %v829_v52 = vadd.f32 %v828_v45, %v397_v44  ;;  %v857_v44 = vadd.f32 %v856_v36, %v411_v35  ;;  %v417_v45 = vld [vmem:[%s14434_s0 + $0x610] sm:$0xff]  ;;  %v427_v35 = vld [vmem:[%s14434_s0 + $0x660] sm:$0xff] }
  0xcb   : > { %778 = vadd.xlane.f32.xlu0 %v777_v54  ;;  %v8781_v63 = vpop.xlane.xlu1 %510  ;;  %v869_v56 = vadd.f32 %v868_v48, %v417_v45  ;;  %v433_v48 = vld [vmem:[%s14434_s0 + $0x690] sm:$0xff] }
  0xcc   : > { %v8787_v3 = vpop.xlane.xlu0 %506 }
  0xce   : > { %790 = vadd.xlane.f32.xlu1 %v789_v62  ;;  %v406_v62 = vld [vmem:[%s14434_s0 + $0x5b8] sm:$0xff] }
  0xcf   : > { %786 = vadd.xlane.f32.xlu0 %v785_v0  ;;  %v8799_v9 = vpop.xlane.xlu1 %518  ;;  %v404_v0 = vld [vmem:[%s14434_s0 + $0x5a8] sm:$0xff]  ;;  %v844_v6 = vsel %vm479_vm0, %v406_v62, 0.0 }
  0xd0   : > { %v8805_v13 = vpop.xlane.xlu0 %514  ;;  %v845_v14 = vadd.f32 %v844_v6, %v405_v5  ;;  %v426_v5 = vld [vmem:[%s14434_s0 + $0x658] sm:$0xff]  ;;  %v424_v6 = vld [vmem:[%s14434_s0 + $0x648] sm:$0xff] }
  0xd2   : > { %798 = vadd.xlane.f32.xlu1 %v797_v8  ;;  %v403_v8 = vld [vmem:[%s14434_s0 + $0x5a0] sm:$0xff] }
  0xd3   : > { %794 = vadd.xlane.f32.xlu0 %v793_v10  ;;  %v8817_v19 = vpop.xlane.xlu1 %526  ;;  %v840_v10 = vsel %vm479_vm0, %v404_v0, 0.0 }
  0xd4   : > { %v8823_v23 = vpop.xlane.xlu0 %522  ;;  %v841_v16 = vadd.f32 %v840_v10, %v403_v8 }
  0xd6   : > { %806 = vadd.xlane.f32.xlu1 %v805_v18  ;;  %v852_v18 = vsel %vm479_vm0, %v410_v11, 0.0 }
  0xd7   : > { %802 = vadd.xlane.f32.xlu0 %v801_v20  ;;  %v8835_v29 = vpop.xlane.xlu1 %534  ;;  %v853_v26 = vadd.f32 %v852_v18, %v409_v17  ;;  %v423_v17 = vld [vmem:[%s14434_s0 + $0x640] sm:$0xff]  ;;  %v880_v18 = vsel %vm479_vm0, %v424_v6, 0.0 }
  0xd8   : > { %v8841_v34 = vpop.xlane.xlu0 %530 }
  0xda   : > { %814 = vadd.xlane.f32.xlu1 %v813_v28  ;;  %v849_v28 = vadd.f32 %v848_v22, %v407_v21  ;;  %v430_v21 = vld [vmem:[%s14434_s0 + $0x678] sm:$0xff]  ;;  %v428_v22 = vld [vmem:[%s14434_s0 + $0x668] sm:$0xff] }
  0xdb   : > { %810 = vadd.xlane.f32.xlu0 %v809_v30  ;;  %v8853_v41 = vpop.xlane.xlu1 %542  ;;  %v413_v30 = vld [vmem:[%s14434_s0 + $0x5f0] sm:$0xff]  ;;  %v888_v36 = vsel %vm479_vm0, %v428_v22, 0.0 }
  0xdc   : > { %v8859_v46 = vpop.xlane.xlu0 %538  ;;  %v889_v45 = vadd.f32 %v888_v36, %v427_v35  ;;  %v441_v22 = vld [vmem:[%s14434_s0 + $0x6d0] sm:$0xff]  ;;  %v446_v35 = vld [vmem:[%s14434_s0 + $0x6f8] sm:$0xff]  ;;  %v444_v36 = vld [vmem:[%s14434_s0 + $0x6e8] sm:$0xff] }
  0xde   : > { %822 = vadd.xlane.f32.xlu1 %v821_v40  ;;  %v861_v40 = vadd.f32 %v860_v31, %v413_v30  ;;  %v892_v30 = vsel %vm479_vm0, %v430_v21, 0.0 }
  0xdf   : > { %818 = vadd.xlane.f32.xlu0 %v817_v42  ;;  %v8871_v54 = vpop.xlane.xlu1 %550 }
  0xe0   : > { %v8877_v59 = vpop.xlane.xlu0 %546 }
  0xe2   : > { %830 = vadd.xlane.f32.xlu1 %v829_v52  ;;  %v422_v52 = vld [vmem:[%s14434_s0 + $0x638] sm:$0xff] }
  0xe3   : > { %826 = vadd.xlane.f32.xlu0 %v825_v55  ;;  %v8889_v2 = vpop.xlane.xlu1 %558  ;;  %v420_v55 = vld [vmem:[%s14434_s0 + $0x628] sm:$0xff]  ;;  %v876_v62 = vsel %vm479_vm0, %v422_v52, 0.0  ;;  %v431_v52 = vld [vmem:[%s14434_s0 + $0x680] sm:$0xff] }
  0xe4   : > { %v8895_v7 = vpop.xlane.xlu0 %554  ;;  %v877_v8 = vadd.f32 %v876_v62, %v421_v61  ;;  %v901_v61 = vadd.f32 %v900_v50, %v433_v48  ;;  %v924_v48 = vsel %vm479_vm0, %v446_v35, 0.0 }
  0xe6   : > { %838 = vadd.xlane.f32.xlu1 %v837_v1  ;;  %v419_v1 = vld [vmem:[%s14434_s0 + $0x620] sm:$0xff] }
  0xe7   : > { %834 = vadd.xlane.f32.xlu0 %v833_v4  ;;  %v8907_v15 = vpop.xlane.xlu1 %566  ;;  %v872_v4 = vsel %vm479_vm0, %v420_v55, 0.0  ;;  %v896_v55 = vsel %vm479_vm0, %v432_v39, 0.0 }
  0xe8   : > { %v8913_v20 = vpop.xlane.xlu0 %562  ;;  %v873_v11 = vadd.f32 %v872_v4, %v419_v1  ;;  %v897_v1 = vadd.f32 %v896_v55, %v431_v52  ;;  %v437_v4 = vld [vmem:[%s14434_s0 + $0x6b0] sm:$0xff]  ;;  %v443_v52 = vld [vmem:[%s14434_s0 + $0x6e0] sm:$0xff]  ;;  %v920_v55 = vsel %vm479_vm0, %v444_v36, 0.0 }
  0xea   : > { %846 = vadd.xlane.f32.xlu1 %v845_v14  ;;  %v884_v14 = vsel %vm479_vm0, %v426_v5, 0.0 }
  0xeb   : > { %842 = vadd.xlane.f32.xlu0 %v841_v16  ;;  %v8925_v27 = vpop.xlane.xlu1 %574  ;;  %v885_v24 = vadd.f32 %v884_v14, %v425_v12  ;;  %v442_v12 = vld [vmem:[%s14434_s0 + $0x6d8] sm:$0xff]  ;;  %v440_v14 = vld [vmem:[%s14434_s0 + $0x6c8] sm:$0xff] }
  0xec   : > { %v8931_v32 = vpop.xlane.xlu0 %570 }
  0xee   : > { %854 = vadd.xlane.f32.xlu1 %v853_v26  ;;  %v881_v26 = vadd.f32 %v880_v18, %v423_v17 }
  0xef   : > { %850 = vadd.xlane.f32.xlu0 %v849_v28  ;;  %v8943_v42 = vpop.xlane.xlu1 %582  ;;  %v429_v28 = vld [vmem:[%s14434_s0 + $0x670] sm:$0xff] }
  0xf0   : > { %v8949_v49 = vpop.xlane.xlu0 %578 }
  0xf2   : > { %862 = vadd.xlane.f32.xlu1 %v861_v40  ;;  %v893_v40 = vadd.f32 %v892_v30, %v429_v28  ;;  %v439_v28 = vld [vmem:[%s14434_s0 + $0x6c0] sm:$0xff]  ;;  %v912_v30 = vsel %vm479_vm0, %v440_v14, 0.0 }
  0xf3   : > { %858 = vadd.xlane.f32.xlu0 %v857_v44  ;;  %v8961_v58 = vpop.xlane.xlu1 %590 }
  0xf4   : > { %v8967_v0 = vpop.xlane.xlu0 %586 }
  0xf6   : > { %870 = vadd.xlane.f32.xlu1 %v869_v56  ;;  %v438_v56 = vld [vmem:[%s14434_s0 + $0x6b8] sm:$0xff] }
  0xf7   : > { %866 = vadd.xlane.f32.xlu0 %v865_v60  ;;  %v8979_v10 = vpop.xlane.xlu1 %598  ;;  %v436_v60 = vld [vmem:[%s14434_s0 + $0x6a8] sm:$0xff]  ;;  %v908_v5 = vsel %vm479_vm0, %v438_v56, 0.0  ;;  %v450_v56 = vld [vmem:[%s14434_s0 + $0x718] sm:$0xff] }
  0xf8   : > { %v8985_v16 = vpop.xlane.xlu0 %594  ;;  %v909_v17 = vadd.f32 %v908_v5, %v437_v4  ;;  %v921_v4 = vadd.f32 %v920_v55, %v443_v52  ;;  %v449_v5 = vld [vmem:[%s14434_s0 + $0x710] sm:$0xff] }
  0xfa   : > { %878 = vadd.xlane.f32.xlu1 %v877_v8  ;;  %v435_v8 = vld [vmem:[%s14434_s0 + $0x6a0] sm:$0xff] }
  0xfb   : > { %874 = vadd.xlane.f32.xlu0 %v873_v11  ;;  %v8997_v25 = vpop.xlane.xlu1 %606  ;;  %v904_v11 = vsel %vm479_vm0, %v436_v60, 0.0  ;;  %v448_v60 = vld [vmem:[%s14434_s0 + $0x708] sm:$0xff] }
  0xfc   : > { %v9003_v31 = vpop.xlane.xlu0 %602  ;;  %v905_v21 = vadd.f32 %v904_v11, %v435_v8  ;;  %v932_v8 = vsel %vm479_vm0, %v450_v56, 0.0  ;;  %v928_v14 = vsel %vm479_vm0, %v448_v60, 0.0  ;;  %v457_v60 = vld [vmem:[%s14434_s0 + $0x750] sm:$0xff] }
  0xfe   : > { %886 = vadd.xlane.f32.xlu1 %v885_v24  ;;  %v916_v24 = vsel %vm479_vm0, %v442_v12, 0.0  ;;  %v447_v12 = vld [vmem:[%s14434_s0 + $0x700] sm:$0xff] }
  0xff   : > { %882 = vadd.xlane.f32.xlu0 %v881_v26  ;;  %v9015_v44 = vpop.xlane.xlu1 %614  ;;  %v917_v38 = vadd.f32 %v916_v24, %v441_v22  ;;  %v933_v22 = vadd.f32 %v932_v8, %v449_v5  ;;  %v455_v5 = vld [vmem:[%s14434_s0 + $0x740] sm:$0xff] }
 0x100   : > { %v9021_v51 = vpop.xlane.xlu0 %610 }
 0x102   : > { %894 = vadd.xlane.f32.xlu1 %v893_v40  ;;  %v913_v40 = vadd.f32 %v912_v30, %v439_v28  ;;  %v929_v28 = vadd.f32 %v928_v14, %v447_v12  ;;  %v453_v30 = vld [vmem:[%s14434_s0 + $0x730] sm:$0xff]  ;;  %v462_v12 = vld [vmem:[%s14434_s0 + $0x778] sm:$0xff]  ;;  %v460_v14 = vld [vmem:[%s14434_s0 + $0x768] sm:$0xff] }
 0x103   : > { %890 = vadd.xlane.f32.xlu0 %v889_v45  ;;  %v9033_v62 = vpop.xlane.xlu1 %622  ;;  %v445_v45 = vld [vmem:[%s14434_s0 + $0x6f0] sm:$0xff] }
 0x104   : > { %v9039_v6 = vpop.xlane.xlu0 %618 }
 0x106   : > { %902 = vadd.xlane.f32.xlu1 %v901_v61  ;;  %v925_v61 = vadd.f32 %v924_v48, %v445_v45  ;;  %v458_v45 = vld [vmem:[%s14434_s0 + $0x758] sm:$0xff]  ;;  %v456_v48 = vld [vmem:[%s14434_s0 + $0x748] sm:$0xff] }
 0x107   : > { %898 = vadd.xlane.f32.xlu0 %v897_v1  ;;  %v9051_v18 = vpop.xlane.xlu1 %630  ;;  %v944_v8 = vsel %vm479_vm0, %v456_v48, 0.0  ;;  %v464_v48 = vld [vmem:[%s14434_s0 + $0x788] sm:$0xff] }
 0x108   : > { %v9057_v26 = vpop.xlane.xlu0 %626 }
 0x10a   : > { %910 = vadd.xlane.f32.xlu1 %v909_v17  ;;  %v454_v17 = vld [vmem:[%s14434_s0 + $0x738] sm:$0xff] }
 0x10b   : > { %906 = vadd.xlane.f32.xlu0 %v905_v21  ;;  %v9069_v39 = vpop.xlane.xlu1 %638  ;;  %v452_v21 = vld [vmem:[%s14434_s0 + $0x728] sm:$0xff]  ;;  %v940_v35 = vsel %vm479_vm0, %v454_v17, 0.0 }
 0x10c   : > { %v9075_v50 = vpop.xlane.xlu0 %634  ;;  %v941_v52 = vadd.f32 %v940_v35, %v453_v30  ;;  %v956_v30 = vsel %vm479_vm0, %v462_v12, 0.0  ;;  %v463_v12 = vld [vmem:[%s14434_s0 + $0x780] sm:$0xff] }
 0x10e   : > { %918 = vadd.xlane.f32.xlu1 %v917_v38  ;;  %v451_v38 = vld [vmem:[%s14434_s0 + $0x720] sm:$0xff] }
 0x10f   : > { %914 = vadd.xlane.f32.xlu0 %v913_v40  ;;  %v9087_v1 = vpop.xlane.xlu1 %646  ;;  %v936_v40 = vsel %vm479_vm0, %v452_v21, 0.0 }
 0x110   : > { %v9093_v11 = vpop.xlane.xlu0 %642  ;;  %v937_v56 = vadd.f32 %v936_v40, %v451_v38  ;;  %v459_v38 = vld [vmem:[%s14434_s0 + $0x760] sm:$0xff]  ;;  %v952_v40 = vsel %vm479_vm0, %v460_v14, 0.0  ;;  %v960_v14 = vsel %vm479_vm0, %v464_v48, 0.0 }
 0x112   : > { %926 = vadd.xlane.f32.xlu1 %v925_v61  ;;  %v948_v61 = vsel %vm479_vm0, %v458_v45, 0.0  ;;  %v466_v45 = vld [vmem:[%s14434_s0 + $0x798] sm:$0xff] }
 0x113   : > { %922 = vadd.xlane.f32.xlu0 %v921_v4  ;;  %v9105_v24 = vpop.xlane.xlu1 %654  ;;  %v949_v17 = vadd.f32 %v948_v61, %v457_v60  ;;  %v953_v60 = vadd.f32 %v952_v40, %v459_v38  ;;  %v465_v61 = vld [vmem:[%s14434_s0 + $0x790] sm:$0xff]  ;;  %v961_v38 = vadd.f32 %v960_v14, %v463_v12 }
 0x114   : > { %v9111_v36 = vpop.xlane.xlu0 %650  ;;  %v469_v40 = vld [vmem:[%s14434_s0 + $0x7b0] sm:$0xff] }
 0x116   : > { %934 = vadd.xlane.f32.xlu1 %v933_v22  ;;  %v945_v22 = vadd.f32 %v944_v8, %v455_v5  ;;  %v964_v5 = vsel %vm479_vm0, %v466_v45, 0.0 }
 0x117   : > { %930 = vadd.xlane.f32.xlu0 %v929_v28  ;;  %v9123_v55 = vpop.xlane.xlu1 %662  ;;  %v461_v28 = vld [vmem:[%s14434_s0 + $0x770] sm:$0xff] }
 0x118   : > { %v9129_v4 = vpop.xlane.xlu0 %658 }
 0x11a   : > { %942 = vadd.xlane.f32.xlu1 %v941_v52  ;;  %v957_v52 = vadd.f32 %v956_v30, %v461_v28  ;;  %v965_v28 = vadd.f32 %v964_v5, %v465_v61  ;;  %v472_v61 = vld [vmem:[%s14434_s0 + $0x7c8] sm:$0xff]  ;;  %v993_v5 = vmul.f32 0.0051020407, %v8733_v37  ;;  %v471_v37 = vld [vmem:[%s14434_s0 + $0x7c0] sm:$0xff] }
 0x11b   : > { %938 = vadd.xlane.f32.xlu0 %v937_v56  ;;  %v9141_v21 = vpop.xlane.xlu1 %670 }
 0x11c   : > { %14723 = vst [vmem:[#allocation5_spill] sm:$0xff] %v9141_v21  ;;  %v9147_v35 = vpop.xlane.xlu0 %666 }
 0x11d   : > { %14724 = vst [vmem:[#allocation6_spill] sm:$0xff] %v9147_v35 }
 0x11e   : > { %950 = vadd.xlane.f32.xlu1 %v949_v17  ;;  %v470_v17 = vld [vmem:[%s14434_s0 + $0x7b8] sm:$0xff] }
 0x11f   : > { %946 = vadd.xlane.f32.xlu0 %v945_v22  ;;  %v9159_v56 = vpop.xlane.xlu1 %678  ;;  %v468_v22 = vld [vmem:[%s14434_s0 + $0x7a8] sm:$0xff]  ;;  %v972_v45 = vsel %vm479_vm0, %v470_v17, 0.0 }
 0x120   : > { %14725 = vst [vmem:[#allocation7_spill] sm:$0xff] %v9159_v56  ;;  %v9165_v8 = vpop.xlane.xlu0 %674  ;;  %v968_v56 = vsel %vm479_vm0, %v468_v22, 0.0  ;;  %v973_v12 = vadd.f32 %v972_v45, %v469_v40  ;;  %v473_v22 = vld [vmem:[%s14434_s0 + $0x7d0] sm:$0xff]  ;;  %v995_v40 = vmul.f32 0.0051020407, %v8727_v33  ;;  %v7785_v45 = vld [vmem:[%s14434_s0 + $0x8] sm:$0xff] }
 0x121   : > { %14726 = vst [vmem:[#allocation8_spill] sm:$0xff] %v9165_v8  ;;  %v467_v8 = vld [vmem:[%s14434_s0 + $0x7a0] sm:$0xff]  ;;  %v7786_v33 = vld [vmem:[%s14434_s0 + $0x38] sm:$0xff] }
 0x122   : > { %958 = vadd.xlane.f32.xlu1 %v957_v52  ;;  %v474_v52 = vld [vmem:[%s14434_s0 + $0x7d8] sm:$0xff]  ;;  %v969_v17 = vadd.f32 %v968_v56, %v467_v8 }
 0x123   : > { %954 = vadd.xlane.f32.xlu0 %v953_v60  ;;  %v9177_v30 = vpop.xlane.xlu1 %686  ;;  %v994_v60 = vmul.f32 0.0051020407, %v8751_v47  ;;  %v996_v47 = vmul.f32 0.0051020407, %v8745_v43  ;;  %v478_v56 = vld [vmem:[%s14434_s0 + $0x7f8] sm:$0xff]  ;;  %v476_v43 = vld [vmem:[%s14434_s0 + $0x7e8] sm:$0xff] }
 0x124   : > { %14727 = vst [vmem:[#allocation9_spill] sm:$0xff] %v9177_v30  ;;  %v9183_v48 = vpop.xlane.xlu0 %682  ;;  %v7784_v8 = vld [vmem:[%s14434_s0 + $0x18] sm:$0xff]  ;;  %v988_v35 = vsel %vm479_vm0, %v478_v56, 0.0  ;;  %v7788_v56 = vld [vmem:[%s14434_s0] sm:$0xff] }
 0x125   : > { %14728 = vst [vmem:[#allocation10_spill] sm:$0xff] %v9183_v48  ;;  %v980_v48 = vsel %vm479_vm0, %v474_v52, 0.0  ;;  %v9225_v52 = vsub.f32 %v7785_v45, %v993_v5  ;;  %v9236_v21 = vsub.f32 %v7786_v33, %v996_v47  ;;  %v9253_v45 = vsub.f32 %v7788_v56, %v993_v5  ;;  %v7790_v5 = vld [vmem:[%s14434_s0 + $0x30] sm:$0xff] }
 0x126   : > { %966 = vadd.xlane.f32.xlu1 %v965_v28  ;;  %v976_v28 = vsel %vm479_vm0, %v472_v61, 0.0  ;;  %v981_v61 = vadd.f32 %v980_v48, %v473_v22  ;;  %v7787_v48 = vld [vmem:[%s14434_s0 + $0x10] sm:$0xff]  ;;  %v997_v33 = vmul.f32 0.0051020407, %v8769_v57  ;;  %v9268_v56 = vsub.f32 %v7790_v5, %v996_v47  ;;  %v7792_v47 = vld [vmem:[%s14434_s0 + $0x58] sm:$0xff] }
 0x127   : > { %962 = vadd.xlane.f32.xlu0 %v961_v38  ;;  %v9197_v14 = vpop.xlane.xlu1 %694  ;;  %v9216_v38 = vsub.f32 %v7784_v8, %v994_v60  ;;  %14732 = vst [vmem:[#allocation14_spill] sm:$0xff] %v9225_v52  ;;  %v477_v8 = vld [vmem:[%s14434_s0 + $0x7f0] sm:$0xff]  ;;  %14734 = vst [vmem:[#allocation16_spill] sm:$0xff] %v9236_v21  ;;  %v1000_v5 = vmul.f32 0.0051020407, %v8781_v63  ;;  %v7795_v63 = vld [vmem:[%s14434_s0 + $0x40] sm:$0xff] }
 0x128   : > { %14729 = vst [vmem:[#allocation11_spill] sm:$0xff] %v9197_v14  ;;  %v9204_v30 = vpop.xlane.xlu0 %690  ;;  %v977_v14 = vadd.f32 %v976_v28, %v471_v37  ;;  %v475_v37 = vld [vmem:[%s14434_s0 + $0x7e0] sm:$0xff]  ;;  %v984_v28 = vsel %vm479_vm0, %v476_v43, 0.0  ;;  %14737 = vst [vmem:[#allocation19_spill] sm:$0xff] %v9253_v45  ;;  %v1378_v43 = vmul.f32 %v9225_v52, %v9225_v52 }
 0x129   : > { %14730 = vst [vmem:[#allocation12_spill] sm:$0xff] %v9204_v30  ;;  %14731 = vst [vmem:[#allocation13_spill] sm:$0xff] %v9216_v38  ;;  %v985_v57 = vadd.f32 %v984_v28, %v475_v37  ;;  %v1377_v37 = vmul.f32 %v9253_v45, %v9253_v45  ;;  %v1383_v45 = vmul.f32 %v9268_v56, %v9268_v56 }
 0x12a   : > { %974 = vadd.xlane.f32.xlu1 %v973_v12  ;;  %v9241_v12 = vsub.f32 %v7787_v48, %v994_v60  ;;  %v1380_v60 = vmul.f32 %v9216_v38, %v9216_v38  ;;  %14739 = vst [vmem:[#allocation21_spill] sm:$0xff] %v9268_v56 }
 0x12b   : > { %970 = vadd.xlane.f32.xlu0 %v969_v17  ;;  %v9227_v30 = vpop.xlane.xlu1 %702  ;;  %v998_v17 = vmul.f32 0.0051020407, %v8763_v53  ;;  %v7789_v53 = vld [vmem:[%s14434_s0 + $0x28] sm:$0xff] }
 0x12c   : > { %14733 = vst [vmem:[#allocation15_spill] sm:$0xff] %v9227_v30  ;;  %14735 = vst [vmem:[#allocation17_spill] sm:$0xff] %v9241_v12  ;;  %v9244_v22 = vpop.xlane.xlu0 %698  ;;  %v9261_v48 = vsub.f32 %v7789_v53, %v995_v40  ;;  %v7791_v53 = vld [vmem:[%s14434_s0 + $0x20] sm:$0xff] }
 0x12d   : > { %14736 = vst [vmem:[#allocation18_spill] sm:$0xff] %v9244_v22  ;;  %v989_v22 = vadd.f32 %v988_v35, %v477_v8  ;;  %v9275_v30 = vsub.f32 %v7791_v53, %v995_v40  ;;  %v1379_v35 = vmul.f32 %v9241_v12, %v9241_v12  ;;  %v7793_v40 = vld [vmem:[%s14434_s0 + $0x48] sm:$0xff]  ;;  %v1637_v53 = vsel %vm479_vm0, %v1380_v60, 0.0 }
 0x12e   : > { %14738 = vst [vmem:[#allocation20_spill] sm:$0xff] %v9261_v48  ;;  %982 = vadd.xlane.f32.xlu1 %v981_v61  ;;  %v1384_v61 = vmul.f32 %v9236_v21, %v9236_v21  ;;  %v9293_v28 = vsub.f32 %v7793_v40, %v997_v33  ;;  %v1382_v52 = vmul.f32 %v9261_v48, %v9261_v48  ;;  %v1633_v12 = vsel %vm479_vm0, %v1378_v43, 0.0  ;;  %v7794_v40 = vld [vmem:[%s14434_s0 + $0x50] sm:$0xff] }
 0x12f   : > { %978 = vadd.xlane.f32.xlu0 %v977_v14  ;;  %v9270_v38 = vpop.xlane.xlu1 %710  ;;  %14740 = vst [vmem:[#allocation22_spill] sm:$0xff] %v9275_v30  ;;  %v9284_v14 = vsub.f32 %v7792_v47, %v998_v17  ;;  %v999_v47 = vmul.f32 0.0051020407, %v8787_v3  ;;  %v9306_v21 = vsub.f32 %v7794_v40, %v998_v17  ;;  %v9311_v60 = vsub.f32 %v7795_v63, %v997_v33 }
 0x130   : > { %v9286_v8 = vpop.xlane.xlu0 %706  ;;  %14742 = vst [vmem:[#allocation24_spill] sm:$0xff] %v9293_v28  ;;  %v1002_v43 = vmul.f32 0.0051020407, %v8799_v9  ;;  %v1638_v56 = vadd.f32 %v1637_v53, %v1379_v35  ;;  %v1645_v17 = vsel %vm479_vm0, %v1384_v61, 0.0  ;;  %v1381_v40 = vmul.f32 %v9275_v30, %v9275_v30  ;;  %v7797_v9 = vld [vmem:[%s14434_s0 + $0x68] sm:$0xff] }
 0x131   : > { %14741 = vst [vmem:[#allocation23_spill] sm:$0xff] %v9284_v14  ;;  %14743 = vst [vmem:[#allocation25_spill] sm:$0xff] %v9306_v21  ;;  %v1386_v33 = vmul.f32 %v9293_v28, %v9293_v28  ;;  %v9333_v35 = vsub.f32 %v7797_v9, %v999_v47  ;;  %v1001_v61 = vmul.f32 0.0051020407, %v8805_v13  ;;  %v1641_v53 = vsel %vm479_vm0, %v1382_v52, 0.0  ;;  %v7799_v13 = vld [vmem:[%s14434_s0 + $0x60] sm:$0xff] }
 0x132   : > { %990 = vadd.xlane.f32.xlu1 %v989_v22  ;;  %14744 = vst [vmem:[#allocation26_spill] sm:$0xff] %v9311_v60  ;;  %v1388_v22 = vmul.f32 %v9284_v14, %v9284_v14  ;;  %v1634_v14 = vadd.f32 %v1633_v12, %v1377_v37  ;;  %v1387_v30 = vmul.f32 %v9306_v21, %v9306_v21  ;;  %v7798_v12 = vld [vmem:[%s14434_s0 + $0x70] sm:$0xff]  ;;  %v1004_v21 = vmul.f32 0.0051020407, %v8817_v19 }
 0x133   : > { %986 = vadd.xlane.f32.xlu0 %v985_v57  ;;  %v9313_v3 = vpop.xlane.xlu1 %718  ;;  %v7796_v57 = vld [vmem:[%s14434_s0 + $0x78] sm:$0xff]  ;;  %14746 = vst [vmem:[#allocation28_spill] sm:$0xff] %v9333_v35  ;;  %v1385_v28 = vmul.f32 %v9311_v60, %v9311_v60  ;;  %v9344_v37 = vsub.f32 %v7798_v12, %v1000_v5  ;;  %v1646_v9 = vadd.f32 %v1645_v17, %v1383_v45  ;;  %v1003_v17 = vmul.f32 0.0051020407, %v8823_v23  ;;  %v7802_v23 = vld [vmem:[%s14434_s0 + $0x90] sm:$0xff] }
 0x134   : > { %v9318_v48 = vpop.xlane.xlu0 %714  ;;  %v9328_v63 = vsub.f32 %v7796_v57, %v1000_v5  ;;  %v9351_v52 = vsub.f32 %v7799_v13, %v999_v47  ;;  %v1642_v12 = vadd.f32 %v1641_v53, %v1381_v40  ;;  %v1649_v47 = vsel %vm479_vm0, %v1386_v33, 0.0 }
 0x135   : > { %14747 = vst [vmem:[#allocation29_spill] sm:$0xff] %v9344_v37  ;;  %v1390_v13 = vmul.f32 %v9333_v35, %v9333_v35  ;;  %v9378_v40 = vsub.f32 %v7802_v23, %v1002_v43 }
 0x136   : > { %14745 = vst [vmem:[#allocation27_spill] sm:$0xff] %v9328_v63  ;;  %1639 = vadd.xlane.f32.xlu1 %v1638_v56  ;;  %14748 = vst [vmem:[#allocation30_spill] sm:$0xff] %v9351_v52  ;;  %v7800_v56 = vld [vmem:[%s14434_s0 + $0x98] sm:$0xff]  ;;  %v1392_v45 = vmul.f32 %v9328_v63, %v9328_v63  ;;  %v1389_v63 = vmul.f32 %v9351_v52, %v9351_v52  ;;  %v1006_v52 = vmul.f32 0.0051020407, %v8835_v29  ;;  %v7807_v29 = vld [vmem:[%s14434_s0 + $0xa0] sm:$0xff] }
 0x137   : > { %1635 = vadd.xlane.f32.xlu0 %v1634_v14  ;;  %v9346_v57 = vpop.xlane.xlu1 %726  ;;  %v9356_v60 = vsub.f32 %v7800_v56, %v1002_v43  ;;  %v1653_v14 = vsel %vm479_vm0, %v1388_v22, 0.0  ;;  %v7801_v56 = vld [vmem:[%s14434_s0 + $0x88] sm:$0xff]  ;;  %v1391_v22 = vmul.f32 %v9344_v37, %v9344_v37  ;;  %14751 = vst [vmem:[#allocation33_spill] sm:$0xff] %v9378_v40  ;;  %v1650_v43 = vadd.f32 %v1649_v47, %v1385_v28 }
 0x138   : > { %v9359_v5 = vpop.xlane.xlu0 %722  ;;  %v9371_v19 = vsub.f32 %v7801_v56, %v1001_v61  ;;  %v1654_v53 = vadd.f32 %v1653_v14, %v1387_v30  ;;  %v7805_v14 = vld [vmem:[%s14434_s0 + $0xa8] sm:$0xff]  ;;  %v1005_v28 = vmul.f32 0.0051020407, %v8841_v34  ;;  %v1657_v47 = vsel %vm479_vm0, %v1390_v13, 0.0 }
 0x139   : > { %14749 = vst [vmem:[#allocation31_spill] sm:$0xff] %v9356_v60  ;;  %v1396_v56 = vmul.f32 %v9356_v60, %v9356_v60  ;;  %v9401_v23 = vsub.f32 %v7805_v14, %v1003_v17 }
 0x13a   : > { %14750 = vst [vmem:[#allocation32_spill] sm:$0xff] %v9371_v19  ;;  %1647 = vadd.xlane.f32.xlu1 %v1646_v9  ;;  %v7803_v9 = vld [vmem:[%s14434_s0 + $0xb8] sm:$0xff]  ;;  %v1394_v60 = vmul.f32 %v9371_v19, %v9371_v19 }
 0x13b   : > { %1643 = vadd.xlane.f32.xlu0 %v1642_v12  ;;  %v9380_v33 = vpop.xlane.xlu1 %734  ;;  %v9389_v37 = vsub.f32 %v7803_v9, %v1004_v21  ;;  %v7804_v12 = vld [vmem:[%s14434_s0 + $0x80] sm:$0xff]  ;;  %14754 = vst [vmem:[#allocation36_spill] sm:$0xff] %v9401_v23  ;;  %v1661_v9 = vsel %vm479_vm0, %v1392_v45, 0.0  ;;  %v9419_v45 = vsub.f32 %v7807_v29, %v1003_v17  ;;  %v1398_v17 = vmul.f32 %v9401_v23, %v9401_v23 }
 0x13c   : > { %v9391_v35 = vpop.xlane.xlu0 %730  ;;  %v9396_v30 = vsub.f32 %v7804_v12, %v1001_v61  ;;  %v1395_v61 = vmul.f32 %v9378_v40, %v9378_v40  ;;  %v7806_v12 = vld [vmem:[%s14434_s0 + $0xb0] sm:$0xff]  ;;  %v1662_v40 = vadd.f32 %v1661_v9, %v1391_v22  ;;  %v1665_v9 = vsel %vm479_vm0, %v1394_v60, 0.0 }
 0x13d   : > { %14752 = vst [vmem:[#allocation34_spill] sm:$0xff] %v9389_v37  ;;  %v9414_v14 = vsub.f32 %v7806_v12, %v1004_v21  ;;  %14756 = vst [vmem:[#allocation38_spill] sm:$0xff] %v9419_v45  ;;  %v1400_v13 = vmul.f32 %v9389_v37, %v9389_v37  ;;  %v1669_v21 = vsel %vm479_vm0, %v1396_v56, 0.0  ;;  %v1658_v37 = vadd.f32 %v1657_v47, %v1389_v63  ;;  %v7810_v63 = vld [vmem:[%s14434_s0 + $0xd0] sm:$0xff] }
 0x13e   : > { %14753 = vst [vmem:[#allocation35_spill] sm:$0xff] %v9396_v30  ;;  %1655 = vadd.xlane.f32.xlu1 %v1654_v53  ;;  %v1008_v53 = vmul.f32 0.0051020407, %v8853_v41  ;;  %v1393_v12 = vmul.f32 %v9396_v30, %v9396_v30  ;;  %v7809_v41 = vld [vmem:[%s14434_s0 + $0xc8] sm:$0xff]  ;;  %v1007_v56 = vmul.f32 0.0051020407, %v8859_v46  ;;  %v1397_v23 = vmul.f32 %v9419_v45, %v9419_v45 }
 0x13f   : > { %14755 = vst [vmem:[#allocation37_spill] sm:$0xff] %v9414_v14  ;;  %1651 = vadd.xlane.f32.xlu0 %v1650_v43  ;;  %v9421_v34 = vpop.xlane.xlu1 %742  ;;  %v7808_v43 = vld [vmem:[%s14434_s0 + $0xd8] sm:$0xff]  ;;  %v9441_v22 = vsub.f32 %v7809_v41, %v1005_v28  ;;  %v1399_v30 = vmul.f32 %v9414_v14, %v9414_v14  ;;  %v9452_v47 = vsub.f32 %v7810_v63, %v1006_v52  ;;  %v7811_v46 = vld [vmem:[%s14434_s0 + $0xc0] sm:$0xff]  ;;  %v1010_v14 = vmul.f32 0.0051020407, %v8871_v54 }
 0x140   : > { %v9426_v19 = vpop.xlane.xlu0 %738  ;;  %v9436_v29 = vsub.f32 %v7808_v43, %v1006_v52  ;;  %v1670_v41 = vadd.f32 %v1669_v21, %v1395_v61  ;;  %v9459_v60 = vsub.f32 %v7811_v46, %v1005_v28  ;;  %v1009_v21 = vmul.f32 0.0051020407, %v8877_v59  ;;  %v7814_v59 = vld [vmem:[%s14434_s0 + $0xf0] sm:$0xff] }
 0x141   : > { %14758 = vst [vmem:[#allocation40_spill] sm:$0xff] %v9441_v22  ;;  %14759 = vst [vmem:[#allocation41_spill] sm:$0xff] %v9452_v47  ;;  %v1666_v63 = vadd.f32 %v1665_v9, %v1393_v12  ;;  %v1673_v28 = vsel %vm479_vm0, %v1398_v17, 0.0  ;;  %v1402_v46 = vmul.f32 %v9441_v22, %v9441_v22  ;;  %v9486_v12 = vsub.f32 %v7814_v59, %v1008_v53 }
 0x142   : > { %14757 = vst [vmem:[#allocation39_spill] sm:$0xff] %v9436_v29  ;;  %1663 = vadd.xlane.f32.xlu1 %v1662_v40  ;;  %14760 = vst [vmem:[#allocation42_spill] sm:$0xff] %v9459_v60  ;;  %v7812_v40 = vld [vmem:[%s14434_s0 + $0xf8] sm:$0xff]  ;;  %v1404_v61 = vmul.f32 %v9436_v29, %v9436_v29  ;;  %v1401_v22 = vmul.f32 %v9459_v60, %v9459_v60  ;;  %v1012_v60 = vmul.f32 0.0051020407, %v8889_v2  ;;  %v7819_v2 = vld [vmem:[%s14434_s0 + $0x100] sm:$0xff] }
 0x143   : > { %1659 = vadd.xlane.f32.xlu0 %v1658_v37  ;;  %v9454_v43 = vpop.xlane.xlu1 %750  ;;  %v9464_v45 = vsub.f32 %v7812_v40, %v1008_v53  ;;  %v1677_v37 = vsel %vm479_vm0, %v1400_v13, 0.0  ;;  %v7813_v40 = vld [vmem:[%s14434_s0 + $0xe8] sm:$0xff]  ;;  %v1403_v13 = vmul.f32 %v9452_v47, %v9452_v47  ;;  %14763 = vst [vmem:[#allocation45_spill] sm:$0xff] %v9486_v12  ;;  %v1674_v53 = vadd.f32 %v1673_v28, %v1397_v23 }
 0x144   : > { %v9467_v52 = vpop.xlane.xlu0 %746  ;;  %v9479_v54 = vsub.f32 %v7813_v40, %v1007_v56  ;;  %v1678_v9 = vadd.f32 %v1677_v37, %v1399_v30  ;;  %v7817_v37 = vld [vmem:[%s14434_s0 + $0x108] sm:$0xff]  ;;  %v1011_v23 = vmul.f32 0.0051020407, %v8895_v7  ;;  %v1681_v28 = vsel %vm479_vm0, %v1402_v46, 0.0 }
 0x145   : > { %14761 = vst [vmem:[#allocation43_spill] sm:$0xff] %v9464_v45  ;;  %v1408_v40 = vmul.f32 %v9464_v45, %v9464_v45  ;;  %v9509_v59 = vsub.f32 %v7817_v37, %v1009_v21 }
 0x146   : > { %14762 = vst [vmem:[#allocation44_spill] sm:$0xff] %v9479_v54  ;;  %1671 = vadd.xlane.f32.xlu1 %v1670_v41  ;;  %v7815_v41 = vld [vmem:[%s14434_s0 + $0x118] sm:$0xff]  ;;  %v1406_v45 = vmul.f32 %v9479_v54, %v9479_v54 }
 0x147   : > { %1667 = vadd.xlane.f32.xlu0 %v1666_v63  ;;  %v9488_v17 = vpop.xlane.xlu1 %758  ;;  %v9497_v47 = vsub.f32 %v7815_v41, %v1010_v14  ;;  %v7816_v63 = vld [vmem:[%s14434_s0 + $0xe0] sm:$0xff]  ;;  %14766 = vst [vmem:[#allocation48_spill] sm:$0xff] %v9509_v59  ;;  %v1685_v41 = vsel %vm479_vm0, %v1404_v61, 0.0  ;;  %v9527_v61 = vsub.f32 %v7819_v2, %v1009_v21  ;;  %v1410_v21 = vmul.f32 %v9509_v59, %v9509_v59 }
 0x148   : > { %v9499_v29 = vpop.xlane.xlu0 %754  ;;  %v9504_v30 = vsub.f32 %v7816_v63, %v1007_v56  ;;  %v1407_v56 = vmul.f32 %v9486_v12, %v9486_v12  ;;  %v7818_v63 = vld [vmem:[%s14434_s0 + $0x110] sm:$0xff]  ;;  %v1686_v12 = vadd.f32 %v1685_v41, %v1403_v13  ;;  %v1689_v41 = vsel %vm479_vm0, %v1406_v45, 0.0 }
 0x149   : > { %14764 = vst [vmem:[#allocation46_spill] sm:$0xff] %v9497_v47  ;;  %v9522_v37 = vsub.f32 %v7818_v63, %v1010_v14  ;;  %14768 = vst [vmem:[#allocation50_spill] sm:$0xff] %v9527_v61  ;;  %v1412_v46 = vmul.f32 %v9497_v47, %v9497_v47  ;;  %v1693_v14 = vsel %vm479_vm0, %v1408_v40, 0.0  ;;  %v1682_v47 = vadd.f32 %v1681_v28, %v1401_v22  ;;  %v7822_v22 = vld [vmem:[%s14434_s0 + $0x130] sm:$0xff] }
 0x14a   : > { %14765 = vst [vmem:[#allocation47_spill] sm:$0xff] %v9504_v30  ;;  %1679 = vadd.xlane.f32.xlu1 %v1678_v9  ;;  %v1014_v9 = vmul.f32 0.0051020407, %v8907_v15  ;;  %v1405_v63 = vmul.f32 %v9504_v30, %v9504_v30  ;;  %v7821_v15 = vld [vmem:[%s14434_s0 + $0x128] sm:$0xff]  ;;  %v1013_v40 = vmul.f32 0.0051020407, %v8913_v20  ;;  %v1409_v30 = vmul.f32 %v9527_v61, %v9527_v61 }
 0x14b   : > { %14767 = vst [vmem:[#allocation49_spill] sm:$0xff] %v9522_v37  ;;  %1675 = vadd.xlane.f32.xlu0 %v1674_v53  ;;  %v9529_v7 = vpop.xlane.xlu1 %766  ;;  %v7820_v53 = vld [vmem:[%s14434_s0 + $0x138] sm:$0xff]  ;;  %v9549_v13 = vsub.f32 %v7821_v15, %v1011_v23  ;;  %v1411_v59 = vmul.f32 %v9522_v37, %v9522_v37  ;;  %v9560_v28 = vsub.f32 %v7822_v22, %v1012_v60  ;;  %v7823_v20 = vld [vmem:[%s14434_s0 + $0x120] sm:$0xff]  ;;  %v1016_v37 = vmul.f32 0.0051020407, %v8925_v27 }
 0x14c   : > { %v9534_v54 = vpop.xlane.xlu0 %762  ;;  %v9544_v2 = vsub.f32 %v7820_v53, %v1012_v60  ;;  %v1694_v15 = vadd.f32 %v1693_v14, %v1407_v56  ;;  %v9567_v45 = vsub.f32 %v7823_v20, %v1011_v23  ;;  %v1015_v14 = vmul.f32 0.0051020407, %v8931_v32  ;;  %v7826_v32 = vld [vmem:[%s14434_s0 + $0x150] sm:$0xff] }
 0x14d   : > { %14770 = vst [vmem:[#allocation52_spill] sm:$0xff] %v9549_v13  ;;  %14771 = vst [vmem:[#allocation53_spill] sm:$0xff] %v9560_v28  ;;  %v1690_v22 = vadd.f32 %v1689_v41, %v1405_v63  ;;  %v1697_v23 = vsel %vm479_vm0, %v1410_v21, 0.0  ;;  %v1414_v20 = vmul.f32 %v9549_v13, %v9549_v13  ;;  %v9594_v63 = vsub.f32 %v7826_v32, %v1014_v9 }
 0x14e   : > { %14769 = vst [vmem:[#allocation51_spill] sm:$0xff] %v9544_v2  ;;  %1687 = vadd.xlane.f32.xlu1 %v1686_v12  ;;  %14772 = vst [vmem:[#allocation54_spill] sm:$0xff] %v9567_v45  ;;  %v7824_v12 = vld [vmem:[%s14434_s0 + $0x158] sm:$0xff]  ;;  %v1416_v56 = vmul.f32 %v9544_v2, %v9544_v2  ;;  %v1413_v13 = vmul.f32 %v9567_v45, %v9567_v45  ;;  %v1018_v45 = vmul.f32 0.0051020407, %v8943_v42  ;;  %v7831_v42 = vld [vmem:[%s14434_s0 + $0x160] sm:$0xff] }
 0x14f   : > { %1683 = vadd.xlane.f32.xlu0 %v1682_v47  ;;  %v9562_v53 = vpop.xlane.xlu1 %774  ;;  %v9572_v61 = vsub.f32 %v7824_v12, %v1014_v9  ;;  %v1701_v47 = vsel %vm479_vm0, %v1412_v46, 0.0  ;;  %v7825_v12 = vld [vmem:[%s14434_s0 + $0x148] sm:$0xff]  ;;  %v1415_v46 = vmul.f32 %v9560_v28, %v9560_v28  ;;  %14775 = vst [vmem:[#allocation57_spill] sm:$0xff] %v9594_v63  ;;  %v1698_v9 = vadd.f32 %v1697_v23, %v1409_v30 }
 0x150   : > { %v9575_v60 = vpop.xlane.xlu0 %770  ;;  %v9587_v27 = vsub.f32 %v7825_v12, %v1013_v40  ;;  %v1702_v41 = vadd.f32 %v1701_v47, %v1411_v59  ;;  %v7829_v47 = vld [vmem:[%s14434_s0 + $0x168] sm:$0xff]  ;;  %v1017_v30 = vmul.f32 0.0051020407, %v8949_v49  ;;  %v1705_v23 = vsel %vm479_vm0, %v1414_v20, 0.0 }
 0x151   : > { %14773 = vst [vmem:[#allocation55_spill] sm:$0xff] %v9572_v61  ;;  %v1420_v12 = vmul.f32 %v9572_v61, %v9572_v61  ;;  %v9617_v32 = vsub.f32 %v7829_v47, %v1015_v14 }
 0x152   : > { %14774 = vst [vmem:[#allocation56_spill] sm:$0xff] %v9587_v27  ;;  %1695 = vadd.xlane.f32.xlu1 %v1694_v15  ;;  %v7827_v15 = vld [vmem:[%s14434_s0 + $0x178] sm:$0xff]  ;;  %v1418_v61 = vmul.f32 %v9587_v27, %v9587_v27 }
 0x153   : > { %1691 = vadd.xlane.f32.xlu0 %v1690_v22  ;;  %v9596_v21 = vpop.xlane.xlu1 %782  ;;  %v9605_v2 = vsub.f32 %v7827_v15, %v1016_v37  ;;  %v7828_v22 = vld [vmem:[%s14434_s0 + $0x140] sm:$0xff]  ;;  %14778 = vst [vmem:[#allocation60_spill] sm:$0xff] %v9617_v32  ;;  %v1709_v15 = vsel %vm479_vm0, %v1416_v56, 0.0  ;;  %v9635_v56 = vsub.f32 %v7831_v42, %v1015_v14  ;;  %v1422_v14 = vmul.f32 %v9617_v32, %v9617_v32 }
 0x154   : > { %v9607_v28 = vpop.xlane.xlu0 %778  ;;  %v9612_v59 = vsub.f32 %v7828_v22, %v1013_v40  ;;  %v1419_v40 = vmul.f32 %v9594_v63, %v9594_v63  ;;  %v7830_v22 = vld [vmem:[%s14434_s0 + $0x170] sm:$0xff]  ;;  %v1710_v63 = vadd.f32 %v1709_v15, %v1415_v46  ;;  %v1713_v15 = vsel %vm479_vm0, %v1418_v61, 0.0 }
 0x155   : > { %14776 = vst [vmem:[#allocation58_spill] sm:$0xff] %v9605_v2  ;;  %v9630_v47 = vsub.f32 %v7830_v22, %v1016_v37  ;;  %14780 = vst [vmem:[#allocation62_spill] sm:$0xff] %v9635_v56  ;;  %v1424_v20 = vmul.f32 %v9605_v2, %v9605_v2  ;;  %v1717_v37 = vsel %vm479_vm0, %v1420_v12, 0.0  ;;  %v1706_v2 = vadd.f32 %v1705_v23, %v1413_v13  ;;  %v7834_v13 = vld [vmem:[%s14434_s0 + $0x190] sm:$0xff] }
 0x156   : > { %14777 = vst [vmem:[#allocation59_spill] sm:$0xff] %v9612_v59  ;;  %1703 = vadd.xlane.f32.xlu1 %v1702_v41  ;;  %v1020_v41 = vmul.f32 0.0051020407, %v8961_v58  ;;  %v1417_v22 = vmul.f32 %v9612_v59, %v9612_v59  ;;  %v7833_v58 = vld [vmem:[%s14434_s0 + $0x188] sm:$0xff]  ;;  %v1019_v12 = vmul.f32 0.0051020407, %v8967_v0  ;;  %v1421_v32 = vmul.f32 %v9635_v56, %v9635_v56 }
 0x157   : > { %14779 = vst [vmem:[#allocation61_spill] sm:$0xff] %v9630_v47  ;;  %1699 = vadd.xlane.f32.xlu0 %v1698_v9  ;;  %v9637_v49 = vpop.xlane.xlu1 %790  ;;  %v7832_v9 = vld [vmem:[%s14434_s0 + $0x198] sm:$0xff]  ;;  %v9657_v46 = vsub.f32 %v7833_v58, %v1017_v30  ;;  %v1423_v59 = vmul.f32 %v9630_v47, %v9630_v47  ;;  %v9668_v23 = vsub.f32 %v7834_v13, %v1018_v45  ;;  %v7835_v0 = vld [vmem:[%s14434_s0 + $0x180] sm:$0xff]  ;;  %v1022_v47 = vmul.f32 0.0051020407, %v8979_v10 }
 0x158   : > { %v9642_v27 = vpop.xlane.xlu0 %786  ;;  %v9652_v42 = vsub.f32 %v7832_v9, %v1018_v45  ;;  %v1718_v58 = vadd.f32 %v1717_v37, %v1419_v40  ;;  %v9675_v61 = vsub.f32 %v7835_v0, %v1017_v30  ;;  %v1021_v37 = vmul.f32 0.0051020407, %v8985_v16  ;;  %v7838_v16 = vld [vmem:[%s14434_s0 + $0x1b0] sm:$0xff] }
 0x159   : > { %14782 = vst [vmem:[#allocation64_spill] sm:$0xff] %v9657_v46  ;;  %14783 = vst [vmem:[#allocation65_spill] sm:$0xff] %v9668_v23  ;;  %v1714_v13 = vadd.f32 %v1713_v15, %v1417_v22  ;;  %v1721_v30 = vsel %vm479_vm0, %v1422_v14, 0.0  ;;  %v1426_v0 = vmul.f32 %v9657_v46, %v9657_v46  ;;  %v9702_v22 = vsub.f32 %v7838_v16, %v1020_v41 }
 0x15a   : > { %14781 = vst [vmem:[#allocation63_spill] sm:$0xff] %v9652_v42  ;;  %1711 = vadd.xlane.f32.xlu1 %v1710_v63  ;;  %14784 = vst [vmem:[#allocation66_spill] sm:$0xff] %v9675_v61  ;;  %v7836_v63 = vld [vmem:[%s14434_s0 + $0x1b8] sm:$0xff]  ;;  %v1428_v40 = vmul.f32 %v9652_v42, %v9652_v42  ;;  %v1425_v46 = vmul.f32 %v9675_v61, %v9675_v61  ;;  %v1024_v61 = vmul.f32 0.0051020407, %v8997_v25  ;;  %v7843_v25 = vld [vmem:[%s14434_s0 + $0x1c0] sm:$0xff] }
 0x15b   : > { %1707 = vadd.xlane.f32.xlu0 %v1706_v2  ;;  %v9670_v9 = vpop.xlane.xlu1 %798  ;;  %v9680_v56 = vsub.f32 %v7836_v63, %v1020_v41  ;;  %v1725_v2 = vsel %vm479_vm0, %v1424_v20, 0.0  ;;  %v7837_v63 = vld [vmem:[%s14434_s0 + $0x1a8] sm:$0xff]  ;;  %v1427_v20 = vmul.f32 %v9668_v23, %v9668_v23  ;;  %14787 = vst [vmem:[#allocation69_spill] sm:$0xff] %v9702_v22  ;;  %v1722_v41 = vadd.f32 %v1721_v30, %v1421_v32 }
 0x15c   : > { %v9683_v45 = vpop.xlane.xlu0 %794  ;;  %v9695_v10 = vsub.f32 %v7837_v63, %v1019_v12  ;;  %v1726_v15 = vadd.f32 %v1725_v2, %v1423_v59  ;;  %v7841_v2 = vld [vmem:[%s14434_s0 + $0x1c8] sm:$0xff]  ;;  %v1023_v32 = vmul.f32 0.0051020407, %v9003_v31  ;;  %v1729_v30 = vsel %vm479_vm0, %v1426_v0, 0.0 }
 0x15d   : > { %14785 = vst [vmem:[#allocation67_spill] sm:$0xff] %v9680_v56  ;;  %v1432_v63 = vmul.f32 %v9680_v56, %v9680_v56  ;;  %v9725_v16 = vsub.f32 %v7841_v2, %v1021_v37 }
 0x15e   : > { %14786 = vst [vmem:[#allocation68_spill] sm:$0xff] %v9695_v10  ;;  %1719 = vadd.xlane.f32.xlu1 %v1718_v58  ;;  %v7839_v58 = vld [vmem:[%s14434_s0 + $0x1d8] sm:$0xff]  ;;  %v1430_v56 = vmul.f32 %v9695_v10, %v9695_v10 }
 0x15f   : > { %1715 = vadd.xlane.f32.xlu0 %v1714_v13  ;;  %v9704_v14 = vpop.xlane.xlu1 %806  ;;  %v9713_v42 = vsub.f32 %v7839_v58, %v1022_v47  ;;  %v7840_v13 = vld [vmem:[%s14434_s0 + $0x1a0] sm:$0xff]  ;;  %14790 = vst [vmem:[#allocation72_spill] sm:$0xff] %v9725_v16  ;;  %v1733_v58 = vsel %vm479_vm0, %v1428_v40, 0.0  ;;  %v9743_v40 = vsub.f32 %v7843_v25, %v1021_v37  ;;  %v1434_v37 = vmul.f32 %v9725_v16, %v9725_v16 }
 0x160   : > { %v9715_v23 = vpop.xlane.xlu0 %802  ;;  %v9720_v59 = vsub.f32 %v7840_v13, %v1019_v12  ;;  %v1431_v12 = vmul.f32 %v9702_v22, %v9702_v22  ;;  %v7842_v13 = vld [vmem:[%s14434_s0 + $0x1d0] sm:$0xff]  ;;  %v1734_v22 = vadd.f32 %v1733_v58, %v1427_v20  ;;  %v1737_v58 = vsel %vm479_vm0, %v1430_v56, 0.0 }
 0x161   : > { %14788 = vst [vmem:[#allocation70_spill] sm:$0xff] %v9713_v42  ;;  %v9738_v2 = vsub.f32 %v7842_v13, %v1022_v47  ;;  %14792 = vst [vmem:[#allocation74_spill] sm:$0xff] %v9743_v40  ;;  %v1436_v0 = vmul.f32 %v9713_v42, %v9713_v42  ;;  %v1741_v47 = vsel %vm479_vm0, %v1432_v63, 0.0  ;;  %v1730_v42 = vadd.f32 %v1729_v30, %v1425_v46  ;;  %v7846_v46 = vld [vmem:[%s14434_s0 + $0x1f0] sm:$0xff] }
 0x162   : > { %14789 = vst [vmem:[#allocation71_spill] sm:$0xff] %v9720_v59  ;;  %1727 = vadd.xlane.f32.xlu1 %v1726_v15  ;;  %v1026_v15 = vmul.f32 0.0051020407, %v9015_v44  ;;  %v1429_v13 = vmul.f32 %v9720_v59, %v9720_v59  ;;  %v7845_v44 = vld [vmem:[%s14434_s0 + $0x1e8] sm:$0xff]  ;;  %v1025_v63 = vmul.f32 0.0051020407, %v9021_v51  ;;  %v1433_v16 = vmul.f32 %v9743_v40, %v9743_v40 }
 0x163   : > { %14791 = vst [vmem:[#allocation73_spill] sm:$0xff] %v9738_v2  ;;  %1723 = vadd.xlane.f32.xlu0 %v1722_v41  ;;  %v9745_v31 = vpop.xlane.xlu1 %814  ;;  %v7844_v41 = vld [vmem:[%s14434_s0 + $0x1f8] sm:$0xff]  ;;  %v9765_v20 = vsub.f32 %v7845_v44, %v1023_v32  ;;  %v1435_v59 = vmul.f32 %v9738_v2, %v9738_v2  ;;  %v9776_v30 = vsub.f32 %v7846_v46, %v1024_v61  ;;  %v7847_v51 = vld [vmem:[%s14434_s0 + $0x1e0] sm:$0xff]  ;;  %v1028_v2 = vmul.f32 0.0051020407, %v9033_v62 }
 0x164   : > { %v9750_v10 = vpop.xlane.xlu0 %810  ;;  %v9760_v25 = vsub.f32 %v7844_v41, %v1024_v61  ;;  %v1742_v44 = vadd.f32 %v1741_v47, %v1431_v12  ;;  %v9783_v56 = vsub.f32 %v7847_v51, %v1023_v32  ;;  %v1027_v47 = vmul.f32 0.0051020407, %v9039_v6  ;;  %v7850_v6 = vld [vmem:[%s14434_s0 + $0x210] sm:$0xff] }
 0x165   : > { %14794 = vst [vmem:[#allocation76_spill] sm:$0xff] %v9765_v20  ;;  %14795 = vst [vmem:[#allocation77_spill] sm:$0xff] %v9776_v30  ;;  %v1738_v46 = vadd.f32 %v1737_v58, %v1429_v13  ;;  %v1745_v32 = vsel %vm479_vm0, %v1434_v37, 0.0  ;;  %v1438_v51 = vmul.f32 %v9765_v20, %v9765_v20  ;;  %v9810_v13 = vsub.f32 %v7850_v6, %v1026_v15 }
 0x166   : > { %14793 = vst [vmem:[#allocation75_spill] sm:$0xff] %v9760_v25  ;;  %1735 = vadd.xlane.f32.xlu1 %v1734_v22  ;;  %14796 = vst [vmem:[#allocation78_spill] sm:$0xff] %v9783_v56  ;;  %v7848_v22 = vld [vmem:[%s14434_s0 + $0x218] sm:$0xff]  ;;  %v1440_v12 = vmul.f32 %v9760_v25, %v9760_v25  ;;  %v1437_v20 = vmul.f32 %v9783_v56, %v9783_v56  ;;  %v1030_v56 = vmul.f32 0.0051020407, %v9051_v18  ;;  %v7855_v18 = vld [vmem:[%s14434_s0 + $0x220] sm:$0xff] }
 0x167   : > { %1731 = vadd.xlane.f32.xlu0 %v1730_v42  ;;  %v9778_v41 = vpop.xlane.xlu1 %822  ;;  %v9788_v40 = vsub.f32 %v7848_v22, %v1026_v15  ;;  %v1749_v42 = vsel %vm479_vm0, %v1436_v0, 0.0  ;;  %v7849_v22 = vld [vmem:[%s14434_s0 + $0x208] sm:$0xff]  ;;  %v1439_v0 = vmul.f32 %v9776_v30, %v9776_v30  ;;  %14799 = vst [vmem:[#allocation81_spill] sm:$0xff] %v9810_v13  ;;  %v1746_v15 = vadd.f32 %v1745_v32, %v1433_v16 }
 0x168   : > { %v9791_v61 = vpop.xlane.xlu0 %818  ;;  %v9803_v62 = vsub.f32 %v7849_v22, %v1025_v63  ;;  %v1750_v58 = vadd.f32 %v1749_v42, %v1435_v59  ;;  %v7853_v42 = vld [vmem:[%s14434_s0 + $0x228] sm:$0xff]  ;;  %v1029_v16 = vmul.f32 0.0051020407, %v9057_v26  ;;  %v1753_v32 = vsel %vm479_vm0, %v1438_v51, 0.0 }
 0x169   : > { %14797 = vst [vmem:[#allocation79_spill] sm:$0xff] %v9788_v40  ;;  %v1444_v22 = vmul.f32 %v9788_v40, %v9788_v40  ;;  %v9833_v6 = vsub.f32 %v7853_v42, %v1027_v47 }
 0x16a   : > { %14798 = vst [vmem:[#allocation80_spill] sm:$0xff] %v9803_v62  ;;  %1743 = vadd.xlane.f32.xlu1 %v1742_v44  ;;  %v7851_v44 = vld [vmem:[%s14434_s0 + $0x238] sm:$0xff]  ;;  %v1442_v40 = vmul.f32 %v9803_v62, %v9803_v62 }
 0x16b   : > { %1739 = vadd.xlane.f32.xlu0 %v1738_v46  ;;  %v9812_v37 = vpop.xlane.xlu1 %830  ;;  %v9821_v25 = vsub.f32 %v7851_v44, %v1028_v2  ;;  %v7852_v46 = vld [vmem:[%s14434_s0 + $0x200] sm:$0xff]  ;;  %14802 = vst [vmem:[#allocation84_spill] sm:$0xff] %v9833_v6  ;;  %v1757_v44 = vsel %vm479_vm0, %v1440_v12, 0.0  ;;  %v9851_v12 = vsub.f32 %v7855_v18, %v1027_v47  ;;  %v1446_v47 = vmul.f32 %v9833_v6, %v9833_v6 }
 0x16c   : > { %v9823_v30 = vpop.xlane.xlu0 %826  ;;  %v9828_v59 = vsub.f32 %v7852_v46, %v1025_v63  ;;  %v1443_v63 = vmul.f32 %v9810_v13, %v9810_v13  ;;  %v7854_v46 = vld [vmem:[%s14434_s0 + $0x230] sm:$0xff]  ;;  %v1758_v13 = vadd.f32 %v1757_v44, %v1439_v0  ;;  %v1761_v44 = vsel %vm479_vm0, %v1442_v40, 0.0 }
 0x16d   : > { %14800 = vst [vmem:[#allocation82_spill] sm:$0xff] %v9821_v25  ;;  %v9846_v42 = vsub.f32 %v7854_v46, %v1028_v2  ;;  %14804 = vst [vmem:[#allocation86_spill] sm:$0xff] %v9851_v12  ;;  %v1448_v51 = vmul.f32 %v9821_v25, %v9821_v25  ;;  %v1765_v2 = vsel %vm479_vm0, %v1444_v22, 0.0  ;;  %v1754_v25 = vadd.f32 %v1753_v32, %v1437_v20  ;;  %v7858_v20 = vld [vmem:[%s14434_s0 + $0x250] sm:$0xff] }
 0x16e   : > { %14801 = vst [vmem:[#allocation83_spill] sm:$0xff] %v9828_v59  ;;  %1751 = vadd.xlane.f32.xlu1 %v1750_v58  ;;  %v1032_v58 = vmul.f32 0.0051020407, %v9069_v39  ;;  %v1441_v46 = vmul.f32 %v9828_v59, %v9828_v59  ;;  %v7857_v39 = vld [vmem:[%s14434_s0 + $0x248] sm:$0xff]  ;;  %v1031_v22 = vmul.f32 0.0051020407, %v9075_v50  ;;  %v1445_v6 = vmul.f32 %v9851_v12, %v9851_v12 }
 0x16f   : > { %14803 = vst [vmem:[#allocation85_spill] sm:$0xff] %v9846_v42  ;;  %1747 = vadd.xlane.f32.xlu0 %v1746_v15  ;;  %v9853_v26 = vpop.xlane.xlu1 %838  ;;  %v7856_v15 = vld [vmem:[%s14434_s0 + $0x258] sm:$0xff]  ;;  %v9873_v0 = vsub.f32 %v7857_v39, %v1029_v16  ;;  %v1447_v59 = vmul.f32 %v9846_v42, %v9846_v42  ;;  %v9884_v32 = vsub.f32 %v7858_v20, %v1030_v56  ;;  %v7859_v50 = vld [vmem:[%s14434_s0 + $0x240] sm:$0xff]  ;;  %v1034_v42 = vmul.f32 0.0051020407, %v9087_v1 }
 0x170   : > { %v9858_v62 = vpop.xlane.xlu0 %834  ;;  %v9868_v18 = vsub.f32 %v7856_v15, %v1030_v56  ;;  %v1766_v39 = vadd.f32 %v1765_v2, %v1443_v63  ;;  %v9891_v40 = vsub.f32 %v7859_v50, %v1029_v16  ;;  %v1033_v2 = vmul.f32 0.0051020407, %v9093_v11  ;;  %v7862_v11 = vld [vmem:[%s14434_s0 + $0x270] sm:$0xff] }
 0x171   : > { %14806 = vst [vmem:[#allocation88_spill] sm:$0xff] %v9873_v0  ;;  %14807 = vst [vmem:[#allocation89_spill] sm:$0xff] %v9884_v32  ;;  %v1762_v20 = vadd.f32 %v1761_v44, %v1441_v46  ;;  %v1769_v16 = vsel %vm479_vm0, %v1446_v47, 0.0  ;;  %v1450_v50 = vmul.f32 %v9873_v0, %v9873_v0  ;;  %v9918_v46 = vsub.f32 %v7862_v11, %v1032_v58 }
 0x172   : > { %14805 = vst [vmem:[#allocation87_spill] sm:$0xff] %v9868_v18  ;;  %1759 = vadd.xlane.f32.xlu1 %v1758_v13  ;;  %14808 = vst [vmem:[#allocation90_spill] sm:$0xff] %v9891_v40  ;;  %v7860_v13 = vld [vmem:[%s14434_s0 + $0x278] sm:$0xff]  ;;  %v1452_v63 = vmul.f32 %v9868_v18, %v9868_v18  ;;  %v1449_v0 = vmul.f32 %v9891_v40, %v9891_v40  ;;  %v1036_v40 = vmul.f32 0.0051020407, %v9105_v24  ;;  %v7867_v24 = vld [vmem:[%s14434_s0 + $0x280] sm:$0xff] }
 0x173   : > { %1755 = vadd.xlane.f32.xlu0 %v1754_v25  ;;  %v9886_v15 = vpop.xlane.xlu1 %846  ;;  %v9896_v12 = vsub.f32 %v7860_v13, %v1032_v58  ;;  %v1773_v25 = vsel %vm479_vm0, %v1448_v51, 0.0  ;;  %v7861_v13 = vld [vmem:[%s14434_s0 + $0x268] sm:$0xff]  ;;  %v1451_v51 = vmul.f32 %v9884_v32, %v9884_v32  ;;  %14811 = vst [vmem:[#allocation93_spill] sm:$0xff] %v9918_v46  ;;  %v1770_v58 = vadd.f32 %v1769_v16, %v1445_v6 }
 0x174   : > { %v9899_v56 = vpop.xlane.xlu0 %842  ;;  %v9911_v1 = vsub.f32 %v7861_v13, %v1031_v22  ;;  %v1774_v44 = vadd.f32 %v1773_v25, %v1447_v59  ;;  %v7865_v25 = vld [vmem:[%s14434_s0 + $0x288] sm:$0xff]  ;;  %v1035_v6 = vmul.f32 0.0051020407, %v9111_v36  ;;  %v1777_v16 = vsel %vm479_vm0, %v1450_v50, 0.0 }
 0x175   : > { %14809 = vst [vmem:[#allocation91_spill] sm:$0xff] %v9896_v12  ;;  %v1456_v13 = vmul.f32 %v9896_v12, %v9896_v12  ;;  %v9941_v11 = vsub.f32 %v7865_v25, %v1033_v2 }
 0x176   : > { %14810 = vst [vmem:[#allocation92_spill] sm:$0xff] %v9911_v1  ;;  %1767 = vadd.xlane.f32.xlu1 %v1766_v39  ;;  %v7863_v39 = vld [vmem:[%s14434_s0 + $0x298] sm:$0xff]  ;;  %v1454_v12 = vmul.f32 %v9911_v1, %v9911_v1 }
 0x177   : > { %1763 = vadd.xlane.f32.xlu0 %v1762_v20  ;;  %v9920_v47 = vpop.xlane.xlu1 %854  ;;  %v9929_v18 = vsub.f32 %v7863_v39, %v1034_v42  ;;  %v7864_v20 = vld [vmem:[%s14434_s0 + $0x260] sm:$0xff]  ;;  %14814 = vst [vmem:[#allocation96_spill] sm:$0xff] %v9941_v11  ;;  %v1781_v39 = vsel %vm479_vm0, %v1452_v63, 0.0  ;;  %v9959_v63 = vsub.f32 %v7867_v24, %v1033_v2  ;;  %v1458_v2 = vmul.f32 %v9941_v11, %v9941_v11 }
 0x178   : > { %v9931_v32 = vpop.xlane.xlu0 %850  ;;  %v9936_v59 = vsub.f32 %v7864_v20, %v1031_v22  ;;  %v1455_v22 = vmul.f32 %v9918_v46, %v9918_v46  ;;  %v7866_v20 = vld [vmem:[%s14434_s0 + $0x290] sm:$0xff]  ;;  %v1782_v46 = vadd.f32 %v1781_v39, %v1451_v51  ;;  %v1785_v39 = vsel %vm479_vm0, %v1454_v12, 0.0 }
 0x179   : > { %14812 = vst [vmem:[#allocation94_spill] sm:$0xff] %v9929_v18  ;;  %v9954_v25 = vsub.f32 %v7866_v20, %v1034_v42  ;;  %14816 = vst [vmem:[#allocation98_spill] sm:$0xff] %v9959_v63  ;;  %v1460_v50 = vmul.f32 %v9929_v18, %v9929_v18  ;;  %v1789_v42 = vsel %vm479_vm0, %v1456_v13, 0.0  ;;  %v1778_v18 = vadd.f32 %v1777_v16, %v1449_v0  ;;  %v7870_v0 = vld [vmem:[%s14434_s0 + $0x2b0] sm:$0xff] }
 0x17a   : > { %14813 = vst [vmem:[#allocation95_spill] sm:$0xff] %v9936_v59  ;;  %1775 = vadd.xlane.f32.xlu1 %v1774_v44  ;;  %v1038_v44 = vmul.f32 0.0051020407, %v9123_v55  ;;  %v1453_v20 = vmul.f32 %v9936_v59, %v9936_v59  ;;  %v7869_v55 = vld [vmem:[%s14434_s0 + $0x2a8] sm:$0xff]  ;;  %v1037_v13 = vmul.f32 0.0051020407, %v9129_v4  ;;  %v1457_v11 = vmul.f32 %v9959_v63, %v9959_v63 }
 0x17b   : > { %14815 = vst [vmem:[#allocation97_spill] sm:$0xff] %v9954_v25  ;;  %1771 = vadd.xlane.f32.xlu0 %v1770_v58  ;;  %v9961_v36 = vpop.xlane.xlu1 %862  ;;  %v7868_v58 = vld [vmem:[%s14434_s0 + $0x2b8] sm:$0xff]  ;;  %v9981_v51 = vsub.f32 %v7869_v55, %v1035_v6  ;;  %v1459_v59 = vmul.f32 %v9954_v25, %v9954_v25  ;;  %v9992_v16 = vsub.f32 %v7870_v0, %v1036_v40  ;;  %v7871_v4 = vld [vmem:[%s14434_s0 + $0x2a0] sm:$0xff] }
 0x17c   : > { %v9966_v1 = vpop.xlane.xlu0 %858  ;;  %v9976_v24 = vsub.f32 %v7868_v58, %v1036_v40  ;;  %v1790_v55 = vadd.f32 %v1789_v42, %v1455_v22  ;;  %v9999_v12 = vsub.f32 %v7871_v4, %v1035_v6  ;;  %v14824_v25 = vld [vmem:[#allocation5_spill] sm:$0xff]  ;;  %v14826_v42 = vld [vmem:[#allocation6_spill] sm:$0xff]  ;;  %v1793_v6 = vsel %vm479_vm0, %v1458_v2, 0.0 }
 0x17d   : > { %14817 = vst [vmem:[#allocation99_spill] sm:$0xff] %v9966_v1  ;;  %14819 = vst [vmem:[#allocation101_spill] sm:$0xff] %v9981_v51  ;;  %v1040_v1 = vmul.f32 0.0051020407, %v14824_v25  ;;  %v1039_v0 = vmul.f32 0.0051020407, %v14826_v42  ;;  %v1462_v4 = vmul.f32 %v9981_v51, %v9981_v51 }
 0x17e   : > { %14818 = vst [vmem:[#allocation100_spill] sm:$0xff] %v9976_v24  ;;  %1783 = vadd.xlane.f32.xlu1 %v1782_v46  ;;  %14820 = vst [vmem:[#allocation102_spill] sm:$0xff] %v9992_v16  ;;  %v7872_v46 = vld [vmem:[%s14434_s0 + $0x2d8] sm:$0xff]  ;;  %v1464_v22 = vmul.f32 %v9976_v24, %v9976_v24  ;;  %v7874_v42 = vld [vmem:[%s14434_s0 + $0x2d0] sm:$0xff]  ;;  %v1461_v51 = vmul.f32 %v9999_v12, %v9999_v12 }
 0x17f   : > { %1779 = vadd.xlane.f32.xlu0 %v1778_v18  ;;  %v9994_v58 = vpop.xlane.xlu1 %870  ;;  %14822 = vst [vmem:[#allocation104_spill] sm:$0xff] %v9999_v12  ;;  %v10004_v63 = vsub.f32 %v7872_v46, %v1038_v44  ;;  %v1797_v18 = vsel %vm479_vm0, %v1460_v50, 0.0  ;;  %v7873_v46 = vld [vmem:[%s14434_s0 + $0x2c8] sm:$0xff]  ;;  %v1463_v50 = vmul.f32 %v9992_v16, %v9992_v16  ;;  %v14834_v12 = vld [vmem:[#allocation7_spill] sm:$0xff] }
 0x180   : > { %14821 = vst [vmem:[#allocation103_spill] sm:$0xff] %v9994_v58  ;;  %v10007_v40 = vpop.xlane.xlu0 %866  ;;  %v1786_v58 = vadd.f32 %v1785_v39, %v1453_v20  ;;  %v10019_v25 = vsub.f32 %v7873_v46, %v1037_v13  ;;  %v10026_v20 = vsub.f32 %v7874_v42, %v1038_v44  ;;  %v1798_v39 = vadd.f32 %v1797_v18, %v1459_v59  ;;  %v7877_v18 = vld [vmem:[%s14434_s0 + $0x2e8] sm:$0xff] }
 0x181   : > { %14823 = vst [vmem:[#allocation105_spill] sm:$0xff] %v10004_v63  ;;  %14825 = vst [vmem:[#allocation5_spill] sm:$0xff] %v10007_v40  ;;  %v1468_v46 = vmul.f32 %v10004_v63, %v10004_v63  ;;  %v1794_v44 = vadd.f32 %v1793_v6, %v1457_v11  ;;  %v10049_v42 = vsub.f32 %v7877_v18, %v1039_v0  ;;  %v1042_v63 = vmul.f32 0.0051020407, %v14834_v12  ;;  %v14835_v11 = vld [vmem:[#allocation8_spill] sm:$0xff]  ;;  %v7879_v12 = vld [vmem:[%s14434_s0 + $0x2e0] sm:$0xff] }
 0x182   : > { %14827 = vst [vmem:[#allocation6_spill] sm:$0xff] %v10019_v25  ;;  %1791 = vadd.xlane.f32.xlu1 %v1790_v55  ;;  %14828 = vst [vmem:[#allocation106_spill] sm:$0xff] %v10026_v20  ;;  %v7875_v55 = vld [vmem:[%s14434_s0 + $0x2f8] sm:$0xff]  ;;  %v1041_v6 = vmul.f32 0.0051020407, %v14835_v11 }
 0x183   : > { %1787 = vadd.xlane.f32.xlu0 %v1786_v58  ;;  %v10028_v2 = vpop.xlane.xlu1 %878  ;;  %v10037_v24 = vsub.f32 %v7875_v55, %v1040_v1  ;;  %v7876_v58 = vld [vmem:[%s14434_s0 + $0x2c0] sm:$0xff]  ;;  %14833 = vst [vmem:[#allocation111_spill] sm:$0xff] %v10049_v42  ;;  %v1805_v55 = vsel %vm479_vm0, %v1464_v22, 0.0  ;;  %v10067_v22 = vsub.f32 %v7879_v12, %v1039_v0  ;;  %v1470_v0 = vmul.f32 %v10049_v42, %v10049_v42 }
 0x184   : > { %14829 = vst [vmem:[#allocation107_spill] sm:$0xff] %v10028_v2  ;;  %v10039_v16 = vpop.xlane.xlu0 %874  ;;  %v10044_v59 = vsub.f32 %v7876_v58, %v1037_v13  ;;  %v1801_v2 = vsel %vm479_vm0, %v1462_v4, 0.0  ;;  %v1467_v13 = vmul.f32 %v10026_v20, %v10026_v20  ;;  %v7878_v58 = vld [vmem:[%s14434_s0 + $0x2f0] sm:$0xff]  ;;  %v1806_v40 = vadd.f32 %v1805_v55, %v1463_v50 }
 0x185   : > { %14830 = vst [vmem:[#allocation108_spill] sm:$0xff] %v10037_v24  ;;  %14831 = vst [vmem:[#allocation109_spill] sm:$0xff] %v10039_v16  ;;  %v1466_v16 = vmul.f32 %v10019_v25, %v10019_v25  ;;  %v10062_v18 = vsub.f32 %v7878_v58, %v1040_v1  ;;  %v1472_v4 = vmul.f32 %v10037_v24, %v10037_v24  ;;  %v1813_v1 = vsel %vm479_vm0, %v1468_v46, 0.0  ;;  %v14843_v46 = vld [vmem:[#allocation10_spill] sm:$0xff] }
 0x186   : > { %14832 = vst [vmem:[#allocation110_spill] sm:$0xff] %v10044_v59  ;;  %1799 = vadd.xlane.f32.xlu1 %v1798_v39  ;;  %14837 = vst [vmem:[#allocation8_spill] sm:$0xff] %v10067_v22  ;;  %v14839_v39 = vld [vmem:[#allocation9_spill] sm:$0xff]  ;;  %v1465_v58 = vmul.f32 %v10044_v59, %v10044_v59  ;;  %v1802_v24 = vadd.f32 %v1801_v2, %v1461_v51  ;;  %v1043_v55 = vmul.f32 0.0051020407, %v14843_v46  ;;  %v7882_v51 = vld [vmem:[%s14434_s0 + $0x310] sm:$0xff] }
 0x187   : > { %14836 = vst [vmem:[#allocation7_spill] sm:$0xff] %v10062_v18  ;;  %1795 = vadd.xlane.f32.xlu0 %v1794_v44  ;;  %v10069_v11 = vpop.xlane.xlu1 %886  ;;  %v1044_v25 = vmul.f32 0.0051020407, %v14839_v39  ;;  %v7880_v44 = vld [vmem:[%s14434_s0 + $0x318] sm:$0xff]  ;;  %v7881_v39 = vld [vmem:[%s14434_s0 + $0x308] sm:$0xff]  ;;  %v1809_v59 = vsel %vm479_vm0, %v1466_v16, 0.0  ;;  %v1471_v42 = vmul.f32 %v10062_v18, %v10062_v18  ;;  %v10100_v2 = vsub.f32 %v7882_v51, %v1042_v63 }
 0x188   : > { %14838 = vst [vmem:[#allocation112_spill] sm:$0xff] %v10069_v11  ;;  %v10074_v20 = vpop.xlane.xlu0 %882  ;;  %v10084_v12 = vsub.f32 %v7880_v44, %v1042_v63  ;;  %v10089_v50 = vsub.f32 %v7881_v39, %v1041_v6  ;;  %v1814_v39 = vadd.f32 %v1813_v1, %v1467_v13  ;;  %v7883_v16 = vld [vmem:[%s14434_s0 + $0x300] sm:$0xff]  ;;  %v7884_v46 = vld [vmem:[%s14434_s0 + $0x338] sm:$0xff]  ;;  %v14848_v18 = vld [vmem:[#allocation11_spill] sm:$0xff] }
 0x189   : > { %14840 = vst [vmem:[#allocation9_spill] sm:$0xff] %v10074_v20  ;;  %v1469_v20 = vmul.f32 %v10067_v22, %v10067_v22  ;;  %14844 = vst [vmem:[#allocation10_spill] sm:$0xff] %v10100_v2  ;;  %v10112_v22 = vsub.f32 %v7884_v46, %v1044_v25  ;;  %v1046_v11 = vmul.f32 0.0051020407, %v14848_v18  ;;  %v14849_v1 = vld [vmem:[#allocation12_spill] sm:$0xff]  ;;  %v7885_v46 = vld [vmem:[%s14434_s0 + $0x328] sm:$0xff] }
 0x18a   : > { %14841 = vst [vmem:[#allocation113_spill] sm:$0xff] %v10084_v12  ;;  %14842 = vst [vmem:[#allocation114_spill] sm:$0xff] %v10089_v50  ;;  %1807 = vadd.xlane.f32.xlu1 %v1806_v40  ;;  %v10107_v40 = vsub.f32 %v7883_v16, %v1041_v6  ;;  %v1476_v13 = vmul.f32 %v10084_v12, %v10084_v12  ;;  %v1045_v51 = vmul.f32 0.0051020407, %v14849_v1  ;;  %v1817_v6 = vsel %vm479_vm0, %v1470_v0, 0.0  ;;  %v7886_v1 = vld [vmem:[%s14434_s0 + $0x330] sm:$0xff] }
 0x18b   : > { %1803 = vadd.xlane.f32.xlu0 %v1802_v24  ;;  %v10102_v44 = vpop.xlane.xlu1 %894  ;;  %14847 = vst [vmem:[#allocation117_spill] sm:$0xff] %v10112_v22  ;;  %v1821_v24 = vsel %vm479_vm0, %v1472_v4, 0.0  ;;  %v1474_v16 = vmul.f32 %v10089_v50, %v10089_v50  ;;  %v10127_v18 = vsub.f32 %v7885_v46, %v1043_v55  ;;  %v1475_v4 = vmul.f32 %v10100_v2, %v10100_v2 }
 0x18c   : > { %14845 = vst [vmem:[#allocation115_spill] sm:$0xff] %v10102_v44  ;;  %14846 = vst [vmem:[#allocation116_spill] sm:$0xff] %v10107_v40  ;;  %v10115_v63 = vpop.xlane.xlu0 %890  ;;  %v1810_v44 = vadd.f32 %v1809_v59, %v1465_v58  ;;  %v10134_v59 = vsub.f32 %v7886_v1, %v1044_v25  ;;  %v1822_v0 = vadd.f32 %v1821_v24, %v1471_v42  ;;  %v7889_v24 = vld [vmem:[%s14434_s0 + $0x348] sm:$0xff] }
 0x18d   : > { %14850 = vst [vmem:[#allocation11_spill] sm:$0xff] %v10127_v18  ;;  %v1473_v12 = vmul.f32 %v10107_v40, %v10107_v40  ;;  %v1480_v46 = vmul.f32 %v10112_v22, %v10112_v22  ;;  %v1818_v25 = vadd.f32 %v1817_v6, %v1469_v20  ;;  %v10157_v1 = vsub.f32 %v7889_v24, %v1045_v51  ;;  %v14857_v40 = vld [vmem:[#allocation15_spill] sm:$0xff]  ;;  %v14858_v20 = vld [vmem:[#allocation18_spill] sm:$0xff] }
 0x18e   : > { %1815 = vadd.xlane.f32.xlu1 %v1814_v39  ;;  %14851 = vst [vmem:[#allocation12_spill] sm:$0xff] %v10134_v59  ;;  %v7887_v39 = vld [vmem:[%s14434_s0 + $0x358] sm:$0xff]  ;;  %v1048_v22 = vmul.f32 0.0051020407, %v14857_v40  ;;  %v1047_v6 = vmul.f32 0.0051020407, %v14858_v20 }
 0x18f   : > { %1811 = vadd.xlane.f32.xlu0 %v1810_v44  ;;  %v10136_v58 = vpop.xlane.xlu1 %902  ;;  %v10145_v2 = vsub.f32 %v7887_v39, %v1046_v11  ;;  %v7888_v44 = vld [vmem:[%s14434_s0 + $0x320] sm:$0xff]  ;;  %14856 = vst [vmem:[#allocation122_spill] sm:$0xff] %v10157_v1  ;;  %v1829_v39 = vsel %vm479_vm0, %v1476_v13, 0.0 }
 0x190   : > { %14852 = vst [vmem:[#allocation118_spill] sm:$0xff] %v10136_v58  ;;  %v10147_v50 = vpop.xlane.xlu0 %898  ;;  %v10152_v42 = vsub.f32 %v7888_v44, %v1043_v55  ;;  %v1825_v58 = vsel %vm479_vm0, %v1474_v16, 0.0  ;;  %v1479_v55 = vmul.f32 %v10134_v59, %v10134_v59  ;;  %v7890_v44 = vld [vmem:[%s14434_s0 + $0x350] sm:$0xff]  ;;  %v7891_v40 = vld [vmem:[%s14434_s0 + $0x340] sm:$0xff] }
 0x191   : > { %14853 = vst [vmem:[#allocation119_spill] sm:$0xff] %v10145_v2  ;;  %14854 = vst [vmem:[#allocation120_spill] sm:$0xff] %v10147_v50  ;;  %v1478_v50 = vmul.f32 %v10127_v18, %v10127_v18  ;;  %v10170_v24 = vsub.f32 %v7890_v44, %v1046_v11  ;;  %v10175_v13 = vsub.f32 %v7891_v40, %v1045_v51  ;;  %v1837_v11 = vsel %vm479_vm0, %v1480_v46, 0.0 }
 0x192   : > { %14855 = vst [vmem:[#allocation121_spill] sm:$0xff] %v10152_v42  ;;  %1823 = vadd.xlane.f32.xlu1 %v1822_v0  ;;  %v1484_v16 = vmul.f32 %v10145_v2, %v10145_v2  ;;  %v1050_v0 = vmul.f32 0.0051020407, %v9270_v38  ;;  %v1830_v18 = vadd.f32 %v1829_v39, %v1475_v4  ;;  %v1477_v44 = vmul.f32 %v10152_v42, %v10152_v42  ;;  %v7893_v38 = vld [vmem:[%s14434_s0 + $0x368] sm:$0xff] }
 0x193   : > { %14859 = vst [vmem:[#allocation15_spill] sm:$0xff] %v10170_v24  ;;  %14860 = vst [vmem:[#allocation18_spill] sm:$0xff] %v10175_v13  ;;  %1819 = vadd.xlane.f32.xlu0 %v1818_v25  ;;  %v10177_v20 = vpop.xlane.xlu1 %910  ;;  %v1482_v51 = vmul.f32 %v10157_v1, %v10157_v1  ;;  %v7892_v25 = vld [vmem:[%s14434_s0 + $0x378] sm:$0xff]  ;;  %v1826_v2 = vadd.f32 %v1825_v58, %v1473_v12  ;;  %v10197_v4 = vsub.f32 %v7893_v38, %v1047_v6  ;;  %v7894_v12 = vld [vmem:[%s14434_s0 + $0x370] sm:$0xff] }
 0x194   : > { %v10182_v59 = vpop.xlane.xlu0 %906  ;;  %v10192_v40 = vsub.f32 %v7892_v25, %v1048_v22  ;;  %v1049_v46 = vmul.f32 0.0051020407, %v9286_v8  ;;  %v1833_v39 = vsel %vm479_vm0, %v1478_v50, 0.0  ;;  %v1483_v42 = vmul.f32 %v10170_v24, %v10170_v24  ;;  %v7895_v8 = vld [vmem:[%s14434_s0 + $0x360] sm:$0xff] }
 0x195   : > { %14862 = vst [vmem:[#allocation124_spill] sm:$0xff] %v10197_v4  ;;  %v1481_v1 = vmul.f32 %v10175_v13, %v10175_v13  ;;  %v10208_v58 = vsub.f32 %v7894_v12, %v1048_v22  ;;  %v1838_v38 = vadd.f32 %v1837_v11, %v1479_v55  ;;  %v10215_v50 = vsub.f32 %v7895_v8, %v1047_v6 }
 0x196   : > { %14861 = vst [vmem:[#allocation123_spill] sm:$0xff] %v10192_v40  ;;  %1831 = vadd.xlane.f32.xlu1 %v1830_v18  ;;  %v7896_v18 = vld [vmem:[%s14434_s0 + $0x398] sm:$0xff]  ;;  %v1052_v13 = vmul.f32 0.0051020407, %v9313_v3  ;;  %v1488_v55 = vmul.f32 %v10192_v40, %v10192_v40  ;;  %v1051_v11 = vmul.f32 0.0051020407, %v9318_v48  ;;  %v1834_v12 = vadd.f32 %v1833_v39, %v1477_v44 }
 0x197   : > { %14863 = vst [vmem:[#allocation125_spill] sm:$0xff] %v10208_v58  ;;  %1827 = vadd.xlane.f32.xlu0 %v1826_v2  ;;  %v10210_v25 = vpop.xlane.xlu1 %918  ;;  %14864 = vst [vmem:[#allocation126_spill] sm:$0xff] %v10215_v50  ;;  %v10220_v24 = vsub.f32 %v7896_v18, %v1050_v0  ;;  %v1845_v2 = vsel %vm479_vm0, %v1484_v16, 0.0  ;;  %v1841_v6 = vsel %vm479_vm0, %v1482_v51, 0.0  ;;  %v1486_v8 = vmul.f32 %v10197_v4, %v10197_v4  ;;  %v7897_v18 = vld [vmem:[%s14434_s0 + $0x388] sm:$0xff]  ;;  %v7898_v48 = vld [vmem:[%s14434_s0 + $0x390] sm:$0xff] }
 0x198   : > { %v10223_v22 = vpop.xlane.xlu0 %914  ;;  %v10235_v3 = vsub.f32 %v7897_v18, %v1049_v46  ;;  %v1487_v16 = vmul.f32 %v10208_v58, %v10208_v58  ;;  %v10242_v44 = vsub.f32 %v7898_v48, %v1050_v0  ;;  %v1846_v39 = vadd.f32 %v1845_v2, %v1483_v42  ;;  %v7901_v2 = vld [vmem:[%s14434_s0 + $0x3a8] sm:$0xff] }
 0x199   : > { %14865 = vst [vmem:[#allocation127_spill] sm:$0xff] %v10220_v24  ;;  %v1485_v40 = vmul.f32 %v10215_v50, %v10215_v50  ;;  %v1492_v18 = vmul.f32 %v10220_v24, %v10220_v24  ;;  %v1842_v0 = vadd.f32 %v1841_v6, %v1481_v1  ;;  %v10265_v48 = vsub.f32 %v7901_v2, %v1051_v11 }
 0x19a   : > { %14866 = vst [vmem:[#allocation128_spill] sm:$0xff] %v10235_v3  ;;  %1839 = vadd.xlane.f32.xlu1 %v1838_v38  ;;  %14867 = vst [vmem:[#allocation129_spill] sm:$0xff] %v10242_v44  ;;  %v7899_v38 = vld [vmem:[%s14434_s0 + $0x3b8] sm:$0xff]  ;;  %v1054_v50 = vmul.f32 0.0051020407, %v9346_v57  ;;  %v1490_v24 = vmul.f32 %v10235_v3, %v10235_v3  ;;  %v1849_v6 = vsel %vm479_vm0, %v1486_v8, 0.0 }
 0x19b   : > { %1835 = vadd.xlane.f32.xlu0 %v1834_v12  ;;  %v10244_v51 = vpop.xlane.xlu1 %926  ;;  %v10253_v58 = vsub.f32 %v7899_v38, %v1052_v13  ;;  %v7900_v12 = vld [vmem:[%s14434_s0 + $0x380] sm:$0xff]  ;;  %14870 = vst [vmem:[#allocation132_spill] sm:$0xff] %v10265_v48  ;;  %v1853_v38 = vsel %vm479_vm0, %v1488_v55, 0.0  ;;  %v1053_v1 = vmul.f32 0.0051020407, %v9359_v5 }
 0x19c   : > { %v10255_v4 = vpop.xlane.xlu0 %922  ;;  %v10260_v42 = vsub.f32 %v7900_v12, %v1049_v46  ;;  %v1491_v46 = vmul.f32 %v10242_v44, %v10242_v44  ;;  %v7902_v12 = vld [vmem:[%s14434_s0 + $0x3b0] sm:$0xff]  ;;  %v7903_v57 = vld [vmem:[%s14434_s0 + $0x3a0] sm:$0xff]  ;;  %v1854_v3 = vadd.f32 %v1853_v38, %v1487_v16  ;;  %v1857_v38 = vsel %vm479_vm0, %v1490_v24, 0.0 }
 0x19d   : > { %14868 = vst [vmem:[#allocation130_spill] sm:$0xff] %v10253_v58  ;;  %v10278_v2 = vsub.f32 %v7902_v12, %v1052_v13  ;;  %v10283_v55 = vsub.f32 %v7903_v57, %v1051_v11  ;;  %v1496_v8 = vmul.f32 %v10253_v58, %v10253_v58  ;;  %v1861_v13 = vsel %vm479_vm0, %v1492_v18, 0.0 }
 0x19e   : > { %14869 = vst [vmem:[#allocation131_spill] sm:$0xff] %v10260_v42  ;;  %1847 = vadd.xlane.f32.xlu1 %v1846_v39  ;;  %v1056_v39 = vmul.f32 0.0051020407, %v9380_v33  ;;  %v1489_v12 = vmul.f32 %v10260_v42, %v10260_v42  ;;  %v1494_v11 = vmul.f32 %v10265_v48, %v10265_v48  ;;  %v1850_v58 = vadd.f32 %v1849_v6, %v1485_v40  ;;  %v7905_v33 = vld [vmem:[%s14434_s0 + $0x3c8] sm:$0xff]  ;;  %v7906_v40 = vld [vmem:[%s14434_s0 + $0x3d0] sm:$0xff] }
 0x19f   : > { %14871 = vst [vmem:[#allocation133_spill] sm:$0xff] %v10278_v2  ;;  %14872 = vst [vmem:[#allocation134_spill] sm:$0xff] %v10283_v55  ;;  %1843 = vadd.xlane.f32.xlu0 %v1842_v0  ;;  %v10285_v5 = vpop.xlane.xlu1 %934  ;;  %v7904_v0 = vld [vmem:[%s14434_s0 + $0x3d8] sm:$0xff]  ;;  %v10305_v16 = vsub.f32 %v7905_v33, %v1053_v1  ;;  %v1055_v18 = vmul.f32 0.0051020407, %v9391_v35  ;;  %v1495_v42 = vmul.f32 %v10278_v2, %v10278_v2  ;;  %v7907_v35 = vld [vmem:[%s14434_s0 + $0x3c0] sm:$0xff] }
 0x1a0   : > { %v10290_v44 = vpop.xlane.xlu0 %930  ;;  %v10300_v57 = vsub.f32 %v7904_v0, %v1054_v50  ;;  %v1493_v48 = vmul.f32 %v10283_v55, %v10283_v55  ;;  %v10316_v6 = vsub.f32 %v7906_v40, %v1054_v50  ;;  %v1862_v33 = vadd.f32 %v1861_v13, %v1491_v46 }
 0x1a1   : > { %14874 = vst [vmem:[#allocation136_spill] sm:$0xff] %v10305_v16  ;;  %v10323_v24 = vsub.f32 %v7907_v35, %v1053_v1  ;;  %v1058_v55 = vmul.f32 0.0051020407, %v9421_v34  ;;  %v1057_v13 = vmul.f32 0.0051020407, %v9426_v19  ;;  %v1858_v40 = vadd.f32 %v1857_v38, %v1489_v12  ;;  %v7910_v19 = vld [vmem:[%s14434_s0 + $0x3f0] sm:$0xff] }
 0x1a2   : > { %14873 = vst [vmem:[#allocation135_spill] sm:$0xff] %v10300_v57  ;;  %1855 = vadd.xlane.f32.xlu1 %v1854_v3  ;;  %14875 = vst [vmem:[#allocation137_spill] sm:$0xff] %v10316_v6  ;;  %v7908_v3 = vld [vmem:[%s14434_s0 + $0x3f8] sm:$0xff]  ;;  %v1500_v46 = vmul.f32 %v10300_v57, %v10300_v57  ;;  %v1865_v1 = vsel %vm479_vm0, %v1494_v11, 0.0  ;;  %v1498_v35 = vmul.f32 %v10305_v16, %v10305_v16 }
 0x1a3   : > { %1851 = vadd.xlane.f32.xlu0 %v1850_v58  ;;  %v10318_v0 = vpop.xlane.xlu1 %942  ;;  %14876 = vst [vmem:[#allocation138_spill] sm:$0xff] %v10323_v24  ;;  %v10328_v2 = vsub.f32 %v7908_v3, %v1056_v39  ;;  %v1869_v58 = vsel %vm479_vm0, %v1496_v8, 0.0  ;;  %v7909_v3 = vld [vmem:[%s14434_s0 + $0x3e8] sm:$0xff]  ;;  %v1499_v8 = vmul.f32 %v10316_v6, %v10316_v6  ;;  %v10350_v12 = vsub.f32 %v7910_v19, %v1056_v39 }
 0x1a4   : > { %v10331_v50 = vpop.xlane.xlu0 %938  ;;  %v10343_v34 = vsub.f32 %v7909_v3, %v1055_v18  ;;  %v1870_v38 = vadd.f32 %v1869_v58, %v1495_v42  ;;  %v1497_v57 = vmul.f32 %v10323_v24, %v10323_v24  ;;  %v1866_v39 = vadd.f32 %v1865_v1, %v1493_v48  ;;  %v7913_v58 = vld [vmem:[%s14434_s0 + $0x408] sm:$0xff] }
 0x1a5   : > { %14877 = vst [vmem:[#allocation139_spill] sm:$0xff] %v10328_v2  ;;  %14879 = vst [vmem:[#allocation141_spill] sm:$0xff] %v10350_v12  ;;  %v1504_v3 = vmul.f32 %v10328_v2, %v10328_v2  ;;  %v10373_v19 = vsub.f32 %v7913_v58, %v1057_v13  ;;  %v1060_v24 = vmul.f32 0.0051020407, %v9454_v43  ;;  %v1059_v48 = vmul.f32 0.0051020407, %v9467_v52 }
 0x1a6   : > { %14878 = vst [vmem:[#allocation140_spill] sm:$0xff] %v10343_v34  ;;  %1863 = vadd.xlane.f32.xlu1 %v1862_v33  ;;  %v7911_v33 = vld [vmem:[%s14434_s0 + $0x418] sm:$0xff]  ;;  %v1502_v2 = vmul.f32 %v10343_v34, %v10343_v34  ;;  %v1873_v1 = vsel %vm479_vm0, %v1498_v35, 0.0  ;;  %v7915_v43 = vld [vmem:[%s14434_s0 + $0x400] sm:$0xff] }
 0x1a7   : > { %1859 = vadd.xlane.f32.xlu0 %v1858_v40  ;;  %v10352_v11 = vpop.xlane.xlu1 %950  ;;  %v10361_v6 = vsub.f32 %v7911_v33, %v1058_v55  ;;  %v7912_v40 = vld [vmem:[%s14434_s0 + $0x3e0] sm:$0xff]  ;;  %14882 = vst [vmem:[#allocation144_spill] sm:$0xff] %v10373_v19  ;;  %v1877_v33 = vsel %vm479_vm0, %v1500_v46, 0.0  ;;  %v10391_v46 = vsub.f32 %v7915_v43, %v1057_v13  ;;  %v1506_v13 = vmul.f32 %v10373_v19, %v10373_v19 }
 0x1a8   : > { %v10363_v16 = vpop.xlane.xlu0 %946  ;;  %v10368_v42 = vsub.f32 %v7912_v40, %v1055_v18  ;;  %v1503_v18 = vmul.f32 %v10350_v12, %v10350_v12  ;;  %v7914_v40 = vld [vmem:[%s14434_s0 + $0x410] sm:$0xff]  ;;  %v1878_v34 = vadd.f32 %v1877_v33, %v1499_v8  ;;  %v1881_v33 = vsel %vm479_vm0, %v1502_v2, 0.0 }
 0x1a9   : > { %14880 = vst [vmem:[#allocation142_spill] sm:$0xff] %v10361_v6  ;;  %v10386_v58 = vsub.f32 %v7914_v40, %v1058_v55  ;;  %14884 = vst [vmem:[#allocation146_spill] sm:$0xff] %v10391_v46  ;;  %v1508_v35 = vmul.f32 %v10361_v6, %v10361_v6  ;;  %v1885_v55 = vsel %vm479_vm0, %v1504_v3, 0.0  ;;  %v1874_v6 = vadd.f32 %v1873_v1, %v1497_v57  ;;  %v7918_v57 = vld [vmem:[%s14434_s0 + $0x430] sm:$0xff] }
 0x1aa   : > { %14881 = vst [vmem:[#allocation143_spill] sm:$0xff] %v10368_v42  ;;  %1871 = vadd.xlane.f32.xlu1 %v1870_v38  ;;  %v1062_v38 = vmul.f32 0.0051020407, %v9488_v17  ;;  %v1501_v40 = vmul.f32 %v10368_v42, %v10368_v42  ;;  %v7917_v17 = vld [vmem:[%s14434_s0 + $0x428] sm:$0xff]  ;;  %v1061_v3 = vmul.f32 0.0051020407, %v9499_v29  ;;  %v1505_v42 = vmul.f32 %v10391_v46, %v10391_v46 }
 0x1ab   : > { %14883 = vst [vmem:[#allocation145_spill] sm:$0xff] %v10386_v58  ;;  %1867 = vadd.xlane.f32.xlu0 %v1866_v39  ;;  %v10393_v52 = vpop.xlane.xlu1 %958  ;;  %v7916_v39 = vld [vmem:[%s14434_s0 + $0x438] sm:$0xff]  ;;  %v10413_v8 = vsub.f32 %v7917_v17, %v1059_v48  ;;  %v1507_v19 = vmul.f32 %v10386_v58, %v10386_v58  ;;  %v10424_v1 = vsub.f32 %v7918_v57, %v1060_v24  ;;  %v7919_v29 = vld [vmem:[%s14434_s0 + $0x420] sm:$0xff]  ;;  %v1064_v58 = vmul.f32 0.0051020407, %v9529_v7 }
 0x1ac   : > { %v10398_v12 = vpop.xlane.xlu0 %954  ;;  %v10408_v43 = vsub.f32 %v7916_v39, %v1060_v24  ;;  %v1886_v17 = vadd.f32 %v1885_v55, %v1503_v18  ;;  %v10431_v2 = vsub.f32 %v7919_v29, %v1059_v48  ;;  %v1063_v55 = vmul.f32 0.0051020407, %v9534_v54  ;;  %v7922_v54 = vld [vmem:[%s14434_s0 + $0x450] sm:$0xff] }
 0x1ad   : > { %14886 = vst [vmem:[#allocation148_spill] sm:$0xff] %v10413_v8  ;;  %14887 = vst [vmem:[#allocation149_spill] sm:$0xff] %v10424_v1  ;;  %v1882_v57 = vadd.f32 %v1881_v33, %v1501_v40  ;;  %v1889_v48 = vsel %vm479_vm0, %v1506_v13, 0.0  ;;  %v1510_v29 = vmul.f32 %v10413_v8, %v10413_v8  ;;  %v10458_v40 = vsub.f32 %v7922_v54, %v1062_v38 }
 0x1ae   : > { %14885 = vst [vmem:[#allocation147_spill] sm:$0xff] %v10408_v43  ;;  %1879 = vadd.xlane.f32.xlu1 %v1878_v34  ;;  %14888 = vst [vmem:[#allocation150_spill] sm:$0xff] %v10431_v2  ;;  %v7920_v34 = vld [vmem:[%s14434_s0 + $0x458] sm:$0xff]  ;;  %v1512_v18 = vmul.f32 %v10408_v43, %v10408_v43  ;;  %v1509_v8 = vmul.f32 %v10431_v2, %v10431_v2  ;;  %v1066_v2 = vmul.f32 0.0051020407, %v9562_v53  ;;  %v7927_v53 = vld [vmem:[%s14434_s0 + $0x460] sm:$0xff] }
 0x1af   : > { %1875 = vadd.xlane.f32.xlu0 %v1874_v6  ;;  %v10426_v39 = vpop.xlane.xlu1 %966  ;;  %v10436_v46 = vsub.f32 %v7920_v34, %v1062_v38  ;;  %v1893_v6 = vsel %vm479_vm0, %v1508_v35, 0.0  ;;  %v7921_v34 = vld [vmem:[%s14434_s0 + $0x448] sm:$0xff]  ;;  %v1511_v35 = vmul.f32 %v10424_v1, %v10424_v1  ;;  %14891 = vst [vmem:[#allocation153_spill] sm:$0xff] %v10458_v40  ;;  %v1890_v38 = vadd.f32 %v1889_v48, %v1505_v42 }
 0x1b0   : > { %v10439_v24 = vpop.xlane.xlu0 %962  ;;  %v10451_v7 = vsub.f32 %v7921_v34, %v1061_v3  ;;  %v1894_v33 = vadd.f32 %v1893_v6, %v1507_v19  ;;  %v7925_v6 = vld [vmem:[%s14434_s0 + $0x468] sm:$0xff]  ;;  %v1065_v42 = vmul.f32 0.0051020407, %v9575_v60  ;;  %v1897_v48 = vsel %vm479_vm0, %v1510_v29, 0.0 }
 0x1b1   : > { %14889 = vst [vmem:[#allocation151_spill] sm:$0xff] %v10436_v46  ;;  %v1516_v34 = vmul.f32 %v10436_v46, %v10436_v46  ;;  %v10481_v54 = vsub.f32 %v7925_v6, %v1063_v55 }
 0x1b2   : > { %14890 = vst [vmem:[#allocation152_spill] sm:$0xff] %v10451_v7  ;;  %1887 = vadd.xlane.f32.xlu1 %v1886_v17  ;;  %v7923_v17 = vld [vmem:[%s14434_s0 + $0x478] sm:$0xff]  ;;  %v1514_v46 = vmul.f32 %v10451_v7, %v10451_v7 }
 0x1b3   : > { %1883 = vadd.xlane.f32.xlu0 %v1882_v57  ;;  %v10460_v13 = vpop.xlane.xlu1 %974  ;;  %v10469_v43 = vsub.f32 %v7923_v17, %v1064_v58  ;;  %v7924_v57 = vld [vmem:[%s14434_s0 + $0x440] sm:$0xff]  ;;  %14894 = vst [vmem:[#allocation156_spill] sm:$0xff] %v10481_v54  ;;  %v1901_v17 = vsel %vm479_vm0, %v1512_v18, 0.0  ;;  %v10499_v18 = vsub.f32 %v7927_v53, %v1063_v55  ;;  %v1518_v55 = vmul.f32 %v10481_v54, %v10481_v54 }
 0x1b4   : > { %v10471_v1 = vpop.xlane.xlu0 %970  ;;  %v10476_v19 = vsub.f32 %v7924_v57, %v1061_v3  ;;  %v1515_v3 = vmul.f32 %v10458_v40, %v10458_v40  ;;  %v7926_v57 = vld [vmem:[%s14434_s0 + $0x470] sm:$0xff]  ;;  %v1902_v40 = vadd.f32 %v1901_v17, %v1511_v35  ;;  %v1905_v17 = vsel %vm479_vm0, %v1514_v46, 0.0 }
 0x1b5   : > { %14892 = vst [vmem:[#allocation154_spill] sm:$0xff] %v10469_v43  ;;  %v10494_v6 = vsub.f32 %v7926_v57, %v1064_v58  ;;  %14896 = vst [vmem:[#allocation158_spill] sm:$0xff] %v10499_v18  ;;  %v1520_v29 = vmul.f32 %v10469_v43, %v10469_v43  ;;  %v1909_v58 = vsel %vm479_vm0, %v1516_v34, 0.0  ;;  %v1898_v43 = vadd.f32 %v1897_v48, %v1509_v8  ;;  %v7930_v8 = vld [vmem:[%s14434_s0 + $0x490] sm:$0xff] }
 0x1b6   : > { %14893 = vst [vmem:[#allocation155_spill] sm:$0xff] %v10476_v19  ;;  %1895 = vadd.xlane.f32.xlu1 %v1894_v33  ;;  %v1068_v33 = vmul.f32 0.0051020407, %v9596_v21  ;;  %v1513_v57 = vmul.f32 %v10476_v19, %v10476_v19  ;;  %v7929_v21 = vld [vmem:[%s14434_s0 + $0x488] sm:$0xff]  ;;  %v1067_v34 = vmul.f32 0.0051020407, %v9607_v28  ;;  %v1517_v54 = vmul.f32 %v10499_v18, %v10499_v18 }
 0x1b7   : > { %14895 = vst [vmem:[#allocation157_spill] sm:$0xff] %v10494_v6  ;;  %1891 = vadd.xlane.f32.xlu0 %v1890_v38  ;;  %v10501_v60 = vpop.xlane.xlu1 %982  ;;  %v7928_v38 = vld [vmem:[%s14434_s0 + $0x498] sm:$0xff]  ;;  %v10521_v35 = vsub.f32 %v7929_v21, %v1065_v42  ;;  %v1519_v19 = vmul.f32 %v10494_v6, %v10494_v6  ;;  %v10532_v48 = vsub.f32 %v7930_v8, %v1066_v2  ;;  %v7931_v28 = vld [vmem:[%s14434_s0 + $0x480] sm:$0xff]  ;;  %v1070_v6 = vmul.f32 0.0051020407, %v9637_v49 }
 0x1b8   : > { %v10506_v7 = vpop.xlane.xlu0 %978  ;;  %v10516_v53 = vsub.f32 %v7928_v38, %v1066_v2  ;;  %v1910_v21 = vadd.f32 %v1909_v58, %v1515_v3  ;;  %v10539_v46 = vsub.f32 %v7931_v28, %v1065_v42  ;;  %v1069_v58 = vmul.f32 0.0051020407, %v9642_v27  ;;  %v7934_v27 = vld [vmem:[%s14434_s0 + $0x4b0] sm:$0xff] }
 0x1b9   : > { %14898 = vst [vmem:[#allocation160_spill] sm:$0xff] %v10521_v35  ;;  %14899 = vst [vmem:[#allocation161_spill] sm:$0xff] %v10532_v48  ;;  %v1906_v8 = vadd.f32 %v1905_v17, %v1513_v57  ;;  %v1913_v42 = vsel %vm479_vm0, %v1518_v55, 0.0  ;;  %v1522_v28 = vmul.f32 %v10521_v35, %v10521_v35  ;;  %v10566_v57 = vsub.f32 %v7934_v27, %v1068_v33 }
 0x1ba   : > { %14897 = vst [vmem:[#allocation159_spill] sm:$0xff] %v10516_v53  ;;  %1903 = vadd.xlane.f32.xlu1 %v1902_v40  ;;  %14900 = vst [vmem:[#allocation162_spill] sm:$0xff] %v10539_v46  ;;  %v7932_v40 = vld [vmem:[%s14434_s0 + $0x4b8] sm:$0xff]  ;;  %v1524_v3 = vmul.f32 %v10516_v53, %v10516_v53  ;;  %v1521_v35 = vmul.f32 %v10539_v46, %v10539_v46  ;;  %v1072_v46 = vmul.f32 0.0051020407, %v9670_v9  ;;  %v7939_v9 = vld [vmem:[%s14434_s0 + $0x4c0] sm:$0xff] }
 0x1bb   : > { %1899 = vadd.xlane.f32.xlu0 %v1898_v43  ;;  %v10534_v38 = vpop.xlane.xlu1 %990  ;;  %v10544_v18 = vsub.f32 %v7932_v40, %v1068_v33  ;;  %v1917_v43 = vsel %vm479_vm0, %v1520_v29, 0.0  ;;  %v7933_v40 = vld [vmem:[%s14434_s0 + $0x4a8] sm:$0xff]  ;;  %v1523_v29 = vmul.f32 %v10532_v48, %v10532_v48  ;;  %14903 = vst [vmem:[#allocation165_spill] sm:$0xff] %v10566_v57  ;;  %v1914_v33 = vadd.f32 %v1913_v42, %v1517_v54 }
 0x1bc   : > { %v10547_v2 = vpop.xlane.xlu0 %986  ;;  %v10559_v49 = vsub.f32 %v7933_v40, %v1067_v34  ;;  %v1918_v17 = vadd.f32 %v1917_v43, %v1519_v19  ;;  %v7937_v43 = vld [vmem:[%s14434_s0 + $0x4c8] sm:$0xff]  ;;  %v1071_v54 = vmul.f32 0.0051020407, %v9683_v45  ;;  %v1921_v42 = vsel %vm479_vm0, %v1522_v28, 0.0 }
 0x1bd   : > { %14901 = vst [vmem:[#allocation163_spill] sm:$0xff] %v10544_v18  ;;  %v1528_v40 = vmul.f32 %v10544_v18, %v10544_v18  ;;  %v10589_v27 = vsub.f32 %v7937_v43, %v1069_v58 }
 0x1be   : > { %14902 = vst [vmem:[#allocation164_spill] sm:$0xff] %v10559_v49  ;;  %1911 = vadd.xlane.f32.xlu1 %v1910_v21  ;;  %v7935_v21 = vld [vmem:[%s14434_s0 + $0x4d8] sm:$0xff]  ;;  %v1526_v18 = vmul.f32 %v10559_v49, %v10559_v49  ;;  %v1074_v49 = vmul.f32 0.0051020407, %v9704_v14  ;;  %v7941_v14 = vld [vmem:[%s14434_s0 + $0x4e8] sm:$0xff] }
 0x1bf   : > { %1907 = vadd.xlane.f32.xlu0 %v1906_v8  ;;  %v10568_v55 = vpop.xlane.xlu1 %1639  ;;  %v10577_v53 = vsub.f32 %v7935_v21, %v1070_v6  ;;  %v7936_v8 = vld [vmem:[%s14434_s0 + $0x4a0] sm:$0xff]  ;;  %14906 = vst [vmem:[#allocation168_spill] sm:$0xff] %v10589_v27  ;;  %v1925_v21 = vsel %vm479_vm0, %v1524_v3, 0.0  ;;  %v10607_v3 = vsub.f32 %v7939_v9, %v1069_v58  ;;  %v7940_v9 = vld [vmem:[%s14434_s0 + $0x4f8] sm:$0xff] }
 0x1c0   : > { %v10579_v48 = vpop.xlane.xlu0 %1635  ;;  %v10584_v19 = vsub.f32 %v7936_v8, %v1067_v34  ;;  %v1527_v34 = vmul.f32 %v10566_v57, %v10566_v57  ;;  %v7938_v8 = vld [vmem:[%s14434_s0 + $0x4d0] sm:$0xff] }
 0x1c1   : > { %14904 = vst [vmem:[#allocation166_spill] sm:$0xff] %v10577_v53  ;;  %v10602_v43 = vsub.f32 %v7938_v8, %v1070_v6  ;;  %14908 = vst [vmem:[#allocation170_spill] sm:$0xff] %v10607_v3  ;;  %v1532_v28 = vmul.f32 %v10577_v53, %v10577_v53  ;;  %v1926_v6 = vadd.f32 %v1925_v21, %v1523_v29  ;;  %v1933_v8 = vsel %vm479_vm0, %v1528_v40, 0.0 }
 0x1c2   : > { %14905 = vst [vmem:[#allocation167_spill] sm:$0xff] %v10584_v19  ;;  %1919 = vadd.xlane.f32.xlu1 %v1918_v17  ;;  %v8107_v17 = vmov 0   ;;  %v1525_v58 = vmul.f32 %v10584_v19, %v10584_v19  ;;  %v1922_v53 = vadd.f32 %v1921_v42, %v1521_v35  ;;  %v10629_v29 = vsub.f32 %v7941_v14, %v1071_v54  ;;  %v7942_v35 = vld [vmem:[%s14434_s0 + $0x4f0] sm:$0xff] }
 0x1c3   : > { %14907 = vst [vmem:[#allocation169_spill] sm:$0xff] %v10602_v43  ;;  %1915 = vadd.xlane.f32.xlu0 %v1914_v33  ;;  %v10609_v45 = vpop.xlane.xlu1 %1647  ;;  %7527 = vset.pattern.permute.xlu1 %v8107_v17  ;;  %v1530_v33 = vmul.f32 %v10589_v27, %v10589_v27  ;;  %v1073_v40 = vmul.f32 0.0051020407, %v9715_v23  ;;  %v1929_v21 = vsel %vm479_vm0, %v1526_v18, 0.0  ;;  %v1529_v19 = vmul.f32 %v10607_v3, %v10607_v3  ;;  %v7943_v23 = vld [vmem:[%s14434_s0 + $0x4e0] sm:$0xff] }
 0x1c4   : > { %14909 = vst [vmem:[#allocation171_spill] sm:$0xff] %v10609_v45  ;;  %v10614_v57 = vpop.xlane.xlu0 %1643  ;;  %7526 = vset.pattern.permute.xlu0 %v8107_v17  ;;  %v10624_v45 = vsub.f32 %v7940_v9, %v1072_v46  ;;  %14911 = vst [vmem:[#allocation173_spill] sm:$0xff] %v10629_v29  ;;  %v1531_v17 = vmul.f32 %v10602_v43, %v10602_v43  ;;  %v10640_v42 = vsub.f32 %v7942_v35, %v1072_v46 }
 0x1c5   : > { %v1934_v14 = vadd.f32 %v1933_v8, %v1527_v34  ;;  %v10647_v18 = vsub.f32 %v7943_v23, %v1071_v54  ;;  %v1076_v3 = vmul.f32 0.0051020407, %v9745_v31  ;;  %v1075_v8 = vmul.f32 0.0051020407, %v9750_v10  ;;  %v7946_v10 = vld [vmem:[%s14434_s0 + $0x510] sm:$0xff] }
 0x1c6   : > { %14910 = vst [vmem:[#allocation172_spill] sm:$0xff] %v10624_v45  ;;  %1927 = vadd.xlane.f32.xlu1 %v1926_v6  ;;  %14912 = vst [vmem:[#allocation174_spill] sm:$0xff] %v10640_v42  ;;  %v7944_v6 = vld [vmem:[%s14434_s0 + $0x518] sm:$0xff]  ;;  %v1536_v34 = vmul.f32 %v10624_v45, %v10624_v45  ;;  %v1930_v35 = vadd.f32 %v1929_v21, %v1525_v58  ;;  %v1937_v54 = vsel %vm479_vm0, %v1530_v33, 0.0 }
 0x1c7   : > { %1923 = vadd.xlane.f32.xlu0 %v1922_v53  ;;  %v10642_v9 = vpop.xlane.xlu1 %1655  ;;  %14913 = vst [vmem:[#allocation175_spill] sm:$0xff] %v10647_v18  ;;  %v10652_v27 = vsub.f32 %v7944_v6, %v1074_v49  ;;  %v1941_v53 = vsel %vm479_vm0, %v1532_v28, 0.0  ;;  %v1534_v23 = vmul.f32 %v10629_v29, %v10629_v29  ;;  %v7945_v6 = vld [vmem:[%s14434_s0 + $0x508] sm:$0xff]  ;;  %v1535_v28 = vmul.f32 %v10640_v42, %v10640_v42 }
 0x1c8   : > { %v10655_v46 = vpop.xlane.xlu0 %1651  ;;  %v10667_v31 = vsub.f32 %v7945_v6, %v1073_v40  ;;  %v10674_v58 = vsub.f32 %v7946_v10, %v1074_v49  ;;  %v1942_v21 = vadd.f32 %v1941_v53, %v1531_v17  ;;  %v1533_v43 = vmul.f32 %v10647_v18, %v10647_v18  ;;  %v7949_v53 = vld [vmem:[%s14434_s0 + $0x528] sm:$0xff] }
 0x1c9   : > { %14914 = vst [vmem:[#allocation176_spill] sm:$0xff] %v10652_v27  ;;  %v1540_v6 = vmul.f32 %v10652_v27, %v10652_v27  ;;  %v1938_v49 = vadd.f32 %v1937_v54, %v1529_v19  ;;  %v10697_v10 = vsub.f32 %v7949_v53, %v1075_v8  ;;  %v1078_v27 = vmul.f32 0.0051020407, %v9778_v41  ;;  %v7951_v41 = vld [vmem:[%s14434_s0 + $0x520] sm:$0xff] }
 0x1ca   : > { %14915 = vst [vmem:[#allocation177_spill] sm:$0xff] %v10667_v31  ;;  %1935 = vadd.xlane.f32.xlu1 %v1934_v14  ;;  %14916 = vst [vmem:[#allocation178_spill] sm:$0xff] %v10674_v58  ;;  %v7947_v14 = vld [vmem:[%s14434_s0 + $0x538] sm:$0xff]  ;;  %v1538_v18 = vmul.f32 %v10667_v31, %v10667_v31  ;;  %v1077_v19 = vmul.f32 0.0051020407, %v9791_v61  ;;  %v1945_v54 = vsel %vm479_vm0, %v1534_v23, 0.0 }
 0x1cb   : > { %1931 = vadd.xlane.f32.xlu0 %v1930_v35  ;;  %v10676_v33 = vpop.xlane.xlu1 %1663  ;;  %v10685_v29 = vsub.f32 %v7947_v14, %v1076_v3  ;;  %v7948_v35 = vld [vmem:[%s14434_s0 + $0x500] sm:$0xff]  ;;  %14919 = vst [vmem:[#allocation181_spill] sm:$0xff] %v10697_v10  ;;  %v1949_v14 = vsel %vm479_vm0, %v1536_v34, 0.0  ;;  %v10715_v34 = vsub.f32 %v7951_v41, %v1075_v8  ;;  %v1542_v8 = vmul.f32 %v10697_v10, %v10697_v10 }
 0x1cc   : > { %v10687_v45 = vpop.xlane.xlu0 %1659  ;;  %v10692_v17 = vsub.f32 %v7948_v35, %v1073_v40  ;;  %v1539_v40 = vmul.f32 %v10674_v58, %v10674_v58  ;;  %v7950_v35 = vld [vmem:[%s14434_s0 + $0x530] sm:$0xff]  ;;  %v1950_v31 = vadd.f32 %v1949_v14, %v1535_v28  ;;  %v1953_v14 = vsel %vm479_vm0, %v1538_v18, 0.0 }
 0x1cd   : > { %14917 = vst [vmem:[#allocation179_spill] sm:$0xff] %v10685_v29  ;;  %v10710_v53 = vsub.f32 %v7950_v35, %v1076_v3  ;;  %14921 = vst [vmem:[#allocation183_spill] sm:$0xff] %v10715_v34  ;;  %v1544_v23 = vmul.f32 %v10685_v29, %v10685_v29  ;;  %v1957_v3 = vsel %vm479_vm0, %v1540_v6, 0.0  ;;  %v1946_v29 = vadd.f32 %v1945_v54, %v1533_v43  ;;  %v7954_v43 = vld [vmem:[%s14434_s0 + $0x550] sm:$0xff] }
 0x1ce   : > { %14918 = vst [vmem:[#allocation180_spill] sm:$0xff] %v10692_v17  ;;  %1943 = vadd.xlane.f32.xlu1 %v1942_v21  ;;  %v1080_v21 = vmul.f32 0.0051020407, %v9812_v37  ;;  %v1537_v35 = vmul.f32 %v10692_v17, %v10692_v17  ;;  %v7953_v37 = vld [vmem:[%s14434_s0 + $0x548] sm:$0xff]  ;;  %v1079_v6 = vmul.f32 0.0051020407, %v9823_v30  ;;  %v1541_v10 = vmul.f32 %v10715_v34, %v10715_v34 }
 0x1cf   : > { %14920 = vst [vmem:[#allocation182_spill] sm:$0xff] %v10710_v53  ;;  %1939 = vadd.xlane.f32.xlu0 %v1938_v49  ;;  %v10717_v61 = vpop.xlane.xlu1 %1671  ;;  %v7952_v49 = vld [vmem:[%s14434_s0 + $0x558] sm:$0xff]  ;;  %v10737_v28 = vsub.f32 %v7953_v37, %v1077_v19  ;;  %v1543_v17 = vmul.f32 %v10710_v53, %v10710_v53  ;;  %v10748_v54 = vsub.f32 %v7954_v43, %v1078_v27  ;;  %v7955_v30 = vld [vmem:[%s14434_s0 + $0x540] sm:$0xff]  ;;  %v1082_v53 = vmul.f32 0.0051020407, %v9853_v26 }
 0x1d0   : > { %v10722_v58 = vpop.xlane.xlu0 %1667  ;;  %v10732_v41 = vsub.f32 %v7952_v49, %v1078_v27  ;;  %v1958_v37 = vadd.f32 %v1957_v3, %v1539_v40  ;;  %v10755_v18 = vsub.f32 %v7955_v30, %v1077_v19  ;;  %v1081_v3 = vmul.f32 0.0051020407, %v9858_v62  ;;  %v7958_v62 = vld [vmem:[%s14434_s0 + $0x570] sm:$0xff] }
 0x1d1   : > { %14923 = vst [vmem:[#allocation185_spill] sm:$0xff] %v10737_v28  ;;  %14924 = vst [vmem:[#allocation186_spill] sm:$0xff] %v10748_v54  ;;  %v1954_v43 = vadd.f32 %v1953_v14, %v1537_v35  ;;  %v1961_v19 = vsel %vm479_vm0, %v1542_v8, 0.0  ;;  %v1546_v30 = vmul.f32 %v10737_v28, %v10737_v28  ;;  %v10782_v35 = vsub.f32 %v7958_v62, %v1080_v21 }
 0x1d2   : > { %14922 = vst [vmem:[#allocation184_spill] sm:$0xff] %v10732_v41  ;;  %1951 = vadd.xlane.f32.xlu1 %v1950_v31  ;;  %14925 = vst [vmem:[#allocation187_spill] sm:$0xff] %v10755_v18  ;;  %v7956_v31 = vld [vmem:[%s14434_s0 + $0x578] sm:$0xff]  ;;  %v1548_v40 = vmul.f32 %v10732_v41, %v10732_v41  ;;  %v1545_v28 = vmul.f32 %v10755_v18, %v10755_v18  ;;  %v1084_v18 = vmul.f32 0.0051020407, %v9886_v15  ;;  %v7963_v15 = vld [vmem:[%s14434_s0 + $0x580] sm:$0xff] }
 0x1d3   : > { %1947 = vadd.xlane.f32.xlu0 %v1946_v29  ;;  %v10750_v49 = vpop.xlane.xlu1 %1679  ;;  %v10760_v34 = vsub.f32 %v7956_v31, %v1080_v21  ;;  %v1965_v29 = vsel %vm479_vm0, %v1544_v23, 0.0  ;;  %v7957_v31 = vld [vmem:[%s14434_s0 + $0x568] sm:$0xff]  ;;  %v1547_v23 = vmul.f32 %v10748_v54, %v10748_v54  ;;  %14928 = vst [vmem:[#allocation190_spill] sm:$0xff] %v10782_v35  ;;  %v1962_v21 = vadd.f32 %v1961_v19, %v1541_v10 }
 0x1d4   : > { %v10763_v27 = vpop.xlane.xlu0 %1675  ;;  %v10775_v26 = vsub.f32 %v7957_v31, %v1079_v6  ;;  %v1966_v14 = vadd.f32 %v1965_v29, %v1543_v17  ;;  %v7961_v29 = vld [vmem:[%s14434_s0 + $0x588] sm:$0xff]  ;;  %v1083_v10 = vmul.f32 0.0051020407, %v9899_v56  ;;  %v1969_v19 = vsel %vm479_vm0, %v1546_v30, 0.0 }
 0x1d5   : > { %14926 = vst [vmem:[#allocation188_spill] sm:$0xff] %v10760_v34  ;;  %v1552_v31 = vmul.f32 %v10760_v34, %v10760_v34  ;;  %v10805_v62 = vsub.f32 %v7961_v29, %v1081_v3 }
 0x1d6   : > { %14927 = vst [vmem:[#allocation189_spill] sm:$0xff] %v10775_v26  ;;  %1959 = vadd.xlane.f32.xlu1 %v1958_v37  ;;  %v7959_v37 = vld [vmem:[%s14434_s0 + $0x598] sm:$0xff]  ;;  %v1550_v34 = vmul.f32 %v10775_v26, %v10775_v26 }
 0x1d7   : > { %1955 = vadd.xlane.f32.xlu0 %v1954_v43  ;;  %v10784_v8 = vpop.xlane.xlu1 %1687  ;;  %v10793_v41 = vsub.f32 %v7959_v37, %v1082_v53  ;;  %v7960_v43 = vld [vmem:[%s14434_s0 + $0x560] sm:$0xff]  ;;  %14932 = vst [vmem:[#allocation194_spill] sm:$0xff] %v10805_v62  ;;  %v1973_v37 = vsel %vm479_vm0, %v1548_v40, 0.0  ;;  %v10823_v40 = vsub.f32 %v7963_v15, %v1081_v3  ;;  %v1554_v3 = vmul.f32 %v10805_v62, %v10805_v62 }
 0x1d8   : > { %v10795_v54 = vpop.xlane.xlu0 %1683  ;;  %v10800_v17 = vsub.f32 %v7960_v43, %v1079_v6  ;;  %v1551_v6 = vmul.f32 %v10782_v35, %v10782_v35  ;;  %v7962_v43 = vld [vmem:[%s14434_s0 + $0x590] sm:$0xff]  ;;  %v1974_v35 = vadd.f32 %v1973_v37, %v1547_v23  ;;  %v1977_v37 = vsel %vm479_vm0, %v1550_v34, 0.0 }
 0x1d9   : > { %14929 = vst [vmem:[#allocation191_spill] sm:$0xff] %v10793_v41  ;;  %14930 = vst [vmem:[#allocation192_spill] sm:$0xff] %v10795_v54  ;;  %v10818_v29 = vsub.f32 %v7962_v43, %v1082_v53  ;;  %v1556_v30 = vmul.f32 %v10793_v41, %v10793_v41  ;;  %v1981_v53 = vsel %vm479_vm0, %v1552_v31, 0.0  ;;  %v1970_v41 = vadd.f32 %v1969_v19, %v1545_v28  ;;  %v7966_v28 = vld [vmem:[%s14434_s0 + $0x5b0] sm:$0xff] }
 0x1da   : > { %14931 = vst [vmem:[#allocation193_spill] sm:$0xff] %v10800_v17  ;;  %1967 = vadd.xlane.f32.xlu1 %v1966_v14  ;;  %14934 = vst [vmem:[#allocation196_spill] sm:$0xff] %v10823_v40  ;;  %v1086_v14 = vmul.f32 0.0051020407, %v9920_v47  ;;  %v1549_v43 = vmul.f32 %v10800_v17, %v10800_v17  ;;  %v7965_v47 = vld [vmem:[%s14434_s0 + $0x5a8] sm:$0xff]  ;;  %v1553_v62 = vmul.f32 %v10823_v40, %v10823_v40 }
 0x1db   : > { %14933 = vst [vmem:[#allocation195_spill] sm:$0xff] %v10818_v29  ;;  %1963 = vadd.xlane.f32.xlu0 %v1962_v21  ;;  %v10825_v56 = vpop.xlane.xlu1 %1695  ;;  %v7964_v21 = vld [vmem:[%s14434_s0 + $0x5b8] sm:$0xff]  ;;  %v10845_v23 = vsub.f32 %v7965_v47, %v1083_v10  ;;  %v1085_v31 = vmul.f32 0.0051020407, %v9931_v32  ;;  %v1555_v17 = vmul.f32 %v10818_v29, %v10818_v29  ;;  %v10856_v19 = vsub.f32 %v7966_v28, %v1084_v18  ;;  %v7967_v32 = vld [vmem:[%s14434_s0 + $0x5a0] sm:$0xff] }
 0x1dc   : > { %v10830_v26 = vpop.xlane.xlu0 %1691  ;;  %v10840_v15 = vsub.f32 %v7964_v21, %v1084_v18  ;;  %v1982_v47 = vadd.f32 %v1981_v53, %v1551_v6  ;;  %v10863_v34 = vsub.f32 %v7967_v32, %v1083_v10  ;;  %v1088_v29 = vmul.f32 0.0051020407, %v9961_v36  ;;  %v14942_v53 = vld [vmem:[#allocation99_spill] sm:$0xff] }
 0x1dd   : > { %14935 = vst [vmem:[#allocation197_spill] sm:$0xff] %v10830_v26  ;;  %14937 = vst [vmem:[#allocation199_spill] sm:$0xff] %v10845_v23  ;;  %v1087_v28 = vmul.f32 0.0051020407, %v14942_v53  ;;  %v1978_v42 = vadd.f32 %v1977_v37, %v1549_v43  ;;  %v1985_v10 = vsel %vm479_vm0, %v1554_v3, 0.0  ;;  %v1558_v32 = vmul.f32 %v10845_v23, %v10845_v23  ;;  %v7970_v53 = vld [vmem:[%s14434_s0 + $0x5d0] sm:$0xff] }
 0x1de   : > { %14936 = vst [vmem:[#allocation198_spill] sm:$0xff] %v10840_v15  ;;  %1975 = vadd.xlane.f32.xlu1 %v1974_v35  ;;  %14938 = vst [vmem:[#allocation200_spill] sm:$0xff] %v10856_v19  ;;  %v7968_v35 = vld [vmem:[%s14434_s0 + $0x5d8] sm:$0xff]  ;;  %v1560_v6 = vmul.f32 %v10840_v15, %v10840_v15  ;;  %v10890_v43 = vsub.f32 %v7970_v53, %v1086_v14  ;;  %v1557_v23 = vmul.f32 %v10863_v34, %v10863_v34 }
 0x1df   : > { %1971 = vadd.xlane.f32.xlu0 %v1970_v41  ;;  %v10858_v21 = vpop.xlane.xlu1 %1703  ;;  %14939 = vst [vmem:[#allocation201_spill] sm:$0xff] %v10863_v34  ;;  %v10868_v40 = vsub.f32 %v7968_v35, %v1086_v14  ;;  %v1989_v41 = vsel %vm479_vm0, %v1556_v30, 0.0  ;;  %v7969_v35 = vld [vmem:[%s14434_s0 + $0x5c8] sm:$0xff]  ;;  %v1559_v30 = vmul.f32 %v10856_v19, %v10856_v19  ;;  %v1986_v14 = vadd.f32 %v1985_v10, %v1553_v62  ;;  %v14949_v34 = vld [vmem:[#allocation103_spill] sm:$0xff]  ;;  %v14950_v62 = vld [vmem:[#allocation5_spill] sm:$0xff] }
 0x1e0   : > { %v10871_v18 = vpop.xlane.xlu0 %1699  ;;  %v10883_v36 = vsub.f32 %v7969_v35, %v1085_v31  ;;  %14944 = vst [vmem:[#allocation204_spill] sm:$0xff] %v10890_v43  ;;  %v1990_v37 = vadd.f32 %v1989_v41, %v1555_v17  ;;  %v7973_v41 = vld [vmem:[%s14434_s0 + $0x5e8] sm:$0xff]  ;;  %v1089_v10 = vmul.f32 0.0051020407, %v14950_v62 }
 0x1e1   : > { %14940 = vst [vmem:[#allocation202_spill] sm:$0xff] %v10868_v40  ;;  %14941 = vst [vmem:[#allocation203_spill] sm:$0xff] %v10871_v18  ;;  %v1564_v35 = vmul.f32 %v10868_v40, %v10868_v40  ;;  %v10913_v53 = vsub.f32 %v7973_v41, %v1087_v28  ;;  %v1090_v40 = vmul.f32 0.0051020407, %v14949_v34  ;;  %v1993_v18 = vsel %vm479_vm0, %v1558_v32, 0.0  ;;  %v7975_v34 = vld [vmem:[%s14434_s0 + $0x5e0] sm:$0xff] }
 0x1e2   : > { %14943 = vst [vmem:[#allocation99_spill] sm:$0xff] %v10883_v36  ;;  %1983 = vadd.xlane.f32.xlu1 %v1982_v47  ;;  %v7971_v47 = vld [vmem:[%s14434_s0 + $0x5f8] sm:$0xff] }
 0x1e3   : > { %1979 = vadd.xlane.f32.xlu0 %v1978_v42  ;;  %v10892_v3 = vpop.xlane.xlu1 %1711  ;;  %v10901_v15 = vsub.f32 %v7971_v47, %v1088_v29  ;;  %v7972_v42 = vld [vmem:[%s14434_s0 + $0x5c0] sm:$0xff]  ;;  %14948 = vst [vmem:[#allocation208_spill] sm:$0xff] %v10913_v53  ;;  %v1997_v47 = vsel %vm479_vm0, %v1560_v6, 0.0  ;;  %v10931_v6 = vsub.f32 %v7975_v34, %v1087_v28  ;;  %v1566_v28 = vmul.f32 %v10913_v53, %v10913_v53 }
 0x1e4   : > { %v10903_v19 = vpop.xlane.xlu0 %1707  ;;  %v10908_v17 = vsub.f32 %v7972_v42, %v1085_v31  ;;  %v1563_v31 = vmul.f32 %v10890_v43, %v10890_v43  ;;  %v7974_v42 = vld [vmem:[%s14434_s0 + $0x5f0] sm:$0xff]  ;;  %v1998_v26 = vadd.f32 %v1997_v47, %v1559_v30 }
 0x1e5   : > { %14945 = vst [vmem:[#allocation205_spill] sm:$0xff] %v10901_v15  ;;  %14946 = vst [vmem:[#allocation206_spill] sm:$0xff] %v10903_v19  ;;  %v1562_v19 = vmul.f32 %v10883_v36, %v10883_v36  ;;  %v10926_v41 = vsub.f32 %v7974_v42, %v1088_v29  ;;  %v1568_v32 = vmul.f32 %v10901_v15, %v10901_v15  ;;  %v2005_v29 = vsel %vm479_vm0, %v1564_v35, 0.0  ;;  %v14957_v35 = vld [vmem:[#allocation109_spill] sm:$0xff] }
 0x1e6   : > { %14947 = vst [vmem:[#allocation207_spill] sm:$0xff] %v10908_v17  ;;  %1991 = vadd.xlane.f32.xlu1 %v1990_v37  ;;  %14952 = vst [vmem:[#allocation5_spill] sm:$0xff] %v10931_v6  ;;  %v14953_v37 = vld [vmem:[#allocation107_spill] sm:$0xff]  ;;  %v1561_v42 = vmul.f32 %v10908_v17, %v10908_v17  ;;  %v1994_v15 = vadd.f32 %v1993_v18, %v1557_v23  ;;  %v1091_v47 = vmul.f32 0.0051020407, %v14957_v35  ;;  %v7980_v35 = vld [vmem:[%s14434_s0 + $0x638] sm:$0xff] }
 0x1e7   : > { %14951 = vst [vmem:[#allocation103_spill] sm:$0xff] %v10926_v41  ;;  %1987 = vadd.xlane.f32.xlu0 %v1986_v14  ;;  %v10933_v62 = vpop.xlane.xlu1 %1719  ;;  %v1092_v36 = vmul.f32 0.0051020407, %v14953_v37  ;;  %v7976_v14 = vld [vmem:[%s14434_s0 + $0x618] sm:$0xff]  ;;  %v7977_v37 = vld [vmem:[%s14434_s0 + $0x608] sm:$0xff]  ;;  %v2001_v17 = vsel %vm479_vm0, %v1562_v19, 0.0  ;;  %v1567_v53 = vmul.f32 %v10926_v41, %v10926_v41 }
 0x1e8   : > { %v10938_v43 = vpop.xlane.xlu0 %1715  ;;  %v10948_v34 = vsub.f32 %v7976_v14, %v1090_v40  ;;  %v10953_v30 = vsub.f32 %v7977_v37, %v1089_v10  ;;  %v7978_v23 = vld [vmem:[%s14434_s0 + $0x610] sm:$0xff]  ;;  %v2006_v37 = vadd.f32 %v2005_v29, %v1563_v31  ;;  %v14962_v41 = vld [vmem:[#allocation112_spill] sm:$0xff]  ;;  %v14964_v29 = vld [vmem:[#allocation9_spill] sm:$0xff] }
 0x1e9   : > { %14954 = vst [vmem:[#allocation107_spill] sm:$0xff] %v10938_v43  ;;  %v1565_v43 = vmul.f32 %v10931_v6, %v10931_v6  ;;  %v10964_v18 = vsub.f32 %v7978_v23, %v1090_v40  ;;  %v10976_v6 = vsub.f32 %v7980_v35, %v1092_v36  ;;  %v1094_v54 = vmul.f32 0.0051020407, %v14962_v41  ;;  %v7981_v35 = vld [vmem:[%s14434_s0 + $0x628] sm:$0xff] }
 0x1ea   : > { %14955 = vst [vmem:[#allocation209_spill] sm:$0xff] %v10948_v34  ;;  %14956 = vst [vmem:[#allocation210_spill] sm:$0xff] %v10953_v30  ;;  %1999 = vadd.xlane.f32.xlu1 %v1998_v26  ;;  %v7979_v26 = vld [vmem:[%s14434_s0 + $0x600] sm:$0xff]  ;;  %v1572_v31 = vmul.f32 %v10948_v34, %v10948_v34  ;;  %v1093_v23 = vmul.f32 0.0051020407, %v14964_v29  ;;  %v10991_v41 = vsub.f32 %v7981_v35, %v1091_v47  ;;  %v7982_v29 = vld [vmem:[%s14434_s0 + $0x630] sm:$0xff] }
 0x1eb   : > { %14958 = vst [vmem:[#allocation109_spill] sm:$0xff] %v10964_v18  ;;  %1995 = vadd.xlane.f32.xlu0 %v1994_v15  ;;  %v10966_v14 = vpop.xlane.xlu1 %1727  ;;  %v10971_v19 = vsub.f32 %v7979_v26, %v1089_v10  ;;  %14961 = vst [vmem:[#allocation213_spill] sm:$0xff] %v10976_v6  ;;  %v2013_v15 = vsel %vm479_vm0, %v1568_v32, 0.0  ;;  %v2009_v10 = vsel %vm479_vm0, %v1566_v28, 0.0  ;;  %v1570_v26 = vmul.f32 %v10953_v30, %v10953_v30 }
 0x1ec   : > { %14959 = vst [vmem:[#allocation211_spill] sm:$0xff] %v10966_v14  ;;  %v10979_v40 = vpop.xlane.xlu0 %1723  ;;  %v2002_v14 = vadd.f32 %v2001_v17, %v1561_v42  ;;  %14965 = vst [vmem:[#allocation9_spill] sm:$0xff] %v10991_v41  ;;  %v1571_v32 = vmul.f32 %v10964_v18, %v10964_v18  ;;  %v10998_v17 = vsub.f32 %v7982_v29, %v1092_v36 }
 0x1ed   : > { %14960 = vst [vmem:[#allocation212_spill] sm:$0xff] %v10971_v19  ;;  %14963 = vst [vmem:[#allocation112_spill] sm:$0xff] %v10979_v40  ;;  %v2014_v28 = vadd.f32 %v2013_v15, %v1567_v53  ;;  %v1569_v30 = vmul.f32 %v10971_v19, %v10971_v19  ;;  %v1576_v35 = vmul.f32 %v10976_v6, %v10976_v6  ;;  %v7985_v15 = vld [vmem:[%s14434_s0 + $0x648] sm:$0xff]  ;;  %v14971_v19 = vld [vmem:[#allocation115_spill] sm:$0xff] }
 0x1ee   : > { %2007 = vadd.xlane.f32.xlu1 %v2006_v37  ;;  %14966 = vst [vmem:[#allocation214_spill] sm:$0xff] %v10998_v17  ;;  %v7983_v37 = vld [vmem:[%s14434_s0 + $0x658] sm:$0xff]  ;;  %v2010_v36 = vadd.f32 %v2009_v10, %v1565_v43  ;;  %v11021_v29 = vsub.f32 %v7985_v15, %v1093_v23  ;;  %v1096_v6 = vmul.f32 0.0051020407, %v14971_v19  ;;  %v1095_v43 = vmul.f32 0.0051020407, %v10115_v63 }
 0x1ef   : > { %2003 = vadd.xlane.f32.xlu0 %v2002_v14  ;;  %v11000_v42 = vpop.xlane.xlu1 %1735  ;;  %v11009_v34 = vsub.f32 %v7983_v37, %v1094_v54  ;;  %v7984_v14 = vld [vmem:[%s14434_s0 + $0x620] sm:$0xff]  ;;  %v2021_v37 = vsel %vm479_vm0, %v1572_v31, 0.0  ;;  %v2017_v10 = vsel %vm479_vm0, %v1570_v26, 0.0  ;;  %v14973_v19 = vld [vmem:[#allocation118_spill] sm:$0xff] }
 0x1f0   : > { %v11011_v18 = vpop.xlane.xlu0 %1731  ;;  %v11016_v53 = vsub.f32 %v7984_v14, %v1091_v47  ;;  %14970 = vst [vmem:[#allocation218_spill] sm:$0xff] %v11021_v29  ;;  %v1575_v47 = vmul.f32 %v10998_v17, %v10998_v17  ;;  %v7986_v14 = vld [vmem:[%s14434_s0 + $0x650] sm:$0xff]  ;;  %v1098_v40 = vmul.f32 0.0051020407, %v14973_v19  ;;  %v7987_v26 = vld [vmem:[%s14434_s0 + $0x640] sm:$0xff]  ;;  %v2022_v17 = vadd.f32 %v2021_v37, %v1571_v32  ;;  %v7988_v19 = vld [vmem:[%s14434_s0 + $0x678] sm:$0xff] }
 0x1f1   : > { %14967 = vst [vmem:[#allocation215_spill] sm:$0xff] %v11009_v34  ;;  %14968 = vst [vmem:[#allocation216_spill] sm:$0xff] %v11011_v18  ;;  %v1574_v18 = vmul.f32 %v10991_v41, %v10991_v41  ;;  %v11034_v15 = vsub.f32 %v7986_v14, %v1094_v54  ;;  %v1580_v63 = vmul.f32 %v11009_v34, %v11009_v34  ;;  %v2029_v54 = vsel %vm479_vm0, %v1576_v35, 0.0  ;;  %v14979_v35 = vld [vmem:[#allocation120_spill] sm:$0xff] }
 0x1f2   : > { %14969 = vst [vmem:[#allocation217_spill] sm:$0xff] %v11016_v53  ;;  %2015 = vadd.xlane.f32.xlu1 %v2014_v28  ;;  %v11044_v28 = vsub.f32 %v7987_v26, %v1093_v23  ;;  %v1573_v14 = vmul.f32 %v11016_v53, %v11016_v53  ;;  %v11056_v34 = vsub.f32 %v7988_v19, %v1096_v6  ;;  %v7989_v23 = vld [vmem:[%s14434_s0 + $0x668] sm:$0xff]  ;;  %v1097_v37 = vmul.f32 0.0051020407, %v14979_v35  ;;  %v7990_v19 = vld [vmem:[%s14434_s0 + $0x698] sm:$0xff] }
 0x1f3   : > { %14972 = vst [vmem:[#allocation115_spill] sm:$0xff] %v11034_v15  ;;  %2011 = vadd.xlane.f32.xlu0 %v2010_v36  ;;  %v11037_v31 = vpop.xlane.xlu1 %1743  ;;  %v1578_v36 = vmul.f32 %v11021_v29, %v11021_v29  ;;  %v11061_v32 = vsub.f32 %v7989_v23, %v1095_v43  ;;  %v2025_v26 = vsel %vm479_vm0, %v1574_v18, 0.0  ;;  %v1579_v53 = vmul.f32 %v11034_v15, %v11034_v15  ;;  %v7991_v18 = vld [vmem:[%s14434_s0 + $0x670] sm:$0xff] }
 0x1f4   : > { %14974 = vst [vmem:[#allocation118_spill] sm:$0xff] %v11037_v31  ;;  %14975 = vst [vmem:[#allocation219_spill] sm:$0xff] %v11044_v28  ;;  %v11046_v41 = vpop.xlane.xlu0 %1739  ;;  %v2018_v31 = vadd.f32 %v2017_v10, %v1569_v30  ;;  %v11070_v29 = vsub.f32 %v7990_v19, %v1098_v40  ;;  %v1100_v30 = vmul.f32 0.0051020407, %v10177_v20  ;;  %v2030_v23 = vadd.f32 %v2029_v54, %v1575_v47  ;;  %v7992_v47 = vld [vmem:[%s14434_s0 + $0x660] sm:$0xff] }
 0x1f5   : > { %14976 = vst [vmem:[#allocation220_spill] sm:$0xff] %v11046_v41  ;;  %14977 = vst [vmem:[#allocation221_spill] sm:$0xff] %v11056_v34  ;;  %v11080_v35 = vsub.f32 %v7991_v18, %v1096_v6  ;;  %v1099_v15 = vmul.f32 0.0051020407, %v10182_v59  ;;  %v2037_v19 = vsel %vm479_vm0, %v1580_v63, 0.0  ;;  %v1584_v20 = vmul.f32 %v11056_v34, %v11056_v34  ;;  %v7993_v59 = vld [vmem:[%s14434_s0 + $0x690] sm:$0xff] }
 0x1f6   : > { %14978 = vst [vmem:[#allocation222_spill] sm:$0xff] %v11061_v32  ;;  %2023 = vadd.xlane.f32.xlu1 %v2022_v17  ;;  %14980 = vst [vmem:[#allocation120_spill] sm:$0xff] %v11070_v29  ;;  %v1577_v17 = vmul.f32 %v11044_v28, %v11044_v28  ;;  %v2026_v54 = vadd.f32 %v2025_v26, %v1573_v14  ;;  %v2033_v28 = vsel %vm479_vm0, %v1578_v36, 0.0  ;;  %v7994_v18 = vld [vmem:[%s14434_s0 + $0x688] sm:$0xff]  ;;  %v7995_v14 = vld [vmem:[%s14434_s0 + $0x6b8] sm:$0xff] }
 0x1f7   : > { %2019 = vadd.xlane.f32.xlu0 %v2018_v31  ;;  %v11073_v10 = vpop.xlane.xlu1 %1751  ;;  %14981 = vst [vmem:[#allocation223_spill] sm:$0xff] %v11080_v35  ;;  %v11091_v31 = vsub.f32 %v7992_v47, %v1095_v43  ;;  %v1582_v6 = vmul.f32 %v11061_v32, %v11061_v32  ;;  %v11099_v63 = vsub.f32 %v7993_v59, %v1098_v40 }
 0x1f8   : > { %v11083_v41 = vpop.xlane.xlu0 %1747  ;;  %v11104_v34 = vsub.f32 %v7994_v18, %v1097_v37  ;;  %v1588_v43 = vmul.f32 %v11070_v29, %v11070_v29  ;;  %v11111_v36 = vsub.f32 %v7995_v14, %v1100_v30  ;;  %v2038_v40 = vadd.f32 %v2037_v19, %v1579_v53  ;;  %v7997_v53 = vld [vmem:[%s14434_s0 + $0x680] sm:$0xff] }
 0x1f9   : > { %14982 = vst [vmem:[#allocation224_spill] sm:$0xff] %v11091_v31  ;;  %14983 = vst [vmem:[#allocation225_spill] sm:$0xff] %v11099_v63  ;;  %v1583_v47 = vmul.f32 %v11080_v35, %v11080_v35  ;;  %v1102_v18 = vmul.f32 0.0051020407, %v10210_v25  ;;  %v2034_v29 = vadd.f32 %v2033_v28, %v1577_v17  ;;  %v11130_v19 = vsub.f32 %v7997_v53, %v1097_v37  ;;  %v7998_v17 = vld [vmem:[%s14434_s0 + $0x6b0] sm:$0xff]  ;;  %v7999_v37 = vld [vmem:[%s14434_s0 + $0x6a0] sm:$0xff] }
 0x1fa   : > { %14984 = vst [vmem:[#allocation226_spill] sm:$0xff] %v11104_v34  ;;  %2031 = vadd.xlane.f32.xlu1 %v2030_v23  ;;  %14985 = vst [vmem:[#allocation227_spill] sm:$0xff] %v11111_v36  ;;  %v7996_v23 = vld [vmem:[%s14434_s0 + $0x6a8] sm:$0xff]  ;;  %v1101_v14 = vmul.f32 0.0051020407, %v10223_v22  ;;  %v2045_v35 = vsel %vm479_vm0, %v1584_v20, 0.0  ;;  %v1586_v25 = vmul.f32 %v11104_v34, %v11104_v34  ;;  %v1592_v22 = vmul.f32 %v11111_v36, %v11111_v36 }
 0x1fb   : > { %2027 = vadd.xlane.f32.xlu0 %v2026_v54  ;;  %v11113_v26 = vpop.xlane.xlu1 %1759  ;;  %v11120_v59 = vsub.f32 %v7996_v23, %v1099_v15  ;;  %v1581_v54 = vmul.f32 %v11091_v31, %v11091_v31  ;;  %14988 = vst [vmem:[#allocation230_spill] sm:$0xff] %v11130_v19  ;;  %v1587_v23 = vmul.f32 %v11099_v63, %v11099_v63  ;;  %v2041_v28 = vsel %vm479_vm0, %v1582_v6, 0.0 }
 0x1fc   : > { %v11123_v32 = vpop.xlane.xlu0 %1755  ;;  %v11142_v31 = vsub.f32 %v7998_v17, %v1100_v30  ;;  %v11149_v20 = vsub.f32 %v7999_v37, %v1099_v15  ;;  %v2053_v6 = vsel %vm479_vm0, %v1588_v43, 0.0  ;;  %v8000_v30 = vld [vmem:[%s14434_s0 + $0x6d8] sm:$0xff]  ;;  %v1104_v34 = vmul.f32 0.0051020407, %v10244_v51  ;;  %v8001_v43 = vld [vmem:[%s14434_s0 + $0x6c8] sm:$0xff] }
 0x1fd   : > { %14986 = vst [vmem:[#allocation228_spill] sm:$0xff] %v11120_v59  ;;  %14987 = vst [vmem:[#allocation229_spill] sm:$0xff] %v11123_v32  ;;  %v11159_v17 = vsub.f32 %v8000_v30, %v1102_v18  ;;  %v2046_v15 = vadd.f32 %v2045_v35, %v1583_v47  ;;  %v11169_v37 = vsub.f32 %v8001_v43, %v1101_v14  ;;  %v2049_v32 = vsel %vm479_vm0, %v1586_v25, 0.0  ;;  %v8002_v47 = vld [vmem:[%s14434_s0 + $0x6d0] sm:$0xff] }
 0x1fe   : > { %2039 = vadd.xlane.f32.xlu1 %v2038_v40  ;;  %14989 = vst [vmem:[#allocation231_spill] sm:$0xff] %v11142_v31  ;;  %14990 = vst [vmem:[#allocation232_spill] sm:$0xff] %v11149_v20  ;;  %v1590_v40 = vmul.f32 %v11120_v59, %v11120_v59  ;;  %v1103_v59 = vmul.f32 0.0051020407, %v10255_v4  ;;  %v2042_v36 = vadd.f32 %v2041_v28, %v1581_v54  ;;  %v2061_v4 = vsel %vm479_vm0, %v1592_v22, 0.0  ;;  %v8004_v28 = vld [vmem:[%s14434_s0 + $0x6f8] sm:$0xff] }
 0x1ff   : > { %2035 = vadd.xlane.f32.xlu0 %v2034_v29  ;;  %v11151_v53 = vpop.xlane.xlu1 %1767  ;;  %14991 = vst [vmem:[#allocation233_spill] sm:$0xff] %v11159_v17  ;;  %v1585_v29 = vmul.f32 %v11130_v19, %v11130_v19  ;;  %14992 = vst [vmem:[#allocation234_spill] sm:$0xff] %v11169_v37  ;;  %v2054_v30 = vadd.f32 %v2053_v6, %v1587_v23  ;;  %v1591_v51 = vmul.f32 %v11142_v31, %v11142_v31  ;;  %v8003_v23 = vld [vmem:[%s14434_s0 + $0x6c0] sm:$0xff] }
 0x200   : > { %v11162_v63 = vpop.xlane.xlu0 %1763  ;;  %v1589_v35 = vmul.f32 %v11149_v20, %v11149_v20  ;;  %v11180_v19 = vsub.f32 %v8002_v47, %v1102_v18  ;;  %v1596_v54 = vmul.f32 %v11159_v17, %v11159_v17  ;;  %v11190_v25 = vsub.f32 %v8003_v23, %v1101_v14 }
 0x201   : > { %v11195_v18 = vsub.f32 %v8004_v28, %v1104_v34  ;;  %v2057_v6 = vsel %vm479_vm0, %v1590_v40, 0.0  ;;  %v1594_v22 = vmul.f32 %v11169_v37, %v11169_v37  ;;  %v1106_v14 = vmul.f32 0.0051020407, %v10285_v5  ;;  %v8006_v40 = vld [vmem:[%s14434_s0 + $0x6f0] sm:$0xff] }
 0x202   : > { %2047 = vadd.xlane.f32.xlu1 %v2046_v15  ;;  %14993 = vst [vmem:[#allocation235_spill] sm:$0xff] %v11180_v19  ;;  %14994 = vst [vmem:[#allocation236_spill] sm:$0xff] %v11190_v25  ;;  %v8005_v15 = vld [vmem:[%s14434_s0 + $0x6e8] sm:$0xff]  ;;  %v2050_v23 = vadd.f32 %v2049_v32, %v1585_v29  ;;  %v1105_v20 = vmul.f32 0.0051020407, %v10290_v44  ;;  %v1595_v28 = vmul.f32 %v11180_v19, %v11180_v19  ;;  %v8007_v32 = vld [vmem:[%s14434_s0 + $0x6e0] sm:$0xff] }
 0x203   : > { %2043 = vadd.xlane.f32.xlu0 %v2042_v36  ;;  %v11182_v43 = vpop.xlane.xlu1 %1775  ;;  %14995 = vst [vmem:[#allocation237_spill] sm:$0xff] %v11195_v18  ;;  %v11205_v47 = vsub.f32 %v8005_v15, %v1103_v59  ;;  %v11214_v31 = vsub.f32 %v8006_v40, %v1104_v34  ;;  %v2062_v15 = vadd.f32 %v2061_v4, %v1591_v51  ;;  %v2069_v34 = vsel %vm479_vm0, %v1596_v54, 0.0 }
 0x204   : > { %v11197_v36 = vpop.xlane.xlu0 %1771  ;;  %v2058_v17 = vadd.f32 %v2057_v6, %v1589_v35  ;;  %v1593_v5 = vmul.f32 %v11190_v25, %v11190_v25  ;;  %v1600_v44 = vmul.f32 %v11195_v18, %v11195_v18  ;;  %v11225_v29 = vsub.f32 %v8007_v32, %v1103_v59  ;;  %v8008_v35 = vld [vmem:[%s14434_s0 + $0x718] sm:$0xff]  ;;  %v8009_v59 = vld [vmem:[%s14434_s0 + $0x708] sm:$0xff] }
 0x205   : > { %14996 = vst [vmem:[#allocation238_spill] sm:$0xff] %v11205_v47  ;;  %14997 = vst [vmem:[#allocation239_spill] sm:$0xff] %v11214_v31  ;;  %v1598_v51 = vmul.f32 %v11205_v47, %v11205_v47  ;;  %v11235_v4 = vsub.f32 %v8008_v35, %v1106_v14  ;;  %v1108_v6 = vmul.f32 0.0051020407, %v10318_v0  ;;  %v11242_v40 = vsub.f32 %v8009_v59, %v1105_v20  ;;  %v8010_v59 = vld [vmem:[%s14434_s0 + $0x710] sm:$0xff] }
 0x206   : > { %2055 = vadd.xlane.f32.xlu1 %v2054_v30  ;;  %14998 = vst [vmem:[#allocation240_spill] sm:$0xff] %v11225_v29  ;;  %v1107_v54 = vmul.f32 0.0051020407, %v10331_v50  ;;  %v1599_v32 = vmul.f32 %v11214_v31, %v11214_v31  ;;  %v1110_v25 = vmul.f32 0.0051020407, %v10352_v11  ;;  %v2070_v0 = vadd.f32 %v2069_v34, %v1595_v28  ;;  %v8012_v34 = vld [vmem:[%s14434_s0 + $0x738] sm:$0xff] }
 0x207   : > { %2051 = vadd.xlane.f32.xlu0 %v2050_v23  ;;  %v11216_v37 = vpop.xlane.xlu1 %1783  ;;  %14999 = vst [vmem:[#allocation241_spill] sm:$0xff] %v11235_v4  ;;  %v2065_v23 = vsel %vm479_vm0, %v1594_v22, 0.0  ;;  %15000 = vst [vmem:[#allocation242_spill] sm:$0xff] %v11242_v40  ;;  %v1597_v22 = vmul.f32 %v11225_v29, %v11225_v29  ;;  %v11255_v19 = vsub.f32 %v8010_v59, %v1106_v14  ;;  %v2077_v47 = vsel %vm479_vm0, %v1600_v44, 0.0  ;;  %v8013_v44 = vld [vmem:[%s14434_s0 + $0x728] sm:$0xff] }
 0x208   : > { %v11227_v30 = vpop.xlane.xlu0 %1779  ;;  %v1604_v11 = vmul.f32 %v11235_v4, %v11235_v4  ;;  %v11270_v14 = vsub.f32 %v8012_v34, %v1108_v6  ;;  %v2073_v59 = vsel %vm479_vm0, %v1598_v51, 0.0  ;;  %v1112_v51 = vmul.f32 0.0051020407, %v10393_v52 }
 0x209   : > { %15001 = vst [vmem:[#allocation243_spill] sm:$0xff] %v11255_v19  ;;  %v1603_v29 = vmul.f32 %v11255_v19, %v11255_v19 }
 0x20a   : > { %2063 = vadd.xlane.f32.xlu1 %v2062_v15  ;;  %v2066_v15 = vadd.f32 %v2065_v23, %v1593_v5  ;;  %15003 = vst [vmem:[#allocation245_spill] sm:$0xff] %v11270_v14  ;;  %v1602_v5 = vmul.f32 %v11242_v40, %v11242_v40  ;;  %v11278_v23 = vsub.f32 %v8013_v44, %v1107_v54  ;;  %v1111_v44 = vmul.f32 0.0051020407, %v10398_v12 }
 0x20b   : > { %2059 = vadd.xlane.f32.xlu0 %v2058_v17  ;;  %v11248_v35 = vpop.xlane.xlu1 %1791  ;;  %v8011_v17 = vld [vmem:[%s14434_s0 + $0x700] sm:$0xff]  ;;  %v2078_v40 = vadd.f32 %v2077_v47, %v1599_v32  ;;  %v1608_v47 = vmul.f32 %v11270_v14, %v11270_v14 }
 0x20c   : > { %v11257_v50 = vpop.xlane.xlu0 %1787  ;;  %v11265_v28 = vsub.f32 %v8011_v17, %v1105_v20  ;;  %15004 = vst [vmem:[#allocation246_spill] sm:$0xff] %v11278_v23  ;;  %v1109_v20 = vmul.f32 0.0051020407, %v10363_v16  ;;  %v8014_v17 = vld [vmem:[%s14434_s0 + $0x758] sm:$0xff]  ;;  %v8015_v16 = vld [vmem:[%s14434_s0 + $0x730] sm:$0xff]  ;;  %v8016_v32 = vld [vmem:[%s14434_s0 + $0x720] sm:$0xff]  ;;  %v1606_v12 = vmul.f32 %v11278_v23, %v11278_v23 }
 0x20d   : > { %v11284_v34 = vsub.f32 %v8014_v17, %v1110_v25  ;;  %v2074_v17 = vadd.f32 %v2073_v59, %v1597_v22  ;;  %v8017_v22 = vld [vmem:[%s14434_s0 + $0x750] sm:$0xff]  ;;  %v2093_v31 = vsel %vm479_vm0, %v1608_v47, 0.0  ;;  %v8023_v47 = vld [vmem:[%s14434_s0 + $0x760] sm:$0xff] }
 0x20e   : > { %15002 = vst [vmem:[#allocation244_spill] sm:$0xff] %v11265_v28  ;;  %2071 = vadd.xlane.f32.xlu1 %v2070_v0  ;;  %v11294_v0 = vsub.f32 %v8015_v16, %v1108_v6  ;;  %v1601_v52 = vmul.f32 %v11265_v28, %v11265_v28  ;;  %v2085_v6 = vsel %vm479_vm0, %v1604_v11, 0.0  ;;  %v11314_v59 = vsub.f32 %v8017_v22, %v1110_v25  ;;  %v8018_v16 = vld [vmem:[%s14434_s0 + $0x748] sm:$0xff] }
 0x20f   : > { %15005 = vst [vmem:[#allocation247_spill] sm:$0xff] %v11284_v34  ;;  %2067 = vadd.xlane.f32.xlu0 %v2066_v15  ;;  %v11287_v4 = vpop.xlane.xlu1 %1799  ;;  %v11306_v15 = vsub.f32 %v8016_v32, %v1107_v54  ;;  %v11319_v19 = vsub.f32 %v8018_v16, %v1109_v20  ;;  %v2081_v54 = vsel %vm479_vm0, %v1602_v5, 0.0  ;;  %v1612_v11 = vmul.f32 %v11284_v34, %v11284_v34  ;;  %v8019_v32 = vld [vmem:[%s14434_s0 + $0x778] sm:$0xff] }
 0x210   : > { %15006 = vst [vmem:[#allocation248_spill] sm:$0xff] %v11294_v0  ;;  %v11297_v18 = vpop.xlane.xlu0 %1795  ;;  %15008 = vst [vmem:[#allocation250_spill] sm:$0xff] %v11314_v59  ;;  %v11327_v28 = vsub.f32 %v8019_v32, %v1112_v51  ;;  %v1607_v22 = vmul.f32 %v11294_v0, %v11294_v0  ;;  %v1114_v16 = vmul.f32 0.0051020407, %v10426_v39  ;;  %v2086_v14 = vadd.f32 %v2085_v6, %v1603_v29 }
 0x211   : > { %15007 = vst [vmem:[#allocation249_spill] sm:$0xff] %v11306_v15  ;;  %15009 = vst [vmem:[#allocation251_spill] sm:$0xff] %v11319_v19  ;;  %v1605_v32 = vmul.f32 %v11306_v15, %v11306_v15  ;;  %v2082_v0 = vadd.f32 %v2081_v54, %v1601_v52  ;;  %v1610_v39 = vmul.f32 %v11319_v19, %v11319_v19  ;;  %v1113_v29 = vmul.f32 0.0051020407, %v10439_v24  ;;  %v8022_v15 = vld [vmem:[%s14434_s0 + $0x770] sm:$0xff] }
 0x212   : > { %2079 = vadd.xlane.f32.xlu1 %v2078_v40  ;;  %15010 = vst [vmem:[#allocation252_spill] sm:$0xff] %v11327_v28  ;;  %v8020_v40 = vld [vmem:[%s14434_s0 + $0x768] sm:$0xff]  ;;  %v2089_v6 = vsel %vm479_vm0, %v1606_v12, 0.0  ;;  %v1616_v52 = vmul.f32 %v11327_v28, %v11327_v28  ;;  %v11365_v54 = vsub.f32 %v8023_v47, %v1111_v44  ;;  %v1115_v47 = vmul.f32 0.0051020407, %v10471_v1  ;;  %v8026_v1 = vld [vmem:[%s14434_s0 + $0x790] sm:$0xff] }
 0x213   : > { %2075 = vadd.xlane.f32.xlu0 %v2074_v17  ;;  %v11329_v25 = vpop.xlane.xlu1 %1807  ;;  %v11336_v5 = vsub.f32 %v8020_v40, %v1111_v44  ;;  %v8021_v17 = vld [vmem:[%s14434_s0 + $0x740] sm:$0xff]  ;;  %v1611_v40 = vmul.f32 %v11314_v59, %v11314_v59  ;;  %v2094_v44 = vadd.f32 %v2093_v31, %v1607_v22  ;;  %v8025_v59 = vld [vmem:[%s14434_s0 + $0x788] sm:$0xff]  ;;  %v2097_v28 = vsel %vm479_vm0, %v1610_v39, 0.0  ;;  %v8027_v39 = vld [vmem:[%s14434_s0 + $0x7b8] sm:$0xff] }
 0x214   : > { %v11339_v23 = vpop.xlane.xlu0 %1803  ;;  %v11346_v34 = vsub.f32 %v8021_v17, %v1109_v20  ;;  %v11358_v20 = vsub.f32 %v8022_v15, %v1112_v51  ;;  %15014 = vst [vmem:[#allocation256_spill] sm:$0xff] %v11365_v54  ;;  %v8024_v51 = vld [vmem:[%s14434_s0 + $0x798] sm:$0xff]  ;;  %v1116_v17 = vmul.f32 0.0051020407, %v10460_v13  ;;  %v1613_v31 = vmul.f32 %v11365_v54, %v11365_v54 }
 0x215   : > { %15011 = vst [vmem:[#allocation253_spill] sm:$0xff] %v11336_v5  ;;  %v1614_v12 = vmul.f32 %v11336_v5, %v11336_v5  ;;  %v11375_v15 = vsub.f32 %v8024_v51, %v1114_v16  ;;  %v11386_v5 = vsub.f32 %v8025_v59, %v1113_v29  ;;  %v11396_v22 = vsub.f32 %v8026_v1, %v1114_v16  ;;  %v8029_v1 = vld [vmem:[%s14434_s0 + $0x7a8] sm:$0xff] }
 0x216   : > { %15012 = vst [vmem:[#allocation254_spill] sm:$0xff] %v11346_v34  ;;  %2087 = vadd.xlane.f32.xlu1 %v2086_v14  ;;  %15013 = vst [vmem:[#allocation255_spill] sm:$0xff] %v11358_v20  ;;  %v2101_v14 = vsel %vm479_vm0, %v1612_v11, 0.0  ;;  %v2090_v11 = vadd.f32 %v2089_v6, %v1605_v32  ;;  %v1615_v13 = vmul.f32 %v11358_v20, %v11358_v20  ;;  %v2109_v59 = vsel %vm479_vm0, %v1616_v52, 0.0 }
 0x217   : > { %2083 = vadd.xlane.f32.xlu0 %v2082_v0  ;;  %v11367_v24 = vpop.xlane.xlu1 %1815  ;;  %15015 = vst [vmem:[#allocation257_spill] sm:$0xff] %v11375_v15  ;;  %v1609_v0 = vmul.f32 %v11346_v34, %v11346_v34  ;;  %15016 = vst [vmem:[#allocation258_spill] sm:$0xff] %v11386_v5  ;;  %v2102_v51 = vadd.f32 %v2101_v14, %v1611_v40  ;;  %v1620_v40 = vmul.f32 %v11375_v15, %v11375_v15 }
 0x218   : > { %v11378_v19 = vpop.xlane.xlu0 %1811  ;;  %15017 = vst [vmem:[#allocation259_spill] sm:$0xff] %v11396_v22  ;;  %v11406_v6 = vsub.f32 %v8027_v39, %v1116_v17  ;;  %v1118_v14 = vmul.f32 0.0051020407, %v10501_v60  ;;  %v2105_v16 = vsel %vm479_vm0, %v1614_v12, 0.0  ;;  %v11420_v34 = vsub.f32 %v8029_v1, %v1115_v47 }
 0x219   : > { %v1117_v39 = vmul.f32 0.0051020407, %v10506_v7  ;;  %v2098_v54 = vadd.f32 %v2097_v28, %v1609_v0  ;;  %v1618_v60 = vmul.f32 %v11386_v5, %v11386_v5  ;;  %v1619_v12 = vmul.f32 %v11396_v22, %v11396_v22  ;;  %v8031_v28 = vld [vmem:[%s14434_s0 + $0x7a0] sm:$0xff]  ;;  %v8034_v5 = vld [vmem:[%s14434_s0 + $0x7d0] sm:$0xff] }
 0x21a   : > { %2095 = vadd.xlane.f32.xlu1 %v2094_v44  ;;  %15018 = vst [vmem:[#allocation260_spill] sm:$0xff] %v11406_v6  ;;  %15020 = vst [vmem:[#allocation262_spill] sm:$0xff] %v11420_v34  ;;  %v2110_v1 = vadd.f32 %v2109_v59, %v1615_v13  ;;  %v2106_v15 = vadd.f32 %v2105_v16, %v1613_v31  ;;  %v1624_v7 = vmul.f32 %v11406_v6, %v11406_v6 }
 0x21b   : > { %2091 = vadd.xlane.f32.xlu0 %v2090_v11  ;;  %v11398_v32 = vpop.xlane.xlu1 %1823  ;;  %v8028_v11 = vld [vmem:[%s14434_s0 + $0x780] sm:$0xff]  ;;  %v11439_v0 = vsub.f32 %v8031_v28, %v1115_v47  ;;  %v2117_v13 = vsel %vm479_vm0, %v1620_v40, 0.0  ;;  %v1622_v59 = vmul.f32 %v11420_v34, %v11420_v34  ;;  %v8033_v47 = vld [vmem:[%s14434_s0 + $0x7c8] sm:$0xff]  ;;  %v1119_v28 = vmul.f32 0.0051020407, %v10547_v2 }
 0x21c   : > { %v11409_v44 = vpop.xlane.xlu0 %1819  ;;  %v11415_v52 = vsub.f32 %v8028_v11, %v1113_v29  ;;  %v8030_v29 = vld [vmem:[%s14434_s0 + $0x7b0] sm:$0xff]  ;;  %v11456_v16 = vsub.f32 %v8033_v47, %v1117_v39  ;;  %v2118_v47 = vadd.f32 %v2117_v13, %v1619_v12 }
 0x21d   : > { %v11430_v11 = vsub.f32 %v8030_v29, %v1116_v17  ;;  %15022 = vst [vmem:[#allocation264_spill] sm:$0xff] %v11439_v0  ;;  %v1120_v29 = vmul.f32 0.0051020407, %v10534_v38  ;;  %v1621_v38 = vmul.f32 %v11439_v0, %v11439_v0  ;;  %v2121_v0 = vsel %vm479_vm0, %v1622_v59, 0.0 }
 0x21e   : > { %15019 = vst [vmem:[#allocation261_spill] sm:$0xff] %v11415_v52  ;;  %2103 = vadd.xlane.f32.xlu1 %v2102_v51  ;;  %v8032_v51 = vld [vmem:[%s14434_s0 + $0x7d8] sm:$0xff]  ;;  %v1617_v31 = vmul.f32 %v11415_v52, %v11415_v52  ;;  %15024 = vst [vmem:[#allocation266_spill] sm:$0xff] %v11456_v16  ;;  %v11466_v52 = vsub.f32 %v8034_v5, %v1118_v14  ;;  %v2125_v5 = vsel %vm479_vm0, %v1624_v7, 0.0 }
 0x21f   : > { %15021 = vst [vmem:[#allocation263_spill] sm:$0xff] %v11430_v11  ;;  %2099 = vadd.xlane.f32.xlu0 %v2098_v54  ;;  %v11432_v20 = vpop.xlane.xlu1 %1831  ;;  %v11444_v17 = vsub.f32 %v8032_v51, %v1118_v14  ;;  %v2113_v51 = vsel %vm479_vm0, %v1618_v60, 0.0  ;;  %v1623_v40 = vmul.f32 %v11430_v11, %v11430_v11  ;;  %v8035_v60 = vld [vmem:[%s14434_s0 + $0x7c0] sm:$0xff]  ;;  %v8036_v14 = vld [vmem:[%s14434_s0 + $0x7f8] sm:$0xff] }
 0x220   : > { %v11446_v54 = vpop.xlane.xlu0 %1827  ;;  %15025 = vst [vmem:[#allocation267_spill] sm:$0xff] %v11466_v52  ;;  %v11487_v12 = vsub.f32 %v8036_v14, %v1120_v29  ;;  %v2114_v13 = vadd.f32 %v2113_v51, %v1617_v31  ;;  %v1627_v7 = vmul.f32 %v11466_v52, %v11466_v52  ;;  %v8038_v31 = vld [vmem:[%s14434_s0 + $0x7f0] sm:$0xff] }
 0x221   : > { %15023 = vst [vmem:[#allocation265_spill] sm:$0xff] %v11444_v17  ;;  %v1628_v2 = vmul.f32 %v11444_v17, %v11444_v17  ;;  %v2126_v11 = vadd.f32 %v2125_v5, %v1623_v40  ;;  %v11504_v59 = vsub.f32 %v8038_v31, %v1120_v29  ;;  %v8039_v40 = vld [vmem:[%s14434_s0 + $0x7e0] sm:$0xff] }
 0x222   : > { %2111 = vadd.xlane.f32.xlu1 %v2110_v1  ;;  %v11477_v1 = vsub.f32 %v8035_v60, %v1117_v39  ;;  %15027 = vst [vmem:[#allocation269_spill] sm:$0xff] %v11487_v12  ;;  %v8037_v39 = vld [vmem:[%s14434_s0 + $0x7e8] sm:$0xff]  ;;  %v11514_v5 = vsub.f32 %v8039_v40, %v1119_v28 }
 0x223   : > { %2107 = vadd.xlane.f32.xlu0 %v2106_v15  ;;  %v11468_v22 = vpop.xlane.xlu1 %1839  ;;  %v1626_v15 = vmul.f32 %v11456_v16, %v11456_v16  ;;  %v11493_v60 = vsub.f32 %v8037_v39, %v1119_v28  ;;  %15029 = vst [vmem:[#allocation271_spill] sm:$0xff] %v11504_v59  ;;  %v2122_v39 = vadd.f32 %v2121_v0, %v1621_v38  ;;  %v2146_v16 = vmul.f32 0.0051020407, %v10568_v55 }
 0x224   : > { %15026 = vst [vmem:[#allocation268_spill] sm:$0xff] %v11477_v1  ;;  %v11479_v34 = vpop.xlane.xlu0 %1835  ;;  %v1625_v14 = vmul.f32 %v11477_v1, %v11477_v1  ;;  %15030 = vst [vmem:[#allocation272_spill] sm:$0xff] %v11514_v5  ;;  %v1631_v38 = vmul.f32 %v11504_v59, %v11504_v59  ;;  %v1629_v28 = vmul.f32 %v11514_v5, %v11514_v5 }
 0x225   : > { %15028 = vst [vmem:[#allocation270_spill] sm:$0xff] %v11493_v60  ;;  %v2129_v1 = vsel %vm479_vm0, %v1626_v15, 0.0  ;;  %v1630_v29 = vmul.f32 %v11493_v60, %v11493_v60  ;;  %v2274_v55 = vadd.f32 1e-05, %v2146_v16  ;;  %v2147_v15 = vmul.f32 0.0051020407, %v10614_v57 }
 0x226   : > { %2119 = vadd.xlane.f32.xlu1 %v2118_v47  ;;  %v2133_v47 = vsel %vm479_vm0, %v1628_v2, 0.0  ;;  %v2130_v17 = vadd.f32 %v2129_v1, %v1625_v14  ;;  %v15031_v1 = vld [vmem:[#allocation171_spill] sm:$0xff] }
 0x227   : > { %2115 = vadd.xlane.f32.xlu0 %v2114_v13  ;;  %v11497_v6 = vpop.xlane.xlu1 %1847  ;;  %v1632_v13 = vmul.f32 %v11487_v12, %v11487_v12  ;;  %v2134_v31 = vadd.f32 %v2133_v47, %v1627_v7  ;;  %7528 = vrsqrt.f32 %v2274_v55  ;;  %v2148_v14 = vmul.f32 0.0051020407, %v15031_v1 }
 0x228   : > { %v11506_v51 = vpop.xlane.xlu0 %1843  ;;  %v2275_v47 = vadd.f32 1e-05, %v2147_v15  ;;  %v2156_v55 = vmul.f32 0.0051020407, %v10750_v49  ;;  %v2151_v49 = vmul.f32 0.0051020407, %v10687_v45 }
 0x229   : > { %v2141_v40 = vsel %vm479_vm0, %v1632_v13, 0.0  ;;  %v2154_v13 = vmul.f32 0.0051020407, %v10717_v61  ;;  %v2150_v61 = vmul.f32 0.0051020407, %v10642_v9  ;;  %v2531_v45 = vld [vmem:[%s14435_s1 + $0x10] sm:$0xff] }
 0x22a   : > { %2127 = vadd.xlane.f32.xlu1 %v2126_v11  ;;  %v2137_v11 = vsel %vm479_vm0, %v1630_v29, 0.0  ;;  %v2142_v7 = vadd.f32 %v2141_v40, %v1631_v38  ;;  %7530 = vrsqrt.f32 %v2275_v47  ;;  %v2530_v47 = vld [vmem:[%s14435_s1 + $0x8] sm:$0xff] }
 0x22b   : > { %2123 = vadd.xlane.f32.xlu0 %v2122_v39  ;;  %v11520_v0 = vpop.xlane.xlu1 %1855  ;;  %v2145_v39 = vmul.f32 0.0051020407, %v10579_v48  ;;  %v2138_v16 = vadd.f32 %v2137_v11, %v1629_v28  ;;  %v2276_v48 = vadd.f32 1e-05, %v2148_v14  ;;  %v2282_v38 = vadd.f32 1e-05, %v2154_v13 }
 0x22c   : > { %v11524_v2 = vpop.xlane.xlu0 %1851  ;;  %v2284_v11 = vadd.f32 1e-05, %v2156_v55  ;;  %v2152_v13 = vmul.f32 0.0051020407, %v10676_v33  ;;  %v2529_v33 = vld [vmem:[%s14435_s1] sm:$0xff] }
 0x22d   : > { %v2273_v57 = vadd.f32 1e-05, %v2145_v39  ;;  %v2158_v39 = vmul.f32 0.0051020407, %v10784_v8 }
 0x22e   : > { %2135 = vadd.xlane.f32.xlu1 %v2134_v31 }
 0x22f   : > { %2131 = vadd.xlane.f32.xlu0 %v2130_v17  ;;  %v11532_v52 = vpop.xlane.xlu1 %1863  ;;  %v2149_v17 = vmul.f32 0.0051020407, %v10655_v46  ;;  %7532 = vrsqrt.f32 %v2273_v57  ;;  %v2278_v46 = vadd.f32 1e-05, %v2150_v61  ;;  %v2286_v9 = vadd.f32 1e-05, %v2158_v39 }
 0x230   : > { %v11534_v60 = vpop.xlane.xlu0 %1859  ;;  %7534 = vrsqrt.f32 %v2276_v48  ;;  %v2279_v48 = vadd.f32 1e-05, %v2151_v49  ;;  %v2162_v61 = vmul.f32 0.0051020407, %v10858_v21  ;;  %v2280_v39 = vadd.f32 1e-05, %v2152_v13 }
 0x231   : > { %v2277_v15 = vadd.f32 1e-05, %v2149_v17  ;;  %7536 = vrsqrt.f32 %v2282_v38  ;;  %v2532_v21 = vld [vmem:[%s14435_s1 + $0x18] sm:$0xff] }
 0x232   : > { %2143 = vadd.xlane.f32.xlu1 %v2142_v7 }
 0x233   : > { %2139 = vadd.xlane.f32.xlu0 %v2138_v16  ;;  %v11538_v31 = vpop.xlane.xlu1 %1871  ;;  %7538 = vrsqrt.f32 %v2277_v15  ;;  %v2160_v16 = vmul.f32 0.0051020407, %v10825_v56 }
 0x234   : > { %v11540_v29 = vpop.xlane.xlu0 %1867  ;;  %v7529_v14 = vpop.eup %7528  ;;  %7540 = vrsqrt.f32 %v2284_v11 }
 0x235   : > { %7542 = vrsqrt.f32 %v2278_v46  ;;  %v2658_v17 = vmul.f32 %v7529_v14, %v2530_v47  ;;  %v2288_v55 = vadd.f32 1e-05, %v2160_v16  ;;  %v2153_v46 = vmul.f32 0.0051020407, %v10722_v58  ;;  %v2538_v58 = vld [vmem:[%s14435_s1 + $0x48] sm:$0xff] }
 0x236   : > { %7544 = vrsqrt.f32 %v2286_v9  ;;  %v2290_v47 = vadd.f32 1e-05, %v2162_v61  ;;  %v2164_v9 = vmul.f32 0.0051020407, %v10892_v3  ;;  %v2533_v3 = vld [vmem:[%s14435_s1 + $0x20] sm:$0xff] }
 0x237   : > { %v11544_v40 = vpop.xlane.xlu1 %1879  ;;  %v7531_v38 = vpop.eup %7530  ;;  %7546 = vrsqrt.f32 %v2279_v48  ;;  %v2281_v13 = vadd.f32 1e-05, %v2153_v46  ;;  %v2155_v48 = vmul.f32 0.0051020407, %v10763_v27  ;;  %v2166_v61 = vmul.f32 0.0051020407, %v10933_v62 }
 0x238   : > { %v11546_v28 = vpop.xlane.xlu0 %1875  ;;  %v2659_v49 = vmul.f32 %v7531_v38, %v2531_v45  ;;  %7548 = vrsqrt.f32 %v2288_v55  ;;  %v2292_v55 = vadd.f32 1e-05, %v2164_v9  ;;  %v2540_v27 = vld [vmem:[%s14435_s1 + $0x58] sm:$0xff]  ;;  %v2534_v62 = vld [vmem:[%s14435_s1 + $0x28] sm:$0xff] }
 0x239   : > { %7550 = vrsqrt.f32 %v2280_v39  ;;  %v2283_v46 = vadd.f32 1e-05, %v2155_v48  ;;  %v2542_v48 = vld [vmem:[%s14435_s1 + $0x68] sm:$0xff] }
 0x23a   : > { %7552 = vrsqrt.f32 %v2290_v47 }
 0x23b   : > { %v11550_v7 = vpop.xlane.xlu1 %1887  ;;  %7554 = vrsqrt.f32 %v2281_v13 }
 0x23c   : > { %v11552_v1 = vpop.xlane.xlu0 %1883  ;;  %v7533_v15 = vpop.eup %7532  ;;  %7556 = vrsqrt.f32 %v2292_v55 }
 0x23d   : > { %v7535_v14 = vpop.eup %7534  ;;  %7558 = vrsqrt.f32 %v2283_v46 }
 0x23e   : > { %v7537_v5 = vpop.eup %7536  ;;  %v2660_v38 = vmul.f32 %v7535_v14, %v2532_v21  ;;  %v15040_v14 = vld [vmem:[#allocation192_spill] sm:$0xff] }
 0x23f   : > { %v11559_v57 = vpop.xlane.xlu1 %1895  ;;  %v2157_v21 = vmul.f32 0.0051020407, %v15040_v14  ;;  %v2535_v14 = vld [vmem:[%s14435_s1 + $0x30] sm:$0xff] }
 0x240   : > { %15032 = vst [vmem:[#allocation171_spill] sm:$0xff] %v11559_v57  ;;  %v11561_v8 = vpop.xlane.xlu0 %1891  ;;  %v7539_v45 = vpop.eup %7538 }
 0x241   : > { %15033 = vst [vmem:[#allocation273_spill] sm:$0xff] %v11561_v8  ;;  %v2661_v47 = vmul.f32 %v7539_v45, %v2533_v3  ;;  %v2285_v45 = vadd.f32 1e-05, %v2157_v21  ;;  %v15044_v3 = vld [vmem:[#allocation197_spill] sm:$0xff] }
 0x243   : > { %2792 = vperm.xlu1 %7527, %v2658_v17   ;;  %v11568_v56 = vpop.xlane.xlu1 %1903  ;;  %v2657_v17 = vmul.f32 %v7533_v15, %v2529_v33  ;;  %v2666_v33 = vmul.f32 %v7537_v5, %v2538_v58  ;;  %v2294_v5 = vadd.f32 1e-05, %v2166_v61 }
 0x244   : > { %15034 = vst [vmem:[#allocation274_spill] sm:$0xff] %v11568_v56  ;;  %v11570_v11 = vpop.xlane.xlu0 %1899 }
 0x245   : > { %15035 = vst [vmem:[#allocation275_spill] sm:$0xff] %v11570_v11  ;;  %7560 = vrsqrt.f32 %v2294_v5 }
 0x246   : > { %7562 = vrsqrt.f32 %v2285_v45 }
 0x247   : > { %v11580_v16 = vpop.xlane.xlu1 %1911  ;;  %2797 = vperm.xlu1 %7527, %v2659_v49   ;;  %v7541_v49 = vpop.eup %7540 }
 0x248   : > { %15036 = vst [vmem:[#allocation276_spill] sm:$0xff] %v11580_v16  ;;  %v11582_v12 = vpop.xlane.xlu0 %1907  ;;  %v7543_v9 = vpop.eup %7542  ;;  %v2668_v59 = vmul.f32 %v7541_v49, %v2540_v27  ;;  %v2170_v27 = vmul.f32 0.0051020407, %v11000_v42  ;;  %v2536_v42 = vld [vmem:[%s14435_s1 + $0x38] sm:$0xff] }
 0x249   : > { %15037 = vst [vmem:[#allocation277_spill] sm:$0xff] %v11582_v12  ;;  %2787 = vperm.xlu0 %7526, %v2657_v17   ;;  %v15041_v17 = vld [vmem:[#allocation211_spill] sm:$0xff]  ;;  %v7545_v8 = vpop.eup %7544  ;;  %v2662_v55 = vmul.f32 %v7543_v9, %v2534_v62 }
 0x24a   : > { %v2168_v58 = vmul.f32 0.0051020407, %v15041_v17  ;;  %v7547_v61 = vpop.eup %7546  ;;  %v2670_v17 = vmul.f32 %v7545_v8, %v2542_v48  ;;  %v15046_v9 = vld [vmem:[#allocation203_spill] sm:$0xff]  ;;  %v2298_v8 = vadd.f32 1e-05, %v2170_v27  ;;  %v15047_v48 = vld [vmem:[#allocation118_spill] sm:$0xff] }
 0x24b   : > { %v11592_v15 = vpop.xlane.xlu1 %1919  ;;  %2802 = vperm.xlu1 %7527, %v2660_v38   ;;  %v7549_v11 = vpop.eup %7548  ;;  %v2161_v62 = vmul.f32 0.0051020407, %v15046_v9  ;;  %v2663_v5 = vmul.f32 %v7547_v61, %v2535_v14  ;;  %v15048_v14 = vld [vmem:[#allocation206_spill] sm:$0xff]  ;;  %v2537_v9 = vld [vmem:[%s14435_s1 + $0x40] sm:$0xff] }
 0x24c   : > { %15038 = vst [vmem:[#allocation278_spill] sm:$0xff] %v11592_v15  ;;  %v11594_v39 = vpop.xlane.xlu0 %1915  ;;  %v2296_v49 = vadd.f32 1e-05, %v2168_v58  ;;  %v7551_v58 = vpop.eup %7550 }
 0x24d   : > { %15039 = vst [vmem:[#allocation279_spill] sm:$0xff] %v11594_v39  ;;  %2832 = vperm.xlu0 %7526, %v2666_v33   ;;  %v2159_v33 = vmul.f32 0.0051020407, %v15044_v3  ;;  %v2172_v3 = vmul.f32 0.0051020407, %v15047_v48  ;;  %v7553_v56 = vpop.eup %7552 }
 0x24e   : > { %7564 = vrsqrt.f32 %v2296_v49  ;;  %v2289_v61 = vadd.f32 1e-05, %v2161_v62  ;;  %v2664_v49 = vmul.f32 %v7551_v58, %v2536_v42  ;;  %v7555_v27 = vpop.eup %7554  ;;  %v15049_v58 = vld [vmem:[#allocation107_spill] sm:$0xff] }
 0x24f   : > { %v11604_v38 = vpop.xlane.xlu1 %1927  ;;  %2807 = vperm.xlu1 %7527, %v2661_v47   ;;  %v2287_v21 = vadd.f32 1e-05, %v2159_v33  ;;  %v2546_v33 = vld [vmem:[%s14435_s1 + $0x88] sm:$0xff]  ;;  %v7557_v12 = vpop.eup %7556  ;;  %v2165_v42 = vmul.f32 0.0051020407, %v15049_v58 }
 0x250   : > { %15042 = vst [vmem:[#allocation192_spill] sm:$0xff] %v11604_v38  ;;  %v11606_v13 = vpop.xlane.xlu0 %1923  ;;  %v2674_v48 = vmul.f32 %v7553_v56, %v2546_v33  ;;  %v2176_v33 = vmul.f32 0.0051020407, %v11113_v26  ;;  %v2541_v26 = vld [vmem:[%s14435_s1 + $0x60] sm:$0xff] }
 0x251   : > { %15043 = vst [vmem:[#allocation211_spill] sm:$0xff] %v11606_v13  ;;  %2842 = vperm.xlu0 %7526, %v2668_v59   ;;  %v2544_v59 = vld [vmem:[%s14435_s1 + $0x78] sm:$0xff]  ;;  %7566 = vrsqrt.f32 %v2287_v21 }
 0x252   : > { %v2672_v57 = vmul.f32 %v7549_v11, %v2544_v59  ;;  %7568 = vrsqrt.f32 %v2298_v8  ;;  %v2300_v11 = vadd.f32 1e-05, %v2172_v3  ;;  %v2174_v59 = vmul.f32 0.0051020407, %v11073_v10  ;;  %v7559_v3 = vpop.eup %7558  ;;  %v2539_v10 = vld [vmem:[%s14435_s1 + $0x50] sm:$0xff] }
 0x253   : > { %v11616_v47 = vpop.xlane.xlu1 %1935  ;;  %2812 = vperm.xlu1 %7527, %v2662_v55   ;;  %7570 = vrsqrt.f32 %v2289_v61  ;;  %v2665_v8 = vmul.f32 %v7555_v27, %v2537_v9  ;;  %v7561_v16 = vpop.eup %7560  ;;  %v2293_v27 = vadd.f32 1e-05, %v2165_v42  ;;  %v15052_v9 = vld [vmem:[#allocation112_spill] sm:$0xff] }
 0x254   : > { %v11618_v46 = vpop.xlane.xlu0 %1931  ;;  %7572 = vrsqrt.f32 %v2300_v11  ;;  %v2302_v56 = vadd.f32 1e-05, %v2174_v59  ;;  %v2667_v11 = vmul.f32 %v7559_v3, %v2539_v10  ;;  %v7563_v59 = vpop.eup %7562  ;;  %v2552_v42 = vld [vmem:[%s14435_s1 + $0xb8] sm:$0xff] }
 0x255   : > { %15045 = vst [vmem:[#allocation197_spill] sm:$0xff] %v11618_v46  ;;  %2852 = vperm.xlu0 %7526, %v2670_v17   ;;  %v2163_v17 = vmul.f32 0.0051020407, %v15048_v14  ;;  %v15055_v10 = vld [vmem:[#allocation216_spill] sm:$0xff] }
 0x257   : > { %v11628_v55 = vpop.xlane.xlu1 %1943  ;;  %2817 = vperm.xlu1 %7527, %v2663_v5   ;;  %v2291_v62 = vadd.f32 1e-05, %v2163_v17  ;;  %v2550_v17 = vld [vmem:[%s14435_s1 + $0xa8] sm:$0xff] }
 0x258   : > { %v11630_v45 = vpop.xlane.xlu0 %1939 }
 0x259   : > { %2862 = vperm.xlu0 %7526, %v2672_v57   ;;  %v2548_v57 = vld [vmem:[%s14435_s1 + $0x98] sm:$0xff]  ;;  %7574 = vrsqrt.f32 %v2291_v62 }
 0x25a   : > { %7576 = vrsqrt.f32 %v2302_v56  ;;  %v2669_v56 = vmul.f32 %v7563_v59, %v2541_v26  ;;  %v15058_v26 = vld [vmem:[#allocation220_spill] sm:$0xff] }
 0x25b   : > { %v11640_v5 = vpop.xlane.xlu1 %1951  ;;  %2822 = vperm.xlu1 %7527, %v2664_v49   ;;  %v2676_v49 = vmul.f32 %v7557_v12, %v2548_v57  ;;  %v2304_v12 = vadd.f32 1e-05, %v2176_v33  ;;  %v2178_v57 = vmul.f32 0.0051020407, %v11151_v53  ;;  %7578 = vrsqrt.f32 %v2293_v27  ;;  %v2543_v53 = vld [vmem:[%s14435_s1 + $0x70] sm:$0xff] }
 0x25c   : > { %v11642_v21 = vpop.xlane.xlu0 %1947 }
 0x25d   : > { %2872 = vperm.xlu0 %7526, %v2674_v48   ;;  %v2167_v48 = vmul.f32 0.0051020407, %v15052_v9  ;;  %7580 = vrsqrt.f32 %v2304_v12 }
 0x25f   : > { %v11652_v14 = vpop.xlane.xlu1 %1959  ;;  %2827 = vperm.xlu1 %7527, %v2665_v8   ;;  %v2678_v8 = vmul.f32 %v7561_v16, %v2550_v17  ;;  %v2295_v3 = vadd.f32 1e-05, %v2167_v48  ;;  %v2306_v16 = vadd.f32 1e-05, %v2178_v57  ;;  %v2180_v17 = vmul.f32 0.0051020407, %v11182_v43 }
 0x260   : > { %15050 = vst [vmem:[#allocation203_spill] sm:$0xff] %v11652_v14  ;;  %v11654_v61 = vpop.xlane.xlu0 %1955  ;;  %v2554_v48 = vld [vmem:[%s14435_s1 + $0xc8] sm:$0xff]  ;;  %v2545_v43 = vld [vmem:[%s14435_s1 + $0x80] sm:$0xff] }
 0x261   : > { %15051 = vst [vmem:[#allocation118_spill] sm:$0xff] %v11654_v61  ;;  %2882 = vperm.xlu0 %7526, %v2676_v49   ;;  %v7565_v61 = vpop.eup %7564  ;;  %v2169_v49 = vmul.f32 0.0051020407, %v15055_v10  ;;  %7582 = vrsqrt.f32 %v2295_v3 }
 0x262   : > { %v7567_v33 = vpop.eup %7566  ;;  %7584 = vrsqrt.f32 %v2306_v16 }
 0x263   : > { %v11664_v58 = vpop.xlane.xlu1 %1967  ;;  %2837 = vperm.xlu1 %7527, %v2667_v11   ;;  %v2680_v11 = vmul.f32 %v7565_v61, %v2552_v42  ;;  %v7569_v14 = vpop.eup %7568  ;;  %v2297_v59 = vadd.f32 1e-05, %v2169_v49  ;;  %v2671_v12 = vmul.f32 %v7567_v33, %v2543_v53  ;;  %v2308_v61 = vadd.f32 1e-05, %v2180_v17  ;;  %v2556_v49 = vld [vmem:[%s14435_s1 + $0xd8] sm:$0xff] }
 0x264   : > { %15053 = vst [vmem:[#allocation206_spill] sm:$0xff] %v11664_v58  ;;  %v11666_v62 = vpop.xlane.xlu0 %1963  ;;  %v7571_v57 = vpop.eup %7570  ;;  %v2182_v42 = vmul.f32 0.0051020407, %v11216_v37  ;;  %v2173_v53 = vmul.f32 0.0051020407, %v11083_v41  ;;  %v2547_v37 = vld [vmem:[%s14435_s1 + $0x90] sm:$0xff] }
 0x265   : > { %15054 = vst [vmem:[#allocation107_spill] sm:$0xff] %v11666_v62  ;;  %2892 = vperm.xlu0 %7526, %v2678_v8   ;;  %v2171_v8 = vmul.f32 0.0051020407, %v15058_v26  ;;  %v7573_v62 = vpop.eup %7572  ;;  %7586 = vrsqrt.f32 %v2297_v59  ;;  %v2673_v16 = vmul.f32 %v7571_v57, %v2545_v43  ;;  %v2558_v41 = vld [vmem:[%s14435_s1 + $0xe8] sm:$0xff]  ;;  %v15063_v57 = vld [vmem:[#allocation229_spill] sm:$0xff] }
 0x266   : > { %v7575_v17 = vpop.eup %7574  ;;  %7588 = vrsqrt.f32 %v2308_v61  ;;  %v2684_v26 = vmul.f32 %v7573_v62, %v2556_v49  ;;  %v2175_v43 = vmul.f32 0.0051020407, %v15063_v57 }
 0x267   : > { %v11676_v9 = vpop.xlane.xlu1 %1975  ;;  %2847 = vperm.xlu1 %7527, %v2669_v56   ;;  %v2682_v56 = vmul.f32 %v7569_v14, %v2554_v48  ;;  %v2299_v33 = vadd.f32 1e-05, %v2171_v8  ;;  %v2310_v14 = vadd.f32 1e-05, %v2182_v42  ;;  %v2301_v8 = vadd.f32 1e-05, %v2173_v53 }
 0x268   : > { %15056 = vst [vmem:[#allocation112_spill] sm:$0xff] %v11676_v9  ;;  %v11678_v27 = vpop.xlane.xlu0 %1971  ;;  %v2675_v61 = vmul.f32 %v7575_v17, %v2547_v37  ;;  %v2560_v53 = vld [vmem:[%s14435_s1 + $0xf8] sm:$0xff]  ;;  %v2303_v17 = vadd.f32 1e-05, %v2175_v43  ;;  %v2177_v37 = vmul.f32 0.0051020407, %v11162_v63 }
 0x269   : > { %15057 = vst [vmem:[#allocation216_spill] sm:$0xff] %v11678_v27  ;;  %2902 = vperm.xlu0 %7526, %v2680_v11   ;;  %v2184_v11 = vmul.f32 0.0051020407, %v11248_v35  ;;  %7590 = vrsqrt.f32 %v2299_v33  ;;  %v2549_v35 = vld [vmem:[%s14435_s1 + $0xa0] sm:$0xff]  ;;  %v2562_v63 = vld [vmem:[%s14435_s1 + $0x108] sm:$0xff] }
 0x26a   : > { %7592 = vrsqrt.f32 %v2310_v14  ;;  %v2305_v43 = vadd.f32 1e-05, %v2177_v37 }
 0x26b   : > { %v11688_v10 = vpop.xlane.xlu1 %1983  ;;  %2857 = vperm.xlu1 %7527, %v2671_v12   ;;  %v7577_v12 = vpop.eup %7576  ;;  %v2312_v62 = vadd.f32 1e-05, %v2184_v11  ;;  %7594 = vrsqrt.f32 %v2301_v8 }
 0x26c   : > { %15059 = vst [vmem:[#allocation220_spill] sm:$0xff] %v11688_v10  ;;  %v11690_v3 = vpop.xlane.xlu0 %1979  ;;  %v7579_v42 = vpop.eup %7578 }
 0x26d   : > { %15060 = vst [vmem:[#allocation280_spill] sm:$0xff] %v11690_v3  ;;  %2912 = vperm.xlu0 %7526, %v2682_v56   ;;  %v2186_v56 = vmul.f32 0.0051020407, %v11287_v4  ;;  %v7581_v58 = vpop.eup %7580  ;;  %v2677_v14 = vmul.f32 %v7579_v42, %v2549_v35  ;;  %v2551_v4 = vld [vmem:[%s14435_s1 + $0xb0] sm:$0xff]  ;;  %7596 = vrsqrt.f32 %v2312_v62  ;;  %v2179_v42 = vmul.f32 0.0051020407, %v11197_v36 }
 0x26e   : > { %v7583_v11 = vpop.eup %7582  ;;  %v2688_v57 = vmul.f32 %v7581_v58, %v2560_v53  ;;  %7598 = vrsqrt.f32 %v2303_v17  ;;  %v2564_v36 = vld [vmem:[%s14435_s1 + $0x118] sm:$0xff]  ;;  %v3687_v3 = vld [vmem:[%s14436_s2 + $0x30] sm:$0xff] }
 0x26f   : > { %v11700_v48 = vpop.xlane.xlu1 %1991  ;;  %2867 = vperm.xlu1 %7527, %v2673_v16   ;;  %v2686_v16 = vmul.f32 %v7577_v12, %v2558_v41  ;;  %v2188_v12 = vmul.f32 0.0051020407, %v11329_v25  ;;  %v2679_v35 = vmul.f32 %v7583_v11, %v2551_v4  ;;  %v2553_v25 = vld [vmem:[%s14435_s1 + $0xc0] sm:$0xff]  ;;  %v2307_v37 = vadd.f32 1e-05, %v2179_v42 }
 0x270   : > { %15061 = vst [vmem:[#allocation281_spill] sm:$0xff] %v11700_v48  ;;  %v11702_v59 = vpop.xlane.xlu0 %1987  ;;  %v2181_v11 = vmul.f32 0.0051020407, %v11227_v30  ;;  %v2566_v30 = vld [vmem:[%s14435_s1 + $0x128] sm:$0xff] }
 0x271   : > { %15062 = vst [vmem:[#allocation282_spill] sm:$0xff] %v11702_v59  ;;  %2922 = vperm.xlu0 %7526, %v2684_v26   ;;  %v2314_v26 = vadd.f32 1e-05, %v2186_v56  ;;  %v2316_v58 = vadd.f32 1e-05, %v2188_v12 }
 0x272   : > { %v2190_v56 = vmul.f32 0.0051020407, %v11367_v24  ;;  %v2555_v24 = vld [vmem:[%s14435_s1 + $0xd0] sm:$0xff]  ;;  %v2309_v42 = vadd.f32 1e-05, %v2181_v11 }
 0x273   : > { %v11712_v49 = vpop.xlane.xlu1 %1999  ;;  %2877 = vperm.xlu1 %7527, %v2675_v61   ;;  %v7585_v61 = vpop.eup %7584  ;;  %7600 = vrsqrt.f32 %v2314_v26  ;;  %v2185_v11 = vmul.f32 0.0051020407, %v11297_v18 }
 0x274   : > { %15064 = vst [vmem:[#allocation229_spill] sm:$0xff] %v11712_v49  ;;  %v11714_v33 = vpop.xlane.xlu0 %1995  ;;  %v7587_v62 = vpop.eup %7586  ;;  %v2690_v53 = vmul.f32 %v7585_v61, %v2562_v63  ;;  %7602 = vrsqrt.f32 %v2305_v43  ;;  %v2318_v12 = vadd.f32 1e-05, %v2190_v56 }
 0x275   : > { %15065 = vst [vmem:[#allocation283_spill] sm:$0xff] %v11714_v33  ;;  %2932 = vperm.xlu0 %7526, %v2686_v16   ;;  %v2681_v4 = vmul.f32 %v7587_v62, %v2553_v25  ;;  %7604 = vrsqrt.f32 %v2316_v58  ;;  %v2183_v62 = vmul.f32 0.0051020407, %v11257_v50  ;;  %v2568_v50 = vld [vmem:[%s14435_s1 + $0x138] sm:$0xff]  ;;  %v2313_v18 = vadd.f32 1e-05, %v2185_v11 }
 0x276   : > { %7606 = vrsqrt.f32 %v2307_v37  ;;  %v2189_v11 = vmul.f32 0.0051020407, %v11378_v19 }
 0x277   : > { %v11724_v41 = vpop.xlane.xlu1 %2007  ;;  %2887 = vperm.xlu1 %7527, %v2677_v14   ;;  %v7589_v14 = vpop.eup %7588  ;;  %7608 = vrsqrt.f32 %v2318_v12  ;;  %v2311_v37 = vadd.f32 1e-05, %v2183_v62  ;;  %v2559_v12 = vld [vmem:[%s14435_s1 + $0xf0] sm:$0xff]  ;;  %v2187_v62 = vmul.f32 0.0051020407, %v11339_v23 }
 0x278   : > { %15066 = vst [vmem:[#allocation284_spill] sm:$0xff] %v11724_v41  ;;  %v11726_v8 = vpop.xlane.xlu0 %2003  ;;  %v7591_v26 = vpop.eup %7590  ;;  %v2692_v63 = vmul.f32 %v7589_v14, %v2564_v36  ;;  %7610 = vrsqrt.f32 %v2309_v42  ;;  %v2570_v42 = vld [vmem:[%s14435_s1 + $0x148] sm:$0xff]  ;;  %v2317_v19 = vadd.f32 1e-05, %v2189_v11  ;;  %v2592_v41 = vld [vmem:[%s14435_s1 + $0x1f8] sm:$0xff] }
 0x279   : > { %15067 = vst [vmem:[#allocation285_spill] sm:$0xff] %v11726_v8  ;;  %2942 = vperm.xlu0 %7526, %v2688_v57   ;;  %v2192_v57 = vmul.f32 0.0051020407, %v11398_v32  ;;  %v2683_v25 = vmul.f32 %v7591_v26, %v2555_v24  ;;  %v2557_v32 = vld [vmem:[%s14435_s1 + $0xe0] sm:$0xff]  ;;  %v2315_v23 = vadd.f32 1e-05, %v2187_v62 }
 0x27a   : > { %v2191_v62 = vmul.f32 0.0051020407, %v11409_v44 }
 0x27b   : > { %v11736_v16 = vpop.xlane.xlu1 %2015  ;;  %2897 = vperm.xlu1 %7527, %v2679_v35   ;;  %v7593_v35 = vpop.eup %7592  ;;  %v2320_v56 = vadd.f32 1e-05, %v2192_v57 }
 0x27c   : > { %15068 = vst [vmem:[#allocation286_spill] sm:$0xff] %v11736_v16  ;;  %v11738_v17 = vpop.xlane.xlu0 %2011  ;;  %v7595_v58 = vpop.eup %7594  ;;  %v2694_v14 = vmul.f32 %v7593_v35, %v2566_v30  ;;  %v2319_v44 = vadd.f32 1e-05, %v2191_v62  ;;  %v2569_v62 = vld [vmem:[%s14435_s1 + $0x140] sm:$0xff] }
 0x27d   : > { %15069 = vst [vmem:[#allocation287_spill] sm:$0xff] %v11738_v17  ;;  %2952 = vperm.xlu0 %7526, %v2690_v53   ;;  %v7597_v36 = vpop.eup %7596  ;;  %v2685_v26 = vmul.f32 %v7595_v58, %v2557_v32  ;;  %7612 = vrsqrt.f32 %v2320_v56  ;;  %v2561_v32 = vld [vmem:[%s14435_s1 + $0x100] sm:$0xff] }
 0x27e   : > { %v7599_v24 = vpop.eup %7598  ;;  %7614 = vrsqrt.f32 %v2311_v37  ;;  %v2572_v37 = vld [vmem:[%s14435_s1 + $0x158] sm:$0xff]  ;;  %v3713_v16 = vld [vmem:[%s14436_s2 + $0x100] sm:$0xff] }
 0x27f   : > { %v11748_v61 = vpop.xlane.xlu1 %2023  ;;  %2907 = vperm.xlu1 %7527, %v2681_v4   ;;  %7616 = vrsqrt.f32 %v2313_v18  ;;  %v2574_v18 = vld [vmem:[%s14435_s1 + $0x168] sm:$0xff] }
 0x280   : > { %15070 = vst [vmem:[#allocation288_spill] sm:$0xff] %v11748_v61  ;;  %v11750_v43 = vpop.xlane.xlu0 %2019  ;;  %v7601_v35 = vpop.eup %7600  ;;  %7618 = vrsqrt.f32 %v2315_v23  ;;  %v2576_v23 = vld [vmem:[%s14435_s1 + $0x178] sm:$0xff]  ;;  %v2203_v61 = vmul.f32 0.0051020407, %v11540_v29  ;;  %v3707_v29 = vld [vmem:[%s14436_s2 + $0xd0] sm:$0xff] }
 0x281   : > { %15071 = vst [vmem:[#allocation289_spill] sm:$0xff] %v11750_v43  ;;  %2962 = vperm.xlu0 %7526, %v2692_v63   ;;  %v2696_v63 = vmul.f32 %v7597_v36, %v2568_v50  ;;  %v7603_v58 = vpop.eup %7602  ;;  %7620 = vrsqrt.f32 %v2317_v19  ;;  %v3695_v19 = vld [vmem:[%s14436_s2 + $0x70] sm:$0xff] }
 0x282   : > { %v7605_v36 = vpop.eup %7604  ;;  %7622 = vrsqrt.f32 %v2319_v44  ;;  %v2571_v44 = vld [vmem:[%s14435_s1 + $0x150] sm:$0xff] }
 0x283   : > { %v11759_v53 = vpop.xlane.xlu1 %2031  ;;  %2917 = vperm.xlu1 %7527, %v2683_v25   ;;  %v2687_v25 = vmul.f32 %v7599_v24, %v2559_v12  ;;  %v7607_v24 = vpop.eup %7606  ;;  %v2563_v12 = vld [vmem:[%s14435_s1 + $0x110] sm:$0xff] }
 0x284   : > { %15072 = vst [vmem:[#allocation290_spill] sm:$0xff] %v11759_v53  ;;  %v11761_v4 = vpop.xlane.xlu0 %2027 }
 0x285   : > { %15073 = vst [vmem:[#allocation291_spill] sm:$0xff] %v11761_v4  ;;  %2972 = vperm.xlu0 %7526, %v2694_v14   ;;  %v2698_v14 = vmul.f32 %v7601_v35, %v2570_v42  ;;  %v2700_v35 = vmul.f32 %v7605_v36, %v2572_v37  ;;  %v7609_v42 = vpop.eup %7608 }
 0x286   : > { %v2702_v36 = vmul.f32 %v7609_v42, %v2574_v18 }
 0x287   : > { %v11770_v57 = vpop.xlane.xlu1 %2039  ;;  %2927 = vperm.xlu1 %7527, %v2685_v26   ;;  %v2689_v26 = vmul.f32 %v7603_v58, %v2561_v32  ;;  %v2691_v58 = vmul.f32 %v7607_v24, %v2563_v12  ;;  %v7611_v32 = vpop.eup %7610  ;;  %v2567_v12 = vld [vmem:[%s14435_s1 + $0x130] sm:$0xff] }
 0x288   : > { %15074 = vst [vmem:[#allocation292_spill] sm:$0xff] %v11770_v57  ;;  %v11772_v30 = vpop.xlane.xlu0 %2035 }
 0x289   : > { %15075 = vst [vmem:[#allocation293_spill] sm:$0xff] %v11772_v30  ;;  %2982 = vperm.xlu0 %7526, %v2696_v63  }
 0x28a   : > { %v7613_v37 = vpop.eup %7612 }
 0x28b   : > { %v11781_v56 = vpop.xlane.xlu1 %2047  ;;  %2937 = vperm.xlu1 %7527, %v2687_v25   ;;  %v7615_v24 = vpop.eup %7614  ;;  %v2704_v42 = vmul.f32 %v7613_v37, %v2576_v23  ;;  %v3694_v23 = vld [vmem:[%s14436_s2 + $0x68] sm:$0xff] }
 0x28c   : > { %15076 = vst [vmem:[#allocation294_spill] sm:$0xff] %v11781_v56  ;;  %v11783_v50 = vpop.xlane.xlu0 %2043  ;;  %v7617_v9 = vpop.eup %7616 }
 0x28d   : > { %15077 = vst [vmem:[#allocation295_spill] sm:$0xff] %v11783_v50  ;;  %2992 = vperm.xlu0 %7526, %v2698_v14   ;;  %v2565_v14 = vld [vmem:[%s14435_s1 + $0x120] sm:$0xff]  ;;  %v7619_v37 = vpop.eup %7618 }
 0x28e   : > { %v2693_v11 = vmul.f32 %v7611_v32, %v2565_v14 }
 0x28f   : > { %v11792_v63 = vpop.xlane.xlu1 %2055  ;;  %2947 = vperm.xlu1 %7527, %v2689_v26  }
 0x290   : > { %15078 = vst [vmem:[#allocation296_spill] sm:$0xff] %v11792_v63  ;;  %v11794_v25 = vpop.xlane.xlu0 %2051 }
 0x291   : > { %15079 = vst [vmem:[#allocation297_spill] sm:$0xff] %v11794_v25  ;;  %3002 = vperm.xlu0 %7526, %v2700_v35   ;;  %v15129_v25 = vld [vmem:[#allocation41_spill] sm:$0xff] }
 0x293   : > { %v11803_v26 = vpop.xlane.xlu1 %2063  ;;  %2957 = vperm.xlu1 %7527, %v2691_v58   ;;  %v2695_v58 = vmul.f32 %v7615_v24, %v2567_v12  ;;  %v2699_v12 = vmul.f32 %v7619_v37, %v2571_v44  ;;  %v3692_v37 = vld [vmem:[%s14436_s2 + $0x58] sm:$0xff] }
 0x294   : > { %v11805_v27 = vpop.xlane.xlu0 %2059 }
 0x295   : > { %3012 = vperm.xlu0 %7526, %v2702_v36   ;;  %v2697_v36 = vmul.f32 %v7617_v9, %v2569_v62  ;;  %v3693_v9 = vld [vmem:[%s14436_s2 + $0x60] sm:$0xff] }
 0x297   : > { %v11813_v35 = vpop.xlane.xlu1 %2071  ;;  %2967 = vperm.xlu1 %7527, %v2693_v11  }
 0x298   : > { %v11815_v18 = vpop.xlane.xlu0 %2067 }
 0x299   : > { %3022 = vperm.xlu0 %7526, %v2704_v42   ;;  %v7621_v42 = vpop.eup %7620 }
 0x29b   : > { %v11823_v32 = vpop.xlane.xlu1 %2079  ;;  %2977 = vperm.xlu1 %7527, %v2695_v58   ;;  %v2573_v58 = vld [vmem:[%s14435_s1 + $0x160] sm:$0xff] }
 0x29c   : > { %v11825_v14 = vpop.xlane.xlu0 %2075 }
 0x29d   : > { %3881 = vperm.xlu0 %7526, %v3695_v19  }
 0x29f   : > { %v11833_v11 = vpop.xlane.xlu1 %2087  ;;  %2987 = vperm.xlu1 %7527, %v2697_v36   ;;  %v2701_v36 = vmul.f32 %v7621_v42, %v2573_v58  ;;  %v3691_v42 = vld [vmem:[%s14436_s2 + $0x50] sm:$0xff] }
 0x2a0   : > { %15080 = vst [vmem:[#allocation298_spill] sm:$0xff] %v11833_v11  ;;  %v11835_v24 = vpop.xlane.xlu0 %2083  ;;  %v7623_v11 = vpop.eup %7622 }
 0x2a1   : > { %15081 = vst [vmem:[#allocation299_spill] sm:$0xff] %v11835_v24  ;;  %3876 = vperm.xlu0 %7526, %v3694_v23   ;;  %v2575_v23 = vld [vmem:[%s14435_s1 + $0x170] sm:$0xff] }
 0x2a3   : > { %v11843_v19 = vpop.xlane.xlu1 %2095  ;;  %2997 = vperm.xlu1 %7527, %v2699_v12   ;;  %v2703_v12 = vmul.f32 %v7623_v11, %v2575_v23  ;;  %v3728_v23 = vld [vmem:[%s14436_s2 + $0x178] sm:$0xff] }
 0x2a4   : > { %15082 = vst [vmem:[#allocation300_spill] sm:$0xff] %v11843_v19  ;;  %v11845_v62 = vpop.xlane.xlu0 %2091 }
 0x2a5   : > { %15083 = vst [vmem:[#allocation301_spill] sm:$0xff] %v11845_v62  ;;  %3871 = vperm.xlu0 %7526, %v3693_v9   ;;  %v3696_v62 = vld [vmem:[%s14436_s2 + $0x78] sm:$0xff] }
 0x2a7   : > { %v11853_v44 = vpop.xlane.xlu1 %2103  ;;  %3007 = vperm.xlu1 %7527, %v2701_v36   ;;  %v3690_v36 = vld [vmem:[%s14436_s2 + $0x48] sm:$0xff] }
 0x2a8   : > { %15084 = vst [vmem:[#allocation302_spill] sm:$0xff] %v11853_v44  ;;  %v11855_v24 = vpop.xlane.xlu0 %2099 }
 0x2a9   : > { %15085 = vst [vmem:[#allocation303_spill] sm:$0xff] %v11855_v24  ;;  %3866 = vperm.xlu0 %7526, %v3692_v37   ;;  %v3688_v24 = vld [vmem:[%s14436_s2 + $0x38] sm:$0xff] }
 0x2ab   : > { %v11860_v9 = vpop.xlane.xlu1 %2111  ;;  %3017 = vperm.xlu1 %7527, %v2703_v12   ;;  %v3689_v12 = vld [vmem:[%s14436_s2 + $0x40] sm:$0xff] }
 0x2ac   : > { %15086 = vst [vmem:[#allocation304_spill] sm:$0xff] %v11860_v9  ;;  %v11862_v58 = vpop.xlane.xlu0 %2107 }
 0x2ad   : > { %15087 = vst [vmem:[#allocation305_spill] sm:$0xff] %v11862_v58  ;;  %3861 = vperm.xlu0 %7526, %v3691_v42  }
 0x2af   : > { %v11870_v37 = vpop.xlane.xlu1 %2119  ;;  %3886 = vperm.xlu1 %7527, %v3696_v62   ;;  %v3727_v62 = vld [vmem:[%s14436_s2 + $0x170] sm:$0xff] }
 0x2b0   : > { %15088 = vst [vmem:[#allocation306_spill] sm:$0xff] %v11870_v37  ;;  %v11872_v11 = vpop.xlane.xlu0 %2115 }
 0x2b1   : > { %15089 = vst [vmem:[#allocation307_spill] sm:$0xff] %v11872_v11  ;;  %3856 = vperm.xlu0 %7526, %v3690_v36   ;;  %v3726_v36 = vld [vmem:[%s14436_s2 + $0x168] sm:$0xff] }
 0x2b3   : > { %v11880_v19 = vpop.xlane.xlu1 %2127  ;;  %4046 = vperm.xlu1 %7527, %v3728_v23  }
 0x2b4   : > { %15090 = vst [vmem:[#allocation308_spill] sm:$0xff] %v11880_v19  ;;  %v11882_v42 = vpop.xlane.xlu0 %2123 }
 0x2b5   : > { %15091 = vst [vmem:[#allocation309_spill] sm:$0xff] %v11882_v42  ;;  %3851 = vperm.xlu0 %7526, %v3689_v12   ;;  %v3725_v12 = vld [vmem:[%s14436_s2 + $0x160] sm:$0xff] }
 0x2b7   : > { %v11890_v44 = vpop.xlane.xlu1 %2135  ;;  %4041 = vperm.xlu1 %7527, %v3727_v62   ;;  %v3686_v62 = vld [vmem:[%s14436_s2 + $0x28] sm:$0xff] }
 0x2b8   : > { %15092 = vst [vmem:[#allocation310_spill] sm:$0xff] %v11890_v44  ;;  %v11895_v23 = vpop.xlane.xlu0 %2131  ;;  %v2207_v44 = vmul.f32 0.0051020407, %v11552_v1  ;;  %v3711_v1 = vld [vmem:[%s14436_s2 + $0xf0] sm:$0xff] }
 0x2b9   : > { %3846 = vperm.xlu0 %7526, %v3688_v24   ;;  %15093 = vst [vmem:[#allocation311_spill] sm:$0xff] %v11895_v23  ;;  %v2208_v24 = vmul.f32 0.0051020407, %v11550_v7  ;;  %v3723_v7 = vld [vmem:[%s14436_s2 + $0x150] sm:$0xff] }
 0x2bb   : > { %v11900_v58 = vpop.xlane.xlu1 %2143  ;;  %4036 = vperm.xlu1 %7527, %v3726_v36   ;;  %v3724_v36 = vld [vmem:[%s14436_s2 + $0x158] sm:$0xff]  ;;  %v2336_v9 = vadd.f32 1e-05, %v2208_v24  ;;  %v3722_v24 = vld [vmem:[%s14436_s2 + $0x148] sm:$0xff] }
 0x2bc   : > { %15094 = vst [vmem:[#allocation312_spill] sm:$0xff] %v11900_v58  ;;  %v11911_v59 = vpop.xlane.xlu0 %2139 }
 0x2bd   : > { %3841 = vperm.xlu0 %7526, %v3687_v3   ;;  %15095 = vst [vmem:[#allocation313_spill] sm:$0xff] %v11911_v59  ;;  %v3685_v3 = vld [vmem:[%s14436_s2 + $0x20] sm:$0xff]  ;;  %7624 = vrsqrt.f32 %v2336_v9 }
 0x2bf   : > { %v11909_v10 = vpop.permute.xlu1 %2792  ;;  %4031 = vperm.xlu1 %7527, %v3725_v12   ;;  %v3684_v12 = vld [vmem:[%s14436_s2 + $0x18] sm:$0xff] }
 0x2c1   : > { %3836 = vperm.xlu0 %7526, %v3686_v62  }
 0x2c3   : > { %v11919_v48 = vpop.permute.xlu1 %2797  ;;  %4026 = vperm.xlu1 %7527, %v3724_v36   ;;  %v3683_v36 = vld [vmem:[%s14436_s2 + $0x10] sm:$0xff] }
 0x2c4   : > { %v11921_v11 = vpop.permute.xlu0 %2787 }
 0x2c5   : > { %3831 = vperm.xlu0 %7526, %v3685_v3   ;;  %v2206_v3 = vmul.f32 0.0051020407, %v11544_v40  ;;  %v3720_v40 = vld [vmem:[%s14436_s2 + $0x138] sm:$0xff] }
 0x2c7   : > { %v11929_v62 = vpop.permute.xlu1 %2802  ;;  %4021 = vperm.xlu1 %7527, %v3723_v7   ;;  %v3721_v7 = vld [vmem:[%s14436_s2 + $0x140] sm:$0xff]  ;;  %v2334_v49 = vadd.f32 1e-05, %v2206_v3 }
 0x2c8   : > { %v11931_v33 = vpop.permute.xlu0 %2832 }
 0x2c9   : > { %3826 = vperm.xlu0 %7526, %v3684_v12   ;;  %v3682_v12 = vld [vmem:[%s14436_s2 + $0x8] sm:$0xff]  ;;  %7626 = vrsqrt.f32 %v2334_v49 }
 0x2ca   : > { %v7625_v19 = vpop.eup %7624 }
 0x2cb   : > { %v11940_v37 = vpop.permute.xlu1 %2807  ;;  %4016 = vperm.xlu1 %7527, %v3722_v24   ;;  %v3681_v24 = vld [vmem:[%s14436_s2] sm:$0xff]  ;;  %v2720_v49 = vmul.f32 %v7625_v19, %v2592_v41  ;;  %v2335_v19 = vadd.f32 1e-05, %v2207_v44  ;;  %v2590_v44 = vld [vmem:[%s14435_s1 + $0x1e8] sm:$0xff] }
 0x2cc   : > { %v11942_v9 = vpop.permute.xlu0 %2842  ;;  %v3717_v41 = vld [vmem:[%s14436_s2 + $0x120] sm:$0xff] }
 0x2cd   : > { %3821 = vperm.xlu0 %7526, %v3683_v36  }
 0x2cf   : > { %v11950_v42 = vpop.permute.xlu1 %2812  ;;  %4011 = vperm.xlu1 %7527, %v3721_v7   ;;  %v3719_v7 = vld [vmem:[%s14436_s2 + $0x130] sm:$0xff] }
 0x2d0   : > { %v11952_v8 = vpop.permute.xlu0 %2852 }
 0x2d1   : > { %3816 = vperm.xlu0 %7526, %v3682_v12   ;;  %v2204_v12 = vmul.f32 0.0051020407, %v11538_v31 }
 0x2d3   : > { %v11960_v36 = vpop.permute.xlu1 %2817  ;;  %4006 = vperm.xlu1 %7527, %v3720_v40   ;;  %v3718_v40 = vld [vmem:[%s14436_s2 + $0x128] sm:$0xff] }
 0x2d4   : > { %v11962_v3 = vpop.permute.xlu0 %2862 }
 0x2d5   : > { %3811 = vperm.xlu0 %7526, %v3681_v24   ;;  %v2332_v24 = vadd.f32 1e-05, %v2204_v12 }
 0x2d6   : > { %v7627_v12 = vpop.eup %7626 }
 0x2d7   : > { %v11971_v23 = vpop.permute.xlu1 %2822  ;;  %4001 = vperm.xlu1 %7527, %v3719_v7   ;;  %7628 = vrsqrt.f32 %v2332_v24  ;;  %v2718_v24 = vmul.f32 %v7627_v12, %v2590_v44  ;;  %v3714_v12 = vld [vmem:[%s14436_s2 + $0x108] sm:$0xff] }
 0x2d8   : > { %v11973_v17 = vpop.permute.xlu0 %2872  ;;  %7630 = vrsqrt.f32 %v2335_v19  ;;  %v3743_v19 = vld [vmem:[%s14436_s2 + $0x1f0] sm:$0xff] }
 0x2d9   : > { %15096 = vst [vmem:[#allocation314_spill] sm:$0xff] %v11973_v17  ;;  %3102 = vperm.xlu0 %7526, %v2720_v49  }
 0x2db   : > { %v11982_v59 = vpop.permute.xlu1 %2827  ;;  %3996 = vperm.xlu1 %7527, %v3718_v40   ;;  %v3716_v40 = vld [vmem:[%s14436_s2 + $0x118] sm:$0xff] }
 0x2dc   : > { %v11984_v31 = vpop.permute.xlu0 %2882 }
 0x2dd   : > { %15097 = vst [vmem:[#allocation315_spill] sm:$0xff] %v11984_v31  ;;  %3971 = vperm.xlu0 %7526, %v3713_v16   ;;  %v2202_v16 = vmul.f32 0.0051020407, %v11532_v52  ;;  %v3715_v31 = vld [vmem:[%s14436_s2 + $0x110] sm:$0xff] }
 0x2df   : > { %v11992_v7 = vpop.permute.xlu1 %2837  ;;  %3991 = vperm.xlu1 %7527, %v3717_v41  }
 0x2e0   : > { %v11994_v49 = vpop.permute.xlu0 %2892 }
 0x2e1   : > { %15098 = vst [vmem:[#allocation316_spill] sm:$0xff] %v11994_v49  ;;  %3961 = vperm.xlu0 %7526, %v3711_v1   ;;  %v2205_v49 = vmul.f32 0.0051020407, %v11546_v28  ;;  %v2330_v1 = vadd.f32 1e-05, %v2202_v16  ;;  %v3709_v28 = vld [vmem:[%s14436_s2 + $0xe0] sm:$0xff] }
 0x2e3   : > { %v12003_v17 = vpop.permute.xlu1 %2847  ;;  %3986 = vperm.xlu1 %7527, %v3716_v40   ;;  %v2333_v40 = vadd.f32 1e-05, %v2205_v49  ;;  %7632 = vrsqrt.f32 %v2330_v1  ;;  %v2588_v49 = vld [vmem:[%s14435_s1 + $0x1d8] sm:$0xff]  ;;  %v2591_v1 = vld [vmem:[%s14435_s1 + $0x1f0] sm:$0xff] }
 0x2e4   : > { %v12005_v41 = vpop.permute.xlu0 %2902  ;;  %v7629_v16 = vpop.eup %7628 }
 0x2e5   : > { %15099 = vst [vmem:[#allocation317_spill] sm:$0xff] %v12005_v41  ;;  %3092 = vperm.xlu0 %7526, %v2718_v24   ;;  %7634 = vrsqrt.f32 %v2333_v40  ;;  %v2716_v43 = vmul.f32 %v7629_v16, %v2588_v49  ;;  %v3741_v40 = vld [vmem:[%s14436_s2 + $0x1e0] sm:$0xff]  ;;  %v2331_v16 = vadd.f32 1e-05, %v2203_v61  ;;  %v2586_v61 = vld [vmem:[%s14435_s1 + $0x1c8] sm:$0xff] }
 0x2e7   : > { %v12014_v58 = vpop.permute.xlu1 %2857  ;;  %3981 = vperm.xlu1 %7527, %v3715_v31   ;;  %v3712_v31 = vld [vmem:[%s14436_s2 + $0xf8] sm:$0xff] }
 0x2e8   : > { %v12016_v52 = vpop.permute.xlu0 %2912 }
 0x2e9   : > { %15100 = vst [vmem:[#allocation318_spill] sm:$0xff] %v12016_v52  ;;  %4121 = vperm.xlu0 %7526, %v3743_v19   ;;  %v7631_v19 = vpop.eup %7630 }
 0x2ea   : > { %v2719_v52 = vmul.f32 %v7631_v19, %v2591_v1  ;;  %v2589_v1 = vld [vmem:[%s14435_s1 + $0x1e0] sm:$0xff] }
 0x2eb   : > { %v12024_v44 = vpop.permute.xlu1 %2867  ;;  %3976 = vperm.xlu1 %7527, %v3714_v12   ;;  %v2200_v12 = vmul.f32 0.0051020407, %v11520_v0  ;;  %v3744_v0 = vld [vmem:[%s14436_s2 + $0x1f8] sm:$0xff] }
 0x2ec   : > { %15101 = vst [vmem:[#allocation319_spill] sm:$0xff] %v12024_v44  ;;  %v12026_v24 = vpop.permute.xlu0 %2922 }
 0x2ed   : > { %15102 = vst [vmem:[#allocation320_spill] sm:$0xff] %v12026_v24  ;;  %3951 = vperm.xlu0 %7526, %v3709_v28   ;;  %v2328_v28 = vadd.f32 1e-05, %v2200_v12  ;;  %v2198_v12 = vmul.f32 0.0051020407, %v11497_v6  ;;  %v3742_v6 = vld [vmem:[%s14436_s2 + $0x1e8] sm:$0xff] }
 0x2ef   : > { %v12038_v44 = vpop.permute.xlu1 %2877  ;;  %3966 = vperm.xlu1 %7527, %v3712_v31   ;;  %7636 = vrsqrt.f32 %v2328_v28 }
 0x2f0   : > { %15103 = vst [vmem:[#allocation321_spill] sm:$0xff] %v12038_v44  ;;  %v12040_v41 = vpop.permute.xlu0 %2932  ;;  %v7633_v31 = vpop.eup %7632  ;;  %7638 = vrsqrt.f32 %v2331_v16  ;;  %v2201_v44 = vmul.f32 0.0051020407, %v11534_v60  ;;  %v3739_v16 = vld [vmem:[%s14436_s2 + $0x1d0] sm:$0xff]  ;;  %v3705_v60 = vld [vmem:[%s14436_s2 + $0xc0] sm:$0xff] }
 0x2f1   : > { %15104 = vst [vmem:[#allocation322_spill] sm:$0xff] %v12040_v41  ;;  %3082 = vperm.xlu0 %7526, %v2716_v43   ;;  %v2714_v28 = vmul.f32 %v7633_v31, %v2586_v61 }
 0x2f2   : > { %v7635_v19 = vpop.eup %7634  ;;  %v2329_v31 = vadd.f32 1e-05, %v2201_v44  ;;  %v2584_v44 = vld [vmem:[%s14435_s1 + $0x1b8] sm:$0xff] }
 0x2f3   : > { %v12046_v4 = vpop.permute.xlu1 %2887  ;;  %3097 = vperm.xlu1 %7527, %v2719_v52   ;;  %v3710_v52 = vld [vmem:[%s14436_s2 + $0xe8] sm:$0xff] }
 0x2f4   : > { %15105 = vst [vmem:[#allocation323_spill] sm:$0xff] %v12046_v4  ;;  %v12048_v53 = vpop.permute.xlu0 %2942  ;;  %v2717_v4 = vmul.f32 %v7635_v19, %v2589_v1 }
 0x2f5   : > { %15106 = vst [vmem:[#allocation324_spill] sm:$0xff] %v12048_v53  ;;  %4111 = vperm.xlu0 %7526, %v3741_v40   ;;  %v3733_v53 = vld [vmem:[%s14436_s2 + $0x1a0] sm:$0xff] }
 0x2f7   : > { %v12056_v43 = vpop.permute.xlu1 %2897  ;;  %4126 = vperm.xlu1 %7527, %v3744_v0  }
 0x2f8   : > { %15107 = vst [vmem:[#allocation325_spill] sm:$0xff] %v12056_v43  ;;  %v12058_v49 = vpop.permute.xlu0 %2952 }
 0x2f9   : > { %15108 = vst [vmem:[#allocation326_spill] sm:$0xff] %v12058_v49  ;;  %3941 = vperm.xlu0 %7526, %v3707_v29   ;;  %v2326_v29 = vadd.f32 1e-05, %v2198_v12  ;;  %v2587_v12 = vld [vmem:[%s14435_s1 + $0x1d0] sm:$0xff] }
 0x2fb   : > { %v12070_v40 = vpop.permute.xlu1 %2907  ;;  %3956 = vperm.xlu1 %7527, %v3710_v52   ;;  %7640 = vrsqrt.f32 %v2326_v29 }
 0x2fc   : > { %15109 = vst [vmem:[#allocation327_spill] sm:$0xff] %v12070_v40  ;;  %v12072_v0 = vpop.permute.xlu0 %2962  ;;  %v7637_v61 = vpop.eup %7636  ;;  %7642 = vrsqrt.f32 %v2329_v31  ;;  %v2199_v40 = vmul.f32 0.0051020407, %v11524_v2  ;;  %v3737_v31 = vld [vmem:[%s14436_s2 + $0x1c0] sm:$0xff]  ;;  %v2193_v2 = vmul.f32 0.0051020407, %v11446_v54 }
 0x2fd   : > { %15110 = vst [vmem:[#allocation328_spill] sm:$0xff] %v12072_v0  ;;  %3072 = vperm.xlu0 %7526, %v2714_v28   ;;  %v7639_v1 = vpop.eup %7638  ;;  %v2196_v28 = vmul.f32 0.0051020407, %v11468_v22  ;;  %v2712_v29 = vmul.f32 %v7637_v61, %v2584_v44  ;;  %v2194_v22 = vmul.f32 0.0051020407, %v11432_v20  ;;  %v3740_v61 = vld [vmem:[%s14436_s2 + $0x1d8] sm:$0xff] }
 0x2fe   : > { %v2195_v44 = vmul.f32 0.0051020407, %v11479_v34  ;;  %v3706_v34 = vld [vmem:[%s14436_s2 + $0xc8] sm:$0xff] }
 0x2ff   : > { %v12078_v43 = vpop.permute.xlu1 %2917  ;;  %3087 = vperm.xlu1 %7527, %v2717_v4   ;;  %v3708_v4 = vld [vmem:[%s14436_s2 + $0xd8] sm:$0xff]  ;;  %v2582_v54 = vld [vmem:[%s14435_s1 + $0x1a8] sm:$0xff] }
 0x300   : > { %15111 = vst [vmem:[#allocation329_spill] sm:$0xff] %v12078_v43  ;;  %v12080_v24 = vpop.permute.xlu0 %2972  ;;  %v2715_v43 = vmul.f32 %v7639_v1, %v2587_v12  ;;  %v3703_v1 = vld [vmem:[%s14436_s2 + $0xb0] sm:$0xff] }
 0x301   : > { %15112 = vst [vmem:[#allocation330_spill] sm:$0xff] %v12080_v24  ;;  %4101 = vperm.xlu0 %7526, %v3739_v16   ;;  %v15131_v24 = vld [vmem:[#allocation40_spill] sm:$0xff] }
 0x303   : > { %v12088_v52 = vpop.permute.xlu1 %2927  ;;  %4116 = vperm.xlu1 %7527, %v3742_v6  }
 0x304   : > { %15113 = vst [vmem:[#allocation331_spill] sm:$0xff] %v12088_v52  ;;  %v12090_v19 = vpop.permute.xlu0 %2982 }
 0x305   : > { %3931 = vperm.xlu0 %7526, %v3705_v60   ;;  %v2324_v60 = vadd.f32 1e-05, %v2196_v28  ;;  %v2322_v28 = vadd.f32 1e-05, %v2194_v22 }
 0x307   : > { %v12102_v16 = vpop.permute.xlu1 %2937  ;;  %3946 = vperm.xlu1 %7527, %v3708_v4   ;;  %v2327_v4 = vadd.f32 1e-05, %v2199_v40  ;;  %7644 = vrsqrt.f32 %v2324_v60  ;;  %v2321_v40 = vadd.f32 1e-05, %v2193_v2  ;;  %v2585_v60 = vld [vmem:[%s14435_s1 + $0x1c0] sm:$0xff] }
 0x308   : > { %15114 = vst [vmem:[#allocation332_spill] sm:$0xff] %v12102_v16  ;;  %v12104_v6 = vpop.permute.xlu0 %2992  ;;  %v7641_v12 = vpop.eup %7640 }
 0x309   : > { %3062 = vperm.xlu0 %7526, %v2712_v29   ;;  %v2223_v29 = vmul.f32 0.0051020407, %v11642_v21  ;;  %7646 = vrsqrt.f32 %v2327_v4  ;;  %v3735_v4 = vld [vmem:[%s14436_s2 + $0x1b0] sm:$0xff] }
 0x30a   : > { %7648 = vrsqrt.f32 %v2322_v28 }
 0x30b   : > { %v12110_v30 = vpop.permute.xlu1 %2947  ;;  %3077 = vperm.xlu1 %7527, %v2715_v43   ;;  %v2197_v43 = vmul.f32 0.0051020407, %v11506_v51  ;;  %v7643_v51 = vpop.eup %7642  ;;  %v2351_v39 = vadd.f32 1e-05, %v2223_v29  ;;  %7650 = vrsqrt.f32 %v2321_v40 }
 0x30c   : > { %15115 = vst [vmem:[#allocation333_spill] sm:$0xff] %v12110_v30  ;;  %v12113_v52 = vpop.permute.xlu0 %3002  ;;  %v2713_v2 = vmul.f32 %v7643_v51, %v2585_v60  ;;  %v2224_v51 = vmul.f32 0.0051020407, %v11640_v5  ;;  %v2254_v60 = vmul.f32 0.0051020407, %v11813_v35 }
 0x30d   : > { %4091 = vperm.xlu0 %7526, %v3737_v31   ;;  %v2323_v31 = vadd.f32 1e-05, %v2195_v44  ;;  %v2325_v21 = vadd.f32 1e-05, %v2197_v43  ;;  %v3738_v43 = vld [vmem:[%s14436_s2 + $0x1c8] sm:$0xff] }
 0x30e   : > { %v2352_v16 = vadd.f32 1e-05, %v2224_v51  ;;  %v2382_v15 = vadd.f32 1e-05, %v2254_v60 }
 0x30f   : > { %v12124_v20 = vpop.permute.xlu1 %2957  ;;  %4106 = vperm.xlu1 %7527, %v3740_v61   ;;  %v2710_v61 = vmul.f32 %v7641_v12, %v2582_v54  ;;  %7652 = vrsqrt.f32 %v2323_v31  ;;  %v3701_v12 = vld [vmem:[%s14436_s2 + $0xa0] sm:$0xff]  ;;  %v2580_v54 = vld [vmem:[%s14435_s1 + $0x198] sm:$0xff]  ;;  %v2583_v31 = vld [vmem:[%s14435_s1 + $0x1b0] sm:$0xff] }
 0x310   : > { %15116 = vst [vmem:[#allocation334_spill] sm:$0xff] %v12124_v20  ;;  %v12127_v41 = vpop.permute.xlu0 %3012  ;;  %7654 = vrsqrt.f32 %v2325_v21  ;;  %v12209_v20 = vmul.f32 0.0051020407, %v11630_v45 }
 0x311   : > { %3921 = vperm.xlu0 %7526, %v3703_v1   ;;  %7656 = vrsqrt.f32 %v2351_v39  ;;  %v3704_v39 = vld [vmem:[%s14436_s2 + $0xb8] sm:$0xff] }
 0x312   : > { %7658 = vrsqrt.f32 %v2352_v16  ;;  %v12216_v16 = vmul.f32 0.0051020407, %v11803_v26 }
 0x313   : > { %v12138_v22 = vpop.permute.xlu1 %2967  ;;  %3936 = vperm.xlu1 %7527, %v3706_v34   ;;  %7660 = vrsqrt.f32 %v2382_v15 }
 0x314   : > { %15117 = vst [vmem:[#allocation335_spill] sm:$0xff] %v12138_v22  ;;  %v12140_v57 = vpop.permute.xlu0 %3022  ;;  %v7645_v29 = vpop.eup %7644  ;;  %v15130_v22 = vld [vmem:[#allocation28_spill] sm:$0xff] }
 0x315   : > { %3052 = vperm.xlu0 %7526, %v2710_v61   ;;  %v2708_v61 = vmul.f32 %v7645_v29, %v2580_v54  ;;  %v2577_v29 = vld [vmem:[%s14435_s1 + $0x180] sm:$0xff]  ;;  %v2222_v54 = vmul.f32 0.0051020407, %v11628_v55  ;;  %v2607_v55 = vld [vmem:[%s14435_s1 + $0x270] sm:$0xff] }
 0x316   : > { %v7647_v40 = vpop.eup %7646 }
 0x317   : > { %v12145_v44 = vpop.permute.xlu1 %2977  ;;  %3067 = vperm.xlu1 %7527, %v2713_v2   ;;  %v2253_v2 = vmul.f32 0.0051020407, %v11815_v18  ;;  %v2711_v50 = vmul.f32 %v7647_v40, %v2583_v31  ;;  %v2578_v18 = vld [vmem:[%s14435_s1 + $0x188] sm:$0xff]  ;;  %v2581_v31 = vld [vmem:[%s14435_s1 + $0x1a0] sm:$0xff] }
 0x318   : > { %15118 = vst [vmem:[#allocation336_spill] sm:$0xff] %v12145_v44  ;;  %v12147_v1 = vpop.permute.xlu0 %3881 }
 0x319   : > { %4081 = vperm.xlu0 %7526, %v3735_v4   ;;  %v2381_v40 = vadd.f32 1e-05, %v2253_v2  ;;  %v3699_v2 = vld [vmem:[%s14436_s2 + $0x90] sm:$0xff] }
 0x31b   : > { %v12155_v28 = vpop.permute.xlu1 %2987  ;;  %4096 = vperm.xlu1 %7527, %v3738_v43   ;;  %v7649_v43 = vpop.eup %7648  ;;  %7662 = vrsqrt.f32 %v2381_v40  ;;  %v15123_v40 = vld [vmem:[#allocation44_spill] sm:$0xff] }
 0x31c   : > { %v12157_v34 = vpop.permute.xlu0 %3876  ;;  %v7651_v5 = vpop.eup %7650  ;;  %v2706_v13 = vmul.f32 %v7649_v43, %v2578_v18  ;;  %v3702_v43 = vld [vmem:[%s14436_s2 + $0xa8] sm:$0xff]  ;;  %v15120_v18 = vld [vmem:[#allocation31_spill] sm:$0xff] }
 0x31d   : > { %3911 = vperm.xlu0 %7526, %v3701_v12   ;;  %v2255_v12 = vmul.f32 0.0051020407, %v11825_v14  ;;  %v7653_v35 = vpop.eup %7652  ;;  %v2579_v14 = vld [vmem:[%s14435_s1 + $0x190] sm:$0xff]  ;;  %v12206_v56 = vmul.f32 %v7651_v5, %v2577_v29  ;;  %v15119_v5 = vld [vmem:[#allocation33_spill] sm:$0xff]  ;;  %v12233_v26 = vmul.f32 %v11931_v33, %v15120_v18 }
 0x31e   : > { %v15128_v18 = vld [vmem:[#allocation47_spill] sm:$0xff] }
 0x31f   : > { %v12170_v21 = vpop.permute.xlu1 %2997  ;;  %3926 = vperm.xlu1 %7527, %v3704_v39   ;;  %v7655_v39 = vpop.eup %7654  ;;  %v2383_v49 = vadd.f32 1e-05, %v2255_v12  ;;  %v12213_v12 = vadd.f32 1e-05, %v2222_v54 }
 0x320   : > { %v12173_v4 = vpop.permute.xlu0 %3871  ;;  %v7657_v60 = vpop.eup %7656 }
 0x321   : > { %3042 = vperm.xlu0 %7526, %v2708_v61   ;;  %v2256_v61 = vmul.f32 0.0051020407, %v11823_v32  ;;  %v2709_v32 = vmul.f32 %v7655_v39, %v2581_v31  ;;  %v12223_v45 = vmul.f32 %v7657_v60, %v2607_v55  ;;  %7664 = vrsqrt.f32 %v2383_v49  ;;  %v15122_v39 = vld [vmem:[#allocation45_spill] sm:$0xff]  ;;  %v15124_v31 = vld [vmem:[#allocation43_spill] sm:$0xff]  ;;  %v15125_v60 = vld [vmem:[#allocation34_spill] sm:$0xff] }
 0x322   : > { %v3455_v54 = vmul.f32 %v11962_v3, %v15122_v39  ;;  %v3456_v49 = vmul.f32 %v11962_v3, %v15124_v31  ;;  %v15126_v55 = vld [vmem:[#allocation25_spill] sm:$0xff] }
 0x323   : > { %v12179_v30 = vpop.permute.xlu1 %3007  ;;  %3057 = vperm.xlu1 %7527, %v2711_v50   ;;  %v3736_v50 = vld [vmem:[%s14436_s2 + $0x1b8] sm:$0xff]  ;;  %v12225_v15 = vadd.f32 1e-05, %v2256_v61  ;;  %v3448_v61 = vmul.f32 %v11942_v9, %v15125_v60 }
 0x324   : > { %v12191_v51 = vpop.permute.xlu0 %3866 }
 0x325   : > { %4071 = vperm.xlu0 %7526, %v3733_v53   ;;  %v12211_v53 = vmul.f32 %v7653_v35, %v2579_v14  ;;  %v12229_v35 = vmul.f32 %v11931_v33, %v15119_v5  ;;  %v15121_v14 = vld [vmem:[#allocation37_spill] sm:$0xff]  ;;  %v12247_v33 = vmul.f32 %v11950_v42, %v15126_v55  ;;  %v12260_v55 = vmul.f32 %v11960_v36, %v15130_v22 }
 0x326   : > { %v3447_v29 = vmul.f32 %v11942_v9, %v15121_v14  ;;  %v3453_v14 = vmul.f32 %v12014_v58, %v15128_v18  ;;  %v15132_v18 = vld [vmem:[#allocation7_spill] sm:$0xff]  ;;  %7666 = vrsqrt.f32 %v12225_v15 }
 0x327   : > { %v3018_v0 = vpop.permute.xlu1 %3017  ;;  %4086 = vperm.xlu1 %7527, %v3736_v50   ;;  %v3454_v50 = vmul.f32 %v12014_v58, %v15123_v40  ;;  %v3451_v40 = vmul.f32 %v11952_v8, %v15129_v25  ;;  %7668 = vrsqrt.f32 %v12213_v12 }
 0x328   : > { %v12218_v38 = vpop.permute.xlu0 %3861  ;;  %v4477_v58 = vadd.f32 %v12147_v1, %v3453_v14 }
 0x329   : > { %3901 = vperm.xlu0 %7526, %v3699_v2   ;;  %v15127_v2 = vld [vmem:[#allocation39_spill] sm:$0xff]  ;;  %v4478_v3 = vadd.f32 %v12147_v1, %v3454_v50  ;;  %v15135_v1 = vld [vmem:[#allocation36_spill] sm:$0xff] }
 0x32a   : > { %v3452_v5 = vmul.f32 %v11952_v8, %v15127_v2  ;;  %v3450_v2 = vmul.f32 %v12003_v17, %v15131_v24  ;;  %v3519_v8 = vmul.f32 %v12140_v57, %v15132_v18 }
 0x32b   : > { %v3887_v39 = vpop.permute.xlu1 %3886  ;;  %3916 = vperm.xlu1 %7527, %v3702_v43  }
 0x32c   : > { %v12256_v31 = vpop.permute.xlu0 %3856  ;;  %v4480_v9 = vadd.f32 %v3887_v39, %v3456_v49  ;;  %v4479_v60 = vadd.f32 %v3887_v39, %v3455_v54  ;;  %v4476_v43 = vadd.f32 %v12157_v34, %v3452_v5  ;;  %v3731_v54 = vld [vmem:[%s14436_s2 + $0x190] sm:$0xff]  ;;  %v15133_v49 = vld [vmem:[#allocation108_spill] sm:$0xff]  ;;  %v15134_v39 = vld [vmem:[#allocation29_spill] sm:$0xff]  ;;  %v3446_v5 = vmul.f32 %v11992_v7, %v15135_v1 }
 0x32d   : > { %3032 = vperm.xlu0 %7526, %v2706_v13   ;;  %v3520_v22 = vmul.f32 %v12140_v57, %v15133_v49  ;;  %v12275_v24 = vmul.f32 %v11971_v23, %v15134_v39  ;;  %v15136_v13 = vld [vmem:[#allocation42_spill] sm:$0xff]  ;;  %v4474_v46 = vadd.f32 %v12173_v4, %v3450_v2  ;;  %v4734_v57 = vmax.f32 %v4478_v3, 0.0  ;;  %v3697_v3 = vld [vmem:[%s14436_s2 + $0x80] sm:$0xff] }
 0x32e   : > { %v4736_v25 = vmax.f32 %v4480_v9, 0.0  ;;  %v4735_v50 = vmax.f32 %v4479_v60, 0.0  ;;  %v3449_v14 = vmul.f32 %v12003_v17, %v15136_v13  ;;  %v4475_v9 = vadd.f32 %v12157_v34, %v3451_v40  ;;  %v3734_v49 = vld [vmem:[%s14436_s2 + $0x1a8] sm:$0xff]  ;;  %v15137_v40 = vld [vmem:[#allocation8_spill] sm:$0xff]  ;;  %v15138_v13 = vld [vmem:[#allocation111_spill] sm:$0xff] }
 0x32f   : > { %v4047_v18 = vpop.permute.xlu1 %4046  ;;  %3047 = vperm.xlu1 %7527, %v2709_v32   ;;  %v4472_v17 = vadd.f32 %v12191_v51, %v3448_v61  ;;  %v4733_v34 = vmax.f32 %v4477_v58, 0.0  ;;  %v4732_v32 = vmax.f32 %v4476_v43, 0.0  ;;  %v3517_v2 = vmul.f32 %v3018_v0, %v15137_v40 }
 0x330   : > { %v12283_v60 = vpop.permute.xlu0 %3851  ;;  %5473 = vmatprep.subr.mxu0 %v4736_v25  ;;  %v4544_v39 = vadd.f32 %v4047_v18, %v3520_v22  ;;  %v4543_v44 = vadd.f32 %v4047_v18, %v3519_v8  ;;  %v4473_v1 = vadd.f32 %v12173_v4, %v3449_v14  ;;  %v3518_v63 = vmul.f32 %v3018_v0, %v15138_v13  ;;  %v12295_v8 = vpop.eup %7658  ;;  %v15139_v4 = vld [vmem:[#allocation32_spill] sm:$0xff] }
 0x331   : > { %4061 = vperm.xlu0 %7526, %v3731_v54   ;;  %5474 = vmatpush1.msra.mxu0 %v4735_v50  ;;  %v3442_v61 = vmul.f32 %v11982_v59, %v15139_v4  ;;  %v15140_v54 = vld [vmem:[#allocation38_spill] sm:$0xff]  ;;  %v4471_v43 = vadd.f32 %v12191_v51, %v3447_v29  ;;  %v4731_v0 = vmax.f32 %v4475_v9, 0.0  ;;  %v12302_v14 = vpop.eup %7660  ;;  %v4470_v18 = vadd.f32 %v12218_v38, %v3446_v5  ;;  %v15142_v9 = vld [vmem:[#allocation105_spill] sm:$0xff] }
 0x332   : > { %5475 = vmatprep.subr.mxu0 %v4734_v57  ;;  %v4800_v25 = vmax.f32 %v4544_v39, 0.0  ;;  %v4799_v22 = vmax.f32 %v4543_v44, 0.0  ;;  %v3445_v58 = vmul.f32 %v11992_v7, %v15140_v54  ;;  %v4730_v40 = vmax.f32 %v4474_v46, 0.0  ;;  %v3700_v7 = vld [vmem:[%s14436_s2 + $0x98] sm:$0xff]  ;;  %v12308_v13 = vpop.eup %7662  ;;  %v15141_v51 = vld [vmem:[#allocation106_spill] sm:$0xff] }
 0x333   : > { %v4042_v50 = vpop.permute.xlu1 %4041  ;;  %4076 = vperm.xlu1 %7527, %v3734_v49   ;;  %5476 = vmatpush1.msra.mxu0 %v4733_v34  ;;  %v3515_v29 = vmul.f32 %v12127_v41, %v15141_v51  ;;  %v3516_v49 = vmul.f32 %v12127_v41, %v15142_v9  ;;  %v12315_v34 = vpop.eup %7664  ;;  %v4468_v46 = vadd.f32 %v12256_v31, %v12233_v26  ;;  %v15143_v41 = vld [vmem:[#allocation27_spill] sm:$0xff]  ;;  %v4727_v26 = vmax.f32 %v4471_v43, 0.0  ;;  %v15148_v9 = vld [vmem:[#allocation30_spill] sm:$0xff] }
 0x334   : > { %v4541_v57 = vadd.f32 %v4042_v50, %v3517_v2  ;;  %v4542_v44 = vadd.f32 %v4042_v50, %v3518_v63  ;;  %v3847_v39 = vpop.permute.xlu0 %3846  ;;  %5477 = vmatprep.subr.mxu0 %v4732_v32  ;;  %5922 = vmatprep.subr.mxu1 %v4800_v25  ;;  %v4469_v5 = vadd.f32 %v12218_v38, %v3445_v58  ;;  %v4729_v63 = vmax.f32 %v4473_v1, 0.0  ;;  %v3729_v32 = vld [vmem:[%s14436_s2 + $0x180] sm:$0xff] }
 0x335   : > { %3891 = vperm.xlu0 %7526, %v3697_v3   ;;  %5478 = vmatpush1.msra.mxu0 %v4731_v0  ;;  %v4728_v2 = vmax.f32 %v4472_v17, 0.0  ;;  %v3440_v38 = vmul.f32 %v11971_v23, %v15143_v41  ;;  %v15144_v3 = vld [vmem:[#allocation35_spill] sm:$0xff]  ;;  %v4467_v54 = vadd.f32 %v12256_v31, %v12229_v35 }
 0x336   : > { %5923 = vmatpush1.msra.mxu1 %v4799_v22  ;;  %5479 = vmatprep.subr.mxu0 %v4730_v40  ;;  %v4798_v25 = vmax.f32 %v4542_v44, 0.0  ;;  %v4797_v4 = vmax.f32 %v4541_v57, 0.0  ;;  %v3441_v1 = vmul.f32 %v11982_v59, %v15144_v3  ;;  %v4466_v22 = vadd.f32 %v12283_v60, %v3442_v61  ;;  %v15145_v44 = vld [vmem:[#allocation110_spill] sm:$0xff] }
 0x337   : > { %v4037_v58 = vpop.permute.xlu1 %4036  ;;  %3906 = vperm.xlu1 %7527, %v3700_v7   ;;  %5480 = vmatpush1.msra.mxu0 %v4729_v63  ;;  %v4726_v57 = vmax.f32 %v4470_v18, 0.0  ;;  %v3513_v23 = vmul.f32 %v12179_v30, %v15145_v44  ;;  %v15146_v40 = vld [vmem:[#allocation6_spill] sm:$0xff]  ;;  %v4725_v31 = vmax.f32 %v4469_v5, 0.0  ;;  %v4464_v43 = vadd.f32 %v3847_v39, %v3440_v38  ;;  %v3760_v38 = vld [vmem:[%s14436_s2 + $0x278] sm:$0xff] }
 0x338   : > { %v4539_v50 = vadd.f32 %v4037_v58, %v3515_v29  ;;  %v4540_v0 = vadd.f32 %v4037_v58, %v3516_v49  ;;  %v3842_v17 = vpop.permute.xlu0 %3841  ;;  %5481 = vmatprep.subr.mxu0 %v4728_v2  ;;  %5924 = vmatprep.subr.mxu1 %v4798_v25  ;;  %v3514_v59 = vmul.f32 %v12179_v30, %v15146_v40  ;;  %v4724_v61 = vmax.f32 %v4468_v46, 0.0  ;;  %v15147_v29 = vld [vmem:[#allocation23_spill] sm:$0xff]  ;;  %v15151_v58 = vld [vmem:[#allocation26_spill] sm:$0xff] }
 0x339   : > { %v4465_v35 = vadd.f32 %v12283_v60, %v3441_v1  ;;  %4051 = vperm.xlu0 %7526, %v3729_v32   ;;  %5482 = vmatpush1.msra.mxu0 %v4727_v26  ;;  %v3436_v18 = vmul.f32 %v11950_v42, %v15147_v29  ;;  %v3437_v49 = vmul.f32 %v11960_v36, %v15148_v9  ;;  %v4723_v60 = vmax.f32 %v4467_v54, 0.0  ;;  %v3732_v42 = vld [vmem:[%s14436_s2 + $0x198] sm:$0xff]  ;;  %v15149_v36 = vld [vmem:[#allocation102_spill] sm:$0xff] }
 0x33a   : > { %5925 = vmatpush1.msra.mxu1 %v4797_v4  ;;  %5483 = vmatprep.subr.mxu0 %v4726_v57  ;;  %v4796_v7 = vmax.f32 %v4540_v0, 0.0  ;;  %v4795_v51 = vmax.f32 %v4539_v50, 0.0  ;;  %v4463_v63 = vadd.f32 %v3847_v39, %v12275_v24  ;;  %v4462_v5 = vadd.f32 %v3842_v17, %v12260_v55  ;;  %v15150_v39 = vld [vmem:[#allocation100_spill] sm:$0xff]  ;;  %v3698_v40 = vld [vmem:[%s14436_s2 + $0x88] sm:$0xff] }
 0x33b   : > { %v4032_v30 = vpop.permute.xlu1 %4031  ;;  %3037 = vperm.xlu1 %7527, %v12211_v53   ;;  %5484 = vmatpush1.msra.mxu0 %v4725_v31  ;;  %v4722_v25 = vmax.f32 %v4466_v22, 0.0  ;;  %v3511_v24 = vmul.f32 %v12113_v52, %v15149_v36  ;;  %v3512_v53 = vmul.f32 %v12113_v52, %v15150_v39  ;;  %v4461_v4 = vadd.f32 %v3842_v17, %v3437_v49  ;;  %v15152_v22 = vld [vmem:[#allocation24_spill] sm:$0xff]  ;;  %v15158_v39 = vld [vmem:[#allocation94_spill] sm:$0xff] }
 0x33c   : > { %v4537_v32 = vadd.f32 %v4032_v30, %v3513_v23  ;;  %v4538_v2 = vadd.f32 %v4032_v30, %v3514_v59  ;;  %v3837_v46 = vpop.permute.xlu0 %3836  ;;  %5485 = vmatprep.subr.mxu0 %v4724_v61  ;;  %5926 = vmatprep.subr.mxu1 %v4796_v7  ;;  %v4721_v55 = vmax.f32 %v4465_v35, 0.0  ;;  %v4720_v3 = vmax.f32 %v4464_v43, 0.0  ;;  %v15154_v43 = vld [vmem:[#allocation101_spill] sm:$0xff]  ;;  %v15156_v49 = vld [vmem:[#allocation16_spill] sm:$0xff] }
 0x33d   : > { %3177 = vperm.xlu0 %7526, %v12223_v45   ;;  %5486 = vmatpush1.msra.mxu0 %v4723_v60  ;;  %v4460_v41 = vadd.f32 %v3837_v46, %v3436_v18  ;;  %v3433_v26 = vmul.f32 %v11940_v37, %v15151_v58  ;;  %v3434_v52 = vmul.f32 %v11940_v37, %v15152_v22  ;;  %v4719_v0 = vmax.f32 %v4463_v63, 0.0  ;;  %v2639_v37 = vld [vmem:[%s14435_s1 + $0x370] sm:$0xff]  ;;  %v15155_v18 = vld [vmem:[#allocation21_spill] sm:$0xff] }
 0x33e   : > { %5927 = vmatpush1.msra.mxu1 %v4795_v51  ;;  %5487 = vmatprep.subr.mxu0 %v4722_v25  ;;  %v4794_v1 = vmax.f32 %v4538_v2, 0.0  ;;  %v4793_v54 = vmax.f32 %v4537_v32, 0.0  ;;  %v4459_v45 = vadd.f32 %v3837_v46, %v12247_v33  ;;  %v4718_v23 = vmax.f32 %v4462_v5, 0.0  ;;  %v15153_v33 = vld [vmem:[#allocation104_spill] sm:$0xff] }
 0x33f   : > { %v4027_v50 = vpop.permute.xlu1 %4026  ;;  %4066 = vperm.xlu1 %7527, %v3732_v42   ;;  %5488 = vmatpush1.msra.mxu0 %v4721_v55  ;;  %v3509_v59 = vmul.f32 %v12170_v21, %v15153_v33  ;;  %v4717_v15 = vmax.f32 %v4461_v4, 0.0  ;;  %v3510_v61 = vmul.f32 %v12170_v21, %v15154_v43  ;;  %v4716_v7 = vmax.f32 %v4460_v41, 0.0  ;;  %v4962_v41 = vld [vmem:[%s8211_s9 + $0x8] sm:$0xff]  ;;  %v2608_v33 = vld [vmem:[%s14435_s1 + $0x278] sm:$0xff] }
 0x340   : > { %v4535_v17 = vadd.f32 %v4027_v50, %v3511_v24  ;;  %v4536_v57 = vadd.f32 %v4027_v50, %v3512_v53  ;;  %v3832_v44 = vpop.permute.xlu0 %3831  ;;  %5489 = vmatprep.subr.mxu0 %v4720_v3  ;;  %5928 = vmatprep.subr.mxu1 %v4794_v1  ;;  %v3431_v9 = vmul.f32 %v11929_v62, %v15155_v18  ;;  %v4715_v5 = vmax.f32 %v4459_v45, 0.0  ;;  %v15157_v24 = vld [vmem:[#allocation97_spill] sm:$0xff]  ;;  %v3792_v53 = vld [vmem:[%s14436_s2 + $0x378] sm:$0xff]  ;;  %v7667_v18 = vpop.eup %7666 }
 0x341   : > { %v4457_v35 = vadd.f32 %v3832_v44, %v3433_v26  ;;  %v4458_v31 = vadd.f32 %v3832_v44, %v3434_v52  ;;  %4206 = vperm.xlu0 %7526, %v3760_v38   ;;  %5490 = vmatpush1.msra.mxu0 %v4719_v0  ;;  %v3432_v63 = vmul.f32 %v11929_v62, %v15156_v49  ;;  %v2380_v25 = vadd.f32 1e-05, %v12216_v16  ;;  %v2638_v16 = vld [vmem:[%s14435_s1 + $0x368] sm:$0xff]  ;;  %v15160_v1 = vld [vmem:[#allocation20_spill] sm:$0xff] }
 0x342   : > { %5929 = vmatpush1.msra.mxu1 %v4793_v54  ;;  %5491 = vmatprep.subr.mxu0 %v4718_v23  ;;  %v4792_v51 = vmax.f32 %v4536_v57, 0.0  ;;  %v4791_v29 = vmax.f32 %v4535_v17, 0.0  ;;  %v2767_v60 = vmul.f32 %v12315_v34, %v2639_v37  ;;  %v3507_v34 = vmul.f32 %v12104_v6, %v15157_v24  ;;  %v15159_v38 = vld [vmem:[#allocation22_spill] sm:$0xff] }
 0x343   : > { %v4022_v30 = vpop.permute.xlu1 %4021  ;;  %3896 = vperm.xlu1 %7527, %v3698_v40   ;;  %5492 = vmatpush1.msra.mxu0 %v4717_v15  ;;  %v4714_v46 = vmax.f32 %v4458_v31, 0.0  ;;  %v4713_v62 = vmax.f32 %v4457_v35, 0.0  ;;  %v3508_v12 = vmul.f32 %v12104_v6, %v15158_v39  ;;  %v3429_v3 = vmul.f32 %v11919_v48, %v15159_v38  ;;  %v3730_v17 = vld [vmem:[%s14436_s2 + $0x188] sm:$0xff]  ;;  %v15164_v31 = vld [vmem:[#allocation13_spill] sm:$0xff] }
 0x344   : > { %v4533_v21 = vadd.f32 %v4022_v30, %v3509_v59  ;;  %v4534_v32 = vadd.f32 %v4022_v30, %v3510_v61  ;;  %v3827_v2 = vpop.permute.xlu0 %3826  ;;  %5493 = vmatprep.subr.mxu0 %v4716_v7  ;;  %5930 = vmatprep.subr.mxu1 %v4792_v51  ;;  %v3430_v54 = vmul.f32 %v11919_v48, %v15160_v1  ;;  %v2349_v22 = vadd.f32 1e-05, %v12209_v20  ;;  %v15161_v44 = vld [vmem:[#allocation98_spill] sm:$0xff]  ;;  %v15163_v59 = vld [vmem:[#allocation17_spill] sm:$0xff] }
 0x345   : > { %v4455_v42 = vadd.f32 %v3827_v2, %v3431_v9  ;;  %v4456_v36 = vadd.f32 %v3827_v2, %v3432_v63  ;;  %3337 = vperm.xlu0 %7526, %v2767_v60   ;;  %5494 = vmatpush1.msra.mxu0 %v4715_v5  ;;  %v2251_v52 = vmul.f32 0.0051020407, %v11805_v27  ;;  %7670 = vrsqrt.f32 %v2380_v25  ;;  %v15162_v27 = vld [vmem:[#allocation96_spill] sm:$0xff]  ;;  %v15165_v30 = vld [vmem:[#allocation93_spill] sm:$0xff]  ;;  %v15166_v5 = vld [vmem:[#allocation91_spill] sm:$0xff] }
 0x346   : > { %5931 = vmatpush1.msra.mxu1 %v4791_v29  ;;  %5495 = vmatprep.subr.mxu0 %v4714_v46  ;;  %v4790_v4 = vmax.f32 %v4534_v32, 0.0  ;;  %v4789_v55 = vmax.f32 %v4533_v21, 0.0  ;;  %v3505_v20 = vmul.f32 %v12155_v28, %v15161_v44  ;;  %v3506_v23 = vmul.f32 %v12155_v28, %v15162_v27  ;;  %v3791_v21 = vld [vmem:[%s14436_s2 + $0x370] sm:$0xff]  ;;  %v2640_v46 = vld [vmem:[%s14435_s1 + $0x378] sm:$0xff]  ;;  %v15173_v27 = vld [vmem:[#allocation197_spill] sm:$0xff] }
 0x347   : > { %v4017_v6 = vpop.permute.xlu1 %4016  ;;  %3027 = vperm.xlu1 %7527, %v12206_v56   ;;  %5496 = vmatpush1.msra.mxu0 %v4713_v62  ;;  %v4712_v58 = vmax.f32 %v4456_v36, 0.0  ;;  %v4711_v26 = vmax.f32 %v4455_v42, 0.0  ;;  %v2766_v56 = vmul.f32 %v12302_v14, %v2638_v16  ;;  %v3427_v35 = vmul.f32 %v11909_v10, %v15163_v59  ;;  %v15167_v25 = vld [vmem:[#allocation19_spill] sm:$0xff]  ;;  %v15168_v42 = vld [vmem:[#allocation14_spill] sm:$0xff]  ;;  %v7669_v16 = vpop.eup %7668 }
 0x348   : > { %v4531_v45 = vadd.f32 %v4017_v6, %v3507_v34  ;;  %v4532_v50 = vadd.f32 %v4017_v6, %v3508_v12  ;;  %v3822_v0 = vpop.permute.xlu0 %3821  ;;  %5932 = vmatprep.subr.mxu1 %v4790_v4  ;;  %5537 = vmatprep.mubr.f32.mxu0 %v4962_v41  ;;  %v3428_v14 = vmul.f32 %v11909_v10, %v15164_v31  ;;  %v2220_v28 = vmul.f32 0.0051020407, %v11616_v47  ;;  %v4964_v34 = vld [vmem:[%s8211_s9 + $0x18] sm:$0xff]  ;;  %v15175_v59 = vld [vmem:[#allocation330_spill] sm:$0xff]  ;;  %v15176_v31 = vld [vmem:[#allocation87_spill] sm:$0xff] }
 0x349   : > { %v4453_v48 = vadd.f32 %v3822_v0, %v3429_v3  ;;  %v4454_v57 = vadd.f32 %v3822_v0, %v3430_v54  ;;  %4366 = vperm.xlu0 %7526, %v3792_v53   ;;  %5497 = vmatprep.subr.mxu0 %v4712_v58  ;;  %7672 = vrsqrt.f32 %v2349_v22  ;;  %v2379_v9 = vadd.f32 1e-05, %v2251_v52  ;;  %v15169_v41 = vld [vmem:[#allocation296_spill] sm:$0xff]  ;;  %v15170_v54 = vld [vmem:[#allocation95_spill] sm:$0xff] }
 0x34a   : > { %5498 = vmatpush1.msra.mxu0 %v4711_v26  ;;  %5933 = vmatpush1.msra.mxu1 %v4789_v55  ;;  %v4788_v40 = vmax.f32 %v4532_v50, 0.0  ;;  %v4787_v37 = vmax.f32 %v4531_v45, 0.0  ;;  %v2736_v10 = vmul.f32 %v12295_v8, %v2608_v33  ;;  %v3503_v60 = vmul.f32 %v12090_v19, %v15165_v30  ;;  %v2637_v55 = vld [vmem:[%s14435_s1 + $0x360] sm:$0xff]  ;;  %v15171_v6 = vld [vmem:[#allocation336_spill] sm:$0xff]  ;;  %v2606_v50 = vld [vmem:[%s14435_s1 + $0x268] sm:$0xff] }
 0x34b   : > { %v4012_v15 = vpop.permute.xlu1 %4011  ;;  %4056 = vperm.xlu1 %7527, %v3730_v17   ;;  %v4710_v43 = vmax.f32 %v4454_v57, 0.0  ;;  %v4709_v61 = vmax.f32 %v4453_v48, 0.0  ;;  %v3504_v47 = vmul.f32 %v12090_v19, %v15166_v5  ;;  %v3425_v8 = vmul.f32 %v11921_v11, %v15167_v25  ;;  %5986 = vmatprep.mubr.f32.mxu1 %v4964_v34  ;;  %v15172_v26 = vld [vmem:[#allocation92_spill] sm:$0xff]  ;;  %v15174_v33 = vld [vmem:[#allocation89_spill] sm:$0xff]  ;;  %v15178_v30 = vld [vmem:[#allocation335_spill] sm:$0xff] }
 0x34c   : > { %v4529_v7 = vadd.f32 %v4012_v15, %v3505_v20  ;;  %v4530_v51 = vadd.f32 %v4012_v15, %v3506_v23  ;;  %v3817_v29 = vpop.permute.xlu0 %3816  ;;  %5934 = vmatprep.subr.mxu1 %v4788_v40  ;;  %v3426_v36 = vmul.f32 %v11921_v11, %v15168_v42  ;;  %v2348_v39 = vadd.f32 1e-05, %v2220_v28  ;;  %v15179_v5 = vld [vmem:[#allocation88_spill] sm:$0xff] }
 0x34d   : > { %v4451_v49 = vadd.f32 %v3817_v29, %v3427_v35  ;;  %v4452_v63 = vadd.f32 %v3817_v29, %v3428_v14  ;;  %3332 = vperm.xlu0 %7526, %v2766_v56   ;;  %5499 = vmatprep.subr.mxu0 %v4710_v43  ;;  %v2250_v38 = vmul.f32 0.0051020407, %v15169_v41  ;;  %v2768_v1 = vmul.f32 %v7667_v18, %v2640_v46  ;;  %v3790_v14 = vld [vmem:[%s14436_s2 + $0x368] sm:$0xff]  ;;  %v3759_v18 = vld [vmem:[%s14436_s2 + $0x270] sm:$0xff]  ;;  %v15180_v46 = vld [vmem:[#allocation297_spill] sm:$0xff] }
 0x34e   : > { %5500 = vmatpush1.msra.mxu0 %v4709_v61  ;;  %5935 = vmatpush1.msra.mxu1 %v4787_v37  ;;  %v4786_v32 = vmax.f32 %v4530_v51, 0.0  ;;  %v4785_v2 = vmax.f32 %v4529_v7, 0.0  ;;  %v3501_v58 = vmul.f32 %v15171_v6, %v15170_v54  ;;  %v3502_v22 = vmul.f32 %v15171_v6, %v15172_v26 }
 0x34f   : > { %v4007_v62 = vpop.permute.xlu1 %4006  ;;  %3182 = vperm.xlu1 %7527, %v2736_v10   ;;  %v4708_v19 = vmax.f32 %v4452_v63, 0.0  ;;  %v4707_v24 = vmax.f32 %v4451_v49, 0.0  ;;  %7674 = vrsqrt.f32 %v2379_v9  ;;  %v2765_v17 = vmul.f32 %v12308_v13, %v2637_v55  ;;  %v2636_v9 = vld [vmem:[%s14435_s1 + $0x358] sm:$0xff]  ;;  %v15177_v10 = vld [vmem:[#allocation90_spill] sm:$0xff] }
 0x350   : > { %v4527_v12 = vadd.f32 %v4007_v62, %v3503_v60  ;;  %v4528_v53 = vadd.f32 %v4007_v62, %v3504_v47  ;;  %v3812_v4 = vpop.permute.xlu0 %3811  ;;  %5936 = vmatprep.subr.mxu1 %v4786_v32  ;;  %7676 = vrsqrt.f32 %v2348_v39  ;;  %v2219_v23 = vmul.f32 0.0051020407, %v15173_v27  ;;  %v15184_v55 = vld [vmem:[#allocation82_spill] sm:$0xff] }
 0x351   : > { %v4449_v3 = vadd.f32 %v3812_v4, %v3425_v8  ;;  %v4450_v11 = vadd.f32 %v3812_v4, %v3426_v36  ;;  %4361 = vperm.xlu0 %7526, %v3791_v21   ;;  %5501 = vmatprep.subr.mxu0 %v4708_v19  ;;  %v2734_v40 = vmul.f32 %v7669_v16, %v2606_v50  ;;  %v2378_v61 = vadd.f32 1e-05, %v2250_v38  ;;  %v3789_v38 = vld [vmem:[%s14436_s2 + $0x360] sm:$0xff] }
 0x352   : > { %5502 = vmatpush1.msra.mxu0 %v4707_v24  ;;  %5937 = vmatpush1.msra.mxu1 %v4785_v2  ;;  %v4784_v52 = vmax.f32 %v4528_v53, 0.0  ;;  %v4783_v45 = vmax.f32 %v4527_v12, 0.0  ;;  %v7671_v37 = vpop.eup %7670  ;;  %v3499_v35 = vmul.f32 %v15175_v59, %v15174_v33  ;;  %v3500_v13 = vmul.f32 %v15175_v59, %v15176_v31  ;;  %v2605_v2 = vld [vmem:[%s14435_s1 + $0x260] sm:$0xff]  ;;  %v15181_v24 = vld [vmem:[#allocation192_spill] sm:$0xff] }
 0x353   : > { %v4002_v0 = vpop.permute.xlu1 %4001  ;;  %3342 = vperm.xlu1 %7527, %v2768_v1   ;;  %v4706_v48 = vmax.f32 %v4450_v11, 0.0  ;;  %v4705_v57 = vmax.f32 %v4449_v3, 0.0  ;;  %v2347_v63 = vadd.f32 1e-05, %v2219_v23  ;;  %v3497_v60 = vmul.f32 %v15178_v30, %v15177_v10  ;;  %v15182_v12 = vld [vmem:[#allocation85_spill] sm:$0xff]  ;;  %v15183_v53 = vld [vmem:[#allocation328_spill] sm:$0xff] }
 0x354   : > { %v4525_v56 = vadd.f32 %v4002_v0, %v3501_v58  ;;  %v4526_v44 = vadd.f32 %v4002_v0, %v3502_v22  ;;  %v12437_v20 = vpop.permute.xlu0 %3102  ;;  %5938 = vmatprep.subr.mxu1 %v4784_v52  ;;  %v3498_v47 = vmul.f32 %v15178_v30, %v15179_v5  ;;  %7678 = vrsqrt.f32 %v2378_v61  ;;  %v3758_v22 = vld [vmem:[%s14436_s2 + $0x268] sm:$0xff]  ;;  %v2635_v52 = vld [vmem:[%s14435_s1 + $0x350] sm:$0xff]  ;;  %v2604_v23 = vld [vmem:[%s14435_s1 + $0x258] sm:$0xff] }
 0x355   : > { %3327 = vperm.xlu0 %7526, %v2765_v17   ;;  %5503 = vmatprep.subr.mxu0 %v4706_v48  ;;  %v2249_v25 = vmul.f32 0.0051020407, %v15180_v46  ;;  %v2764_v42 = vmul.f32 %v7671_v37, %v2636_v9  ;;  %v2218_v34 = vmul.f32 0.0051020407, %v15181_v24  ;;  %7680 = vrsqrt.f32 %v2347_v63  ;;  %v15185_v0 = vld [vmem:[#allocation86_spill] sm:$0xff]  ;;  %v15193_v9 = vld [vmem:[#allocation80_spill] sm:$0xff] }
 0x356   : > { %5504 = vmatpush1.msra.mxu0 %v4705_v57  ;;  %5939 = vmatpush1.msra.mxu1 %v4783_v45  ;;  %v4782_v15 = vmax.f32 %v4526_v44, 0.0  ;;  %v4781_v43 = vmax.f32 %v4525_v56, 0.0  ;;  %v7673_v49 = vpop.eup %7672  ;;  %v3495_v4 = vmul.f32 %v15183_v53, %v15182_v12  ;;  %v3496_v16 = vmul.f32 %v15183_v53, %v15184_v55  ;;  %v15186_v17 = vld [vmem:[#allocation334_spill] sm:$0xff]  ;;  %v15187_v57 = vld [vmem:[#allocation84_spill] sm:$0xff]  ;;  %v15197_v12 = vld [vmem:[#allocation77_spill] sm:$0xff] }
 0x357   : > { %v3997_v28 = vpop.permute.xlu1 %3996  ;;  %3172 = vperm.xlu1 %7527, %v2734_v40   ;;  %v2733_v39 = vmul.f32 %v7673_v49, %v2605_v2  ;;  %v2377_v11 = vadd.f32 1e-05, %v2249_v25  ;;  %v2346_v45 = vadd.f32 1e-05, %v2218_v34  ;;  %v3493_v48 = vmul.f32 %v15186_v17, %v15185_v0  ;;  %v15188_v40 = vld [vmem:[#allocation294_spill] sm:$0xff]  ;;  %v15194_v49 = vld [vmem:[#allocation333_spill] sm:$0xff] }
 0x358   : > { %v4523_v7 = vadd.f32 %v3997_v28, %v3499_v35  ;;  %v4524_v51 = vadd.f32 %v3997_v28, %v3500_v13  ;;  %v12447_v29 = vpop.permute.xlu0 %3971  ;;  %5940 = vmatprep.subr.mxu1 %v4782_v15  ;;  %v3494_v56 = vmul.f32 %v15186_v17, %v15187_v57  ;;  %v2248_v37 = vmul.f32 0.0051020407, %v15188_v40  ;;  %v15191_v61 = vld [vmem:[#allocation326_spill] sm:$0xff]  ;;  %v3788_v30 = vld [vmem:[%s14436_s2 + $0x358] sm:$0xff] }
 0x359   : > { %4356 = vperm.xlu0 %7526, %v3790_v14   ;;  %5941 = vmatpush1.msra.mxu1 %v4781_v43  ;;  %7682 = vrsqrt.f32 %v2377_v11  ;;  %v15189_v14 = vld [vmem:[#allocation211_spill] sm:$0xff]  ;;  %v15190_v43 = vld [vmem:[#allocation81_spill] sm:$0xff]  ;;  %v3490_v63 = vmul.f32 %v15194_v49, %v15193_v9  ;;  %v15196_v24 = vld [vmem:[#allocation278_spill] sm:$0xff] }
 0x35a   : > { %v4780_v21 = vmax.f32 %v4524_v51, 0.0  ;;  %v4779_v32 = vmax.f32 %v4523_v7, 0.0  ;;  %7684 = vrsqrt.f32 %v2346_v45  ;;  %v2217_v15 = vmul.f32 0.0051020407, %v15189_v14  ;;  %v15192_v51 = vld [vmem:[#allocation79_spill] sm:$0xff]  ;;  %v15198_v53 = vld [vmem:[#allocation324_spill] sm:$0xff] }
 0x35b   : > { %v3992_v8 = vpop.permute.xlu1 %3991  ;;  %4201 = vperm.xlu1 %7527, %v3759_v18   ;;  %v3491_v28 = vmul.f32 %v15191_v61, %v15190_v43  ;;  %v3492_v18 = vmul.f32 %v15191_v61, %v15192_v51  ;;  %v2376_v5 = vadd.f32 1e-05, %v2248_v37  ;;  %v4514_v46 = vadd.f32 %v12447_v29, %v3490_v63  ;;  %v15201_v11 = vld [vmem:[#allocation332_spill] sm:$0xff]  ;;  %v15203_v45 = vld [vmem:[#allocation78_spill] sm:$0xff]  ;;  %v3787_v37 = vld [vmem:[%s14436_s2 + $0x350] sm:$0xff] }
 0x35c   : > { %v4521_v36 = vadd.f32 %v3992_v8, %v3497_v60  ;;  %v4522_v62 = vadd.f32 %v3992_v8, %v3498_v47  ;;  %v12463_v19 = vpop.permute.xlu0 %3961  ;;  %5942 = vmatprep.subr.mxu1 %v4780_v21  ;;  %v7675_v54 = vpop.eup %7674  ;;  %v15195_v47 = vld [vmem:[#allocation83_spill] sm:$0xff]  ;;  %v2216_v34 = vmul.f32 0.0051020407, %v15196_v24 }
 0x35d   : > { %3322 = vperm.xlu0 %7526, %v2764_v42   ;;  %5943 = vmatpush1.msra.mxu1 %v4779_v32  ;;  %v7677_v50 = vpop.eup %7676  ;;  %v2763_v59 = vmul.f32 %v7675_v54, %v2635_v52  ;;  %v3489_v21 = vmul.f32 %v15194_v49, %v15195_v47  ;;  %7686 = vrsqrt.f32 %v2376_v5  ;;  %v2602_v47 = vld [vmem:[%s14435_s1 + $0x248] sm:$0xff] }
 0x35e   : > { %v4778_v41 = vmax.f32 %v4522_v62, 0.0  ;;  %v4777_v3 = vmax.f32 %v4521_v36, 0.0  ;;  %v2732_v7 = vmul.f32 %v7677_v50, %v2604_v23  ;;  %v3757_v36 = vld [vmem:[%s14436_s2 + $0x260] sm:$0xff]  ;;  %v2634_v62 = vld [vmem:[%s14435_s1 + $0x348] sm:$0xff]  ;;  %v2344_v51 = vadd.f32 1e-05, %v2216_v34 }
 0x35f   : > { %v3987_v1 = vpop.permute.xlu1 %3986  ;;  %3167 = vperm.xlu1 %7527, %v2733_v39   ;;  %v2345_v39 = vadd.f32 1e-05, %v2217_v15  ;;  %v4513_v55 = vadd.f32 %v12447_v29, %v3489_v21  ;;  %v3485_v29 = vmul.f32 %v15201_v11, %v15203_v45  ;;  %v15204_v15 = vld [vmem:[#allocation140_spill] sm:$0xff]  ;;  %v15210_v34 = vld [vmem:[#allocation73_spill] sm:$0xff] }
 0x360   : > { %v4519_v6 = vadd.f32 %v3987_v1, %v3495_v4  ;;  %v4520_v58 = vadd.f32 %v3987_v1, %v3496_v16  ;;  %v12473_v26 = vpop.permute.xlu0 %3092  ;;  %5944 = vmatprep.subr.mxu1 %v4778_v41  ;;  %v3487_v4 = vmul.f32 %v15198_v53, %v15197_v12  ;;  %v15199_v41 = vld [vmem:[#allocation75_spill] sm:$0xff]  ;;  %v15208_v21 = vld [vmem:[#allocation292_spill] sm:$0xff] }
 0x361   : > { %4351 = vperm.xlu0 %7526, %v3789_v38   ;;  %5945 = vmatpush1.msra.mxu1 %v4777_v3  ;;  %v7679_v2 = vpop.eup %7678  ;;  %v3488_v38 = vmul.f32 %v15198_v53, %v15199_v41  ;;  %v15200_v3 = vld [vmem:[#allocation76_spill] sm:$0xff]  ;;  %7688 = vrsqrt.f32 %v2345_v39  ;;  %v4769_v40 = vmax.f32 %v4513_v55, 0.0  ;;  %v15211_v39 = vld [vmem:[#allocation322_spill] sm:$0xff] }
 0x362   : > { %v4776_v44 = vmax.f32 %v4520_v58, 0.0  ;;  %v4775_v27 = vmax.f32 %v4519_v6, 0.0  ;;  %v7681_v16 = vpop.eup %7680  ;;  %v3486_v1 = vmul.f32 %v15201_v11, %v15200_v3  ;;  %v2603_v58 = vld [vmem:[%s14435_s1 + $0x250] sm:$0xff]  ;;  %v2762_v0 = vmul.f32 %v7679_v2, %v2634_v62  ;;  %v15212_v55 = vld [vmem:[#allocation70_spill] sm:$0xff]  ;;  %v15213_v41 = vld [vmem:[#allocation72_spill] sm:$0xff] }
 0x363   : > { %v3982_v33 = vpop.permute.xlu1 %3981  ;;  %4196 = vperm.xlu1 %7527, %v3758_v22   ;;  %v15202_v22 = vld [vmem:[#allocation295_spill] sm:$0xff]  ;;  %v2731_v23 = vmul.f32 %v7681_v16, %v2603_v58  ;;  %v3483_v12 = vmul.f32 %v15211_v39, %v15210_v34  ;;  %v3484_v16 = vmul.f32 %v15211_v39, %v15212_v55  ;;  %v3786_v11 = vld [vmem:[%s14436_s2 + $0x348] sm:$0xff]  ;;  %v15222_v34 = vld [vmem:[#allocation277_spill] sm:$0xff] }
 0x364   : > { %v4517_v35 = vadd.f32 %v3982_v33, %v3493_v48  ;;  %v4518_v31 = vadd.f32 %v3982_v33, %v3494_v56  ;;  %v12489_v13 = vpop.permute.xlu0 %4121  ;;  %5946 = vmatprep.subr.mxu1 %v4776_v44  ;;  %v2247_v52 = vmul.f32 0.0051020407, %v15202_v22  ;;  %v4510_v17 = vadd.f32 %v12463_v19, %v3486_v1  ;;  %v15215_v58 = vld [vmem:[#allocation74_spill] sm:$0xff] }
 0x365   : > { %3317 = vperm.xlu0 %7526, %v2763_v59   ;;  %5947 = vmatpush1.msra.mxu1 %v4775_v27  ;;  %v4770_v44 = vmax.f32 %v4514_v46, 0.0  ;;  %v4509_v27 = vadd.f32 %v12463_v19, %v3485_v29  ;;  %v2213_v39 = vmul.f32 0.0051020407, %v15222_v34  ;;  %v15236_v34 = vld [vmem:[#allocation65_spill] sm:$0xff] }
 0x366   : > { %v4774_v10 = vmax.f32 %v4518_v31, 0.0  ;;  %v4773_v60 = vmax.f32 %v4517_v35, 0.0  ;;  %v2375_v35 = vadd.f32 1e-05, %v2247_v52  ;;  %v7683_v14 = vpop.eup %7682  ;;  %v4766_v19 = vmax.f32 %v4510_v17, 0.0 }
 0x367   : > { %v3977_v32 = vpop.permute.xlu1 %3976  ;;  %3162 = vperm.xlu1 %7527, %v2732_v7   ;;  %v2633_v7 = vld [vmem:[%s14435_s1 + $0x340] sm:$0xff]  ;;  %v4765_v49 = vmax.f32 %v4509_v27, 0.0  ;;  %v7685_v63 = vpop.eup %7684 }
 0x368   : > { %v4515_v25 = vadd.f32 %v3977_v32, %v3491_v28  ;;  %v4516_v8 = vadd.f32 %v3977_v32, %v3492_v18  ;;  %v12504_v42 = vpop.permute.xlu0 %3951  ;;  %5948 = vmatprep.subr.mxu1 %v4774_v10  ;;  %v3756_v28 = vld [vmem:[%s14436_s2 + $0x258] sm:$0xff]  ;;  %v15205_v18 = vld [vmem:[#allocation143_spill] sm:$0xff]  ;;  %v15206_v10 = vld [vmem:[#allocation141_spill] sm:$0xff]  ;;  %v2246_v32 = vmul.f32 0.0051020407, %v15208_v21  ;;  %7690 = vrsqrt.f32 %v2375_v35 }
 0x369   : > { %4346 = vperm.xlu0 %7526, %v3788_v30   ;;  %5949 = vmatpush1.msra.mxu1 %v4773_v60  ;;  %v3551_v30 = vmul.f32 %v12437_v20, %v15206_v10  ;;  %v15207_v60 = vld [vmem:[#allocation139_spill] sm:$0xff]  ;;  %v2761_v46 = vmul.f32 %v7683_v14, %v2633_v7  ;;  %7692 = vrsqrt.f32 %v2344_v51  ;;  %v2730_v53 = vmul.f32 %v7685_v63, %v2602_v47  ;;  %v15216_v35 = vld [vmem:[#allocation293_spill] sm:$0xff] }
 0x36a   : > { %v4772_v54 = vmax.f32 %v4516_v8, 0.0  ;;  %v4771_v6 = vmax.f32 %v4515_v25, 0.0  ;;  %v3552_v5 = vmul.f32 %v12437_v20, %v15207_v60  ;;  %v15209_v25 = vld [vmem:[#allocation279_spill] sm:$0xff]  ;;  %v7687_v45 = vpop.eup %7686  ;;  %v15220_v10 = vld [vmem:[#allocation137_spill] sm:$0xff] }
 0x36b   : > { %v3967_v50 = vpop.permute.xlu1 %3966  ;;  %4191 = vperm.xlu1 %7527, %v3757_v36   ;;  %v2215_v8 = vmul.f32 0.0051020407, %v15209_v25  ;;  %v15221_v60 = vld [vmem:[#allocation135_spill] sm:$0xff]  ;;  %v3785_v47 = vld [vmem:[%s14436_s2 + $0x340] sm:$0xff] }
 0x36c   : > { %v4511_v48 = vadd.f32 %v3967_v50, %v3487_v4  ;;  %v4512_v57 = vadd.f32 %v3967_v50, %v3488_v38  ;;  %v12527_v56 = vpop.permute.xlu0 %3082  ;;  %5950 = vmatprep.subr.mxu1 %v4772_v54  ;;  %v15214_v38 = vld [vmem:[#allocation331_spill] sm:$0xff] }
 0x36d   : > { %3312 = vperm.xlu0 %7526, %v2762_v0   ;;  %5951 = vmatpush1.msra.mxu1 %v4771_v6  ;;  %v3482_v3 = vmul.f32 %v15214_v38, %v15213_v41  ;;  %v2374_v6 = vadd.f32 1e-05, %v2246_v32  ;;  %v3481_v22 = vmul.f32 %v15214_v38, %v15215_v58  ;;  %v15225_v41 = vld [vmem:[#allocation67_spill] sm:$0xff]  ;;  %v2600_v58 = vld [vmem:[%s14435_s1 + $0x238] sm:$0xff] }
 0x36e   : > { %5952 = vmatprep.subr.mxu1 %v4770_v44  ;;  %v4768_v33 = vmax.f32 %v4512_v57, 0.0  ;;  %v4767_v59 = vmax.f32 %v4511_v48, 0.0  ;;  %v3755_v48 = vld [vmem:[%s14436_s2 + $0x250] sm:$0xff]  ;;  %v2632_v57 = vld [vmem:[%s14435_s1 + $0x338] sm:$0xff]  ;;  %v2343_v44 = vadd.f32 1e-05, %v2215_v8 }
 0x36f   : > { %v3098_v31 = vpop.permute.xlu1 %3097  ;;  %3157 = vperm.xlu1 %7527, %v2731_v23   ;;  %5953 = vmatpush1.msra.mxu1 %v4769_v40  ;;  %v4505_v27 = vadd.f32 %v12504_v42, %v3481_v22  ;;  %v7689_v40 = vpop.eup %7688  ;;  %7694 = vrsqrt.f32 %v2374_v6  ;;  %v15228_v22 = vld [vmem:[#allocation290_spill] sm:$0xff] }
 0x370   : > { %v3550_v43 = vmul.f32 %v3098_v31, %v15204_v15  ;;  %v12534_v61 = vpop.permute.xlu0 %4111  ;;  %5505 = vmatprep.subr.mxu0 %v4768_v33  ;;  %v3549_v9 = vmul.f32 %v3098_v31, %v15205_v18  ;;  %v2245_v31 = vmul.f32 0.0051020407, %v15216_v35  ;;  %v2760_v15 = vmul.f32 %v7687_v45, %v2632_v57  ;;  %v15219_v18 = vld [vmem:[#allocation138_spill] sm:$0xff]  ;;  %v15229_v45 = vld [vmem:[#allocation71_spill] sm:$0xff] }
 0x371   : > { %4341 = vperm.xlu0 %7526, %v3787_v37   ;;  %5506 = vmatpush2.msra.mxu0 %v4767_v59  ;;  %v2601_v59 = vld [vmem:[%s14435_s1 + $0x240] sm:$0xff]  ;;  %7696 = vrsqrt.f32 %v2343_v44  ;;  %v4761_v63 = vmax.f32 %v4505_v27, 0.0 }
 0x372   : > { %5507 = vmatprep.subr.mxu0 %v4766_v19  ;;  %v4574_v20 = vadd.f32 %v12489_v13, %v3550_v43  ;;  %v4573_v4 = vadd.f32 %v12489_v13, %v3549_v9  ;;  %v4506_v13 = vadd.f32 %v12504_v42, %v3482_v3  ;;  %v15217_v43 = vld [vmem:[#allocation276_spill] sm:$0xff]  ;;  %v2373_v21 = vadd.f32 1e-05, %v2245_v31 }
 0x373   : > { %v4127_v2 = vpop.permute.xlu1 %4126  ;;  %4186 = vperm.xlu1 %7527, %v3756_v28   ;;  %5508 = vmatpush2.msra.mxu0 %v4765_v49  ;;  %v2214_v42 = vmul.f32 0.0051020407, %v15217_v43  ;;  %v15218_v19 = vld [vmem:[#allocation136_spill] sm:$0xff]  ;;  %v2729_v49 = vmul.f32 %v7689_v40, %v2601_v59 }
 0x374   : > { %v4575_v36 = vadd.f32 %v4127_v2, %v3551_v30  ;;  %v4576_v62 = vadd.f32 %v4127_v2, %v3552_v5  ;;  %v12552_v24 = vpop.permute.xlu0 %3941  ;;  %v4830_v17 = vmax.f32 %v4574_v20, 0.0  ;;  %v4829_v23 = vmax.f32 %v4573_v4, 0.0  ;;  %v15226_v3 = vld [vmem:[#allocation68_spill] sm:$0xff] }
 0x375   : > { %3307 = vperm.xlu0 %7526, %v2761_v46   ;;  %v4762_v51 = vmax.f32 %v4506_v13, 0.0  ;;  %v3547_v30 = vmul.f32 %v12473_v26, %v15220_v10  ;;  %v3548_v5 = vmul.f32 %v12473_v26, %v15221_v60  ;;  %v7691_v2 = vpop.eup %7690  ;;  %v2631_v26 = vld [vmem:[%s14435_s1 + $0x330] sm:$0xff]  ;;  %v2342_v20 = vadd.f32 1e-05, %v2214_v42  ;;  %v15232_v10 = vld [vmem:[#allocation133_spill] sm:$0xff]  ;;  %v15233_v60 = vld [vmem:[#allocation130_spill] sm:$0xff] }
 0x376   : > { %v4832_v1 = vmax.f32 %v4576_v62, 0.0  ;;  %v4831_v54 = vmax.f32 %v4575_v36, 0.0  ;;  %v3754_v36 = vld [vmem:[%s14436_s2 + $0x248] sm:$0xff]  ;;  %7698 = vrsqrt.f32 %v2373_v21  ;;  %v15234_v21 = vld [vmem:[#allocation291_spill] sm:$0xff] }
 0x377   : > { %v3957_v52 = vpop.permute.xlu1 %3956  ;;  %3152 = vperm.xlu1 %7527, %v2730_v53   ;;  %v15224_v53 = vld [vmem:[#allocation320_spill] sm:$0xff]  ;;  %7700 = vrsqrt.f32 %v2342_v20 }
 0x378   : > { %v4507_v29 = vadd.f32 %v3957_v52, %v3483_v12  ;;  %v4508_v50 = vadd.f32 %v3957_v52, %v3484_v16  ;;  %v12568_v0 = vpop.permute.xlu0 %3072  ;;  %5954 = vmatprep.subr.mxu1 %v4832_v1  ;;  %v15223_v12 = vld [vmem:[#allocation69_spill] sm:$0xff]  ;;  %v7693_v16 = vpop.eup %7692  ;;  %v3480_v38 = vmul.f32 %v15224_v53, %v15225_v41  ;;  %v2244_v52 = vmul.f32 0.0051020407, %v15228_v22  ;;  %v15239_v41 = vld [vmem:[#allocation64_spill] sm:$0xff] }
 0x379   : > { %4336 = vperm.xlu0 %7526, %v3786_v11   ;;  %5955 = vmatpush2.msra.mxu1 %v4831_v54  ;;  %v3479_v4 = vmul.f32 %v15224_v53, %v15223_v12  ;;  %v15227_v11 = vld [vmem:[#allocation329_spill] sm:$0xff] }
 0x37a   : > { %5956 = vmatprep.subr.mxu1 %v4830_v17  ;;  %v4764_v37 = vmax.f32 %v4508_v50, 0.0  ;;  %v4763_v33 = vmax.f32 %v4507_v29, 0.0  ;;  %v3478_v1 = vmul.f32 %v15227_v11, %v15226_v3  ;;  %v3477_v13 = vmul.f32 %v15227_v11, %v15229_v45  ;;  %v3783_v11 = vld [vmem:[%s14436_s2 + $0x330] sm:$0xff] }
 0x37b   : > { %v3088_v14 = vpop.permute.xlu1 %3087  ;;  %4181 = vperm.xlu1 %7527, %v3755_v48   ;;  %5957 = vmatpush2.msra.mxu1 %v4829_v23  ;;  %v2759_v29 = vmul.f32 %v7691_v2, %v2631_v26  ;;  %v2728_v23 = vmul.f32 %v7693_v16, %v2600_v58  ;;  %v2372_v35 = vadd.f32 1e-05, %v2244_v52  ;;  %v15241_v58 = vld [vmem:[#allocation66_spill] sm:$0xff] }
 0x37c   : > { %v3546_v28 = vmul.f32 %v3088_v14, %v15218_v19  ;;  %v12583_v7 = vpop.permute.xlu0 %4101  ;;  %5509 = vmatprep.subr.mxu0 %v4764_v37  ;;  %v3545_v9 = vmul.f32 %v3088_v14, %v15219_v18  ;;  %v4502_v50 = vadd.f32 %v12552_v24, %v3478_v1  ;;  %v4501_v27 = vadd.f32 %v12552_v24, %v3477_v13  ;;  %v3784_v37 = vld [vmem:[%s14436_s2 + $0x338] sm:$0xff]  ;;  %v7695_v14 = vpop.eup %7694  ;;  %v3753_v19 = vld [vmem:[%s14436_s2 + $0x240] sm:$0xff]  ;;  %v15231_v18 = vld [vmem:[#allocation134_spill] sm:$0xff] }
 0x37d   : > { %3302 = vperm.xlu0 %7526, %v2760_v15   ;;  %5510 = vmatpush2.msra.mxu0 %v4763_v33  ;;  %v15230_v15 = vld [vmem:[#allocation132_spill] sm:$0xff]  ;;  %7702 = vrsqrt.f32 %v2372_v35 }
 0x37e   : > { %5511 = vmatprep.subr.mxu0 %v4762_v51  ;;  %v4570_v62 = vadd.f32 %v12534_v61, %v3546_v28  ;;  %v4569_v55 = vadd.f32 %v12534_v61, %v3545_v9  ;;  %v4758_v24 = vmax.f32 %v4502_v50, 0.0  ;;  %v2630_v28 = vld [vmem:[%s14435_s1 + $0x328] sm:$0xff]  ;;  %v2341_v51 = vadd.f32 1e-05, %v2213_v39  ;;  %v15242_v35 = vld [vmem:[#allocation288_spill] sm:$0xff] }
 0x37f   : > { %v4117_v32 = vpop.permute.xlu1 %4116  ;;  %3147 = vperm.xlu1 %7527, %v2729_v49   ;;  %5512 = vmatpush2.msra.mxu0 %v4761_v63  ;;  %v4757_v49 = vmax.f32 %v4501_v27, 0.0  ;;  %v7697_v63 = vpop.eup %7696  ;;  %v15237_v39 = vld [vmem:[#allocation318_spill] sm:$0xff] }
 0x380   : > { %v4571_v46 = vadd.f32 %v4117_v32, %v3547_v30  ;;  %v4572_v25 = vadd.f32 %v4117_v32, %v3548_v5  ;;  %v12593_v8 = vpop.permute.xlu0 %3931  ;;  %v4826_v44 = vmax.f32 %v4570_v62, 0.0  ;;  %v4825_v40 = vmax.f32 %v4569_v55, 0.0  ;;  %v15238_v55 = vld [vmem:[#allocation63_spill] sm:$0xff] }
 0x381   : > { %4331 = vperm.xlu0 %7526, %v3785_v47   ;;  %v3543_v30 = vmul.f32 %v12527_v56, %v15232_v10  ;;  %v3544_v5 = vmul.f32 %v12527_v56, %v15233_v60  ;;  %v2599_v47 = vld [vmem:[%s14435_s1 + $0x230] sm:$0xff]  ;;  %v2243_v32 = vmul.f32 0.0051020407, %v15234_v21  ;;  %7704 = vrsqrt.f32 %v2341_v51  ;;  %v15247_v60 = vld [vmem:[#allocation129_spill] sm:$0xff] }
 0x382   : > { %v4828_v54 = vmax.f32 %v4572_v25, 0.0  ;;  %v4827_v6 = vmax.f32 %v4571_v46, 0.0  ;;  %v2758_v46 = vmul.f32 %v7695_v14, %v2630_v28  ;;  %v15235_v25 = vld [vmem:[#allocation274_spill] sm:$0xff]  ;;  %v3475_v12 = vmul.f32 %v15237_v39, %v15236_v34  ;;  %v15245_v28 = vld [vmem:[#allocation128_spill] sm:$0xff] }
 0x383   : > { %v3947_v61 = vpop.permute.xlu1 %3946  ;;  %4176 = vperm.xlu1 %7527, %v3754_v36   ;;  %v2212_v36 = vmul.f32 0.0051020407, %v15235_v25  ;;  %v2727_v53 = vmul.f32 %v7697_v63, %v2599_v47  ;;  %v3476_v16 = vmul.f32 %v15237_v39, %v15238_v55  ;;  %v7699_v45 = vpop.eup %7698  ;;  %v15248_v47 = vld [vmem:[#allocation127_spill] sm:$0xff] }
 0x384   : > { %v4503_v17 = vadd.f32 %v3947_v61, %v3479_v4  ;;  %v4504_v48 = vadd.f32 %v3947_v61, %v3480_v38  ;;  %v12617_v57 = vpop.permute.xlu0 %3062  ;;  %5958 = vmatprep.subr.mxu1 %v4828_v54  ;;  %v15240_v38 = vld [vmem:[#allocation327_spill] sm:$0xff]  ;;  %v3540_v21 = vmul.f32 %v12568_v0, %v15248_v47  ;;  %v2596_v47 = vld [vmem:[%s14435_s1 + $0x218] sm:$0xff] }
 0x385   : > { %3297 = vperm.xlu0 %7526, %v2759_v29   ;;  %5959 = vmatpush2.msra.mxu1 %v4827_v6  ;;  %v3474_v3 = vmul.f32 %v15240_v38, %v15239_v41  ;;  %v2371_v6 = vadd.f32 1e-05, %v2243_v32  ;;  %v3473_v22 = vmul.f32 %v15240_v38, %v15241_v58  ;;  %v3782_v32 = vld [vmem:[%s14436_s2 + $0x328] sm:$0xff] }
 0x386   : > { %5960 = vmatprep.subr.mxu1 %v4826_v44  ;;  %v4760_v33 = vmax.f32 %v4504_v48, 0.0  ;;  %v4759_v59 = vmax.f32 %v4503_v17, 0.0  ;;  %v3752_v17 = vld [vmem:[%s14436_s2 + $0x238] sm:$0xff]  ;;  %v2629_v48 = vld [vmem:[%s14435_s1 + $0x320] sm:$0xff]  ;;  %v2340_v44 = vadd.f32 1e-05, %v2212_v36 }
 0x387   : > { %v3078_v31 = vpop.permute.xlu1 %3077  ;;  %3142 = vperm.xlu1 %7527, %v2728_v23   ;;  %5961 = vmatpush2.msra.mxu1 %v4825_v40  ;;  %v4497_v27 = vadd.f32 %v12593_v8, %v3473_v22  ;;  %v7701_v40 = vpop.eup %7700  ;;  %7706 = vrsqrt.f32 %v2371_v6  ;;  %v15251_v38 = vld [vmem:[#allocation58_spill] sm:$0xff]  ;;  %v2597_v22 = vld [vmem:[%s14435_s1 + $0x220] sm:$0xff] }
 0x388   : > { %v3542_v43 = vmul.f32 %v3078_v31, %v15230_v15  ;;  %v12624_v42 = vpop.permute.xlu0 %4091  ;;  %5513 = vmatprep.subr.mxu0 %v4760_v33  ;;  %v3541_v9 = vmul.f32 %v3078_v31, %v15231_v18  ;;  %v2242_v31 = vmul.f32 0.0051020407, %v15242_v35  ;;  %v2757_v15 = vmul.f32 %v7699_v45, %v2629_v48 }
 0x389   : > { %4326 = vperm.xlu0 %7526, %v3784_v37   ;;  %5514 = vmatpush2.msra.mxu0 %v4759_v59  ;;  %v2598_v59 = vld [vmem:[%s14435_s1 + $0x228] sm:$0xff]  ;;  %7708 = vrsqrt.f32 %v2340_v44 }
 0x38a   : > { %5515 = vmatprep.subr.mxu0 %v4758_v24  ;;  %v4566_v56 = vadd.f32 %v12583_v7, %v3542_v43  ;;  %v4565_v4 = vadd.f32 %v12583_v7, %v3541_v9  ;;  %v4498_v7 = vadd.f32 %v12593_v8, %v3474_v3  ;;  %v15243_v43 = vld [vmem:[#allocation171_spill] sm:$0xff]  ;;  %v2726_v10 = vmul.f32 %v7701_v40, %v2598_v59  ;;  %v7703_v25 = vpop.eup %7702 }
 0x38b   : > { %v4107_v2 = vpop.permute.xlu1 %4106  ;;  %4171 = vperm.xlu1 %7527, %v3753_v19   ;;  %5516 = vmatpush2.msra.mxu0 %v4757_v49  ;;  %v2210_v8 = vmul.f32 0.0051020407, %v15243_v43  ;;  %v15244_v24 = vld [vmem:[#allocation275_spill] sm:$0xff]  ;;  %v15256_v43 = vld [vmem:[#allocation124_spill] sm:$0xff] }
 0x38c   : > { %v4567_v26 = vadd.f32 %v4107_v2, %v3543_v30  ;;  %v4568_v62 = vadd.f32 %v4107_v2, %v3544_v5  ;;  %v12642_v20 = vpop.permute.xlu0 %3921  ;;  %v4822_v50 = vmax.f32 %v4566_v56, 0.0  ;;  %v4821_v23 = vmax.f32 %v4565_v4, 0.0  ;;  %v15246_v49 = vld [vmem:[#allocation131_spill] sm:$0xff]  ;;  %v15250_v4 = vld [vmem:[#allocation317_spill] sm:$0xff] }
 0x38d   : > { %3292 = vperm.xlu0 %7526, %v2758_v46   ;;  %v2211_v19 = vmul.f32 0.0051020407, %v15244_v24  ;;  %v4754_v9 = vmax.f32 %v4498_v7, 0.0  ;;  %v4753_v30 = vmax.f32 %v4497_v27, 0.0  ;;  %v3539_v5 = vmul.f32 %v12568_v0, %v15247_v60  ;;  %v3751_v56 = vld [vmem:[%s14436_s2 + $0x230] sm:$0xff]  ;;  %v2628_v0 = vld [vmem:[%s14435_s1 + $0x318] sm:$0xff] }
 0x38e   : > { %v4824_v1 = vmax.f32 %v4568_v62, 0.0  ;;  %v4823_v54 = vmax.f32 %v4567_v26, 0.0  ;;  %v2370_v2 = vadd.f32 1e-05, %v2242_v31  ;;  %v2338_v39 = vadd.f32 1e-05, %v2210_v8  ;;  %v7705_v41 = vpop.eup %7704 }
 0x38f   : > { %v3937_v52 = vpop.permute.xlu1 %3936  ;;  %3137 = vperm.xlu1 %7527, %v2727_v53   ;;  %v15249_v53 = vld [vmem:[#allocation61_spill] sm:$0xff]  ;;  %v3472_v3 = vmul.f32 %v15250_v4, %v15251_v38  ;;  %v15255_v7 = vld [vmem:[#allocation62_spill] sm:$0xff]  ;;  %v2725_v40 = vmul.f32 %v7705_v41, %v2597_v22  ;;  %v15259_v60 = vld [vmem:[#allocation123_spill] sm:$0xff] }
 0x390   : > { %v4499_v13 = vadd.f32 %v3937_v52, %v3475_v12  ;;  %v4500_v61 = vadd.f32 %v3937_v52, %v3476_v16  ;;  %v12658_v29 = vpop.permute.xlu0 %3052  ;;  %5962 = vmatprep.subr.mxu1 %v4824_v1  ;;  %v2339_v12 = vadd.f32 1e-05, %v2211_v19  ;;  %v3471_v55 = vmul.f32 %v15250_v4, %v15249_v53  ;;  %v15253_v1 = vld [vmem:[#allocation325_spill] sm:$0xff]  ;;  %v3750_v19 = vld [vmem:[%s14436_s2 + $0x228] sm:$0xff]  ;;  %v15265_v41 = vld [vmem:[#allocation56_spill] sm:$0xff] }
 0x391   : > { %4321 = vperm.xlu0 %7526, %v3783_v11   ;;  %5963 = vmatpush2.msra.mxu1 %v4823_v54  ;;  %v15252_v11 = vld [vmem:[#allocation60_spill] sm:$0xff]  ;;  %7710 = vrsqrt.f32 %v2370_v2  ;;  %v15254_v52 = vld [vmem:[#allocation289_spill] sm:$0xff]  ;;  %v15266_v38 = vld [vmem:[#allocation323_spill] sm:$0xff] }
 0x392   : > { %5964 = vmatprep.subr.mxu1 %v4822_v50  ;;  %v4756_v37 = vmax.f32 %v4500_v61, 0.0  ;;  %v4755_v33 = vmax.f32 %v4499_v13, 0.0  ;;  %v3470_v54 = vmul.f32 %v15253_v1, %v15252_v11  ;;  %v2241_v45 = vmul.f32 0.0051020407, %v15254_v52  ;;  %v15261_v2 = vld [vmem:[#allocation312_spill] sm:$0xff]  ;;  %v15267_v22 = vld [vmem:[#allocation59_spill] sm:$0xff] }
 0x393   : > { %v3068_v14 = vpop.permute.xlu1 %3067  ;;  %4166 = vperm.xlu1 %7527, %v3752_v17   ;;  %5965 = vmatpush2.msra.mxu1 %v4821_v23  ;;  %v3469_v13 = vmul.f32 %v15253_v1, %v15255_v7  ;;  %v2756_v61 = vmul.f32 %v7703_v25, %v2628_v0  ;;  %7712 = vrsqrt.f32 %v2339_v12  ;;  %v3780_v11 = vld [vmem:[%s14436_s2 + $0x318] sm:$0xff]  ;;  %v3465_v52 = vmul.f32 %v15266_v38, %v15267_v22 }
 0x394   : > { %v3538_v51 = vmul.f32 %v3068_v14, %v15245_v28  ;;  %v12674_v18 = vpop.permute.xlu0 %4081  ;;  %5517 = vmatprep.subr.mxu0 %v4756_v37  ;;  %v3537_v63 = vmul.f32 %v3068_v14, %v15246_v49  ;;  %v4494_v50 = vadd.f32 %v12642_v20, %v3470_v54  ;;  %v2369_v31 = vadd.f32 1e-05, %v2241_v45  ;;  %v2627_v28 = vld [vmem:[%s14435_s1 + $0x310] sm:$0xff] }
 0x395   : > { %3287 = vperm.xlu0 %7526, %v2757_v15   ;;  %5518 = vmatpush2.msra.mxu0 %v4755_v33  ;;  %v4493_v23 = vadd.f32 %v12642_v20, %v3469_v13  ;;  %v3781_v33 = vld [vmem:[%s14436_s2 + $0x320] sm:$0xff]  ;;  %v7707_v15 = vpop.eup %7706  ;;  %7714 = vrsqrt.f32 %v2338_v39  ;;  %v15263_v39 = vld [vmem:[#allocation316_spill] sm:$0xff] }
 0x396   : > { %5519 = vmatprep.subr.mxu0 %v4754_v9  ;;  %v4562_v34 = vadd.f32 %v12624_v42, %v3538_v51  ;;  %v4561_v16 = vadd.f32 %v12624_v42, %v3537_v63  ;;  %v4750_v20 = vmax.f32 %v4494_v50, 0.0  ;;  %v15257_v51 = vld [vmem:[#allocation126_spill] sm:$0xff]  ;;  %v7709_v63 = vpop.eup %7708  ;;  %7716 = vrsqrt.f32 %v2369_v31 }
 0x397   : > { %v4097_v46 = vpop.permute.xlu1 %4096  ;;  %3132 = vperm.xlu1 %7527, %v2726_v10   ;;  %5520 = vmatpush2.msra.mxu0 %v4753_v30  ;;  %v4749_v49 = vmax.f32 %v4493_v23, 0.0  ;;  %v15258_v10 = vld [vmem:[#allocation125_spill] sm:$0xff]  ;;  %v2724_v53 = vmul.f32 %v7709_v63, %v2596_v47 }
 0x398   : > { %v4563_v36 = vadd.f32 %v4097_v46, %v3539_v5  ;;  %v4564_v26 = vadd.f32 %v4097_v46, %v3540_v21  ;;  %v12684_v62 = vpop.permute.xlu0 %3911  ;;  %v4818_v27 = vmax.f32 %v4562_v34, 0.0  ;;  %v4817_v37 = vmax.f32 %v4561_v16, 0.0  ;;  %v15260_v21 = vld [vmem:[#allocation273_spill] sm:$0xff] }
 0x399   : > { %4316 = vperm.xlu0 %7526, %v3782_v32   ;;  %v3535_v30 = vmul.f32 %v12617_v57, %v15258_v10  ;;  %v3536_v5 = vmul.f32 %v12617_v57, %v15259_v60  ;;  %v2209_v32 = vmul.f32 0.0051020407, %v15260_v21  ;;  %v2272_v46 = vmul.f32 0.0051020407, %v15261_v2  ;;  %v15262_v34 = vld [vmem:[#allocation57_spill] sm:$0xff]  ;;  %v3779_v21 = vld [vmem:[%s14436_s2 + $0x310] sm:$0xff] }
 0x39a   : > { %v4820_v6 = vmax.f32 %v4564_v26, 0.0  ;;  %v4819_v58 = vmax.f32 %v4563_v36, 0.0  ;;  %v2755_v36 = vmul.f32 %v7707_v15, %v2627_v28  ;;  %v3467_v12 = vmul.f32 %v15263_v39, %v15262_v34 }
 0x39b   : > { %v3927_v42 = vpop.permute.xlu1 %3926  ;;  %4161 = vperm.xlu1 %7527, %v3751_v56  }
 0x39c   : > { %v4495_v17 = vadd.f32 %v3927_v42, %v3471_v55  ;;  %v4496_v48 = vadd.f32 %v3927_v42, %v3472_v3  ;;  %v12707_v44 = vpop.permute.xlu0 %3042  ;;  %5966 = vmatprep.subr.mxu1 %v4820_v6  ;;  %v15264_v55 = vld [vmem:[#allocation55_spill] sm:$0xff]  ;;  %v3466_v3 = vmul.f32 %v15266_v38, %v15265_v41  ;;  %v2337_v6 = vadd.f32 1e-05, %v2209_v32  ;;  %v2594_v32 = vld [vmem:[%s14435_s1 + $0x208] sm:$0xff] }
 0x39d   : > { %3282 = vperm.xlu0 %7526, %v2756_v61   ;;  %5967 = vmatpush2.msra.mxu1 %v4819_v58  ;;  %v3468_v16 = vmul.f32 %v15263_v39, %v15264_v55  ;;  %v2400_v58 = vadd.f32 1e-05, %v2272_v46  ;;  %v15276_v41 = vld [vmem:[#allocation51_spill] sm:$0xff] }
 0x39e   : > { %5968 = vmatprep.subr.mxu1 %v4818_v27  ;;  %v4752_v59 = vmax.f32 %v4496_v48, 0.0  ;;  %v4751_v35 = vmax.f32 %v4495_v17, 0.0  ;;  %v4490_v7 = vadd.f32 %v12684_v62, %v3466_v3  ;;  %v3749_v17 = vld [vmem:[%s14436_s2 + $0x220] sm:$0xff]  ;;  %v2626_v48 = vld [vmem:[%s14435_s1 + $0x308] sm:$0xff]  ;;  %v4489_v27 = vadd.f32 %v12684_v62, %v3465_v52  ;;  %v15277_v3 = vld [vmem:[#allocation52_spill] sm:$0xff] }
 0x39f   : > { %v3058_v14 = vpop.permute.xlu1 %3057  ;;  %3127 = vperm.xlu1 %7527, %v2725_v40   ;;  %5969 = vmatpush2.msra.mxu1 %v4817_v37  ;;  %7718 = vrsqrt.f32 %v2400_v58  ;;  %v15269_v62 = vld [vmem:[#allocation122_spill] sm:$0xff] }
 0x3a0   : > { %v3534_v8 = vmul.f32 %v3058_v14, %v15256_v43  ;;  %v12714_v24 = vpop.permute.xlu0 %4071  ;;  %5521 = vmatprep.subr.mxu0 %v4752_v59  ;;  %v3533_v9 = vmul.f32 %v3058_v14, %v15257_v51  ;;  %v2595_v59 = vld [vmem:[%s14435_s1 + $0x210] sm:$0xff]  ;;  %7720 = vrsqrt.f32 %v2337_v6  ;;  %v15271_v51 = vld [vmem:[#allocation18_spill] sm:$0xff]  ;;  %v4745_v63 = vmax.f32 %v4489_v27, 0.0 }
 0x3a1   : > { %4311 = vperm.xlu0 %7526, %v3781_v33   ;;  %5522 = vmatpush2.msra.mxu0 %v4751_v35  ;;  %v15268_v35 = vld [vmem:[#allocation313_spill] sm:$0xff]  ;;  %v15279_v58 = vld [vmem:[#allocation310_spill] sm:$0xff] }
 0x3a2   : > { %5523 = vmatprep.subr.mxu0 %v4750_v20  ;;  %v4558_v57 = vadd.f32 %v12674_v18, %v3534_v8  ;;  %v4557_v4 = vadd.f32 %v12674_v18, %v3533_v9  ;;  %v7711_v18 = vpop.eup %7710  ;;  %v2271_v31 = vmul.f32 0.0051020407, %v15268_v35  ;;  %v4746_v20 = vmax.f32 %v4490_v7, 0.0  ;;  %v15280_v52 = vld [vmem:[#allocation54_spill] sm:$0xff] }
 0x3a3   : > { %v4087_v25 = vpop.permute.xlu1 %4086  ;;  %4156 = vperm.xlu1 %7527, %v3750_v19   ;;  %5524 = vmatpush2.msra.mxu0 %v4749_v49  ;;  %v7713_v40 = vpop.eup %7712  ;;  %v2754_v15 = vmul.f32 %v7711_v18, %v2626_v48  ;;  %v15270_v19 = vld [vmem:[#allocation286_spill] sm:$0xff]  ;;  %v2270_v22 = vmul.f32 0.0051020407, %v15279_v58  ;;  %v15281_v48 = vld [vmem:[#allocation287_spill] sm:$0xff] }
 0x3a4   : > { %v4559_v26 = vadd.f32 %v4087_v25, %v3535_v30  ;;  %v4560_v56 = vadd.f32 %v4087_v25, %v3536_v5  ;;  %v12732_v0 = vpop.permute.xlu0 %3901  ;;  %v4814_v50 = vmax.f32 %v4558_v57, 0.0  ;;  %v4813_v23 = vmax.f32 %v4557_v4, 0.0  ;;  %v7715_v10 = vpop.eup %7714  ;;  %v15272_v30 = vld [vmem:[#allocation15_spill] sm:$0xff]  ;;  %v2625_v57 = vld [vmem:[%s14435_s1 + $0x300] sm:$0xff]  ;;  %v15293_v58 = vld [vmem:[#allocation50_spill] sm:$0xff] }
 0x3a5   : > { %3277 = vperm.xlu0 %7526, %v2755_v36   ;;  %v2240_v28 = vmul.f32 0.0051020407, %v15270_v19  ;;  %v2723_v49 = vmul.f32 %v7713_v40, %v2595_v59  ;;  %v3531_v60 = vmul.f32 %v12658_v29, %v15272_v30  ;;  %v15273_v5 = vld [vmem:[#allocation119_spill] sm:$0xff]  ;;  %v2399_v2 = vadd.f32 1e-05, %v2271_v31  ;;  %v7717_v25 = vpop.eup %7716  ;;  %v2656_v19 = vld [vmem:[%s14435_s1 + $0x3f8] sm:$0xff] }
 0x3a6   : > { %v4816_v1 = vmax.f32 %v4560_v56, 0.0  ;;  %v4815_v54 = vmax.f32 %v4559_v26, 0.0  ;;  %v3532_v47 = vmul.f32 %v12658_v29, %v15273_v5  ;;  %v3748_v29 = vld [vmem:[%s14436_s2 + $0x218] sm:$0xff]  ;;  %v2722_v55 = vmul.f32 %v7715_v10, %v2594_v32  ;;  %v2593_v10 = vld [vmem:[%s14435_s1 + $0x200] sm:$0xff] }
 0x3a7   : > { %v3917_v45 = vpop.permute.xlu1 %3916  ;;  %3122 = vperm.xlu1 %7527, %v2724_v53   ;;  %v2368_v39 = vadd.f32 1e-05, %v2240_v28  ;;  %v15275_v53 = vld [vmem:[#allocation315_spill] sm:$0xff]  ;;  %7722 = vrsqrt.f32 %v2399_v2  ;;  %v2753_v7 = vmul.f32 %v7717_v25, %v2625_v57  ;;  %v2239_v27 = vmul.f32 0.0051020407, %v15281_v48  ;;  %v15284_v30 = vld [vmem:[#allocation12_spill] sm:$0xff] }
 0x3a8   : > { %v4491_v13 = vadd.f32 %v3917_v45, %v3467_v12  ;;  %v4492_v42 = vadd.f32 %v3917_v45, %v3468_v16  ;;  %v12748_v61 = vpop.permute.xlu0 %3032  ;;  %5970 = vmatprep.subr.mxu1 %v4816_v1  ;;  %v15274_v12 = vld [vmem:[#allocation53_spill] sm:$0xff]  ;;  %v3464_v38 = vmul.f32 %v15275_v53, %v15276_v41  ;;  %v2398_v35 = vadd.f32 1e-05, %v2270_v22  ;;  %v15291_v41 = vld [vmem:[#allocation48_spill] sm:$0xff] }
 0x3a9   : > { %4306 = vperm.xlu0 %7526, %v3780_v11   ;;  %5971 = vmatpush2.msra.mxu1 %v4815_v54  ;;  %v3463_v4 = vmul.f32 %v15275_v53, %v15274_v12  ;;  %v15278_v11 = vld [vmem:[#allocation321_spill] sm:$0xff]  ;;  %7724 = vrsqrt.f32 %v2368_v39 }
 0x3aa   : > { %5972 = vmatprep.subr.mxu1 %v4814_v50  ;;  %v4748_v37 = vmax.f32 %v4492_v42, 0.0  ;;  %v4747_v33 = vmax.f32 %v4491_v13, 0.0  ;;  %v3462_v1 = vmul.f32 %v15278_v11, %v15277_v3  ;;  %v3461_v45 = vmul.f32 %v15278_v11, %v15280_v52  ;;  %v15285_v5 = vld [vmem:[#allocation117_spill] sm:$0xff] }
 0x3ab   : > { %v3048_v14 = vpop.permute.xlu1 %3047  ;;  %4151 = vperm.xlu1 %7527, %v3749_v17   ;;  %5973 = vmatpush2.msra.mxu1 %v4813_v23  ;;  %7726 = vrsqrt.f32 %v2398_v35  ;;  %v15288_v12 = vld [vmem:[#allocation49_spill] sm:$0xff]  ;;  %v15294_v35 = vld [vmem:[#allocation308_spill] sm:$0xff] }
 0x3ac   : > { %v3530_v43 = vmul.f32 %v3048_v14, %v15269_v62  ;;  %v12762_v8 = vpop.permute.xlu0 %4061  ;;  %5525 = vmatprep.subr.mxu0 %v4748_v37  ;;  %v3529_v9 = vmul.f32 %v3048_v14, %v15271_v51  ;;  %v4486_v13 = vadd.f32 %v12732_v0, %v3462_v1  ;;  %v4485_v23 = vadd.f32 %v12732_v0, %v3461_v45  ;;  %v3778_v37 = vld [vmem:[%s14436_s2 + $0x308] sm:$0xff]  ;;  %v7719_v14 = vpop.eup %7718  ;;  %v3777_v11 = vld [vmem:[%s14436_s2 + $0x300] sm:$0xff] }
 0x3ad   : > { %3272 = vperm.xlu0 %7526, %v2754_v15   ;;  %5526 = vmatpush2.msra.mxu0 %v4747_v33  ;;  %v15282_v15 = vld [vmem:[#allocation11_spill] sm:$0xff]  ;;  %v7721_v28 = vpop.eup %7720  ;;  %v2367_v51 = vadd.f32 1e-05, %v2239_v27 }
 0x3ae   : > { %5527 = vmatprep.subr.mxu0 %v4746_v20  ;;  %v4554_v34 = vadd.f32 %v12714_v24, %v3530_v43  ;;  %v4553_v16 = vadd.f32 %v12714_v24, %v3529_v9  ;;  %v4742_v0 = vmax.f32 %v4486_v13, 0.0  ;;  %v3747_v20 = vld [vmem:[%s14436_s2 + $0x210] sm:$0xff]  ;;  %v15283_v9 = vld [vmem:[#allocation121_spill] sm:$0xff] }
 0x3af   : > { %v4077_v46 = vpop.permute.xlu1 %4076  ;;  %3117 = vperm.xlu1 %7527, %v2723_v49   ;;  %5528 = vmatpush2.msra.mxu0 %v4745_v63  ;;  %v4741_v63 = vmax.f32 %v4485_v23, 0.0  ;;  %7728 = vrsqrt.f32 %v2367_v51  ;;  %v15297_v51 = vld [vmem:[#allocation116_spill] sm:$0xff] }
 0x3b0   : > { %v4555_v36 = vadd.f32 %v4077_v46, %v3531_v60  ;;  %v4556_v26 = vadd.f32 %v4077_v46, %v3532_v47  ;;  %v12776_v56 = vpop.permute.xlu0 %3891  ;;  %v4810_v17 = vmax.f32 %v4554_v34, 0.0  ;;  %v4809_v40 = vmax.f32 %v4553_v16, 0.0  ;;  %v15287_v34 = vld [vmem:[#allocation284_spill] sm:$0xff] }
 0x3b1   : > { %4301 = vperm.xlu0 %7526, %v3779_v21   ;;  %v3527_v60 = vmul.f32 %v12707_v44, %v15284_v30  ;;  %v3528_v47 = vmul.f32 %v12707_v44, %v15285_v5  ;;  %v15286_v21 = vld [vmem:[#allocation311_spill] sm:$0xff]  ;;  %v2784_v46 = vmul.f32 %v7719_v14, %v2656_v19  ;;  %v2238_v39 = vmul.f32 0.0051020407, %v15287_v34  ;;  %v15289_v44 = vld [vmem:[#allocation314_spill] sm:$0xff]  ;;  %v15299_v5 = vld [vmem:[#allocation113_spill] sm:$0xff] }
 0x3b2   : > { %v4812_v54 = vmax.f32 %v4556_v26, 0.0  ;;  %v4811_v6 = vmax.f32 %v4555_v36, 0.0  ;;  %v2269_v32 = vmul.f32 0.0051020407, %v15286_v21  ;;  %v3459_v53 = vmul.f32 %v15289_v44, %v15288_v12  ;;  %v15298_v30 = vld [vmem:[#allocation10_spill] sm:$0xff]  ;;  %v3808_v21 = vld [vmem:[%s14436_s2 + $0x3f8] sm:$0xff] }
 0x3b3   : > { %v3907_v18 = vpop.permute.xlu1 %3906  ;;  %4146 = vperm.xlu1 %7527, %v3748_v29   ;;  %v2721_v29 = vmul.f32 %v7721_v28, %v2593_v10  ;;  %v2366_v48 = vadd.f32 1e-05, %v2238_v39  ;;  %v4961_v10 = vld [vmem:[%s8211_s9] sm:$0xff]  ;;  %v2654_v34 = vld [vmem:[%s14435_s1 + $0x3e8] sm:$0xff] }
 0x3b4   : > { %v4487_v24 = vadd.f32 %v3907_v18, %v3463_v4  ;;  %v4488_v42 = vadd.f32 %v3907_v18, %v3464_v38  ;;  %v12796_v50 = vpop.permute.xlu0 %4051  ;;  %5974 = vmatprep.subr.mxu1 %v4812_v54  ;;  %v15292_v38 = vld [vmem:[#allocation319_spill] sm:$0xff]  ;;  %v7723_v45 = vpop.eup %7722 }
 0x3b5   : > { %3267 = vperm.xlu0 %7526, %v2753_v7   ;;  %5975 = vmatpush2.msra.mxu1 %v4811_v6  ;;  %v3458_v3 = vmul.f32 %v15292_v38, %v15291_v41  ;;  %v2397_v6 = vadd.f32 1e-05, %v2269_v32  ;;  %v3457_v22 = vmul.f32 %v15292_v38, %v15293_v58  ;;  %v4970_v32 = vld [vmem:[%s8211_s9 + $0x48] sm:$0xff]  ;;  %v2623_v41 = vld [vmem:[%s14435_s1 + $0x2f0] sm:$0xff]  ;;  %v15300_v38 = vld [vmem:[#allocation309_spill] sm:$0xff] }
 0x3b6   : > { %5976 = vmatprep.subr.mxu1 %v4810_v17  ;;  %v4744_v33 = vmax.f32 %v4488_v42, 0.0  ;;  %v4743_v59 = vmax.f32 %v4487_v24, 0.0  ;;  %v3746_v42 = vld [vmem:[%s14436_s2 + $0x208] sm:$0xff]  ;;  %v2655_v17 = vld [vmem:[%s14435_s1 + $0x3f0] sm:$0xff] }
 0x3b7   : > { %v3038_v31 = vpop.permute.xlu1 %3037  ;;  %3112 = vperm.xlu1 %7527, %v2722_v55   ;;  %5977 = vmatpush2.msra.mxu1 %v4809_v40  ;;  %v15290_v55 = vld [vmem:[#allocation46_spill] sm:$0xff]  ;;  %v4481_v27 = vadd.f32 %v12776_v56, %v3457_v22  ;;  %v7725_v40 = vpop.eup %7724  ;;  %7730 = vrsqrt.f32 %v2397_v6  ;;  %v15302_v22 = vld [vmem:[#allocation172_spill] sm:$0xff] }
 0x3b8   : > { %v3526_v62 = vmul.f32 %v3038_v31, %v15282_v15  ;;  %v12804_v43 = vpop.permute.xlu0 %3177  ;;  %5529 = vmatprep.subr.mxu0 %v4744_v33  ;;  %v3525_v49 = vmul.f32 %v3038_v31, %v15283_v9  ;;  %v3460_v16 = vmul.f32 %v15289_v44, %v15290_v55  ;;  %v2268_v31 = vmul.f32 0.0051020407, %v15294_v35  ;;  %v4969_v44 = vld [vmem:[%s8211_s9 + $0x40] sm:$0xff]  ;;  %v15301_v6 = vld [vmem:[#allocation174_spill] sm:$0xff] }
 0x3b9   : > { %4296 = vperm.xlu0 %7526, %v3778_v37   ;;  %5530 = vmatpush2.msra.mxu0 %v4743_v59  ;;  %v2624_v59 = vld [vmem:[%s14435_s1 + $0x2f8] sm:$0xff]  ;;  %v2783_v15 = vmul.f32 %v7723_v45, %v2655_v17  ;;  %7732 = vrsqrt.f32 %v2366_v48  ;;  %v4963_v17 = vld [vmem:[%s8211_s9 + $0x10] sm:$0xff] }
 0x3ba   : > { %5531 = vmatprep.subr.mxu0 %v4742_v0  ;;  %v4550_v57 = vadd.f32 %v12762_v8, %v3526_v62  ;;  %v4549_v4 = vadd.f32 %v12762_v8, %v3525_v49  ;;  %v4482_v8 = vadd.f32 %v12776_v56, %v3458_v3  ;;  %v15295_v56 = vld [vmem:[#allocation285_spill] sm:$0xff]  ;;  %v15296_v0 = vld [vmem:[#allocation114_spill] sm:$0xff]  ;;  %v2752_v49 = vmul.f32 %v7725_v40, %v2624_v59  ;;  %v4972_v59 = vld [vmem:[%s8211_s9 + $0x58] sm:$0xff] }
 0x3bb   : > { %v4067_v2 = vpop.permute.xlu1 %4066  ;;  %4141 = vperm.xlu1 %7527, %v3747_v20   ;;  %5532 = vmatpush2.msra.mxu0 %v4741_v63  ;;  %v2237_v62 = vmul.f32 0.0051020407, %v15295_v56  ;;  %v4737_v63 = vmax.f32 %v4481_v27, 0.0  ;;  %v2267_v3 = vmul.f32 0.0051020407, %v15300_v38  ;;  %v3807_v27 = vld [vmem:[%s14436_s2 + $0x3f0] sm:$0xff] }
 0x3bc   : > { %v4551_v25 = vadd.f32 %v4067_v2, %v3527_v60  ;;  %v4552_v36 = vadd.f32 %v4067_v2, %v3528_v47  ;;  %v12821_v26 = vpop.permute.xlu0 %4206  ;;  %v4806_v24 = vmax.f32 %v4550_v57, 0.0  ;;  %v4805_v23 = vmax.f32 %v4549_v4, 0.0  ;;  %v4986_v40 = vld [vmem:[%s8211_s9 + $0xc8] sm:$0xff]  ;;  %v15305_v56 = vld [vmem:[#allocation237_spill] sm:$0xff] }
 0x3bd   : > { %3422 = vperm.xlu0 %7526, %v2784_v46   ;;  %v4738_v28 = vmax.f32 %v4482_v8, 0.0  ;;  %v3523_v60 = vmul.f32 %v12748_v61, %v15298_v30  ;;  %v3524_v47 = vmul.f32 %v12748_v61, %v15299_v5  ;;  %v2396_v2 = vadd.f32 1e-05, %v2268_v31  ;;  %v3745_v61 = vld [vmem:[%s14436_s2 + $0x200] sm:$0xff] }
 0x3be   : > { %v4808_v1 = vmax.f32 %v4552_v36, 0.0  ;;  %v4807_v54 = vmax.f32 %v4551_v25, 0.0  ;;  %v7727_v25 = vpop.eup %7726  ;;  %v2365_v12 = vadd.f32 1e-05, %v2237_v62  ;;  %v15303_v8 = vld [vmem:[#allocation229_spill] sm:$0xff] }
 0x3bf   : > { %v3897_v52 = vpop.permute.xlu1 %3896  ;;  %3107 = vperm.xlu1 %7527, %v2721_v29   ;;  %v7729_v4 = vpop.eup %7728  ;;  %7734 = vrsqrt.f32 %v2396_v2 }
 0x3c0   : > { %v4483_v18 = vadd.f32 %v3897_v52, %v3459_v53  ;;  %v4484_v7 = vadd.f32 %v3897_v52, %v3460_v16  ;;  %v12838_v13 = vpop.permute.xlu0 %3337  ;;  %5978 = vmatprep.subr.mxu1 %v4808_v1  ;;  %v2782_v1 = vmul.f32 %v7727_v25, %v2654_v34  ;;  %7736 = vrsqrt.f32 %v2365_v12  ;;  %v4994_v25 = vld [vmem:[%s8211_s9 + $0x108] sm:$0xff]  ;;  %v15310_v12 = vld [vmem:[#allocation235_spill] sm:$0xff] }
 0x3c1   : > { %4291 = vperm.xlu0 %7526, %v3777_v11   ;;  %5979 = vmatpush2.msra.mxu1 %v4807_v54  ;;  %v4978_v54 = vld [vmem:[%s8211_s9 + $0x88] sm:$0xff] }
 0x3c2   : > { %5980 = vmatprep.subr.mxu1 %v4806_v24  ;;  %v4740_v37 = vmax.f32 %v4484_v7, 0.0  ;;  %v4739_v33 = vmax.f32 %v4483_v18, 0.0  ;;  %v2236_v18 = vmul.f32 0.0051020407, %v15303_v8  ;;  %v2751_v7 = vmul.f32 %v7729_v4, %v2623_v41 }
 0x3c3   : > { %v3028_v14 = vpop.permute.xlu1 %3027  ;;  %4136 = vperm.xlu1 %7527, %v3746_v42   ;;  %5981 = vmatpush2.msra.mxu1 %v4805_v23  ;;  %v4977_v42 = vld [vmem:[%s8211_s9 + $0x80] sm:$0xff] }
 0x3c4   : > { %v3522_v20 = vmul.f32 %v3028_v14, %v15296_v0  ;;  %v12853_v19 = vpop.permute.xlu0 %4366  ;;  %5533 = vmatprep.subr.mxu0 %v4740_v37  ;;  %v3521_v9 = vmul.f32 %v3028_v14, %v15297_v51  ;;  %v2395_v37 = vadd.f32 1e-05, %v2267_v3  ;;  %v7731_v35 = vpop.eup %7730  ;;  %v15304_v14 = vld [vmem:[#allocation239_spill] sm:$0xff]  ;;  %v2364_v51 = vadd.f32 1e-05, %v2236_v18  ;;  %v5002_v18 = vld [vmem:[%s8211_s9 + $0x148] sm:$0xff] }
 0x3c5   : > { %3417 = vperm.xlu0 %7526, %v2783_v15   ;;  %5534 = vmatpush2.msra.mxu0 %v4739_v33 }
 0x3c6   : > { %5535 = vmatprep.subr.mxu0 %v4738_v28  ;;  %v4546_v39 = vadd.f32 %v12796_v50, %v3522_v20  ;;  %v4545_v53 = vadd.f32 %v12796_v50, %v3521_v9  ;;  %v2653_v28 = vld [vmem:[%s14435_s1 + $0x3e0] sm:$0xff]  ;;  %v15306_v9 = vld [vmem:[#allocation238_spill] sm:$0xff]  ;;  %v7733_v30 = vpop.eup %7732  ;;  %7738 = vrsqrt.f32 %v2395_v37  ;;  %v4988_v37 = vld [vmem:[%s8211_s9 + $0xd8] sm:$0xff] }
 0x3c7   : > { %v4057_v46 = vpop.permute.xlu1 %4056  ;;  %3262 = vperm.xlu1 %7527, %v2752_v49   ;;  %5536 = vmatpush2.msra.mxu0 %v4737_v63  ;;  %v3646_v49 = vmul.f32 %v12838_v13, %v15306_v9  ;;  %v4985_v63 = vld [vmem:[%s8211_s9 + $0xc0] sm:$0xff]  ;;  %7740 = vrsqrt.f32 %v2364_v51 }
 0x3c8   : > { %v4547_v36 = vadd.f32 %v4057_v46, %v3523_v60  ;;  %v4548_v29 = vadd.f32 %v4057_v46, %v3524_v47  ;;  %v12865_v57 = vpop.permute.xlu0 %3332  ;;  %5538 = vmatmul.mubr.f32.vlgmr.msra.gmra.mxu0 %v4961_v10  ;;  %v4802_v45 = vmax.f32 %v4546_v39, 0.0  ;;  %v4801_v24 = vmax.f32 %v4545_v53, 0.0  ;;  %v4971_v10 = vld [vmem:[%s8211_s9 + $0x50] sm:$0xff]  ;;  %v15307_v60 = vld [vmem:[#allocation306_spill] sm:$0xff]  ;;  %v15308_v47 = vld [vmem:[#allocation240_spill] sm:$0xff] }
 0x3c9   : > { %4446 = vperm.xlu0 %7526, %v3808_v21   ;;  %5543 = vmatprep.mubr.f32.mxu0 %v4970_v32  ;;  %v2266_v5 = vmul.f32 0.0051020407, %v15307_v60  ;;  %v3645_v21 = vmul.f32 %v12838_v13, %v15308_v47  ;;  %v2622_v46 = vld [vmem:[%s14435_s1 + $0x2e8] sm:$0xff]  ;;  %v2781_v13 = vmul.f32 %v7731_v35, %v2653_v28  ;;  %v4980_v39 = vld [vmem:[%s8211_s9 + $0x98] sm:$0xff] }
 0x3ca   : > { %v4804_v55 = vmax.f32 %v4548_v29, 0.0  ;;  %v4803_v16 = vmax.f32 %v4547_v36, 0.0  ;;  %v15309_v36 = vld [vmem:[#allocation233_spill] sm:$0xff]  ;;  %v2750_v3 = vmul.f32 %v7733_v30, %v2622_v46 }
 0x3cb   : > { %v3183_v11 = vpop.permute.xlu1 %3182  ;;  %4131 = vperm.xlu1 %7527, %v3745_v61   ;;  %v3644_v29 = vmul.f32 %v12865_v57, %v15309_v36  ;;  %v15318_v46 = vld [vmem:[#allocation169_spill] sm:$0xff]  ;;  %v15319_v36 = vld [vmem:[#allocation166_spill] sm:$0xff] }
 0x3cc   : > { %v3583_v58 = vmul.f32 %v3183_v11, %v15301_v6  ;;  %v3584_v50 = vmul.f32 %v3183_v11, %v15302_v22  ;;  %v4362_v52 = vpop.permute.xlu0 %4361  ;;  %5544 = vmatmul.mubr.f32.gmra.mxu0 %v4969_v44  ;;  %5982 = vmatprep.subr.mxu1 %v4804_v55  ;;  %v4993_v11 = vld [vmem:[%s8211_s9 + $0x100] sm:$0xff]  ;;  %v15312_v6 = vld [vmem:[#allocation175_spill] sm:$0xff] }
 0x3cd   : > { %3412 = vperm.xlu0 %7526, %v2782_v1   ;;  %5983 = vmatpush2.msra.mxu1 %v4803_v16  ;;  %v4670_v61 = vadd.f32 %v4362_v52, %v3646_v49  ;;  %v4669_v44 = vadd.f32 %v4362_v52, %v3645_v21  ;;  %v15311_v16 = vld [vmem:[#allocation283_spill] sm:$0xff]  ;;  %v3806_v52 = vld [vmem:[%s14436_s2 + $0x3e8] sm:$0xff] }
 0x3ce   : > { %v4607_v48 = vadd.f32 %v12821_v26, %v3583_v58  ;;  %5984 = vmatprep.subr.mxu1 %v4802_v45  ;;  %5549 = vmatprep.mubr.f32.mxu0 %v4978_v54  ;;  %v4608_v23 = vadd.f32 %v12821_v26, %v3584_v50  ;;  %v3776_v26 = vld [vmem:[%s14436_s2 + $0x2f8] sm:$0xff]  ;;  %v2235_v41 = vmul.f32 0.0051020407, %v15311_v16  ;;  %v4979_v1 = vld [vmem:[%s8211_s9 + $0x90] sm:$0xff]  ;;  %v2394_v54 = vadd.f32 1e-05, %v2266_v5 }
 0x3cf   : > { %v3343_v33 = vpop.permute.xlu1 %3342  ;;  %3257 = vperm.xlu1 %7527, %v2751_v7   ;;  %5985 = vmatpush2.msra.mxu1 %v4801_v24  ;;  %v15313_v58 = vld [vmem:[#allocation173_spill] sm:$0xff]  ;;  %v4926_v8 = vmax.f32 %v4670_v61, 0.0  ;;  %v7735_v7 = vpop.eup %7734  ;;  %v4925_v24 = vmax.f32 %v4669_v44, 0.0  ;;  %v5010_v21 = vld [vmem:[%s8211_s9 + $0x188] sm:$0xff] }
 0x3d0   : > { %v4863_v31 = vmax.f32 %v4607_v48, 0.0  ;;  %v3647_v15 = vmul.f32 %v3343_v33, %v15304_v14  ;;  %v3648_v62 = vmul.f32 %v3343_v33, %v15305_v56  ;;  %v12895_v0 = vpop.permute.xlu0 %3327  ;;  %5550 = vmatmul.mubr.f32.gmra.mxu0 %v4977_v42  ;;  %5987 = vmatmul.mubr.f32.vlgmr.msra.gmra.mxu1 %v4963_v17  ;;  %v4864_v20 = vmax.f32 %v4608_v23, 0.0  ;;  %v7737_v33 = vpop.eup %7736  ;;  %v5001_v14 = vld [vmem:[%s8211_s9 + $0x140] sm:$0xff]  ;;  %v3774_v16 = vld [vmem:[%s14436_s2 + $0x2e8] sm:$0xff] }
 0x3d1   : > { %4441 = vperm.xlu0 %7526, %v3807_v27   ;;  %5555 = vmatprep.mubr.f32.mxu0 %v4986_v40  ;;  %v3582_v22 = vmul.f32 %v12804_v43, %v15313_v58  ;;  %v2652_v27 = vld [vmem:[%s14435_s1 + $0x3d8] sm:$0xff]  ;;  %v2363_v23 = vadd.f32 1e-05, %v2235_v41  ;;  %7742 = vrsqrt.f32 %v2394_v54  ;;  %v2621_v56 = vld [vmem:[%s14435_s1 + $0x2e0] sm:$0xff]  ;;  %v2651_v41 = vld [vmem:[%s14435_s1 + $0x3d0] sm:$0xff] }
 0x3d2   : > { %v4671_v32 = vadd.f32 %v12853_v19, %v3647_v15  ;;  %6371 = vmatprep.subr.mxu0 %v4864_v20  ;;  %5992 = vmatprep.mubr.f32.mxu1 %v4972_v59  ;;  %v4672_v2 = vadd.f32 %v12853_v19, %v3648_v62  ;;  %v3643_v19 = vmul.f32 %v12865_v57, %v15310_v12  ;;  %v15314_v59 = vld [vmem:[#allocation307_spill] sm:$0xff]  ;;  %v15315_v62 = vld [vmem:[#allocation236_spill] sm:$0xff]  ;;  %v3805_v61 = vld [vmem:[%s14436_s2 + $0x3e0] sm:$0xff] }
 0x3d3   : > { %v12918_v34 = vpop.permute.xlu1 %3172  ;;  %4286 = vperm.xlu1 %7527, %v3776_v26   ;;  %6372 = vmatpush1.msra.mxu0 %v4863_v31  ;;  %v3581_v57 = vmul.f32 %v12804_v43, %v15312_v6  ;;  %v3775_v43 = vld [vmem:[%s14436_s2 + $0x2f0] sm:$0xff]  ;;  %v2265_v35 = vmul.f32 0.0051020407, %v15314_v59  ;;  %v3641_v20 = vmul.f32 %v12895_v0, %v15315_v62  ;;  %v15316_v26 = vld [vmem:[#allocation234_spill] sm:$0xff]  ;;  %v2780_v49 = vmul.f32 %v7735_v7, %v2652_v27  ;;  %v15320_v54 = vld [vmem:[#allocation304_spill] sm:$0xff] }
 0x3d4   : > { %v4927_v53 = vmax.f32 %v4671_v32, 0.0  ;;  %v4357_v4 = vpop.permute.xlu0 %4356  ;;  %5556 = vmatmul.mubr.f32.gmra.mxu0 %v4985_v63  ;;  %5993 = vmatmul.mubr.f32.gmra.mxu1 %v4971_v10  ;;  %v4928_v55 = vmax.f32 %v4672_v2, 0.0  ;;  %v3642_v28 = vmul.f32 %v12895_v0, %v15316_v26  ;;  %v4987_v63 = vld [vmem:[%s8211_s9 + $0xd0] sm:$0xff]  ;;  %v15317_v10 = vld [vmem:[#allocation281_spill] sm:$0xff]  ;;  %7744 = vrsqrt.f32 %v2363_v23  ;;  %v4996_v32 = vld [vmem:[%s8211_s9 + $0x118] sm:$0xff] }
 0x3d5   : > { %v4668_v38 = vadd.f32 %v4357_v4, %v3644_v29  ;;  %3407 = vperm.xlu0 %7526, %v2781_v13   ;;  %5561 = vmatprep.mubr.f32.mxu0 %v4994_v25  ;;  %v4667_v50 = vadd.f32 %v4357_v4, %v3643_v19  ;;  %v2234_v30 = vmul.f32 0.0051020407, %v15317_v10  ;;  %v2749_v0 = vmul.f32 %v7737_v33, %v2621_v56  ;;  %v5009_v13 = vld [vmem:[%s8211_s9 + $0x180] sm:$0xff]  ;;  %v4995_v19 = vld [vmem:[%s8211_s9 + $0x110] sm:$0xff]  ;;  %v5012_v33 = vld [vmem:[%s8211_s9 + $0x198] sm:$0xff] }
 0x3d6   : > { %6820 = vmatprep.subr.mxu1 %v4928_v55  ;;  %5998 = vmatprep.mubr.f32.mxu1 %v4980_v39  ;;  %v2393_v2 = vadd.f32 1e-05, %v2265_v35  ;;  %v3579_v25 = vmul.f32 %v12918_v34, %v15318_v46  ;;  %v3580_v29 = vmul.f32 %v12918_v34, %v15319_v36  ;;  %v2264_v6 = vmul.f32 0.0051020407, %v15320_v54  ;;  %v15324_v35 = vld [vmem:[#allocation170_spill] sm:$0xff]  ;;  %v3804_v56 = vld [vmem:[%s14436_s2 + $0x3d8] sm:$0xff] }
 0x3d7   : > { %v4202_v45 = vpop.permute.xlu1 %4201  ;;  %3252 = vperm.xlu1 %7527, %v2750_v3   ;;  %6821 = vmatpush1.msra.mxu1 %v4927_v53  ;;  %v4924_v40 = vmax.f32 %v4668_v38, 0.0  ;;  %v4923_v31 = vmax.f32 %v4667_v50, 0.0  ;;  %v7739_v53 = vpop.eup %7738  ;;  %v2362_v38 = vadd.f32 1e-05, %v2234_v30  ;;  %v5018_v3 = vld [vmem:[%s8211_s9 + $0x1c8] sm:$0xff]  ;;  %v15321_v50 = vld [vmem:[#allocation231_spill] sm:$0xff] }
 0x3d8   : > { %v4605_v42 = vadd.f32 %v4202_v45, %v3581_v57  ;;  %v4606_v17 = vadd.f32 %v4202_v45, %v3582_v22  ;;  %v12934_v48 = vpop.permute.xlu0 %3322  ;;  %5562 = vmatmul.mubr.f32.gmra.mxu0 %v4993_v11  ;;  %5999 = vmatmul.mubr.f32.gmra.mxu1 %v4979_v1  ;;  %v5004_v11 = vld [vmem:[%s8211_s9 + $0x158] sm:$0xff]  ;;  %v7741_v1 = vpop.eup %7740  ;;  %7746 = vrsqrt.f32 %v2393_v2  ;;  %v5017_v57 = vld [vmem:[%s8211_s9 + $0x1c0] sm:$0xff]  ;;  %v15322_v45 = vld [vmem:[#allocation227_spill] sm:$0xff]  ;;  %v2392_v59 = vadd.f32 1e-05, %v2264_v6 }
 0x3d9   : > { %4436 = vperm.xlu0 %7526, %v3806_v52   ;;  %6822 = vmatprep.subr.mxu1 %v4926_v8  ;;  %v2620_v22 = vld [vmem:[%s14435_s1 + $0x2d8] sm:$0xff]  ;;  %v3639_v52 = vmul.f32 %v12934_v48, %v15321_v50  ;;  %v3640_v8 = vmul.f32 %v12934_v48, %v15322_v45  ;;  %7748 = vrsqrt.f32 %v2362_v38  ;;  %v5025_v62 = vld [vmem:[%s8211_s9 + $0x200] sm:$0xff]  ;;  %v2619_v46 = vld [vmem:[%s14435_s1 + $0x2d0] sm:$0xff] }
 0x3da   : > { %6823 = vmatpush1.msra.mxu1 %v4925_v24  ;;  %5567 = vmatprep.mubr.f32.mxu0 %v5002_v18  ;;  %v4862_v15 = vmax.f32 %v4606_v17, 0.0  ;;  %v4861_v51 = vmax.f32 %v4605_v42, 0.0  ;;  %v2779_v24 = vmul.f32 %v7739_v53, %v2651_v41  ;;  %v5003_v42 = vld [vmem:[%s8211_s9 + $0x150] sm:$0xff]  ;;  %v15323_v17 = vld [vmem:[#allocation282_spill] sm:$0xff]  ;;  %v2748_v48 = vmul.f32 %v7741_v1, %v2620_v22  ;;  %v3773_v30 = vld [vmem:[%s14436_s2 + $0x2e0] sm:$0xff] }
 0x3db   : > { %6824 = vmatprep.subr.mxu1 %v4924_v40  ;;  %v12952_v9 = vpop.permute.xlu1 %3167  ;;  %4281 = vperm.xlu1 %7527, %v3775_v43   ;;  %v2233_v43 = vmul.f32 0.0051020407, %v15323_v17  ;;  %7750 = vrsqrt.f32 %v2392_v59  ;;  %v15330_v1 = vld [vmem:[#allocation165_spill] sm:$0xff]  ;;  %v15331_v6 = vld [vmem:[#allocation163_spill] sm:$0xff] }
 0x3dc   : > { %6004 = vmatprep.mubr.f32.mxu1 %v4988_v37  ;;  %6825 = vmatpush1.msra.mxu1 %v4923_v31  ;;  %v4352_v60 = vpop.permute.xlu0 %4351  ;;  %v5026_v37 = vld [vmem:[%s8211_s9 + $0x208] sm:$0xff]  ;;  %v3577_v31 = vmul.f32 %v12952_v9, %v15324_v35  ;;  %v5041_v22 = vld [vmem:[%s8211_s9 + $0x280] sm:$0xff] }
 0x3dd   : > { %v4665_v5 = vadd.f32 %v4352_v60, %v3641_v20  ;;  %v4666_v47 = vadd.f32 %v4352_v60, %v3642_v28  ;;  %3402 = vperm.xlu0 %7526, %v2780_v49   ;;  %5568 = vmatmul.mubr.f32.gmra.mxu0 %v5001_v14  ;;  %v15325_v14 = vld [vmem:[#allocation168_spill] sm:$0xff]  ;;  %v2650_v60 = vld [vmem:[%s14435_s1 + $0x3c8] sm:$0xff] }
 0x3de   : > { %6005 = vmatmul.mubr.f32.gmra.mxu1 %v4987_v63  ;;  %6373 = vmatprep.subr.mxu0 %v4862_v15  ;;  %v3578_v15 = vmul.f32 %v12952_v9, %v15325_v14  ;;  %v7743_v20 = vpop.eup %7742  ;;  %v2618_v35 = vld [vmem:[%s14435_s1 + $0x2c8] sm:$0xff] }
 0x3df   : > { %v4921_v39 = vmax.f32 %v4665_v5, 0.0  ;;  %6374 = vmatpush1.msra.mxu0 %v4861_v51  ;;  %v4197_v12 = vpop.permute.xlu1 %4196  ;;  %3247 = vperm.xlu1 %7527, %v2749_v0   ;;  %v4922_v44 = vmax.f32 %v4666_v47, 0.0  ;;  %v5011_v51 = vld [vmem:[%s8211_s9 + $0x190] sm:$0xff]  ;;  %v2361_v5 = vadd.f32 1e-05, %v2233_v43  ;;  %v5034_v47 = vld [vmem:[%s8211_s9 + $0x248] sm:$0xff] }
 0x3e0   : > { %v4603_v4 = vadd.f32 %v4197_v12, %v3579_v25  ;;  %v4604_v55 = vadd.f32 %v4197_v12, %v3580_v29  ;;  %5573 = vmatprep.mubr.f32.mxu0 %v5010_v21  ;;  %6010 = vmatprep.mubr.f32.mxu1 %v4996_v32  ;;  %v12967_v34 = vpop.permute.xlu0 %3317  ;;  %v5020_v0 = vld [vmem:[%s8211_s9 + $0x1d8] sm:$0xff]  ;;  %v5033_v32 = vld [vmem:[%s8211_s9 + $0x240] sm:$0xff]  ;;  %v2778_v12 = vmul.f32 %v7743_v20, %v2650_v60 }
 0x3e1   : > { %4431 = vperm.xlu0 %7526, %v3805_v61   ;;  %5574 = vmatmul.mubr.f32.gmra.mxu0 %v5009_v13  ;;  %v7745_v21 = vpop.eup %7744  ;;  %v15326_v25 = vld [vmem:[#allocation232_spill] sm:$0xff]  ;;  %7752 = vrsqrt.f32 %v2361_v5 }
 0x3e2   : > { %6011 = vmatmul.mubr.f32.gmra.mxu1 %v4995_v19  ;;  %6826 = vmatprep.subr.mxu1 %v4922_v44  ;;  %v4860_v58 = vmax.f32 %v4604_v55, 0.0  ;;  %v4859_v18 = vmax.f32 %v4603_v4, 0.0  ;;  %v3637_v36 = vmul.f32 %v12967_v34, %v15326_v25  ;;  %v15327_v29 = vld [vmem:[#allocation228_spill] sm:$0xff]  ;;  %v5019_v19 = vld [vmem:[%s8211_s9 + $0x1d0] sm:$0xff]  ;;  %v15329_v4 = vld [vmem:[#allocation305_spill] sm:$0xff]  ;;  %v2747_v38 = vmul.f32 %v7745_v21, %v2619_v46 }
 0x3e3   : > { %6827 = vmatpush1.msra.mxu1 %v4921_v39  ;;  %v12986_v7 = vpop.permute.xlu1 %3162  ;;  %4276 = vperm.xlu1 %7527, %v3774_v16   ;;  %v3638_v61 = vmul.f32 %v12967_v34, %v15327_v29  ;;  %v15328_v44 = vld [vmem:[#allocation220_spill] sm:$0xff]  ;;  %v2263_v55 = vmul.f32 0.0051020407, %v15329_v4  ;;  %v15336_v21 = vld [vmem:[#allocation167_spill] sm:$0xff]  ;;  %v5057_v25 = vld [vmem:[%s8211_s9 + $0x300] sm:$0xff] }
 0x3e4   : > { %5579 = vmatprep.mubr.f32.mxu0 %v5018_v3  ;;  %6016 = vmatprep.mubr.f32.mxu1 %v5004_v11  ;;  %v4347_v27 = vpop.permute.xlu0 %4346  ;;  %v2232_v53 = vmul.f32 0.0051020407, %v15328_v44  ;;  %v5042_v3 = vld [vmem:[%s8211_s9 + $0x288] sm:$0xff]  ;;  %v5028_v11 = vld [vmem:[%s8211_s9 + $0x218] sm:$0xff]  ;;  %v3575_v54 = vmul.f32 %v12986_v7, %v15330_v1 }
 0x3e5   : > { %v4663_v23 = vadd.f32 %v4347_v27, %v3639_v52  ;;  %v4664_v40 = vadd.f32 %v4347_v27, %v3640_v8  ;;  %3397 = vperm.xlu0 %7526, %v2779_v24   ;;  %5580 = vmatmul.mubr.f32.gmra.mxu0 %v5017_v57  ;;  %v3576_v57 = vmul.f32 %v12986_v7, %v15331_v6  ;;  %v7747_v50 = vpop.eup %7746  ;;  %v5027_v8 = vld [vmem:[%s8211_s9 + $0x210] sm:$0xff]  ;;  %v2391_v24 = vadd.f32 1e-05, %v2263_v55  ;;  %v3772_v43 = vld [vmem:[%s14436_s2 + $0x2d8] sm:$0xff]  ;;  %v2649_v27 = vld [vmem:[%s14435_s1 + $0x3c0] sm:$0xff] }
 0x3e6   : > { %6017 = vmatmul.mubr.f32.gmra.mxu1 %v5003_v42  ;;  %6375 = vmatprep.subr.mxu0 %v4860_v58  ;;  %v3803_v58 = vld [vmem:[%s14436_s2 + $0x3d0] sm:$0xff]  ;;  %v15338_v6 = vld [vmem:[#allocation230_spill] sm:$0xff] }
 0x3e7   : > { %v4919_v26 = vmax.f32 %v4663_v23, 0.0  ;;  %6376 = vmatpush1.msra.mxu0 %v4859_v18  ;;  %v4192_v28 = vpop.permute.xlu1 %4191  ;;  %3242 = vperm.xlu1 %7527, %v2748_v48   ;;  %v4920_v49 = vmax.f32 %v4664_v40, 0.0  ;;  %v2360_v23 = vadd.f32 1e-05, %v2232_v53  ;;  %v5050_v40 = vld [vmem:[%s8211_s9 + $0x2c8] sm:$0xff]  ;;  %v5036_v48 = vld [vmem:[%s8211_s9 + $0x258] sm:$0xff]  ;;  %7754 = vrsqrt.f32 %v2391_v24 }
 0x3e8   : > { %v4601_v63 = vadd.f32 %v4192_v28, %v3577_v31  ;;  %v4602_v10 = vadd.f32 %v4192_v28, %v3578_v15  ;;  %5585 = vmatprep.mubr.f32.mxu0 %v5026_v37  ;;  %6022 = vmatprep.mubr.f32.mxu1 %v5012_v33  ;;  %v13001_v9 = vpop.permute.xlu0 %3312  ;;  %v7749_v37 = vpop.eup %7748  ;;  %v5049_v33 = vld [vmem:[%s8211_s9 + $0x2c0] sm:$0xff]  ;;  %v15333_v15 = vld [vmem:[#allocation120_spill] sm:$0xff]  ;;  %v5035_v28 = vld [vmem:[%s8211_s9 + $0x250] sm:$0xff] }
 0x3e9   : > { %4426 = vperm.xlu0 %7526, %v3804_v56   ;;  %5586 = vmatmul.mubr.f32.gmra.mxu0 %v5025_v62  ;;  %v15332_v31 = vld [vmem:[#allocation225_spill] sm:$0xff]  ;;  %v3636_v56 = vmul.f32 %v13001_v9, %v15333_v15  ;;  %7756 = vrsqrt.f32 %v2360_v23  ;;  %v2746_v5 = vmul.f32 %v7749_v37, %v2618_v35  ;;  %v7751_v29 = vpop.eup %7750  ;;  %v3771_v55 = vld [vmem:[%s14436_s2 + $0x2d0] sm:$0xff] }
 0x3ea   : > { %6023 = vmatmul.mubr.f32.gmra.mxu1 %v5011_v51  ;;  %6828 = vmatprep.subr.mxu1 %v4920_v49  ;;  %v4858_v2 = vmax.f32 %v4602_v10, 0.0  ;;  %v4857_v13 = vmax.f32 %v4601_v63, 0.0  ;;  %v3635_v14 = vmul.f32 %v13001_v9, %v15332_v31  ;;  %v15334_v51 = vld [vmem:[#allocation280_spill] sm:$0xff]  ;;  %v15335_v63 = vld [vmem:[#allocation302_spill] sm:$0xff]  ;;  %v15342_v37 = vld [vmem:[#allocation161_spill] sm:$0xff] }
 0x3eb   : > { %6829 = vmatpush1.msra.mxu1 %v4919_v26  ;;  %v13019_v39 = vpop.permute.xlu1 %3157  ;;  %4271 = vperm.xlu1 %7527, %v3773_v30   ;;  %v2777_v26 = vmul.f32 %v7747_v50, %v2649_v27  ;;  %v2231_v49 = vmul.f32 0.0051020407, %v15334_v51  ;;  %v2262_v10 = vmul.f32 0.0051020407, %v15335_v63  ;;  %v5073_v31 = vld [vmem:[%s8211_s9 + $0x380] sm:$0xff]  ;;  %v3770_v63 = vld [vmem:[%s14436_s2 + $0x2c8] sm:$0xff] }
 0x3ec   : > { %5591 = vmatprep.mubr.f32.mxu0 %v5034_v47  ;;  %6028 = vmatprep.mubr.f32.mxu1 %v5020_v0  ;;  %v4342_v16 = vpop.permute.xlu0 %4341  ;;  %v5058_v47 = vld [vmem:[%s8211_s9 + $0x308] sm:$0xff]  ;;  %v5044_v0 = vld [vmem:[%s8211_s9 + $0x298] sm:$0xff] }
 0x3ed   : > { %v4661_v41 = vadd.f32 %v4342_v16, %v3637_v36  ;;  %v4662_v34 = vadd.f32 %v4342_v16, %v3638_v61  ;;  %3392 = vperm.xlu0 %7526, %v2778_v12   ;;  %5592 = vmatmul.mubr.f32.gmra.mxu0 %v5033_v32  ;;  %v3573_v32 = vmul.f32 %v13019_v39, %v15336_v21  ;;  %v3802_v36 = vld [vmem:[%s14436_s2 + $0x3c8] sm:$0xff]  ;;  %v2390_v44 = vadd.f32 1e-05, %v2262_v10  ;;  %v2648_v16 = vld [vmem:[%s14435_s1 + $0x3b8] sm:$0xff] }
 0x3ee   : > { %6029 = vmatmul.mubr.f32.gmra.mxu1 %v5019_v19  ;;  %6377 = vmatprep.subr.mxu0 %v4858_v2  ;;  %v15337_v2 = vld [vmem:[#allocation164_spill] sm:$0xff]  ;;  %v5043_v19 = vld [vmem:[%s8211_s9 + $0x290] sm:$0xff] }
 0x3ef   : > { %v4917_v52 = vmax.f32 %v4661_v41, 0.0  ;;  %6378 = vmatpush1.msra.mxu0 %v4857_v13  ;;  %v4187_v45 = vpop.permute.xlu1 %4186  ;;  %3237 = vperm.xlu1 %7527, %v2747_v38   ;;  %v4918_v18 = vmax.f32 %v4662_v34, 0.0  ;;  %v3574_v46 = vmul.f32 %v13019_v39, %v15337_v2  ;;  %v2359_v41 = vadd.f32 1e-05, %v2231_v49  ;;  %v5066_v34 = vld [vmem:[%s8211_s9 + $0x348] sm:$0xff]  ;;  %v5052_v38 = vld [vmem:[%s8211_s9 + $0x2d8] sm:$0xff] }
 0x3f0   : > { %v4599_v42 = vadd.f32 %v4187_v45, %v3575_v54  ;;  %v4600_v7 = vadd.f32 %v4187_v45, %v3576_v57  ;;  %5597 = vmatprep.mubr.f32.mxu0 %v5042_v3  ;;  %6034 = vmatprep.mubr.f32.mxu1 %v5028_v11  ;;  %v13035_v17 = vpop.permute.xlu0 %3307  ;;  %v7753_v3 = vpop.eup %7752  ;;  %v5065_v11 = vld [vmem:[%s8211_s9 + $0x340] sm:$0xff]  ;;  %v5051_v45 = vld [vmem:[%s8211_s9 + $0x2d0] sm:$0xff]  ;;  %7758 = vrsqrt.f32 %v2390_v44  ;;  %v15347_v44 = vld [vmem:[#allocation300_spill] sm:$0xff] }
 0x3f1   : > { %4421 = vperm.xlu0 %7526, %v3803_v58   ;;  %5598 = vmatmul.mubr.f32.gmra.mxu0 %v5041_v22  ;;  %v2617_v54 = vld [vmem:[%s14435_s1 + $0x2c0] sm:$0xff]  ;;  %v3633_v57 = vmul.f32 %v13035_v17, %v15338_v6  ;;  %v15339_v58 = vld [vmem:[#allocation226_spill] sm:$0xff]  ;;  %7760 = vrsqrt.f32 %v2359_v41  ;;  %v15344_v2 = vld [vmem:[#allocation223_spill] sm:$0xff] }
 0x3f2   : > { %6035 = vmatmul.mubr.f32.gmra.mxu1 %v5027_v8  ;;  %6830 = vmatprep.subr.mxu1 %v4918_v18  ;;  %v4856_v59 = vmax.f32 %v4600_v7, 0.0  ;;  %v4855_v62 = vmax.f32 %v4599_v42, 0.0  ;;  %v3634_v22 = vmul.f32 %v13035_v17, %v15339_v58  ;;  %v2776_v8 = vmul.f32 %v7751_v29, %v2648_v16  ;;  %v15340_v18 = vld [vmem:[#allocation112_spill] sm:$0xff]  ;;  %v15341_v42 = vld [vmem:[#allocation303_spill] sm:$0xff]  ;;  %v5089_v6 = vld [vmem:[%s8211_s9 + $0x400] sm:$0xff] }
 0x3f3   : > { %6831 = vmatpush1.msra.mxu1 %v4917_v52  ;;  %v13053_v20 = vpop.permute.xlu1 %3152  ;;  %4266 = vperm.xlu1 %7527, %v3772_v43   ;;  %v2230_v24 = vmul.f32 0.0051020407, %v15340_v18  ;;  %v2261_v7 = vmul.f32 0.0051020407, %v15341_v42  ;;  %v2745_v23 = vmul.f32 %v7753_v3, %v2617_v54  ;;  %v15348_v3 = vld [vmem:[#allocation162_spill] sm:$0xff]  ;;  %v3769_v42 = vld [vmem:[%s14436_s2 + $0x2c0] sm:$0xff] }
 0x3f4   : > { %5603 = vmatprep.mubr.f32.mxu0 %v5050_v40  ;;  %6040 = vmatprep.mubr.f32.mxu1 %v5036_v48  ;;  %v4337_v30 = vpop.permute.xlu0 %4336  ;;  %v5074_v40 = vld [vmem:[%s8211_s9 + $0x388] sm:$0xff]  ;;  %v5060_v48 = vld [vmem:[%s8211_s9 + $0x318] sm:$0xff]  ;;  %v7755_v10 = vpop.eup %7754 }
 0x3f5   : > { %v4659_v9 = vadd.f32 %v4337_v30, %v3635_v14  ;;  %v4660_v60 = vadd.f32 %v4337_v30, %v3636_v56  ;;  %3387 = vperm.xlu0 %7526, %v2777_v26   ;;  %5604 = vmatmul.mubr.f32.gmra.mxu0 %v5049_v33  ;;  %v3571_v33 = vmul.f32 %v13053_v20, %v15342_v37  ;;  %v3801_v14 = vld [vmem:[%s14436_s2 + $0x3c0] sm:$0xff]  ;;  %v5059_v26 = vld [vmem:[%s8211_s9 + $0x310] sm:$0xff]  ;;  %v2358_v30 = vadd.f32 1e-05, %v2230_v24 }
 0x3f6   : > { %6041 = vmatmul.mubr.f32.gmra.mxu1 %v5035_v28  ;;  %6379 = vmatprep.subr.mxu0 %v4856_v59  ;;  %v15343_v59 = vld [vmem:[#allocation159_spill] sm:$0xff]  ;;  %v2389_v28 = vadd.f32 1e-05, %v2261_v7  ;;  %v5097_v37 = vld [vmem:[%s8211_s9 + $0x440] sm:$0xff] }
 0x3f7   : > { %v4915_v61 = vmax.f32 %v4659_v9, 0.0  ;;  %v4916_v13 = vmax.f32 %v4660_v60, 0.0  ;;  %6380 = vmatpush1.msra.mxu0 %v4855_v62  ;;  %v4182_v12 = vpop.permute.xlu1 %4181  ;;  %3232 = vperm.xlu1 %7527, %v2746_v5   ;;  %v3572_v35 = vmul.f32 %v13053_v20, %v15343_v59  ;;  %v5082_v9 = vld [vmem:[%s8211_s9 + $0x3c8] sm:$0xff]  ;;  %v5068_v60 = vld [vmem:[%s8211_s9 + $0x358] sm:$0xff]  ;;  %v2647_v5 = vld [vmem:[%s14435_s1 + $0x3b0] sm:$0xff] }
 0x3f8   : > { %v4597_v53 = vadd.f32 %v4182_v12, %v3573_v32  ;;  %v4598_v39 = vadd.f32 %v4182_v12, %v3574_v46  ;;  %5609 = vmatprep.mubr.f32.mxu0 %v5058_v47  ;;  %6046 = vmatprep.mubr.f32.mxu1 %v5044_v0  ;;  %v13069_v4 = vpop.permute.xlu0 %3302  ;;  %v7757_v47 = vpop.eup %7756  ;;  %v5081_v0 = vld [vmem:[%s8211_s9 + $0x3c0] sm:$0xff]  ;;  %v2616_v32 = vld [vmem:[%s14435_s1 + $0x2b8] sm:$0xff]  ;;  %7762 = vrsqrt.f32 %v2389_v28 }
 0x3f9   : > { %5610 = vmatmul.mubr.f32.gmra.mxu0 %v5057_v25  ;;  %4416 = vperm.xlu0 %7526, %v3802_v36   ;;  %v3631_v46 = vmul.f32 %v13069_v4, %v15344_v2  ;;  %v15345_v25 = vld [vmem:[#allocation221_spill] sm:$0xff]  ;;  %v15346_v12 = vld [vmem:[#allocation216_spill] sm:$0xff]  ;;  %7764 = vrsqrt.f32 %v2358_v30  ;;  %v2744_v41 = vmul.f32 %v7757_v47, %v2616_v32 }
 0x3fa   : > { %6047 = vmatmul.mubr.f32.gmra.mxu1 %v5043_v19  ;;  %6832 = vmatprep.subr.mxu1 %v4916_v13  ;;  %v4854_v1 = vmax.f32 %v4598_v39, 0.0  ;;  %v4853_v50 = vmax.f32 %v4597_v53, 0.0  ;;  %v3632_v36 = vmul.f32 %v13069_v4, %v15345_v25  ;;  %v5067_v13 = vld [vmem:[%s8211_s9 + $0x350] sm:$0xff]  ;;  %v2229_v19 = vmul.f32 0.0051020407, %v15346_v12  ;;  %v15350_v59 = vld [vmem:[#allocation224_spill] sm:$0xff] }
 0x3fb   : > { %6833 = vmatpush1.msra.mxu1 %v4915_v61  ;;  %v13087_v52 = vpop.permute.xlu1 %3147  ;;  %4261 = vperm.xlu1 %7527, %v3771_v55   ;;  %v2260_v53 = vmul.f32 0.0051020407, %v15347_v44  ;;  %v2775_v55 = vmul.f32 %v7755_v10, %v2647_v5  ;;  %v5092_v5 = vld [vmem:[%s8211_s9 + $0x418] sm:$0xff]  ;;  %v15354_v47 = vld [vmem:[#allocation157_spill] sm:$0xff] }
 0x3fc   : > { %5615 = vmatprep.mubr.f32.mxu0 %v5066_v34  ;;  %6052 = vmatprep.mubr.f32.mxu1 %v5052_v38  ;;  %v4332_v43 = vpop.permute.xlu0 %4331  ;;  %v5090_v34 = vld [vmem:[%s8211_s9 + $0x408] sm:$0xff]  ;;  %v5076_v38 = vld [vmem:[%s8211_s9 + $0x398] sm:$0xff]  ;;  %v5105_v2 = vld [vmem:[%s8211_s9 + $0x480] sm:$0xff] }
 0x3fd   : > { %v4657_v17 = vadd.f32 %v4332_v43, %v3633_v57  ;;  %v4658_v27 = vadd.f32 %v4332_v43, %v3634_v22  ;;  %5616 = vmatmul.mubr.f32.gmra.mxu0 %v5065_v11  ;;  %3382 = vperm.xlu0 %7526, %v2776_v8   ;;  %v3569_v11 = vmul.f32 %v13087_v52, %v15348_v3  ;;  %v2388_v8 = vadd.f32 1e-05, %v2260_v53  ;;  %v7759_v7 = vpop.eup %7758  ;;  %v3768_v53 = vld [vmem:[%s14436_s2 + $0x2b8] sm:$0xff]  ;;  %v5113_v3 = vld [vmem:[%s8211_s9 + $0x4c0] sm:$0xff] }
 0x3fe   : > { %6053 = vmatmul.mubr.f32.gmra.mxu1 %v5051_v45  ;;  %6381 = vmatprep.subr.mxu0 %v4854_v1  ;;  %v15349_v1 = vld [vmem:[#allocation160_spill] sm:$0xff]  ;;  %v2357_v43 = vadd.f32 1e-05, %v2229_v19 }
 0x3ff   : > { %v4913_v15 = vmax.f32 %v4657_v17, 0.0  ;;  %v4914_v56 = vmax.f32 %v4658_v27, 0.0  ;;  %6382 = vmatpush1.msra.mxu0 %v4853_v50  ;;  %v4177_v62 = vpop.permute.xlu1 %4176  ;;  %3227 = vperm.xlu1 %7527, %v2745_v23   ;;  %v3570_v54 = vmul.f32 %v13087_v52, %v15349_v1  ;;  %v5075_v50 = vld [vmem:[%s8211_s9 + $0x390] sm:$0xff]  ;;  %v3800_v45 = vld [vmem:[%s14436_s2 + $0x3b8] sm:$0xff]  ;;  %v5098_v17 = vld [vmem:[%s8211_s9 + $0x448] sm:$0xff]  ;;  %7766 = vrsqrt.f32 %v2388_v8 }
 0x400   : > { %v4595_v51 = vadd.f32 %v4177_v62, %v3571_v33  ;;  %v4596_v49 = vadd.f32 %v4177_v62, %v3572_v35  ;;  %5621 = vmatprep.mubr.f32.mxu0 %v5074_v40  ;;  %6058 = vmatprep.mubr.f32.mxu1 %v5060_v48  ;;  %v13103_v20 = vpop.permute.xlu0 %3297  ;;  %v5084_v27 = vld [vmem:[%s8211_s9 + $0x3d8] sm:$0xff]  ;;  %v2646_v23 = vld [vmem:[%s14435_s1 + $0x3a8] sm:$0xff]  ;;  %v7761_v40 = vpop.eup %7760  ;;  %v2615_v33 = vld [vmem:[%s14435_s1 + $0x2b0] sm:$0xff]  ;;  %7768 = vrsqrt.f32 %v2357_v43 }
 0x401   : > { %5622 = vmatmul.mubr.f32.gmra.mxu0 %v5073_v31  ;;  %4411 = vperm.xlu0 %7526, %v3801_v14   ;;  %v3629_v35 = vmul.f32 %v13103_v20, %v15350_v59  ;;  %v15351_v31 = vld [vmem:[#allocation222_spill] sm:$0xff]  ;;  %v5083_v62 = vld [vmem:[%s8211_s9 + $0x3d0] sm:$0xff]  ;;  %v2774_v10 = vmul.f32 %v7759_v7, %v2646_v23  ;;  %v5108_v23 = vld [vmem:[%s8211_s9 + $0x498] sm:$0xff] }
 0x402   : > { %6059 = vmatmul.mubr.f32.gmra.mxu1 %v5059_v26  ;;  %6834 = vmatprep.subr.mxu1 %v4914_v56  ;;  %v4852_v21 = vmax.f32 %v4596_v49, 0.0  ;;  %v4851_v29 = vmax.f32 %v4595_v51, 0.0  ;;  %v3630_v14 = vmul.f32 %v13103_v20, %v15351_v31  ;;  %v15352_v26 = vld [vmem:[#allocation206_spill] sm:$0xff]  ;;  %v15353_v51 = vld [vmem:[#allocation301_spill] sm:$0xff]  ;;  %v15356_v1 = vld [vmem:[#allocation115_spill] sm:$0xff] }
 0x403   : > { %6835 = vmatpush1.msra.mxu1 %v4913_v15  ;;  %v13121_v61 = vpop.permute.xlu1 %3142  ;;  %4256 = vperm.xlu1 %7527, %v3770_v63   ;;  %v2228_v28 = vmul.f32 0.0051020407, %v15352_v26  ;;  %v2259_v49 = vmul.f32 0.0051020407, %v15353_v51  ;;  %v5121_v59 = vld [vmem:[%s8211_s9 + $0x500] sm:$0xff] }
 0x404   : > { %5627 = vmatprep.mubr.f32.mxu0 %v5082_v9  ;;  %6064 = vmatprep.mubr.f32.mxu1 %v5068_v60  ;;  %v4327_v39 = vpop.permute.xlu0 %4326  ;;  %v2743_v9 = vmul.f32 %v7761_v40, %v2615_v33  ;;  %v5106_v60 = vld [vmem:[%s8211_s9 + $0x488] sm:$0xff] }
 0x405   : > { %v4655_v4 = vadd.f32 %v4327_v39, %v3631_v46  ;;  %v4656_v16 = vadd.f32 %v4327_v39, %v3632_v36  ;;  %5628 = vmatmul.mubr.f32.gmra.mxu0 %v5081_v0  ;;  %6383 = vmatprep.subr.mxu0 %v4852_v21  ;;  %v3567_v0 = vmul.f32 %v13121_v61, %v15354_v47  ;;  %v15355_v21 = vld [vmem:[#allocation154_spill] sm:$0xff]  ;;  %v2387_v12 = vadd.f32 1e-05, %v2259_v49  ;;  %v7763_v39 = vpop.eup %7762  ;;  %v3767_v49 = vld [vmem:[%s14436_s2 + $0x2b0] sm:$0xff]  ;;  %v5129_v47 = vld [vmem:[%s8211_s9 + $0x540] sm:$0xff] }
 0x406   : > { %6065 = vmatmul.mubr.f32.gmra.mxu1 %v5067_v13  ;;  %3377 = vperm.xlu0 %7526, %v2775_v55   ;;  %v3568_v32 = vmul.f32 %v13121_v61, %v15355_v21  ;;  %v3799_v13 = vld [vmem:[%s14436_s2 + $0x3b0] sm:$0xff]  ;;  %v2356_v55 = vadd.f32 1e-05, %v2228_v28  ;;  %v15360_v40 = vld [vmem:[#allocation158_spill] sm:$0xff] }
 0x407   : > { %v4911_v57 = vmax.f32 %v4655_v4, 0.0  ;;  %v4912_v58 = vmax.f32 %v4656_v16, 0.0  ;;  %6384 = vmatpush1.msra.mxu0 %v4851_v29  ;;  %v4172_v22 = vpop.permute.xlu1 %4171  ;;  %3222 = vperm.xlu1 %7527, %v2744_v41   ;;  %v5091_v29 = vld [vmem:[%s8211_s9 + $0x410] sm:$0xff]  ;;  %v5114_v4 = vld [vmem:[%s8211_s9 + $0x4c8] sm:$0xff]  ;;  %v5100_v16 = vld [vmem:[%s8211_s9 + $0x458] sm:$0xff]  ;;  %7770 = vrsqrt.f32 %v2387_v12 }
 0x408   : > { %v4593_v18 = vadd.f32 %v4172_v22, %v3569_v11  ;;  %v4594_v24 = vadd.f32 %v4172_v22, %v3570_v54  ;;  %5633 = vmatprep.mubr.f32.mxu0 %v5090_v34  ;;  %6070 = vmatprep.mubr.f32.mxu1 %v5076_v38  ;;  %v13137_v52 = vpop.permute.xlu0 %3292  ;;  %v2645_v41 = vld [vmem:[%s14435_s1 + $0x3a0] sm:$0xff]  ;;  %v7765_v34 = vpop.eup %7764  ;;  %v2614_v11 = vld [vmem:[%s14435_s1 + $0x2a8] sm:$0xff]  ;;  %7772 = vrsqrt.f32 %v2356_v55  ;;  %v15362_v21 = vld [vmem:[#allocation219_spill] sm:$0xff] }
 0x409   : > { %5634 = vmatmul.mubr.f32.gmra.mxu0 %v5089_v6  ;;  %6836 = vmatprep.subr.mxu1 %v4912_v58  ;;  %v3627_v54 = vmul.f32 %v13137_v52, %v15356_v1  ;;  %v15357_v6 = vld [vmem:[#allocation215_spill] sm:$0xff]  ;;  %v2773_v7 = vmul.f32 %v7763_v39, %v2645_v41  ;;  %v5138_v55 = vld [vmem:[%s8211_s9 + $0x588] sm:$0xff] }
 0x40a   : > { %v4850_v48 = vmax.f32 %v4594_v24, 0.0  ;;  %6071 = vmatmul.mubr.f32.gmra.mxu1 %v5075_v50  ;;  %4406 = vperm.xlu0 %7526, %v3800_v45   ;;  %v4849_v15 = vmax.f32 %v4593_v18, 0.0  ;;  %v5099_v50 = vld [vmem:[%s8211_s9 + $0x450] sm:$0xff]  ;;  %v15359_v18 = vld [vmem:[#allocation298_spill] sm:$0xff] }
 0x40b   : > { %6837 = vmatpush1.msra.mxu1 %v4911_v57  ;;  %v13155_v56 = vpop.permute.xlu1 %3137  ;;  %4251 = vperm.xlu1 %7527, %v3769_v42   ;;  %v3628_v57 = vmul.f32 %v13137_v52, %v15357_v6  ;;  %v15358_v45 = vld [vmem:[#allocation107_spill] sm:$0xff]  ;;  %v2258_v24 = vmul.f32 0.0051020407, %v15359_v18 }
 0x40c   : > { %5639 = vmatprep.mubr.f32.mxu0 %v5098_v17  ;;  %6076 = vmatprep.mubr.f32.mxu1 %v5084_v27  ;;  %v4322_v63 = vpop.permute.xlu0 %4321  ;;  %v2227_v8 = vmul.f32 0.0051020407, %v15358_v45  ;;  %v2742_v17 = vmul.f32 %v7765_v34, %v2614_v11  ;;  %v5122_v27 = vld [vmem:[%s8211_s9 + $0x508] sm:$0xff]  ;;  %v15366_v34 = vld [vmem:[#allocation151_spill] sm:$0xff] }
 0x40d   : > { %v4653_v20 = vadd.f32 %v4322_v63, %v3629_v35  ;;  %v4654_v30 = vadd.f32 %v4322_v63, %v3630_v14  ;;  %5640 = vmatmul.mubr.f32.gmra.mxu0 %v5097_v37  ;;  %6385 = vmatprep.subr.mxu0 %v4850_v48  ;;  %v3565_v48 = vmul.f32 %v13155_v56, %v15360_v40  ;;  %v15361_v37 = vld [vmem:[#allocation156_spill] sm:$0xff]  ;;  %v2386_v26 = vadd.f32 1e-05, %v2258_v24  ;;  %v7767_v63 = vpop.eup %7766  ;;  %v5123_v6 = vld [vmem:[%s8211_s9 + $0x510] sm:$0xff]  ;;  %v3766_v45 = vld [vmem:[%s14436_s2 + $0x2a8] sm:$0xff] }
 0x40e   : > { %6077 = vmatmul.mubr.f32.gmra.mxu1 %v5083_v62  ;;  %3372 = vperm.xlu0 %7526, %v2774_v10   ;;  %v3566_v33 = vmul.f32 %v13155_v56, %v15361_v37  ;;  %v3798_v62 = vld [vmem:[%s14436_s2 + $0x3a8] sm:$0xff]  ;;  %v2355_v10 = vadd.f32 1e-05, %v2227_v8 }
 0x40f   : > { %v4909_v46 = vmax.f32 %v4653_v20, 0.0  ;;  %v4910_v25 = vmax.f32 %v4654_v30, 0.0  ;;  %6386 = vmatpush1.msra.mxu0 %v4849_v15  ;;  %v4167_v36 = vpop.permute.xlu1 %4166  ;;  %3217 = vperm.xlu1 %7527, %v2743_v9   ;;  %v5107_v15 = vld [vmem:[%s8211_s9 + $0x490] sm:$0xff]  ;;  %v5130_v20 = vld [vmem:[%s8211_s9 + $0x548] sm:$0xff]  ;;  %v5116_v30 = vld [vmem:[%s8211_s9 + $0x4d8] sm:$0xff]  ;;  %7774 = vrsqrt.f32 %v2386_v26 }
 0x410   : > { %v4591_v19 = vadd.f32 %v4167_v36, %v3567_v0  ;;  %v4592_v44 = vadd.f32 %v4167_v36, %v3568_v32  ;;  %5645 = vmatprep.mubr.f32.mxu0 %v5106_v60  ;;  %6082 = vmatprep.mubr.f32.mxu1 %v5092_v5  ;;  %v13171_v61 = vpop.permute.xlu0 %3287  ;;  %v2644_v9 = vld [vmem:[%s14435_s1 + $0x398] sm:$0xff]  ;;  %v7769_v60 = vpop.eup %7768  ;;  %v2613_v0 = vld [vmem:[%s14435_s1 + $0x2a0] sm:$0xff]  ;;  %7776 = vrsqrt.f32 %v2355_v10  ;;  %v5146_v24 = vld [vmem:[%s8211_s9 + $0x5c8] sm:$0xff] }
 0x411   : > { %5646 = vmatmul.mubr.f32.gmra.mxu0 %v5105_v2  ;;  %6838 = vmatprep.subr.mxu1 %v4910_v25  ;;  %v3625_v32 = vmul.f32 %v13171_v61, %v15362_v21  ;;  %v15363_v2 = vld [vmem:[#allocation218_spill] sm:$0xff]  ;;  %v3796_v21 = vld [vmem:[%s14436_s2 + $0x398] sm:$0xff] }
 0x412   : > { %v4848_v38 = vmax.f32 %v4592_v44, 0.0  ;;  %6083 = vmatmul.mubr.f32.gmra.mxu1 %v5091_v29  ;;  %4401 = vperm.xlu0 %7526, %v3799_v13   ;;  %v4847_v58 = vmax.f32 %v4591_v19, 0.0  ;;  %v5115_v29 = vld [vmem:[%s8211_s9 + $0x4d0] sm:$0xff]  ;;  %v2772_v44 = vmul.f32 %v7767_v63, %v2644_v9  ;;  %v5153_v9 = vld [vmem:[%s8211_s9 + $0x600] sm:$0xff] }
 0x413   : > { %6839 = vmatpush1.msra.mxu1 %v4909_v46  ;;  %v13189_v22 = vpop.permute.xlu1 %3132  ;;  %4246 = vperm.xlu1 %7527, %v3768_v53   ;;  %v3626_v46 = vmul.f32 %v13171_v61, %v15363_v2  ;;  %v15364_v13 = vld [vmem:[#allocation203_spill] sm:$0xff]  ;;  %v2741_v61 = vmul.f32 %v7769_v60, %v2613_v0 }
 0x414   : > { %5651 = vmatprep.mubr.f32.mxu0 %v5114_v4  ;;  %6088 = vmatprep.mubr.f32.mxu1 %v5100_v16  ;;  %v4317_v42 = vpop.permute.xlu0 %4316  ;;  %v2226_v12 = vmul.f32 0.0051020407, %v15364_v13  ;;  %v5124_v4 = vld [vmem:[%s8211_s9 + $0x518] sm:$0xff]  ;;  %v15365_v16 = vld [vmem:[#allocation153_spill] sm:$0xff]  ;;  %v7771_v8 = vpop.eup %7770  ;;  %v15370_v63 = vld [vmem:[#allocation155_spill] sm:$0xff] }
 0x415   : > { %v4651_v52 = vadd.f32 %v4317_v42, %v3627_v54  ;;  %v4652_v43 = vadd.f32 %v4317_v42, %v3628_v57  ;;  %5652 = vmatmul.mubr.f32.gmra.mxu0 %v5113_v3  ;;  %6387 = vmatprep.subr.mxu0 %v4848_v38  ;;  %v3563_v41 = vmul.f32 %v13189_v22, %v15365_v16  ;;  %v5137_v3 = vld [vmem:[%s8211_s9 + $0x580] sm:$0xff]  ;;  %v5132_v42 = vld [vmem:[%s8211_s9 + $0x558] sm:$0xff]  ;;  %v5139_v0 = vld [vmem:[%s8211_s9 + $0x590] sm:$0xff] }
 0x416   : > { %6089 = vmatmul.mubr.f32.gmra.mxu1 %v5099_v50  ;;  %3367 = vperm.xlu0 %7526, %v2773_v7   ;;  %v3564_v38 = vmul.f32 %v13189_v22, %v15366_v34  ;;  %v3797_v57 = vld [vmem:[%s14436_s2 + $0x3a0] sm:$0xff]  ;;  %v2354_v18 = vadd.f32 1e-05, %v2226_v12  ;;  %v2643_v7 = vld [vmem:[%s14435_s1 + $0x390] sm:$0xff]  ;;  %v5162_v13 = vld [vmem:[%s8211_s9 + $0x648] sm:$0xff] }
 0x417   : > { %v4907_v35 = vmax.f32 %v4651_v52, 0.0  ;;  %v4908_v31 = vmax.f32 %v4652_v43, 0.0  ;;  %6388 = vmatpush1.msra.mxu0 %v4847_v58  ;;  %v4162_v14 = vpop.permute.xlu1 %4161  ;;  %3212 = vperm.xlu1 %7527, %v2742_v17   ;;  %v7773_v52 = vpop.eup %7772  ;;  %v5145_v17 = vld [vmem:[%s8211_s9 + $0x5c0] sm:$0xff]  ;;  %v5148_v12 = vld [vmem:[%s8211_s9 + $0x5d8] sm:$0xff] }
 0x418   : > { %v4589_v28 = vadd.f32 %v4162_v14, %v3565_v48  ;;  %v4590_v51 = vadd.f32 %v4162_v14, %v3566_v33  ;;  %5657 = vmatprep.mubr.f32.mxu0 %v5122_v27  ;;  %6094 = vmatprep.mubr.f32.mxu1 %v5108_v23  ;;  %v13205_v56 = vpop.permute.xlu0 %3282  ;;  %v2612_v27 = vld [vmem:[%s14435_s1 + $0x298] sm:$0xff]  ;;  %v15367_v23 = vld [vmem:[#allocation214_spill] sm:$0xff]  ;;  %v15368_v48 = vld [vmem:[#allocation213_spill] sm:$0xff]  ;;  %7778 = vrsqrt.f32 %v2354_v18 }
 0x419   : > { %5658 = vmatmul.mubr.f32.gmra.mxu0 %v5121_v59  ;;  %6840 = vmatprep.subr.mxu1 %v4908_v31  ;;  %v3623_v40 = vmul.f32 %v13205_v56, %v15367_v23  ;;  %v3624_v37 = vmul.f32 %v13205_v56, %v15368_v48  ;;  %v15369_v31 = vld [vmem:[#allocation118_spill] sm:$0xff]  ;;  %v15373_v16 = vld [vmem:[#allocation9_spill] sm:$0xff]  ;;  %v3795_v23 = vld [vmem:[%s14436_s2 + $0x390] sm:$0xff] }
 0x41a   : > { %v4846_v5 = vmax.f32 %v4590_v51, 0.0  ;;  %6095 = vmatmul.mubr.f32.gmra.mxu1 %v5107_v15  ;;  %4396 = vperm.xlu0 %7526, %v3798_v62   ;;  %v4845_v25 = vmax.f32 %v4589_v28, 0.0  ;;  %v2225_v14 = vmul.f32 0.0051020407, %v15369_v31  ;;  %v2771_v62 = vmul.f32 %v7771_v8, %v2643_v7  ;;  %v5154_v56 = vld [vmem:[%s8211_s9 + $0x608] sm:$0xff]  ;;  %v15375_v8 = vld [vmem:[#allocation149_spill] sm:$0xff] }
 0x41b   : > { %6841 = vmatpush1.msra.mxu1 %v4907_v35  ;;  %v13223_v36 = vpop.permute.xlu1 %3127  ;;  %4241 = vperm.xlu1 %7527, %v3767_v49   ;;  %v5131_v35 = vld [vmem:[%s8211_s9 + $0x550] sm:$0xff]  ;;  %v2740_v51 = vmul.f32 %v7773_v52, %v2612_v27  ;;  %v5140_v49 = vld [vmem:[%s8211_s9 + $0x598] sm:$0xff]  ;;  %v5169_v7 = vld [vmem:[%s8211_s9 + $0x680] sm:$0xff] }
 0x41c   : > { %5663 = vmatprep.mubr.f32.mxu0 %v5130_v20  ;;  %6100 = vmatprep.mubr.f32.mxu1 %v5116_v30  ;;  %v4312_v19 = vpop.permute.xlu0 %4311  ;;  %v3561_v10 = vmul.f32 %v13223_v36, %v15370_v63  ;;  %v15371_v20 = vld [vmem:[#allocation152_spill] sm:$0xff]  ;;  %v5155_v27 = vld [vmem:[%s8211_s9 + $0x610] sm:$0xff] }
 0x41d   : > { %v4649_v53 = vadd.f32 %v4312_v19, %v3625_v32  ;;  %v4650_v39 = vadd.f32 %v4312_v19, %v3626_v46  ;;  %5664 = vmatmul.mubr.f32.gmra.mxu0 %v5129_v47  ;;  %6389 = vmatprep.subr.mxu0 %v4846_v5  ;;  %v3562_v30 = vmul.f32 %v13223_v36, %v15371_v20  ;;  %v2353_v32 = vadd.f32 1e-05, %v2225_v14  ;;  %v3765_v36 = vld [vmem:[%s14436_s2 + $0x2a0] sm:$0xff]  ;;  %v2642_v19 = vld [vmem:[%s14435_s1 + $0x388] sm:$0xff]  ;;  %v5164_v31 = vld [vmem:[%s8211_s9 + $0x658] sm:$0xff] }
 0x41e   : > { %6101 = vmatmul.mubr.f32.gmra.mxu1 %v5115_v29  ;;  %3362 = vperm.xlu0 %7526, %v2772_v44   ;;  %v7775_v29 = vpop.eup %7774  ;;  %v5163_v20 = vld [vmem:[%s8211_s9 + $0x650] sm:$0xff] }
 0x41f   : > { %v4905_v11 = vmax.f32 %v4649_v53, 0.0  ;;  %v4906_v1 = vmax.f32 %v4650_v39, 0.0  ;;  %6390 = vmatpush1.msra.mxu0 %v4845_v25  ;;  %v4157_v54 = vpop.permute.xlu1 %4156  ;;  %3207 = vperm.xlu1 %7527, %v2741_v61   ;;  %v7777_v44 = vpop.eup %7776  ;;  %v5161_v39 = vld [vmem:[%s8211_s9 + $0x640] sm:$0xff]  ;;  %v2611_v61 = vld [vmem:[%s14435_s1 + $0x290] sm:$0xff]  ;;  %7780 = vrsqrt.f32 %v2353_v32  ;;  %v15379_v32 = vld [vmem:[#allocation150_spill] sm:$0xff] }
 0x420   : > { %v4587_v58 = vadd.f32 %v4157_v54, %v3563_v41  ;;  %v4588_v50 = vadd.f32 %v4157_v54, %v3564_v38  ;;  %5669 = vmatprep.mubr.f32.mxu0 %v5138_v55  ;;  %6106 = vmatprep.mubr.f32.mxu1 %v5124_v4  ;;  %v13238_v22 = vpop.permute.xlu0 %3277  ;;  %v15372_v55 = vld [vmem:[#allocation217_spill] sm:$0xff]  ;;  %v15374_v54 = vld [vmem:[#allocation299_spill] sm:$0xff] }
 0x421   : > { %5670 = vmatmul.mubr.f32.gmra.mxu0 %v5137_v3  ;;  %6842 = vmatprep.subr.mxu1 %v4906_v1  ;;  %v3621_v4 = vmul.f32 %v13238_v22, %v15372_v55  ;;  %v3622_v41 = vmul.f32 %v13238_v22, %v15373_v16  ;;  %v5147_v3 = vld [vmem:[%s8211_s9 + $0x5d0] sm:$0xff]  ;;  %v2770_v1 = vmul.f32 %v7775_v29, %v2642_v19  ;;  %v5170_v22 = vld [vmem:[%s8211_s9 + $0x688] sm:$0xff] }
 0x422   : > { %v4844_v43 = vmax.f32 %v4588_v50, 0.0  ;;  %6107 = vmatmul.mubr.f32.gmra.mxu1 %v5123_v6  ;;  %4391 = vperm.xlu0 %7526, %v3797_v57   ;;  %v4843_v33 = vmax.f32 %v4587_v58, 0.0  ;;  %v2257_v6 = vmul.f32 0.0051020407, %v15374_v54  ;;  %v2739_v50 = vmul.f32 %v7777_v44, %v2611_v61  ;;  %v5171_v19 = vld [vmem:[%s8211_s9 + $0x690] sm:$0xff]  ;;  %v3793_v44 = vld [vmem:[%s14436_s2 + $0x380] sm:$0xff] }
 0x423   : > { %6843 = vmatpush1.msra.mxu1 %v4905_v11  ;;  %v13256_v59 = vpop.permute.xlu1 %3122  ;;  %4236 = vperm.xlu1 %7527, %v3766_v45   ;;  %v5156_v45 = vld [vmem:[%s8211_s9 + $0x618] sm:$0xff]  ;;  %v3763_v55 = vld [vmem:[%s14436_s2 + $0x290] sm:$0xff]  ;;  %v5194_v16 = vld [vmem:[%s8211_s9 + $0x748] sm:$0xff] }
 0x424   : > { %5675 = vmatprep.mubr.f32.mxu0 %v5146_v24  ;;  %6112 = vmatprep.mubr.f32.mxu1 %v5132_v42  ;;  %v4307_v15 = vpop.permute.xlu0 %4306  ;;  %v3559_v18 = vmul.f32 %v13256_v59, %v15375_v8  ;;  %v15376_v24 = vld [vmem:[#allocation147_spill] sm:$0xff] }
 0x425   : > { %v4647_v26 = vadd.f32 %v4307_v15, %v3623_v40  ;;  %v4648_v28 = vadd.f32 %v4307_v15, %v3624_v37  ;;  %5676 = vmatmul.mubr.f32.gmra.mxu0 %v5145_v17  ;;  %6391 = vmatprep.subr.mxu0 %v4844_v43  ;;  %v3560_v42 = vmul.f32 %v13256_v59, %v15376_v24  ;;  %v2385_v59 = vadd.f32 1e-05, %v2257_v6  ;;  %v7779_v14 = vpop.eup %7778  ;;  %v15382_v6 = vld [vmem:[#allocation210_spill] sm:$0xff] }
 0x426   : > { %6113 = vmatmul.mubr.f32.gmra.mxu1 %v5131_v35  ;;  %3357 = vperm.xlu0 %7526, %v2771_v62   ;;  %v5178_v35 = vld [vmem:[%s8211_s9 + $0x6c8] sm:$0xff]  ;;  %v5177_v62 = vld [vmem:[%s8211_s9 + $0x6c0] sm:$0xff] }
 0x427   : > { %v4903_v60 = vmax.f32 %v4647_v26, 0.0  ;;  %v4904_v5 = vmax.f32 %v4648_v28, 0.0  ;;  %6392 = vmatpush1.msra.mxu0 %v4843_v33  ;;  %v4152_v47 = vpop.permute.xlu1 %4151  ;;  %3202 = vperm.xlu1 %7527, %v2740_v51   ;;  %v3764_v33 = vld [vmem:[%s14436_s2 + $0x298] sm:$0xff]  ;;  %v2610_v26 = vld [vmem:[%s14435_s1 + $0x288] sm:$0xff]  ;;  %v15377_v28 = vld [vmem:[#allocation109_spill] sm:$0xff]  ;;  %7782 = vrsqrt.f32 %v2385_v59 }
 0x428   : > { %v4585_v2 = vadd.f32 %v4152_v47, %v3561_v10  ;;  %v4586_v46 = vadd.f32 %v4152_v47, %v3562_v30  ;;  %5681 = vmatprep.mubr.f32.mxu0 %v5154_v56  ;;  %6118 = vmatprep.mubr.f32.mxu1 %v5140_v49  ;;  %v13271_v25 = vpop.permute.xlu0 %3272  ;;  %v15378_v56 = vld [vmem:[#allocation209_spill] sm:$0xff]  ;;  %v2738_v47 = vmul.f32 %v7779_v14, %v2610_v26  ;;  %v3762_v14 = vld [vmem:[%s14436_s2 + $0x288] sm:$0xff] }
 0x429   : > { %5682 = vmatmul.mubr.f32.gmra.mxu0 %v5153_v9  ;;  %6844 = vmatprep.subr.mxu1 %v4904_v5  ;;  %v3619_v51 = vmul.f32 %v13271_v25, %v15377_v28  ;;  %v3620_v49 = vmul.f32 %v13271_v25, %v15378_v56  ;;  %v3761_v30 = vld [vmem:[%s14436_s2 + $0x280] sm:$0xff] }
 0x42a   : > { %v4842_v53 = vmax.f32 %v4586_v46, 0.0  ;;  %6119 = vmatmul.mubr.f32.gmra.mxu1 %v5139_v0  ;;  %4386 = vperm.xlu0 %7526, %v3796_v21   ;;  %v4841_v34 = vmax.f32 %v4585_v2, 0.0  ;;  %v5186_v0 = vld [vmem:[%s8211_s9 + $0x708] sm:$0xff]  ;;  %v5172_v21 = vld [vmem:[%s8211_s9 + $0x698] sm:$0xff]  ;;  %v2641_v56 = vld [vmem:[%s14435_s1 + $0x380] sm:$0xff] }
 0x42b   : > { %6845 = vmatpush1.msra.mxu1 %v4903_v60  ;;  %v13289_v38 = vpop.permute.xlu1 %3117  ;;  %4231 = vperm.xlu1 %7527, %v3765_v36   ;;  %v15380_v46 = vld [vmem:[#allocation148_spill] sm:$0xff]  ;;  %v5185_v36 = vld [vmem:[%s8211_s9 + $0x700] sm:$0xff] }
 0x42c   : > { %5687 = vmatprep.mubr.f32.mxu0 %v5162_v13  ;;  %6124 = vmatprep.mubr.f32.mxu1 %v5148_v12  ;;  %v4302_v11 = vpop.permute.xlu0 %4301  ;;  %v3557_v2 = vmul.f32 %v13289_v38, %v15379_v32  ;;  %v3558_v25 = vmul.f32 %v13289_v38, %v15380_v46  ;;  %v5204_v32 = vld [vmem:[%s8211_s9 + $0x798] sm:$0xff] }
 0x42d   : > { %v4645_v57 = vadd.f32 %v4302_v11, %v3621_v4  ;;  %v4646_v58 = vadd.f32 %v4302_v11, %v3622_v41  ;;  %5688 = vmatmul.mubr.f32.gmra.mxu0 %v5161_v39  ;;  %6393 = vmatprep.subr.mxu0 %v4842_v53  ;;  %v7781_v4 = vpop.eup %7780  ;;  %v5180_v41 = vld [vmem:[%s8211_s9 + $0x6d8] sm:$0xff]  ;;  %v2609_v11 = vld [vmem:[%s14435_s1 + $0x280] sm:$0xff] }
 0x42e   : > { %6125 = vmatmul.mubr.f32.gmra.mxu1 %v5147_v3  ;;  %3352 = vperm.xlu0 %7526, %v2770_v1   ;;  %v5193_v3 = vld [vmem:[%s8211_s9 + $0x740] sm:$0xff]  ;;  %v15381_v1 = vld [vmem:[#allocation212_spill] sm:$0xff]  ;;  %v2737_v24 = vmul.f32 %v7781_v4, %v2609_v11  ;;  %v3794_v4 = vld [vmem:[%s14436_s2 + $0x388] sm:$0xff] }
 0x42f   : > { %v4901_v52 = vmax.f32 %v4645_v57, 0.0  ;;  %v4902_v43 = vmax.f32 %v4646_v58, 0.0  ;;  %6394 = vmatpush1.msra.mxu0 %v4841_v34  ;;  %v4147_v17 = vpop.permute.xlu1 %4146  ;;  %3197 = vperm.xlu1 %7527, %v2739_v50   ;;  %v5179_v50 = vld [vmem:[%s8211_s9 + $0x6d0] sm:$0xff] }
 0x430   : > { %v4583_v40 = vadd.f32 %v4147_v17, %v3559_v18  ;;  %v4584_v48 = vadd.f32 %v4147_v17, %v3560_v42  ;;  %5693 = vmatprep.mubr.f32.mxu0 %v5170_v22  ;;  %6130 = vmatprep.mubr.f32.mxu1 %v5156_v45  ;;  %v3268_v37 = vpop.permute.xlu0 %3267  ;;  %v5202_v45 = vld [vmem:[%s8211_s9 + $0x788] sm:$0xff]  ;;  %v5188_v42 = vld [vmem:[%s8211_s9 + $0x718] sm:$0xff] }
 0x431   : > { %5694 = vmatmul.mubr.f32.gmra.mxu0 %v5169_v7  ;;  %6846 = vmatprep.subr.mxu1 %v4902_v43  ;;  %v3617_v54 = vmul.f32 %v3268_v37, %v15381_v1  ;;  %v3618_v57 = vmul.f32 %v3268_v37, %v15382_v6  ;;  %v15383_v7 = vld [vmem:[#allocation145_spill] sm:$0xff]  ;;  %v15384_v43 = vld [vmem:[#allocation142_spill] sm:$0xff]  ;;  %v5187_v37 = vld [vmem:[%s8211_s9 + $0x710] sm:$0xff] }
 0x432   : > { %v4840_v15 = vmax.f32 %v4584_v48, 0.0  ;;  %6131 = vmatmul.mubr.f32.gmra.mxu1 %v5155_v27  ;;  %4381 = vperm.xlu0 %7526, %v3795_v23   ;;  %v4839_v63 = vmax.f32 %v4583_v40, 0.0  ;;  %v5201_v27 = vld [vmem:[%s8211_s9 + $0x780] sm:$0xff]  ;;  %v15390_v1 = vld [vmem:[#allocation270_spill] sm:$0xff] }
 0x433   : > { %6847 = vmatpush1.msra.mxu1 %v4901_v52  ;;  %v3113_v10 = vpop.permute.xlu1 %3112  ;;  %4226 = vperm.xlu1 %7527, %v3764_v33   ;;  %v5210_v33 = vld [vmem:[%s8211_s9 + $0x7c8] sm:$0xff] }
 0x434   : > { %5699 = vmatprep.mubr.f32.mxu0 %v5178_v35  ;;  %6136 = vmatprep.mubr.f32.mxu1 %v5164_v31  ;;  %v4297_v9 = vpop.permute.xlu0 %4296  ;;  %v3555_v52 = vmul.f32 %v3113_v10, %v15383_v7  ;;  %v3556_v17 = vmul.f32 %v3113_v10, %v15384_v43  ;;  %v15386_v10 = vld [vmem:[#allocation269_spill] sm:$0xff] }
 0x435   : > { %v4643_v60 = vadd.f32 %v4297_v9, %v3619_v51  ;;  %v4644_v5 = vadd.f32 %v4297_v9, %v3620_v49  ;;  %5700 = vmatmul.mubr.f32.gmra.mxu0 %v5177_v62  ;;  %6395 = vmatprep.subr.mxu0 %v4840_v15  ;;  %v5196_v15 = vld [vmem:[%s8211_s9 + $0x758] sm:$0xff]  ;;  %v7783_v62 = vpop.eup %7782  ;;  %v5209_v51 = vld [vmem:[%s8211_s9 + $0x7c0] sm:$0xff]  ;;  %v15385_v49 = vld [vmem:[#allocation271_spill] sm:$0xff] }
 0x436   : > { %6137 = vmatmul.mubr.f32.gmra.mxu1 %v5163_v20  ;;  %4211 = vperm.xlu0 %7526, %v3761_v30   ;;  %v5195_v9 = vld [vmem:[%s8211_s9 + $0x750] sm:$0xff] }
 0x437   : > { %v4899_v29 = vmax.f32 %v4643_v60, 0.0  ;;  %v4900_v13 = vmax.f32 %v4644_v5, 0.0  ;;  %6396 = vmatpush1.msra.mxu0 %v4839_v63  ;;  %v4142_v12 = vpop.permute.xlu1 %4141  ;;  %3192 = vperm.xlu1 %7527, %v2738_v47   ;;  %v5218_v5 = vld [vmem:[%s8211_s9 + $0x808] sm:$0xff] }
 0x438   : > { %v4581_v53 = vadd.f32 %v4142_v12, %v3557_v2  ;;  %v4582_v39 = vadd.f32 %v4142_v12, %v3558_v25  ;;  %5705 = vmatprep.mubr.f32.mxu0 %v5186_v0  ;;  %6142 = vmatprep.mubr.f32.mxu1 %v5172_v21  ;;  %v3423_v61 = vpop.permute.xlu0 %3422  ;;  %v2769_v21 = vmul.f32 %v7783_v62, %v2641_v56  ;;  %v15387_v2 = vld [vmem:[#allocation146_spill] sm:$0xff]  ;;  %v15388_v25 = vld [vmem:[#allocation144_spill] sm:$0xff]  ;;  %v5227_v56 = vld [vmem:[%s8211_s9 + $0x850] sm:$0xff] }
 0x439   : > { %5706 = vmatmul.mubr.f32.gmra.mxu0 %v5185_v36  ;;  %6848 = vmatprep.subr.mxu1 %v4900_v13  ;;  %v3679_v63 = vmul.f32 %v3423_v61, %v15385_v49  ;;  %v3680_v20 = vmul.f32 %v3423_v61, %v15386_v10  ;;  %v5236_v10 = vld [vmem:[%s8211_s9 + $0x898] sm:$0xff] }
 0x43a   : > { %v4837_v34 = vmax.f32 %v4581_v53, 0.0  ;;  %v4838_v38 = vmax.f32 %v4582_v39, 0.0  ;;  %6143 = vmatmul.mubr.f32.gmra.mxu1 %v5171_v19  ;;  %4371 = vperm.xlu0 %7526, %v3793_v44   ;;  %v5203_v44 = vld [vmem:[%s8211_s9 + $0x790] sm:$0xff]  ;;  %v5226_v53 = vld [vmem:[%s8211_s9 + $0x848] sm:$0xff] }
 0x43b   : > { %6849 = vmatpush1.msra.mxu1 %v4899_v29  ;;  %v3108_v58 = vpop.permute.xlu1 %3107  ;;  %4221 = vperm.xlu1 %7527, %v3763_v55   ;;  %v5217_v29 = vld [vmem:[%s8211_s9 + $0x800] sm:$0xff] }
 0x43c   : > { %5711 = vmatprep.mubr.f32.mxu0 %v5194_v16  ;;  %6148 = vmatprep.mubr.f32.mxu1 %v5180_v41  ;;  %v4292_v22 = vpop.permute.xlu0 %4291  ;;  %v3553_v46 = vmul.f32 %v3108_v58, %v15387_v2  ;;  %v3554_v36 = vmul.f32 %v3108_v58, %v15388_v25  ;;  %v5212_v16 = vld [vmem:[%s8211_s9 + $0x7d8] sm:$0xff]  ;;  %v5258_v25 = vld [vmem:[%s8211_s9 + $0x948] sm:$0xff] }
 0x43d   : > { %v4641_v8 = vadd.f32 %v4292_v22, %v3617_v54  ;;  %v4642_v18 = vadd.f32 %v4292_v22, %v3618_v57  ;;  %5712 = vmatmul.mubr.f32.gmra.mxu0 %v5193_v3  ;;  %6397 = vmatprep.subr.mxu0 %v4838_v38  ;;  %v5225_v38 = vld [vmem:[%s8211_s9 + $0x840] sm:$0xff]  ;;  %v15389_v3 = vld [vmem:[#allocation272_spill] sm:$0xff]  ;;  %v5211_v57 = vld [vmem:[%s8211_s9 + $0x7d0] sm:$0xff] }
 0x43e   : > { %6149 = vmatmul.mubr.f32.gmra.mxu1 %v5179_v50  ;;  %6398 = vmatpush1.msra.mxu0 %v4837_v34  ;;  %v5234_v50 = vld [vmem:[%s8211_s9 + $0x888] sm:$0xff]  ;;  %v5220_v22 = vld [vmem:[%s8211_s9 + $0x818] sm:$0xff] }
 0x43f   : > { %v4897_v23 = vmax.f32 %v4641_v8, 0.0  ;;  %v4898_v40 = vmax.f32 %v4642_v18, 0.0  ;;  %v4137_v48 = vpop.permute.xlu1 %4136  ;;  %3187 = vperm.xlu1 %7527, %v2737_v24   ;;  %5717 = vmatprep.mubr.f32.mxu0 %v5202_v45  ;;  %v15391_v18 = vld [vmem:[#allocation103_spill] sm:$0xff] }
 0x440   : > { %v4579_v59 = vadd.f32 %v4137_v48, %v3555_v52  ;;  %v4580_v35 = vadd.f32 %v4137_v48, %v3556_v17  ;;  %6154 = vmatprep.mubr.f32.mxu1 %v5188_v42  ;;  %v3418_v31 = vpop.permute.xlu0 %3417  ;;  %v15392_v42 = vld [vmem:[#allocation205_spill] sm:$0xff] }
 0x441   : > { %5718 = vmatmul.mubr.f32.gmra.mxu0 %v5201_v27  ;;  %6850 = vmatprep.subr.mxu1 %v4898_v40  ;;  %v3677_v11 = vmul.f32 %v3418_v31, %v15389_v3  ;;  %v3678_v54 = vmul.f32 %v3418_v31, %v15390_v1  ;;  %v5233_v52 = vld [vmem:[%s8211_s9 + $0x880] sm:$0xff]  ;;  %v5242_v40 = vld [vmem:[%s8211_s9 + $0x8c8] sm:$0xff]  ;;  %v5252_v3 = vld [vmem:[%s8211_s9 + $0x918] sm:$0xff] }
 0x442   : > { %v4835_v26 = vmax.f32 %v4579_v59, 0.0  ;;  %v4836_v28 = vmax.f32 %v4580_v35, 0.0  ;;  %6155 = vmatmul.mubr.f32.gmra.mxu1 %v5187_v37  ;;  %5723 = vmatprep.mubr.f32.mxu0 %v5210_v33  ;;  %v5228_v59 = vld [vmem:[%s8211_s9 + $0x858] sm:$0xff] }
 0x443   : > { %6851 = vmatpush1.msra.mxu1 %v4897_v23  ;;  %v3263_v30 = vpop.permute.xlu1 %3262  ;;  %4216 = vperm.xlu1 %7527, %v3762_v14   ;;  %v5219_v23 = vld [vmem:[%s8211_s9 + $0x810] sm:$0xff]  ;;  %v5241_v14 = vld [vmem:[%s8211_s9 + $0x8c0] sm:$0xff] }
 0x444   : > { %6160 = vmatprep.mubr.f32.mxu1 %v5196_v15  ;;  %v4447_v60 = vpop.permute.xlu0 %4446  ;;  %6399 = vmatprep.subr.mxu0 %v4836_v28  ;;  %v3615_v24 = vmul.f32 %v3263_v30, %v15391_v18  ;;  %v3616_v7 = vmul.f32 %v3263_v30, %v15392_v42  ;;  %v15393_v15 = vld [vmem:[#allocation267_spill] sm:$0xff] }
 0x445   : > { %v4703_v47 = vadd.f32 %v4447_v60, %v3679_v63  ;;  %v4704_v0 = vadd.f32 %v4447_v60, %v3680_v20  ;;  %5724 = vmatmul.mubr.f32.gmra.mxu0 %v5209_v51  ;;  %v5250_v63 = vld [vmem:[%s8211_s9 + $0x908] sm:$0xff]  ;;  %v5251_v18 = vld [vmem:[%s8211_s9 + $0x910] sm:$0xff] }
 0x446   : > { %6161 = vmatmul.mubr.f32.gmra.mxu1 %v5195_v9  ;;  %6400 = vmatpush1.msra.mxu0 %v4835_v26  ;;  %v15394_v26 = vld [vmem:[#allocation265_spill] sm:$0xff] }
 0x447   : > { %v4959_v13 = vmax.f32 %v4703_v47, 0.0  ;;  %v4960_v12 = vmax.f32 %v4704_v0, 0.0  ;;  %v4132_v19 = vpop.permute.xlu1 %4131  ;;  %3347 = vperm.xlu1 %7527, %v2769_v21   ;;  %5729 = vmatprep.mubr.f32.mxu0 %v5218_v5  ;;  %v15395_v9 = vld [vmem:[#allocation5_spill] sm:$0xff]  ;;  %v15396_v5 = vld [vmem:[#allocation208_spill] sm:$0xff] }
 0x448   : > { %v4577_v39 = vadd.f32 %v4132_v19, %v3553_v46  ;;  %v4578_v61 = vadd.f32 %v4132_v19, %v3554_v36  ;;  %6166 = vmatprep.mubr.f32.mxu1 %v5204_v32  ;;  %v3413_v55 = vpop.permute.xlu0 %3412  ;;  %v5249_v0 = vld [vmem:[%s8211_s9 + $0x900] sm:$0xff]  ;;  %v5235_v46 = vld [vmem:[%s8211_s9 + $0x890] sm:$0xff] }
 0x449   : > { %5730 = vmatmul.mubr.f32.gmra.mxu0 %v5217_v29  ;;  %6852 = vmatprep.subr.mxu1 %v4960_v12  ;;  %v3675_v62 = vmul.f32 %v3413_v55, %v15393_v15  ;;  %v3676_v28 = vmul.f32 %v3413_v55, %v15394_v26  ;;  %v5244_v12 = vld [vmem:[%s8211_s9 + $0x8d8] sm:$0xff]  ;;  %v15398_v55 = vld [vmem:[#allocation266_spill] sm:$0xff] }
 0x44a   : > { %v4833_v41 = vmax.f32 %v4577_v39, 0.0  ;;  %v4834_v34 = vmax.f32 %v4578_v61, 0.0  ;;  %6167 = vmatmul.mubr.f32.gmra.mxu1 %v5203_v44  ;;  %5735 = vmatprep.mubr.f32.mxu0 %v5226_v53  ;;  %v5257_v53 = vld [vmem:[%s8211_s9 + $0x940] sm:$0xff]  ;;  %v15397_v39 = vld [vmem:[#allocation268_spill] sm:$0xff] }
 0x44b   : > { %6853 = vmatpush2.msra.mxu1 %v4959_v13  ;;  %v3258_v6 = vpop.permute.xlu1 %3257  ;;  %4376 = vperm.xlu1 %7527, %v3794_v4   ;;  %v5268_v15 = vld [vmem:[%s8211_s9 + $0x998] sm:$0xff] }
 0x44c   : > { %6172 = vmatprep.mubr.f32.mxu1 %v5212_v16  ;;  %v4442_v58 = vpop.permute.xlu0 %4441  ;;  %6401 = vmatprep.subr.mxu0 %v4834_v34  ;;  %v3613_v60 = vmul.f32 %v3258_v6, %v15395_v9  ;;  %v3614_v47 = vmul.f32 %v3258_v6, %v15396_v5  ;;  %v5267_v9 = vld [vmem:[%s8211_s9 + $0x990] sm:$0xff] }
 0x44d   : > { %v4701_v45 = vadd.f32 %v4442_v58, %v3677_v11  ;;  %v4702_v8 = vadd.f32 %v4442_v58, %v3678_v54  ;;  %5736 = vmatmul.mubr.f32.gmra.mxu0 %v5225_v38  ;;  %v5266_v38 = vld [vmem:[%s8211_s9 + $0x988] sm:$0xff]  ;;  %v15399_v54 = vld [vmem:[#allocation204_spill] sm:$0xff] }
 0x44e   : > { %6173 = vmatmul.mubr.f32.gmra.mxu1 %v5211_v57  ;;  %6402 = vmatpush1.msra.mxu0 %v4833_v41  ;;  %v5243_v41 = vld [vmem:[%s8211_s9 + $0x8d0] sm:$0xff]  ;;  %v15400_v57 = vld [vmem:[#allocation202_spill] sm:$0xff] }
 0x44f   : > { %v4957_v43 = vmax.f32 %v4701_v45, 0.0  ;;  %v4958_v17 = vmax.f32 %v4702_v8, 0.0  ;;  %v4287_v27 = vpop.permute.xlu1 %4286  ;;  %5741 = vmatprep.mubr.f32.mxu0 %v5234_v50  ;;  %6178 = vmatprep.mubr.f32.mxu1 %v5220_v22  ;;  %v5265_v50 = vld [vmem:[%s8211_s9 + $0x980] sm:$0xff] }
 0x450   : > { %v4639_v48 = vadd.f32 %v4287_v27, %v3615_v24  ;;  %v4640_v37 = vadd.f32 %v4287_v27, %v3616_v7  ;;  %v3408_v33 = vpop.permute.xlu0 %3407  ;;  %v5274_v24 = vld [vmem:[%s8211_s9 + $0x9c8] sm:$0xff] }
 0x451   : > { %5742 = vmatmul.mubr.f32.gmra.mxu0 %v5233_v52  ;;  %6854 = vmatprep.subr.mxu1 %v4958_v17  ;;  %v3673_v61 = vmul.f32 %v3408_v33, %v15397_v39  ;;  %v3674_v4 = vmul.f32 %v3408_v33, %v15398_v55  ;;  %v5284_v39 = vld [vmem:[%s8211_s9 + $0xa18] sm:$0xff] }
 0x452   : > { %v4895_v35 = vmax.f32 %v4639_v48, 0.0  ;;  %v4896_v31 = vmax.f32 %v4640_v37, 0.0  ;;  %6179 = vmatmul.mubr.f32.gmra.mxu1 %v5219_v23  ;;  %5747 = vmatprep.mubr.f32.mxu0 %v5242_v40  ;;  %v5273_v23 = vld [vmem:[%s8211_s9 + $0x9c0] sm:$0xff]  ;;  %v15401_v40 = vld [vmem:[#allocation263_spill] sm:$0xff]  ;;  %v15402_v37 = vld [vmem:[#allocation260_spill] sm:$0xff] }
 0x453   : > { %6855 = vmatpush2.msra.mxu1 %v4957_v43  ;;  %v3253_v51 = vpop.permute.xlu1 %3252  ;;  %6184 = vmatprep.mubr.f32.mxu1 %v5228_v59  ;;  %v5260_v43 = vld [vmem:[%s8211_s9 + $0x958] sm:$0xff] }
 0x454   : > { %v4437_v49 = vpop.permute.xlu0 %4436  ;;  %6403 = vmatprep.subr.mxu0 %v4896_v31  ;;  %v3611_v6 = vmul.f32 %v3253_v51, %v15399_v54  ;;  %v3612_v58 = vmul.f32 %v3253_v51, %v15400_v57  ;;  %v5283_v54 = vld [vmem:[%s8211_s9 + $0xa10] sm:$0xff] }
 0x455   : > { %v4699_v20 = vadd.f32 %v4437_v49, %v3675_v62  ;;  %v4700_v30 = vadd.f32 %v4437_v49, %v3676_v28  ;;  %5748 = vmatmul.mubr.f32.gmra.mxu0 %v5241_v14  ;;  %v5282_v14 = vld [vmem:[%s8211_s9 + $0xa08] sm:$0xff]  ;;  %v15403_v28 = vld [vmem:[#allocation207_spill] sm:$0xff] }
 0x456   : > { %6185 = vmatmul.mubr.f32.gmra.mxu1 %v5227_v56  ;;  %6404 = vmatpush2.msra.mxu0 %v4895_v35  ;;  %v5259_v35 = vld [vmem:[%s8211_s9 + $0x950] sm:$0xff] }
 0x457   : > { %v4955_v21 = vmax.f32 %v4699_v20, 0.0  ;;  %v4956_v32 = vmax.f32 %v4700_v30, 0.0  ;;  %v4282_v2 = vpop.permute.xlu1 %4281  ;;  %5753 = vmatprep.mubr.f32.mxu0 %v5250_v63  ;;  %6190 = vmatprep.mubr.f32.mxu1 %v5236_v10  ;;  %v15404_v56 = vld [vmem:[#allocation99_spill] sm:$0xff]  ;;  %v5281_v63 = vld [vmem:[%s8211_s9 + $0xa00] sm:$0xff] }
 0x458   : > { %v4637_v36 = vadd.f32 %v4282_v2, %v3613_v60  ;;  %v4638_v29 = vadd.f32 %v4282_v2, %v3614_v47  ;;  %v3403_v13 = vpop.permute.xlu0 %3402  ;;  %v5290_v60 = vld [vmem:[%s8211_s9 + $0xa48] sm:$0xff] }
 0x459   : > { %5754 = vmatmul.mubr.f32.gmra.mxu0 %v5249_v0  ;;  %6856 = vmatprep.subr.mxu1 %v4956_v32  ;;  %v3671_v48 = vmul.f32 %v3403_v13, %v15401_v40  ;;  %v3672_v33 = vmul.f32 %v3403_v13, %v15402_v37  ;;  %v5300_v40 = vld [vmem:[%s8211_s9 + $0xa98] sm:$0xff] }
 0x45a   : > { %v4893_v19 = vmax.f32 %v4637_v36, 0.0  ;;  %v4894_v44 = vmax.f32 %v4638_v29, 0.0  ;;  %6191 = vmatmul.mubr.f32.gmra.mxu1 %v5235_v46  ;;  %5759 = vmatprep.mubr.f32.mxu0 %v5258_v25  ;;  %v5289_v46 = vld [vmem:[%s8211_s9 + $0xa40] sm:$0xff]  ;;  %v15405_v25 = vld [vmem:[#allocation264_spill] sm:$0xff]  ;;  %v15406_v29 = vld [vmem:[#allocation262_spill] sm:$0xff] }
 0x45b   : > { %6857 = vmatpush2.msra.mxu1 %v4955_v21  ;;  %v3248_v16 = vpop.permute.xlu1 %3247  ;;  %6196 = vmatprep.mubr.f32.mxu1 %v5244_v12  ;;  %v5276_v21 = vld [vmem:[%s8211_s9 + $0x9d8] sm:$0xff] }
 0x45c   : > { %v4432_v34 = vpop.permute.xlu0 %4431  ;;  %6405 = vmatprep.subr.mxu0 %v4894_v44  ;;  %v3609_v51 = vmul.f32 %v3248_v16, %v15403_v28  ;;  %v3610_v49 = vmul.f32 %v3248_v16, %v15404_v56  ;;  %v5299_v28 = vld [vmem:[%s8211_s9 + $0xa90] sm:$0xff] }
 0x45d   : > { %v4697_v11 = vadd.f32 %v4432_v34, %v3673_v61  ;;  %v4698_v1 = vadd.f32 %v4432_v34, %v3674_v4  ;;  %5760 = vmatmul.mubr.f32.gmra.mxu0 %v5257_v53  ;;  %v5298_v53 = vld [vmem:[%s8211_s9 + $0xa88] sm:$0xff]  ;;  %v15407_v4 = vld [vmem:[#allocation200_spill] sm:$0xff] }
 0x45e   : > { %6197 = vmatmul.mubr.f32.gmra.mxu1 %v5243_v41  ;;  %6406 = vmatpush2.msra.mxu0 %v4893_v19  ;;  %v5275_v19 = vld [vmem:[%s8211_s9 + $0x9d0] sm:$0xff]  ;;  %v15408_v41 = vld [vmem:[#allocation198_spill] sm:$0xff] }
 0x45f   : > { %v4953_v22 = vmax.f32 %v4697_v11, 0.0  ;;  %v4954_v45 = vmax.f32 %v4698_v1, 0.0  ;;  %v4277_v8 = vpop.permute.xlu1 %4276  ;;  %5765 = vmatprep.mubr.f32.mxu0 %v5266_v38  ;;  %6202 = vmatprep.mubr.f32.mxu1 %v5252_v3  ;;  %v5297_v38 = vld [vmem:[%s8211_s9 + $0xa80] sm:$0xff] }
 0x460   : > { %v4635_v42 = vadd.f32 %v4277_v8, %v3611_v6  ;;  %v4636_v7 = vadd.f32 %v4277_v8, %v3612_v58  ;;  %v3398_v52 = vpop.permute.xlu0 %3397  ;;  %v5306_v6 = vld [vmem:[%s8211_s9 + $0xac8] sm:$0xff] }
 0x461   : > { %5766 = vmatmul.mubr.f32.gmra.mxu0 %v5265_v50  ;;  %6858 = vmatprep.subr.mxu1 %v4954_v45  ;;  %v3669_v36 = vmul.f32 %v3398_v52, %v15405_v25  ;;  %v3670_v13 = vmul.f32 %v3398_v52, %v15406_v29  ;;  %v5316_v25 = vld [vmem:[%s8211_s9 + $0xb18] sm:$0xff] }
 0x462   : > { %v4891_v17 = vmax.f32 %v4635_v42, 0.0  ;;  %v4892_v27 = vmax.f32 %v4636_v7, 0.0  ;;  %6203 = vmatmul.mubr.f32.gmra.mxu1 %v5251_v18  ;;  %5771 = vmatprep.mubr.f32.mxu0 %v5274_v24  ;;  %v5305_v18 = vld [vmem:[%s8211_s9 + $0xac0] sm:$0xff]  ;;  %v15409_v24 = vld [vmem:[#allocation259_spill] sm:$0xff] }
 0x463   : > { %6859 = vmatpush2.msra.mxu1 %v4953_v22  ;;  %v3243_v59 = vpop.permute.xlu1 %3242  ;;  %6208 = vmatprep.mubr.f32.mxu1 %v5260_v43  ;;  %v5292_v22 = vld [vmem:[%s8211_s9 + $0xa58] sm:$0xff]  ;;  %v15410_v7 = vld [vmem:[#allocation257_spill] sm:$0xff] }
 0x464   : > { %v4427_v31 = vpop.permute.xlu0 %4426  ;;  %6407 = vmatprep.subr.mxu0 %v4892_v27  ;;  %v3607_v16 = vmul.f32 %v3243_v59, %v15407_v4  ;;  %v3608_v34 = vmul.f32 %v3243_v59, %v15408_v41  ;;  %v5315_v4 = vld [vmem:[%s8211_s9 + $0xb10] sm:$0xff] }
 0x465   : > { %v4695_v62 = vadd.f32 %v4427_v31, %v3671_v48  ;;  %v4696_v26 = vadd.f32 %v4427_v31, %v3672_v33  ;;  %5772 = vmatmul.mubr.f32.gmra.mxu0 %v5273_v23  ;;  %v5314_v23 = vld [vmem:[%s8211_s9 + $0xb08] sm:$0xff]  ;;  %v15411_v33 = vld [vmem:[#allocation201_spill] sm:$0xff] }
 0x466   : > { %6209 = vmatmul.mubr.f32.gmra.mxu1 %v5259_v35  ;;  %6408 = vmatpush2.msra.mxu0 %v4891_v17  ;;  %v5291_v17 = vld [vmem:[%s8211_s9 + $0xa50] sm:$0xff] }
 0x467   : > { %v4951_v10 = vmax.f32 %v4695_v62, 0.0  ;;  %v4952_v20 = vmax.f32 %v4696_v26, 0.0  ;;  %v4272_v30 = vpop.permute.xlu1 %4271  ;;  %5777 = vmatprep.mubr.f32.mxu0 %v5282_v14  ;;  %6214 = vmatprep.mubr.f32.mxu1 %v5268_v15  ;;  %v15412_v35 = vld [vmem:[#allocation199_spill] sm:$0xff]  ;;  %v5313_v14 = vld [vmem:[%s8211_s9 + $0xb00] sm:$0xff] }
 0x468   : > { %v4633_v5 = vadd.f32 %v4272_v30, %v3609_v51  ;;  %v4634_v47 = vadd.f32 %v4272_v30, %v3610_v49  ;;  %v3393_v0 = vpop.permute.xlu0 %3392  ;;  %v5322_v51 = vld [vmem:[%s8211_s9 + $0xb48] sm:$0xff] }
 0x469   : > { %5778 = vmatmul.mubr.f32.gmra.mxu0 %v5281_v63  ;;  %6860 = vmatprep.subr.mxu1 %v4952_v20  ;;  %v3667_v42 = vmul.f32 %v3393_v0, %v15409_v24  ;;  %v3668_v52 = vmul.f32 %v3393_v0, %v15410_v7  ;;  %v15419_v24 = vld [vmem:[#allocation196_spill] sm:$0xff] }
 0x46a   : > { %v4889_v32 = vmax.f32 %v4633_v5, 0.0  ;;  %v4890_v2 = vmax.f32 %v4634_v47, 0.0  ;;  %6215 = vmatmul.mubr.f32.gmra.mxu1 %v5267_v9  ;;  %5783 = vmatprep.mubr.f32.mxu0 %v5290_v60  ;;  %v5321_v9 = vld [vmem:[%s8211_s9 + $0xb40] sm:$0xff]  ;;  %v15414_v47 = vld [vmem:[#allocation258_spill] sm:$0xff] }
 0x46b   : > { %6861 = vmatpush2.msra.mxu1 %v4951_v10  ;;  %v3238_v12 = vpop.permute.xlu1 %3237  ;;  %6220 = vmatprep.mubr.f32.mxu1 %v5276_v21  ;;  %v5308_v10 = vld [vmem:[%s8211_s9 + $0xad8] sm:$0xff]  ;;  %v15413_v60 = vld [vmem:[#allocation261_spill] sm:$0xff] }
 0x46c   : > { %v4422_v44 = vpop.permute.xlu0 %4421  ;;  %6409 = vmatprep.subr.mxu0 %v4890_v2  ;;  %v3605_v59 = vmul.f32 %v3238_v12, %v15411_v33  ;;  %v3606_v31 = vmul.f32 %v3238_v12, %v15412_v35 }
 0x46d   : > { %v4693_v61 = vadd.f32 %v4422_v44, %v3669_v36  ;;  %v4694_v55 = vadd.f32 %v4422_v44, %v3670_v13  ;;  %5784 = vmatmul.mubr.f32.gmra.mxu0 %v5289_v46  ;;  %v5330_v46 = vld [vmem:[%s8211_s9 + $0xb88] sm:$0xff]  ;;  %v15415_v13 = vld [vmem:[#allocation195_spill] sm:$0xff] }
 0x46e   : > { %6221 = vmatmul.mubr.f32.gmra.mxu1 %v5275_v19  ;;  %6410 = vmatpush2.msra.mxu0 %v4889_v32  ;;  %v5307_v32 = vld [vmem:[%s8211_s9 + $0xad0] sm:$0xff] }
 0x46f   : > { %v4949_v3 = vmax.f32 %v4693_v61, 0.0  ;;  %v4950_v11 = vmax.f32 %v4694_v55, 0.0  ;;  %v4267_v1 = vpop.permute.xlu1 %4266  ;;  %5789 = vmatprep.mubr.f32.mxu0 %v5298_v53  ;;  %6226 = vmatprep.mubr.f32.mxu1 %v5284_v39  ;;  %v15416_v19 = vld [vmem:[#allocation191_spill] sm:$0xff]  ;;  %v5329_v53 = vld [vmem:[%s8211_s9 + $0xb80] sm:$0xff] }
 0x470   : > { %v4631_v57 = vadd.f32 %v4267_v1, %v3607_v16  ;;  %v4632_v58 = vadd.f32 %v4267_v1, %v3608_v34  ;;  %v3388_v50 = vpop.permute.xlu0 %3387  ;;  %v5338_v16 = vld [vmem:[%s8211_s9 + $0xbc8] sm:$0xff] }
 0x471   : > { %5790 = vmatmul.mubr.f32.gmra.mxu0 %v5297_v38  ;;  %6862 = vmatprep.subr.mxu1 %v4950_v11  ;;  %v3665_v5 = vmul.f32 %v3388_v50, %v15413_v60  ;;  %v3666_v0 = vmul.f32 %v3388_v50, %v15414_v47  ;;  %v5324_v38 = vld [vmem:[%s8211_s9 + $0xb58] sm:$0xff] }
 0x472   : > { %v4887_v45 = vmax.f32 %v4631_v57, 0.0  ;;  %v4888_v8 = vmax.f32 %v4632_v58, 0.0  ;;  %6227 = vmatmul.mubr.f32.gmra.mxu1 %v5283_v54  ;;  %5795 = vmatprep.mubr.f32.mxu0 %v5306_v6  ;;  %v5337_v54 = vld [vmem:[%s8211_s9 + $0xbc0] sm:$0xff]  ;;  %v5323_v57 = vld [vmem:[%s8211_s9 + $0xb50] sm:$0xff]  ;;  %v5348_v47 = vld [vmem:[%s8211_s9 + $0xc18] sm:$0xff] }
 0x473   : > { %6863 = vmatpush2.msra.mxu1 %v4949_v3  ;;  %v3233_v43 = vpop.permute.xlu1 %3232  ;;  %6232 = vmatprep.mubr.f32.mxu1 %v5292_v22  ;;  %v15417_v58 = vld [vmem:[#allocation255_spill] sm:$0xff]  ;;  %v15418_v22 = vld [vmem:[#allocation252_spill] sm:$0xff] }
 0x474   : > { %v4417_v27 = vpop.permute.xlu0 %4416  ;;  %6411 = vmatprep.subr.mxu0 %v4888_v8  ;;  %v3603_v12 = vmul.f32 %v3233_v43, %v15415_v13  ;;  %v3604_v44 = vmul.f32 %v3233_v43, %v15416_v19  ;;  %v5346_v8 = vld [vmem:[%s8211_s9 + $0xc08] sm:$0xff]  ;;  %v5361_v13 = vld [vmem:[%s8211_s9 + $0xc80] sm:$0xff]  ;;  %v5347_v19 = vld [vmem:[%s8211_s9 + $0xc10] sm:$0xff] }
 0x475   : > { %v4691_v48 = vadd.f32 %v4417_v27, %v3667_v42  ;;  %v4692_v37 = vadd.f32 %v4417_v27, %v3668_v52  ;;  %5796 = vmatmul.mubr.f32.gmra.mxu0 %v5305_v18  ;;  %v5332_v18 = vld [vmem:[%s8211_s9 + $0xb98] sm:$0xff]  ;;  %v15420_v52 = vld [vmem:[#allocation194_spill] sm:$0xff] }
 0x476   : > { %6233 = vmatmul.mubr.f32.gmra.mxu1 %v5291_v17  ;;  %6412 = vmatpush2.msra.mxu0 %v4887_v45 }
 0x477   : > { %v4947_v15 = vmax.f32 %v4691_v48, 0.0  ;;  %v4948_v62 = vmax.f32 %v4692_v37, 0.0  ;;  %v4262_v26 = vpop.permute.xlu1 %4261  ;;  %5801 = vmatprep.mubr.f32.mxu0 %v5314_v23  ;;  %6238 = vmatprep.mubr.f32.mxu1 %v5300_v40  ;;  %v5345_v23 = vld [vmem:[%s8211_s9 + $0xc00] sm:$0xff]  ;;  %v5331_v48 = vld [vmem:[%s8211_s9 + $0xb90] sm:$0xff] }
 0x478   : > { %v4629_v56 = vadd.f32 %v4262_v26, %v3605_v59  ;;  %v4630_v49 = vadd.f32 %v4262_v26, %v3606_v31  ;;  %v3383_v63 = vpop.permute.xlu0 %3382 }
 0x479   : > { %5802 = vmatmul.mubr.f32.gmra.mxu0 %v5313_v14  ;;  %6864 = vmatprep.subr.mxu1 %v4948_v62  ;;  %v3663_v50 = vmul.f32 %v3383_v63, %v15417_v58  ;;  %v3664_v45 = vmul.f32 %v3383_v63, %v15418_v22  ;;  %v5354_v14 = vld [vmem:[%s8211_s9 + $0xc48] sm:$0xff]  ;;  %v5340_v62 = vld [vmem:[%s8211_s9 + $0xbd8] sm:$0xff]  ;;  %v5339_v63 = vld [vmem:[%s8211_s9 + $0xbd0] sm:$0xff] }
 0x47a   : > { %v4885_v20 = vmax.f32 %v4629_v56, 0.0  ;;  %v4886_v30 = vmax.f32 %v4630_v49, 0.0  ;;  %6239 = vmatmul.mubr.f32.gmra.mxu1 %v5299_v28  ;;  %5807 = vmatprep.mubr.f32.mxu0 %v5322_v51  ;;  %v5353_v56 = vld [vmem:[%s8211_s9 + $0xc40] sm:$0xff]  ;;  %v15425_v22 = vld [vmem:[#allocation250_spill] sm:$0xff] }
 0x47b   : > { %6865 = vmatpush2.msra.mxu1 %v4947_v15  ;;  %v3228_v21 = vpop.permute.xlu1 %3227  ;;  %6244 = vmatprep.mubr.f32.mxu1 %v5308_v10  ;;  %v15421_v10 = vld [vmem:[#allocation256_spill] sm:$0xff] }
 0x47c   : > { %v4412_v2 = vpop.permute.xlu0 %4411  ;;  %6413 = vmatprep.subr.mxu0 %v4886_v30  ;;  %v3601_v42 = vmul.f32 %v3228_v21, %v15419_v24  ;;  %v3602_v43 = vmul.f32 %v3228_v21, %v15420_v52  ;;  %v15422_v30 = vld [vmem:[#allocation253_spill] sm:$0xff]  ;;  %v5364_v52 = vld [vmem:[%s8211_s9 + $0xc98] sm:$0xff] }
 0x47d   : > { %v4689_v36 = vadd.f32 %v4412_v2, %v3665_v5  ;;  %v4690_v29 = vadd.f32 %v4412_v2, %v3666_v0  ;;  %5808 = vmatmul.mubr.f32.gmra.mxu0 %v5321_v9  ;;  %v5362_v5 = vld [vmem:[%s8211_s9 + $0xc88] sm:$0xff]  ;;  %v15424_v2 = vld [vmem:[#allocation188_spill] sm:$0xff] }
 0x47e   : > { %6245 = vmatmul.mubr.f32.gmra.mxu1 %v5307_v32  ;;  %6414 = vmatpush2.msra.mxu0 %v4885_v20  ;;  %v15423_v0 = vld [vmem:[#allocation190_spill] sm:$0xff] }
 0x47f   : > { %v4945_v39 = vmax.f32 %v4689_v36, 0.0  ;;  %v4946_v61 = vmax.f32 %v4690_v29, 0.0  ;;  %v4257_v55 = vpop.permute.xlu1 %4256  ;;  %5813 = vmatprep.mubr.f32.mxu0 %v5330_v46  ;;  %6250 = vmatprep.mubr.f32.mxu1 %v5316_v25 }
 0x480   : > { %v4627_v41 = vadd.f32 %v4257_v55, %v3603_v12  ;;  %v4628_v34 = vadd.f32 %v4257_v55, %v3604_v44 }
 0x481   : > { %v3378_v3 = vpop.permute.xlu0 %3377  ;;  %5814 = vmatmul.mubr.f32.gmra.mxu0 %v5329_v53  ;;  %6866 = vmatprep.subr.mxu1 %v4946_v61 }
 0x482   : > { %v4883_v11 = vmax.f32 %v4627_v41, 0.0  ;;  %v4884_v1 = vmax.f32 %v4628_v34, 0.0  ;;  %6251 = vmatmul.mubr.f32.gmra.mxu1 %v5315_v4  ;;  %5819 = vmatprep.mubr.f32.mxu0 %v5338_v16  ;;  %v3661_v20 = vmul.f32 %v3378_v3, %v15421_v10  ;;  %v3662_v9 = vmul.f32 %v3378_v3, %v15422_v30  ;;  %v5370_v16 = vld [vmem:[%s8211_s9 + $0xcc8] sm:$0xff] }
 0x483   : > { %6867 = vmatpush2.msra.mxu1 %v4945_v39  ;;  %v3223_v6 = vpop.permute.xlu1 %3222  ;;  %6256 = vmatprep.mubr.f32.mxu1 %v5324_v38  ;;  %v5356_v38 = vld [vmem:[%s8211_s9 + $0xc58] sm:$0xff]  ;;  %v5386_v10 = vld [vmem:[%s8211_s9 + $0xd48] sm:$0xff] }
 0x484   : > { %6415 = vmatprep.subr.mxu0 %v4884_v1  ;;  %v3599_v21 = vmul.f32 %v3223_v6, %v15423_v0  ;;  %v3600_v46 = vmul.f32 %v3223_v6, %v15424_v2  ;;  %v5369_v6 = vld [vmem:[%s8211_s9 + $0xcc0] sm:$0xff] }
 0x485   : > { %v4407_v7 = vpop.permute.xlu0 %4406  ;;  %5820 = vmatmul.mubr.f32.gmra.mxu0 %v5337_v54 }
 0x486   : > { %v4687_v17 = vadd.f32 %v4407_v7, %v3663_v50  ;;  %v4688_v27 = vadd.f32 %v4407_v7, %v3664_v45  ;;  %6257 = vmatmul.mubr.f32.gmra.mxu1 %v5323_v57  ;;  %6416 = vmatpush2.msra.mxu0 %v4883_v11  ;;  %v5355_v50 = vld [vmem:[%s8211_s9 + $0xc50] sm:$0xff]  ;;  %v5378_v7 = vld [vmem:[%s8211_s9 + $0xd08] sm:$0xff] }
 0x487   : > { %v4252_v40 = vpop.permute.xlu1 %4251  ;;  %5825 = vmatprep.mubr.f32.mxu0 %v5346_v8  ;;  %6262 = vmatprep.mubr.f32.mxu1 %v5332_v18  ;;  %v15426_v8 = vld [vmem:[#allocation247_spill] sm:$0xff] }
 0x488   : > { %v4943_v37 = vmax.f32 %v4687_v17, 0.0  ;;  %v4944_v33 = vmax.f32 %v4688_v27, 0.0  ;;  %v4625_v59 = vadd.f32 %v4252_v40, %v3601_v42  ;;  %v4626_v35 = vadd.f32 %v4252_v40, %v3602_v43  ;;  %v5539_v31 = vpop.f32.mrf.mxu0  ;;  %v15427_v43 = vld [vmem:[#allocation193_spill] sm:$0xff] }
 0x489   : > { %v3373_v15 = vpop.permute.xlu0 %3372  ;;  %5826 = vmatmul.mubr.f32.gmra.mxu0 %v5345_v23  ;;  %v15428_v40 = vld [vmem:[#allocation189_spill] sm:$0xff] }
 0x48a   : > { %v4881_v26 = vmax.f32 %v4625_v59, 0.0  ;;  %v4882_v28 = vmax.f32 %v4626_v35, 0.0  ;;  %6263 = vmatmul.mubr.f32.gmra.mxu1 %v5331_v48  ;;  %6868 = vmatprep.subr.mxu1 %v4944_v33  ;;  %v5541_v51 = vpop.f32.mrf.mxu0  ;;  %v3659_v45 = vmul.f32 %v3373_v15, %v15425_v22  ;;  %v3660_v18 = vmul.f32 %v3373_v15, %v15426_v8 }
 0x48b   : > { %6869 = vmatpush2.msra.mxu1 %v4943_v37  ;;  %v3218_v49 = vpop.permute.xlu1 %3217  ;;  %5831 = vmatprep.mubr.f32.mxu0 %v5354_v14 }
 0x48c   : > { %6268 = vmatprep.mubr.f32.mxu1 %v5340_v62  ;;  %v5545_v60 = vpop.f32.mrf.mxu0  ;;  %6417 = vmatprep.subr.mxu0 %v4882_v28  ;;  %v3597_v17 = vmul.f32 %v3218_v49, %v15427_v43  ;;  %v3598_v48 = vmul.f32 %v3218_v49, %v15428_v40  ;;  %v5363_v62 = vld [vmem:[%s8211_s9 + $0xc90] sm:$0xff]  ;;  %v5401_v40 = vld [vmem:[%s8211_s9 + $0xdc0] sm:$0xff] }
 0x48d   : > { %v4402_v32 = vpop.permute.xlu0 %4401  ;;  %5832 = vmatmul.mubr.f32.gmra.mxu0 %v5353_v56 }
 0x48e   : > { %v4685_v25 = vadd.f32 %v4402_v32, %v3661_v20  ;;  %v4686_v36 = vadd.f32 %v4402_v32, %v3662_v9  ;;  %6269 = vmatmul.mubr.f32.gmra.mxu1 %v5339_v63  ;;  %6418 = vmatpush2.msra.mxu0 %v4881_v26  ;;  %v5547_v29 = vpop.f32.mrf.mxu0  ;;  %v5372_v9 = vld [vmem:[%s8211_s9 + $0xcd8] sm:$0xff] }
 0x48f   : > { %v4247_v12 = vpop.permute.xlu1 %4246  ;;  %5837 = vmatprep.mubr.f32.mxu0 %v5362_v5  ;;  %6274 = vmatprep.mubr.f32.mxu1 %v5348_v47 }
 0x490   : > { %v4941_v44 = vmax.f32 %v4685_v25, 0.0  ;;  %v4942_v53 = vmax.f32 %v4686_v36, 0.0  ;;  %v4623_v39 = vadd.f32 %v4247_v12, %v3599_v21  ;;  %v4624_v61 = vadd.f32 %v4247_v12, %v3600_v46  ;;  %v5551_v55 = vpop.f32.mrf.mxu0  ;;  %v5988_v4 = vpop.f32.mrf.mxu1  ;;  %v5385_v21 = vld [vmem:[%s8211_s9 + $0xd40] sm:$0xff]  ;;  %v5371_v46 = vld [vmem:[%s8211_s9 + $0xcd0] sm:$0xff]  ;;  %v15429_v25 = vld [vmem:[#allocation254_spill] sm:$0xff] }
 0x491   : > { %v13480_v41 = vpop.permute.xlu0 %3367  ;;  %5838 = vmatmul.mubr.f32.gmra.mxu0 %v5361_v13  ;;  %v13482_v34 = vadd.f32 %v5988_v4, %v5539_v31  ;;  %v5377_v31 = vld [vmem:[%s8211_s9 + $0xd00] sm:$0xff]  ;;  %v5394_v12 = vld [vmem:[%s8211_s9 + $0xd88] sm:$0xff] }
 0x492   : > { %v4879_v3 = vmax.f32 %v4623_v39, 0.0  ;;  %v4880_v11 = vmax.f32 %v4624_v61, 0.0  ;;  %6275 = vmatmul.mubr.f32.gmra.mxu1 %v5347_v19  ;;  %6870 = vmatprep.subr.mxu1 %v4942_v53  ;;  %v5553_v1 = vpop.f32.mrf.mxu0  ;;  %v5990_v54 = vpop.f32.mrf.mxu1  ;;  %v3657_v36 = vmul.f32 %v13480_v41, %v15429_v25  ;;  %v5380_v19 = vld [vmem:[%s8211_s9 + $0xd18] sm:$0xff] }
 0x493   : > { %6871 = vmatpush2.msra.mxu1 %v4941_v44  ;;  %v13486_v57 = vadd.f32 %v5990_v54, %v5541_v51  ;;  %v3213_v58 = vpop.permute.xlu1 %3212  ;;  %5843 = vmatprep.mubr.f32.mxu0 %v5370_v16  ;;  %v15431_v44 = vld [vmem:[#allocation186_spill] sm:$0xff] }
 0x494   : > { %6280 = vmatprep.mubr.f32.mxu1 %v5356_v38  ;;  %v5557_v24 = vpop.f32.mrf.mxu0  ;;  %v5994_v42 = vpop.f32.mrf.mxu1  ;;  %6419 = vmatprep.subr.mxu0 %v4880_v11  ;;  %v3595_v53 = vmul.f32 %v3213_v58, %v15431_v44  ;;  %v5393_v11 = vld [vmem:[%s8211_s9 + $0xd80] sm:$0xff] }
 0x495   : > { %v4397_v27 = vpop.permute.xlu0 %4396  ;;  %5844 = vmatmul.mubr.f32.gmra.mxu0 %v5369_v6  ;;  %v13494_v23 = vadd.f32 %v5994_v42, %v5545_v60  ;;  %v5379_v6 = vld [vmem:[%s8211_s9 + $0xd10] sm:$0xff] }
 0x496   : > { %v4683_v37 = vadd.f32 %v4397_v27, %v3659_v45  ;;  %v4684_v33 = vadd.f32 %v4397_v27, %v3660_v18  ;;  %6281 = vmatmul.mubr.f32.gmra.mxu1 %v5355_v50  ;;  %6420 = vmatpush2.msra.mxu0 %v4879_v3  ;;  %v5559_v59 = vpop.f32.mrf.mxu0  ;;  %v5996_v35 = vpop.f32.mrf.mxu1  ;;  %v5402_v18 = vld [vmem:[%s8211_s9 + $0xdc8] sm:$0xff] }
 0x497   : > { %v13498_v14 = vadd.f32 %v5996_v35, %v5547_v29  ;;  %v4242_v15 = vpop.permute.xlu1 %4241  ;;  %5849 = vmatprep.mubr.f32.mxu0 %v5378_v7  ;;  %6286 = vmatprep.mubr.f32.mxu1 %v5364_v52  ;;  %v15430_v29 = vld [vmem:[#allocation251_spill] sm:$0xff]  ;;  %v5388_v52 = vld [vmem:[%s8211_s9 + $0xd58] sm:$0xff] }
 0x498   : > { %v4939_v26 = vmax.f32 %v4683_v37, 0.0  ;;  %v4940_v28 = vmax.f32 %v4684_v33, 0.0  ;;  %v4621_v51 = vadd.f32 %v4242_v15, %v3597_v17  ;;  %v4622_v56 = vadd.f32 %v4242_v15, %v3598_v48  ;;  %v5563_v49 = vpop.f32.mrf.mxu0  ;;  %v6000_v63 = vpop.f32.mrf.mxu1  ;;  %v15433_v35 = vld [vmem:[#allocation248_spill] sm:$0xff]  ;;  %v15434_v15 = vld [vmem:[#allocation245_spill] sm:$0xff] }
 0x499   : > { %v13502_v20 = vpop.permute.xlu0 %3362  ;;  %5850 = vmatmul.mubr.f32.gmra.mxu0 %v5377_v31  ;;  %v13504_v30 = vadd.f32 %v6000_v63, %v5551_v55  ;;  %v3658_v13 = vmul.f32 %v13480_v41, %v15430_v29  ;;  %v15432_v55 = vld [vmem:[#allocation184_spill] sm:$0xff] }
 0x49a   : > { %v4877_v60 = vmax.f32 %v4621_v51, 0.0  ;;  %v4878_v5 = vmax.f32 %v4622_v56, 0.0  ;;  %6287 = vmatmul.mubr.f32.gmra.mxu1 %v5363_v62  ;;  %6872 = vmatprep.subr.mxu1 %v4940_v28  ;;  %v5565_v47 = vpop.f32.mrf.mxu0  ;;  %v6002_v0 = vpop.f32.mrf.mxu1  ;;  %v3596_v4 = vmul.f32 %v3213_v58, %v15432_v55  ;;  %v3655_v31 = vmul.f32 %v13502_v20, %v15433_v35  ;;  %v5410_v28 = vld [vmem:[%s8211_s9 + $0xe08] sm:$0xff]  ;;  %v5396_v51 = vld [vmem:[%s8211_s9 + $0xd98] sm:$0xff]  ;;  %v15435_v56 = vld [vmem:[#allocation187_spill] sm:$0xff] }
 0x49b   : > { %6873 = vmatpush2.msra.mxu1 %v4939_v26  ;;  %v13508_v32 = vadd.f32 %v6002_v0, %v5553_v1  ;;  %v3208_v2 = vpop.permute.xlu1 %3207  ;;  %5855 = vmatprep.mubr.f32.mxu0 %v5386_v10  ;;  %v3656_v62 = vmul.f32 %v13502_v20, %v15434_v15  ;;  %v15440_v35 = vld [vmem:[#allocation179_spill] sm:$0xff] }
 0x49c   : > { %6292 = vmatprep.mubr.f32.mxu1 %v5372_v9  ;;  %6421 = vmatprep.subr.mxu0 %v4878_v5 }
 0x49d   : > { %v4392_v39 = vpop.permute.xlu0 %4391  ;;  %v5569_v61 = vpop.f32.mrf.mxu0  ;;  %5856 = vmatmul.mubr.f32.gmra.mxu0 %v5385_v21 }
 0x49e   : > { %v4681_v16 = vadd.f32 %v4392_v39, %v3657_v36  ;;  %v4682_v38 = vadd.f32 %v4392_v39, %v3658_v13  ;;  %v6006_v3 = vpop.f32.mrf.mxu1  ;;  %6293 = vmatmul.mubr.f32.gmra.mxu1 %v5371_v46  ;;  %6422 = vmatpush2.msra.mxu0 %v4877_v60  ;;  %v15436_v60 = vld [vmem:[#allocation185_spill] sm:$0xff] }
 0x49f   : > { %v13520_v41 = vadd.f32 %v6006_v3, %v5557_v24  ;;  %v5571_v1 = vpop.f32.mrf.mxu0  ;;  %v4237_v54 = vpop.permute.xlu1 %4236  ;;  %5861 = vmatprep.mubr.f32.mxu0 %v5394_v12  ;;  %6298 = vmatprep.mubr.f32.mxu1 %v5380_v19  ;;  %v3594_v5 = vmul.f32 %v3208_v2, %v15436_v60  ;;  %v5409_v46 = vld [vmem:[%s8211_s9 + $0xe00] sm:$0xff] }
 0x4a0   : > { %v4937_v50 = vmax.f32 %v4681_v16, 0.0  ;;  %v4938_v22 = vmax.f32 %v4682_v38, 0.0  ;;  %v6008_v45 = vpop.f32.mrf.mxu1  ;;  %v4619_v58 = vadd.f32 %v4237_v54, %v3595_v53  ;;  %v4620_v8 = vadd.f32 %v4237_v54, %v3596_v4  ;;  %v5418_v53 = vld [vmem:[%s8211_s9 + $0xe48] sm:$0xff]  ;;  %v5404_v4 = vld [vmem:[%s8211_s9 + $0xdd8] sm:$0xff] }
 0x4a1   : > { %v13524_v42 = vadd.f32 %v6008_v45, %v5559_v59  ;;  %v13526_v7 = vpop.permute.xlu0 %3357  ;;  %v5575_v24 = vpop.f32.mrf.mxu0  ;;  %5862 = vmatmul.mubr.f32.gmra.mxu0 %v5393_v11  ;;  %v5387_v59 = vld [vmem:[%s8211_s9 + $0xd50] sm:$0xff]  ;;  %v5417_v11 = vld [vmem:[%s8211_s9 + $0xe40] sm:$0xff] }
 0x4a2   : > { %v4875_v43 = vmax.f32 %v4619_v58, 0.0  ;;  %v4876_v17 = vmax.f32 %v4620_v8, 0.0  ;;  %v6012_v27 = vpop.f32.mrf.mxu1  ;;  %6299 = vmatmul.mubr.f32.gmra.mxu1 %v5379_v6  ;;  %6874 = vmatprep.subr.mxu1 %v4938_v22  ;;  %v15437_v22 = vld [vmem:[#allocation249_spill] sm:$0xff]  ;;  %v15438_v58 = vld [vmem:[#allocation246_spill] sm:$0xff] }
 0x4a3   : > { %v13530_v48 = vadd.f32 %v6012_v27, %v5563_v49  ;;  %6875 = vmatpush2.msra.mxu1 %v4937_v50  ;;  %v5577_v37 = vpop.f32.mrf.mxu0  ;;  %v13532_v33 = vpop.permute.xlu1 %3202  ;;  %5867 = vmatprep.mubr.f32.mxu0 %v5402_v18  ;;  %v3593_v49 = vmul.f32 %v3208_v2, %v15435_v56  ;;  %v5403_v50 = vld [vmem:[%s8211_s9 + $0xdd0] sm:$0xff]  ;;  %v3653_v45 = vmul.f32 %v13526_v7, %v15437_v22 }
 0x4a4   : > { %v6014_v26 = vpop.f32.mrf.mxu1  ;;  %6304 = vmatprep.mubr.f32.mxu1 %v5388_v52  ;;  %6423 = vmatprep.subr.mxu0 %v4876_v17  ;;  %v3654_v8 = vmul.f32 %v13526_v7, %v15438_v58  ;;  %v5426_v52 = vld [vmem:[%s8211_s9 + $0xe88] sm:$0xff]  ;;  %v5411_v56 = vld [vmem:[%s8211_s9 + $0xe10] sm:$0xff] }
 0x4a5   : > { %v13542_v63 = vadd.f32 %v6014_v26, %v5565_v47  ;;  %v4387_v10 = vpop.permute.xlu0 %4386  ;;  %v5581_v9 = vpop.f32.mrf.mxu0  ;;  %5868 = vmatmul.mubr.f32.gmra.mxu0 %v5401_v40  ;;  %v5395_v47 = vld [vmem:[%s8211_s9 + $0xd90] sm:$0xff]  ;;  %v15439_v17 = vld [vmem:[#allocation182_spill] sm:$0xff]  ;;  %v5425_v26 = vld [vmem:[%s8211_s9 + $0xe80] sm:$0xff] }
 0x4a6   : > { %v4679_v0 = vadd.f32 %v4387_v10, %v3655_v31  ;;  %v4680_v21 = vadd.f32 %v4387_v10, %v3656_v62  ;;  %v6018_v20 = vpop.f32.mrf.mxu1  ;;  %6305 = vmatmul.mubr.f32.gmra.mxu1 %v5387_v59  ;;  %6424 = vmatpush2.msra.mxu0 %v4875_v43  ;;  %v5412_v43 = vld [vmem:[%s8211_s9 + $0xe18] sm:$0xff]  ;;  %v3592_v31 = vmul.f32 %v13532_v33, %v15440_v35 }
 0x4a7   : > { %v13546_v25 = vadd.f32 %v6018_v20, %v5569_v61  ;;  %v5583_v36 = vpop.f32.mrf.mxu0  ;;  %v4232_v29 = vpop.permute.xlu1 %4231  ;;  %5873 = vmatprep.mubr.f32.mxu0 %v5410_v28  ;;  %6310 = vmatprep.mubr.f32.mxu1 %v5396_v51 }
 0x4a8   : > { %v4935_v13 = vmax.f32 %v4679_v0, 0.0  ;;  %v4936_v12 = vmax.f32 %v4680_v21, 0.0  ;;  %v6020_v19 = vpop.f32.mrf.mxu1  ;;  %v4617_v2 = vadd.f32 %v4232_v29, %v3593_v49  ;;  %v4618_v44 = vadd.f32 %v4232_v29, %v3594_v5  ;;  %v5434_v0 = vld [vmem:[%s8211_s9 + $0xec8] sm:$0xff] }
 0x4a9   : > { %v13550_v39 = vadd.f32 %v6020_v19, %v5571_v1  ;;  %v13552_v55 = vpop.permute.xlu0 %3352  ;;  %v5587_v61 = vpop.f32.mrf.mxu0  ;;  %5874 = vmatmul.mubr.f32.gmra.mxu0 %v5409_v46  ;;  %v5420_v46 = vld [vmem:[%s8211_s9 + $0xe58] sm:$0xff] }
 0x4aa   : > { %v4873_v16 = vmax.f32 %v4617_v2, 0.0  ;;  %v4874_v38 = vmax.f32 %v4618_v44, 0.0  ;;  %v6024_v3 = vpop.f32.mrf.mxu1  ;;  %6311 = vmatmul.mubr.f32.gmra.mxu1 %v5395_v47  ;;  %6876 = vmatprep.subr.mxu1 %v4936_v12 }
 0x4ab   : > { %v13556_v54 = vadd.f32 %v6024_v3, %v5575_v24  ;;  %6877 = vmatpush2.msra.mxu1 %v4935_v13  ;;  %v5589_v6 = vpop.f32.mrf.mxu0  ;;  %v3198_v1 = vpop.permute.xlu1 %3197  ;;  %5879 = vmatprep.mubr.f32.mxu0 %v5418_v53  ;;  %v3591_v24 = vmul.f32 %v13532_v33, %v15439_v17  ;;  %v5433_v13 = vld [vmem:[%s8211_s9 + $0xec0] sm:$0xff]  ;;  %v5442_v53 = vld [vmem:[%s8211_s9 + $0xf08] sm:$0xff]  ;;  %v15441_v3 = vld [vmem:[#allocation183_spill] sm:$0xff] }
 0x4ac   : > { %v6026_v18 = vpop.f32.mrf.mxu1  ;;  %6316 = vmatprep.mubr.f32.mxu1 %v5404_v4  ;;  %6425 = vmatprep.subr.mxu0 %v4874_v38  ;;  %v5428_v4 = vld [vmem:[%s8211_s9 + $0xe98] sm:$0xff] }
 0x4ad   : > { %v13567_v27 = vadd.f32 %v6026_v18, %v5577_v37  ;;  %v4382_v40 = vpop.permute.xlu0 %4381  ;;  %v5593_v59 = vpop.f32.mrf.mxu0  ;;  %5880 = vmatmul.mubr.f32.gmra.mxu0 %v5417_v11  ;;  %v15442_v11 = vld [vmem:[#allocation181_spill] sm:$0xff] }
 0x4ae   : > { %v4677_v15 = vadd.f32 %v4382_v40, %v3653_v45  ;;  %v4678_v7 = vadd.f32 %v4382_v40, %v3654_v8  ;;  %v6030_v62 = vpop.f32.mrf.mxu1  ;;  %6317 = vmatmul.mubr.f32.gmra.mxu1 %v5403_v50  ;;  %6426 = vmatpush2.msra.mxu0 %v4873_v16  ;;  %v3590_v50 = vmul.f32 %v3198_v1, %v15442_v11  ;;  %v5441_v45 = vld [vmem:[%s8211_s9 + $0xf00] sm:$0xff]  ;;  %v5436_v40 = vld [vmem:[%s8211_s9 + $0xed8] sm:$0xff] }
 0x4af   : > { %v13572_v28 = vadd.f32 %v6030_v62, %v5581_v9  ;;  %v5595_v51 = vpop.f32.mrf.mxu0  ;;  %v4227_v37 = vpop.permute.xlu1 %4226  ;;  %5885 = vmatprep.mubr.f32.mxu0 %v5426_v52  ;;  %6322 = vmatprep.mubr.f32.mxu1 %v5412_v43  ;;  %v5450_v52 = vld [vmem:[%s8211_s9 + $0xf48] sm:$0xff] }
 0x4b0   : > { %v4933_v49 = vmax.f32 %v4677_v15, 0.0  ;;  %v4934_v10 = vmax.f32 %v4678_v7, 0.0  ;;  %v6032_v60 = vpop.f32.mrf.mxu1  ;;  %v4615_v33 = vadd.f32 %v4227_v37, %v3591_v24  ;;  %v4616_v5 = vadd.f32 %v4227_v37, %v3592_v31  ;;  %v5449_v7 = vld [vmem:[%s8211_s9 + $0xf40] sm:$0xff] }
 0x4b1   : > { %v13576_v21 = vadd.f32 %v6032_v60, %v5583_v36  ;;  %v5599_v20 = vpop.f32.mrf.mxu0  ;;  %5886 = vmatmul.mubr.f32.gmra.mxu0 %v5425_v26  ;;  %v5419_v36 = vld [vmem:[%s8211_s9 + $0xe50] sm:$0xff]  ;;  %v4212_v11 = vpop.permute.xlu0 %4211 }
 0x4b2   : > { %v4871_v9 = vmax.f32 %v4615_v33, 0.0  ;;  %v4872_v29 = vmax.f32 %v4616_v5, 0.0  ;;  %v6036_v47 = vpop.f32.mrf.mxu1  ;;  %6323 = vmatmul.mubr.f32.gmra.mxu1 %v5411_v56  ;;  %6878 = vmatprep.subr.mxu1 %v4934_v10  ;;  %v5435_v56 = vld [vmem:[%s8211_s9 + $0xed0] sm:$0xff]  ;;  %v5444_v10 = vld [vmem:[%s8211_s9 + $0xf18] sm:$0xff]  ;;  %v15443_v33 = vld [vmem:[#allocation177_spill] sm:$0xff] }
 0x4b3   : > { %v13580_v12 = vadd.f32 %v6036_v47, %v5587_v61  ;;  %6879 = vmatpush2.msra.mxu1 %v4933_v49  ;;  %v5601_v19 = vpop.f32.mrf.mxu0  ;;  %v3193_v2 = vpop.permute.xlu1 %3192  ;;  %5891 = vmatprep.mubr.f32.mxu0 %v5434_v0  ;;  %v3589_v61 = vmul.f32 %v3198_v1, %v15441_v3  ;;  %v15446_v47 = vld [vmem:[#allocation180_spill] sm:$0xff]  ;;  %v5443_v3 = vld [vmem:[%s8211_s9 + $0xf10] sm:$0xff] }
 0x4b4   : > { %v6038_v44 = vpop.f32.mrf.mxu1  ;;  %6328 = vmatprep.mubr.f32.mxu1 %v5420_v46  ;;  %6427 = vmatprep.subr.mxu0 %v4872_v29  ;;  %v15444_v46 = vld [vmem:[#allocation178_spill] sm:$0xff] }
 0x4b5   : > { %v13585_v16 = vadd.f32 %v6038_v44, %v5589_v6  ;;  %v5605_v38 = vpop.f32.mrf.mxu0  ;;  %5892 = vmatmul.mubr.f32.gmra.mxu0 %v5433_v13  ;;  %v5427_v6 = vld [vmem:[%s8211_s9 + $0xe90] sm:$0xff]  ;;  %v5457_v44 = vld [vmem:[%s8211_s9 + $0xf80] sm:$0xff] }
 0x4b6   : > { %v6042_v22 = vpop.f32.mrf.mxu1  ;;  %6329 = vmatmul.mubr.f32.gmra.mxu1 %v5419_v36  ;;  %6428 = vmatpush2.msra.mxu0 %v4871_v9  ;;  %v15445_v9 = vld [vmem:[#allocation176_spill] sm:$0xff] }
 0x4b7   : > { %v13590_v58 = vadd.f32 %v6042_v22, %v5593_v59  ;;  %v5607_v8 = vpop.f32.mrf.mxu0  ;;  %v4222_v18 = vpop.permute.xlu1 %4221  ;;  %5897 = vmatprep.mubr.f32.mxu0 %v5442_v53  ;;  %6334 = vmatprep.mubr.f32.mxu1 %v5428_v4  ;;  %v3588_v29 = vmul.f32 %v3193_v2, %v15445_v9 }
 0x4b8   : > { %v6044_v43 = vpop.f32.mrf.mxu1  ;;  %v4613_v17 = vadd.f32 %v4222_v18, %v3589_v61  ;;  %v4614_v24 = vadd.f32 %v4222_v18, %v3590_v50  ;;  %v5466_v61 = vld [vmem:[%s8211_s9 + $0xfc8] sm:$0xff] }
 0x4b9   : > { %v13595_v35 = vadd.f32 %v6044_v43, %v5595_v51  ;;  %v5611_v1 = vpop.f32.mrf.mxu0  ;;  %5898 = vmatmul.mubr.f32.gmra.mxu0 %v5441_v45  ;;  %v5458_v51 = vld [vmem:[%s8211_s9 + $0xf88] sm:$0xff]  ;;  %v5452_v45 = vld [vmem:[%s8211_s9 + $0xf58] sm:$0xff] }
 0x4ba   : > { %v4869_v59 = vmax.f32 %v4613_v17, 0.0  ;;  %v4870_v31 = vmax.f32 %v4614_v24, 0.0  ;;  %v6048_v15 = vpop.f32.mrf.mxu1  ;;  %6335 = vmatmul.mubr.f32.gmra.mxu1 %v5427_v6  ;;  %5903 = vmatprep.mubr.f32.mxu0 %v5450_v52 }
 0x4bb   : > { %v13598_v62 = vadd.f32 %v6048_v15, %v5599_v20  ;;  %v5613_v26 = vpop.f32.mrf.mxu0  ;;  %v3188_v37 = vpop.permute.xlu1 %3187  ;;  %6340 = vmatprep.mubr.f32.mxu1 %v5436_v40  ;;  %v3587_v20 = vmul.f32 %v3193_v2, %v15444_v46  ;;  %v5465_v40 = vld [vmem:[%s8211_s9 + $0xfc0] sm:$0xff] }
 0x4bc   : > { %v6050_v49 = vpop.f32.mrf.mxu1  ;;  %6429 = vmatprep.subr.mxu0 %v4870_v31  ;;  %v3586_v5 = vmul.f32 %v3188_v37, %v15443_v33  ;;  %v3585_v13 = vmul.f32 %v3188_v37, %v15446_v47 }
 0x4bd   : > { %v13603_v60 = vadd.f32 %v6050_v49, %v5601_v19  ;;  %v5617_v0 = vpop.f32.mrf.mxu0  ;;  %5904 = vmatmul.mubr.f32.gmra.mxu0 %v5449_v7  ;;  %v5451_v7 = vld [vmem:[%s8211_s9 + $0xf50] sm:$0xff]  ;;  %v5460_v49 = vld [vmem:[%s8211_s9 + $0xf98] sm:$0xff] }
 0x4be   : > { %v6054_v36 = vpop.f32.mrf.mxu1  ;;  %6341 = vmatmul.mubr.f32.gmra.mxu1 %v5435_v56  ;;  %6430 = vmatpush2.msra.mxu0 %v4869_v59  ;;  %v4610_v18 = vadd.f32 %v4212_v11, %v3586_v5 }
 0x4bf   : > { %v13610_v53 = vadd.f32 %v6054_v36, %v5605_v38  ;;  %v5619_v19 = vpop.f32.mrf.mxu0  ;;  %v4217_v4 = vpop.permute.xlu1 %4216  ;;  %5909 = vmatprep.mubr.f32.mxu0 %v5458_v51  ;;  %6346 = vmatprep.mubr.f32.mxu1 %v5444_v10  ;;  %v4609_v38 = vadd.f32 %v4212_v11, %v3585_v13  ;;  %v15448_v10 = vld [vmem:[#allocation244_spill] sm:$0xff]  ;;  %v5459_v11 = vld [vmem:[%s8211_s9 + $0xf90] sm:$0xff] }
 0x4c0   : > { %v6056_v50 = vpop.f32.mrf.mxu1  ;;  %v4611_v22 = vadd.f32 %v4217_v4, %v3587_v20  ;;  %v4612_v2 = vadd.f32 %v4217_v4, %v3588_v29  ;;  %v4866_v46 = vmax.f32 %v4610_v18, 0.0  ;;  %v15449_v20 = vld [vmem:[#allocation243_spill] sm:$0xff]  ;;  %v15450_v29 = vld [vmem:[#allocation241_spill] sm:$0xff]  ;;  %v4372_v13 = vpop.permute.xlu0 %4371  ;;  %v5468_v18 = vld [vmem:[%s8211_s9 + $0xfd8] sm:$0xff] }
 0x4c1   : > { %v13615_v6 = vadd.f32 %v6056_v50, %v5607_v8  ;;  %v5623_v52 = vpop.f32.mrf.mxu0  ;;  %5910 = vmatmul.mubr.f32.gmra.mxu0 %v5457_v44  ;;  %v15447_v8 = vld [vmem:[#allocation242_spill] sm:$0xff]  ;;  %v3651_v9 = vmul.f32 %v13552_v55, %v15449_v20  ;;  %v3652_v47 = vmul.f32 %v13552_v55, %v15450_v29  ;;  %v4865_v36 = vmax.f32 %v4609_v38, 0.0  ;;  %v4981_v20 = vld [vmem:[%s8211_s9 + $0xa0] sm:$0xff] }
 0x4c2   : > { %v4867_v43 = vmax.f32 %v4611_v22, 0.0  ;;  %v4868_v17 = vmax.f32 %v4612_v2, 0.0  ;;  %v6060_v24 = vpop.f32.mrf.mxu1  ;;  %6347 = vmatmul.mubr.f32.gmra.mxu1 %v5443_v3  ;;  %5915 = vmatprep.mubr.f32.mxu0 %v5466_v61  ;;  %v4974_v50 = vld [vmem:[%s8211_s9 + $0x68] sm:$0xff] }
 0x4c3   : > { %v13618_v59 = vadd.f32 %v6060_v24, %v5611_v1  ;;  %v5625_v31 = vpop.f32.mrf.mxu0  ;;  %v3348_v15 = vpop.permute.xlu1 %3347  ;;  %6352 = vmatprep.mubr.f32.mxu1 %v5452_v45  ;;  %v4966_v1 = vld [vmem:[%s8211_s9 + $0x28] sm:$0xff] }
 0x4c4   : > { %v6062_v37 = vpop.f32.mrf.mxu1  ;;  %v3650_v56 = vmul.f32 %v3348_v15, %v15447_v8  ;;  %6431 = vmatprep.subr.mxu0 %v4868_v17  ;;  %v3649_v33 = vmul.f32 %v3348_v15, %v15448_v10  ;;  %v4973_v15 = vld [vmem:[%s8211_s9 + $0x60] sm:$0xff]  ;;  %v5467_v8 = vld [vmem:[%s8211_s9 + $0xfd0] sm:$0xff] }
 0x4c5   : > { %v13623_v51 = vadd.f32 %v6062_v37, %v5613_v26  ;;  %v5629_v5 = vpop.f32.mrf.mxu0  ;;  %5916 = vmatmul.mubr.f32.gmra.mxu0 %v5465_v40  ;;  %v4965_v26 = vld [vmem:[%s8211_s9 + $0x20] sm:$0xff] }
 0x4c6   : > { %v6066_v44 = vpop.f32.mrf.mxu1  ;;  %6353 = vmatmul.mubr.f32.gmra.mxu1 %v5451_v7  ;;  %6432 = vmatpush2.msra.mxu0 %v4867_v43  ;;  %v4674_v22 = vadd.f32 %v4372_v13, %v3650_v56  ;;  %v4673_v38 = vadd.f32 %v4372_v13, %v3649_v33 }
 0x4c7   : > { %v13632_v4 = vadd.f32 %v6066_v44, %v5617_v0  ;;  %v5631_v3 = vpop.f32.mrf.mxu0  ;;  %6433 = vmatprep.subr.mxu0 %v4866_v46  ;;  %v4377_v61 = vpop.permute.xlu1 %4376  ;;  %6358 = vmatprep.mubr.f32.mxu1 %v5460_v49  ;;  %v4982_v49 = vld [vmem:[%s8211_s9 + $0xa8] sm:$0xff] }
 0x4c8   : > { %v6068_v2 = vpop.f32.mrf.mxu1  ;;  %v4675_v45 = vadd.f32 %v4377_v61, %v3651_v9  ;;  %v4676_v55 = vadd.f32 %v4377_v61, %v3652_v47  ;;  %6434 = vmatpush2.msra.mxu0 %v4865_v36  ;;  %6435 = vmatprep.mubr.f32.mxu0 %v4966_v1  ;;  %v4929_v10 = vmax.f32 %v4673_v38, 0.0  ;;  %v4968_v1 = vld [vmem:[%s8211_s9 + $0x38] sm:$0xff]  ;;  %v4967_v47 = vld [vmem:[%s8211_s9 + $0x30] sm:$0xff] }
 0x4c9   : > { %v13637_v43 = vadd.f32 %v6068_v2, %v5619_v19  ;;  %v5635_v0 = vpop.f32.mrf.mxu0  ;;  %6436 = vmatmul.mubr.f32.vlgmr.msra.gmra.mxu0 %v4965_v26  ;;  %v4930_v19 = vmax.f32 %v4674_v22, 0.0  ;;  %v4976_v36 = vld [vmem:[%s8211_s9 + $0x78] sm:$0xff]  ;;  %v4975_v22 = vld [vmem:[%s8211_s9 + $0x70] sm:$0xff]  ;;  %v4998_v2 = vld [vmem:[%s8211_s9 + $0x128] sm:$0xff] }
 0x4ca   : > { %v4931_v17 = vmax.f32 %v4675_v45, 0.0  ;;  %v4932_v24 = vmax.f32 %v4676_v55, 0.0  ;;  %v6072_v40 = vpop.f32.mrf.mxu1  ;;  %6359 = vmatmul.mubr.f32.gmra.mxu1 %v5459_v11  ;;  %6441 = vmatprep.mubr.f32.mxu0 %v4974_v50  ;;  %v4984_v55 = vld [vmem:[%s8211_s9 + $0xb8] sm:$0xff] }
 0x4cb   : > { %v13640_v7 = vadd.f32 %v6072_v40, %v5623_v52  ;;  %v5637_v37 = vpop.f32.mrf.mxu0  ;;  %6364 = vmatprep.mubr.f32.mxu1 %v5468_v18  ;;  %v4983_v40 = vld [vmem:[%s8211_s9 + $0xb0] sm:$0xff] }
 0x4cc   : > { %v6074_v56 = vpop.f32.mrf.mxu1  ;;  %6880 = vmatprep.subr.mxu1 %v4932_v24 }
 0x4cd   : > { %v13644_v33 = vadd.f32 %v6074_v56, %v5625_v31  ;;  %v5641_v46 = vpop.f32.mrf.mxu0  ;;  %6442 = vmatmul.mubr.f32.gmra.mxu0 %v4973_v15  ;;  %6881 = vmatpush2.msra.mxu1 %v4931_v17  ;;  %v4990_v31 = vld [vmem:[%s8211_s9 + $0xe8] sm:$0xff]  ;;  %v4997_v17 = vld [vmem:[%s8211_s9 + $0x120] sm:$0xff]  ;;  %v4992_v56 = vld [vmem:[%s8211_s9 + $0xf8] sm:$0xff] }
 0x4ce   : > { %v6078_v52 = vpop.f32.mrf.mxu1  ;;  %6365 = vmatmul.mubr.f32.gmra.mxu1 %v5467_v8  ;;  %6882 = vmatprep.subr.mxu1 %v4930_v19  ;;  %v5006_v15 = vld [vmem:[%s8211_s9 + $0x168] sm:$0xff] }
 0x4cf   : > { %v13648_v9 = vadd.f32 %v6078_v52, %v5629_v5  ;;  %v5643_v29 = vpop.f32.mrf.mxu0  ;;  %6447 = vmatprep.mubr.f32.mxu0 %v4982_v49  ;;  %6883 = vmatpush2.msra.mxu1 %v4929_v10  ;;  %v4989_v5 = vld [vmem:[%s8211_s9 + $0xe0] sm:$0xff]  ;;  %v4991_v52 = vld [vmem:[%s8211_s9 + $0xf0] sm:$0xff] }
 0x4d0   : > { %v6080_v13 = vpop.f32.mrf.mxu1  ;;  %6884 = vmatprep.mubr.f32.mxu1 %v4968_v1  ;;  %v5005_v10 = vld [vmem:[%s8211_s9 + $0x160] sm:$0xff] }
 0x4d1   : > { %v13653_v44 = vadd.f32 %v6080_v13, %v5631_v3  ;;  %v5647_v26 = vpop.f32.mrf.mxu0  ;;  %6448 = vmatmul.mubr.f32.gmra.mxu0 %v4981_v20  ;;  %v5014_v20 = vld [vmem:[%s8211_s9 + $0x1a8] sm:$0xff] }
 0x4d2   : > { %v6084_v61 = vpop.f32.mrf.mxu1  ;;  %6885 = vmatmul.mubr.f32.vlgmr.msra.gmra.mxu1 %v4967_v47  ;;  %6453 = vmatprep.mubr.f32.mxu0 %v4990_v31  ;;  %v5000_v31 = vld [vmem:[%s8211_s9 + $0x138] sm:$0xff] }
 0x4d3   : > { %v13656_v11 = vadd.f32 %v6084_v61, %v5635_v0  ;;  %v5649_v50 = vpop.f32.mrf.mxu0  ;;  %6890 = vmatprep.mubr.f32.mxu1 %v4976_v36  ;;  %v5013_v61 = vld [vmem:[%s8211_s9 + $0x1a0] sm:$0xff] }
 0x4d4   : > { %v6086_v45 = vpop.f32.mrf.mxu1 }
 0x4d5   : > { %v13661_v3 = vadd.f32 %v6086_v45, %v5637_v37  ;;  %v5653_v18 = vpop.f32.mrf.mxu0  ;;  %6454 = vmatmul.mubr.f32.gmra.mxu0 %v4989_v5 }
 0x4d6   : > { %v6090_v38 = vpop.f32.mrf.mxu1  ;;  %6891 = vmatmul.mubr.f32.gmra.mxu1 %v4975_v22  ;;  %6459 = vmatprep.mubr.f32.mxu0 %v4998_v2  ;;  %v4999_v22 = vld [vmem:[%s8211_s9 + $0x130] sm:$0xff]  ;;  %v5022_v2 = vld [vmem:[%s8211_s9 + $0x1e8] sm:$0xff] }
 0x4d7   : > { %v13664_v0 = vadd.f32 %v6090_v38, %v5641_v46  ;;  %v5655_v24 = vpop.f32.mrf.mxu0  ;;  %6896 = vmatprep.mubr.f32.mxu1 %v4984_v55  ;;  %v5008_v55 = vld [vmem:[%s8211_s9 + $0x178] sm:$0xff] }
 0x4d8   : > { %v6092_v8 = vpop.f32.mrf.mxu1 }
 0x4d9   : > { %v13669_v37 = vadd.f32 %v6092_v8, %v5643_v29  ;;  %v5659_v19 = vpop.f32.mrf.mxu0  ;;  %6460 = vmatmul.mubr.f32.gmra.mxu0 %v4997_v17  ;;  %v5007_v8 = vld [vmem:[%s8211_s9 + $0x170] sm:$0xff] }
 0x4da   : > { %v6096_v49 = vpop.f32.mrf.mxu1  ;;  %6897 = vmatmul.mubr.f32.gmra.mxu1 %v4983_v40  ;;  %6465 = vmatprep.mubr.f32.mxu0 %v5006_v15  ;;  %v5021_v40 = vld [vmem:[%s8211_s9 + $0x1e0] sm:$0xff] }
 0x4db   : > { %v13672_v46 = vadd.f32 %v6096_v49, %v5647_v26  ;;  %v5661_v1 = vpop.f32.mrf.mxu0  ;;  %6902 = vmatprep.mubr.f32.mxu1 %v4992_v56  ;;  %v5030_v56 = vld [vmem:[%s8211_s9 + $0x228] sm:$0xff] }
 0x4dc   : > { %v6098_v47 = vpop.f32.mrf.mxu1 }
 0x4dd   : > { %v13677_v29 = vadd.f32 %v6098_v47, %v5649_v50  ;;  %v5665_v13 = vpop.f32.mrf.mxu0  ;;  %6466 = vmatmul.mubr.f32.gmra.mxu0 %v5005_v10  ;;  %v5016_v10 = vld [vmem:[%s8211_s9 + $0x1b8] sm:$0xff]  ;;  %v5029_v47 = vld [vmem:[%s8211_s9 + $0x220] sm:$0xff] }
 0x4de   : > { %v6102_v36 = vpop.f32.mrf.mxu1  ;;  %6903 = vmatmul.mubr.f32.gmra.mxu1 %v4991_v52  ;;  %6471 = vmatprep.mubr.f32.mxu0 %v5014_v20 }
 0x4df   : > { %v13680_v26 = vadd.f32 %v6102_v36, %v5653_v18  ;;  %v5667_v5 = vpop.f32.mrf.mxu0  ;;  %6908 = vmatprep.mubr.f32.mxu1 %v5000_v31  ;;  %v5015_v36 = vld [vmem:[%s8211_s9 + $0x1b0] sm:$0xff] }
 0x4e0   : > { %v6104_v45 = vpop.f32.mrf.mxu1 }
 0x4e1   : > { %v13685_v50 = vadd.f32 %v6104_v45, %v5655_v24  ;;  %v5671_v38 = vpop.f32.mrf.mxu0  ;;  %6472 = vmatmul.mubr.f32.gmra.mxu0 %v5013_v61  ;;  %v5038_v61 = vld [vmem:[%s8211_s9 + $0x268] sm:$0xff] }
 0x4e2   : > { %v6108_v17 = vpop.f32.mrf.mxu1  ;;  %6909 = vmatmul.mubr.f32.gmra.mxu1 %v4999_v22  ;;  %6477 = vmatprep.mubr.f32.mxu0 %v5022_v2  ;;  %v5024_v2 = vld [vmem:[%s8211_s9 + $0x1f8] sm:$0xff] }
 0x4e3   : > { %v13688_v18 = vadd.f32 %v6108_v17, %v5659_v19  ;;  %v5673_v15 = vpop.f32.mrf.mxu0  ;;  %6914 = vmatprep.mubr.f32.mxu1 %v5008_v55  ;;  %v5037_v17 = vld [vmem:[%s8211_s9 + $0x260] sm:$0xff] }
 0x4e4   : > { %v6110_v49 = vpop.f32.mrf.mxu1 }
 0x4e5   : > { %v13693_v24 = vadd.f32 %v6110_v49, %v5661_v1  ;;  %v5677_v52 = vpop.f32.mrf.mxu0  ;;  %6478 = vmatmul.mubr.f32.gmra.mxu0 %v5021_v40 }
 0x4e6   : > { %v6114_v20 = vpop.f32.mrf.mxu1  ;;  %6915 = vmatmul.mubr.f32.gmra.mxu1 %v5007_v8  ;;  %6483 = vmatprep.mubr.f32.mxu0 %v5030_v56  ;;  %v5023_v8 = vld [vmem:[%s8211_s9 + $0x1f0] sm:$0xff]  ;;  %v5046_v56 = vld [vmem:[%s8211_s9 + $0x2a8] sm:$0xff] }
 0x4e7   : > { %v13696_v19 = vadd.f32 %v6114_v20, %v5665_v13  ;;  %v5679_v31 = vpop.f32.mrf.mxu0  ;;  %6920 = vmatprep.mubr.f32.mxu1 %v5016_v10  ;;  %v5032_v10 = vld [vmem:[%s8211_s9 + $0x238] sm:$0xff] }
 0x4e8   : > { %v6116_v22 = vpop.f32.mrf.mxu1 }
 0x4e9   : > { %v13701_v1 = vadd.f32 %v6116_v22, %v5667_v5  ;;  %v5683_v45 = vpop.f32.mrf.mxu0  ;;  %6484 = vmatmul.mubr.f32.gmra.mxu0 %v5029_v47  ;;  %v5031_v22 = vld [vmem:[%s8211_s9 + $0x230] sm:$0xff] }
 0x4ea   : > { %v6120_v55 = vpop.f32.mrf.mxu1  ;;  %6921 = vmatmul.mubr.f32.gmra.mxu1 %v5015_v36  ;;  %6489 = vmatprep.mubr.f32.mxu0 %v5038_v61  ;;  %v5045_v36 = vld [vmem:[%s8211_s9 + $0x2a0] sm:$0xff] }
 0x4eb   : > { %v13704_v13 = vadd.f32 %v6120_v55, %v5671_v38  ;;  %v5685_v40 = vpop.f32.mrf.mxu0  ;;  %6926 = vmatprep.mubr.f32.mxu1 %v5024_v2  ;;  %v5054_v2 = vld [vmem:[%s8211_s9 + $0x2e8] sm:$0xff] }
 0x4ec   : > { %v6122_v49 = vpop.f32.mrf.mxu1 }
 0x4ed   : > { %15451 = vst [vmem:[#allocation33_spill] sm:$0xff] %v13704_v13  ;;  %v13709_v5 = vadd.f32 %v6122_v49, %v5673_v15  ;;  %v5689_v20 = vpop.f32.mrf.mxu0  ;;  %6490 = vmatmul.mubr.f32.gmra.mxu0 %v5037_v17  ;;  %v5040_v13 = vld [vmem:[%s8211_s9 + $0x278] sm:$0xff] }
 0x4ee   : > { %v6126_v47 = vpop.f32.mrf.mxu1  ;;  %6927 = vmatmul.mubr.f32.gmra.mxu1 %v5023_v8  ;;  %6495 = vmatprep.mubr.f32.mxu0 %v5046_v56  ;;  %v5053_v8 = vld [vmem:[%s8211_s9 + $0x2e0] sm:$0xff] }
 0x4ef   : > { %15452 = vst [vmem:[#allocation31_spill] sm:$0xff] %v13709_v5  ;;  %v13712_v38 = vadd.f32 %v6126_v47, %v5677_v52  ;;  %v5691_v61 = vpop.f32.mrf.mxu0  ;;  %6932 = vmatprep.mubr.f32.mxu1 %v5032_v10  ;;  %v5039_v10 = vld [vmem:[%s8211_s9 + $0x270] sm:$0xff]  ;;  %v5062_v47 = vld [vmem:[%s8211_s9 + $0x328] sm:$0xff]  ;;  %v5048_v5 = vld [vmem:[%s8211_s9 + $0x2b8] sm:$0xff] }
 0x4f0   : > { %v6128_v55 = vpop.f32.mrf.mxu1 }
 0x4f1   : > { %15453 = vst [vmem:[#allocation37_spill] sm:$0xff] %v13712_v38  ;;  %v13717_v15 = vadd.f32 %v6128_v55, %v5679_v31  ;;  %v5695_v49 = vpop.f32.mrf.mxu0  ;;  %6496 = vmatmul.mubr.f32.gmra.mxu0 %v5045_v36 }
 0x4f2   : > { %v6132_v17 = vpop.f32.mrf.mxu1  ;;  %6933 = vmatmul.mubr.f32.gmra.mxu1 %v5031_v22  ;;  %6501 = vmatprep.mubr.f32.mxu0 %v5054_v2  ;;  %v5061_v22 = vld [vmem:[%s8211_s9 + $0x320] sm:$0xff] }
 0x4f3   : > { %15454 = vst [vmem:[#allocation45_spill] sm:$0xff] %v13717_v15  ;;  %v13720_v52 = vadd.f32 %v6132_v17, %v5683_v45  ;;  %v5697_v56 = vpop.f32.mrf.mxu0  ;;  %6938 = vmatprep.mubr.f32.mxu1 %v5040_v13  ;;  %v5047_v13 = vld [vmem:[%s8211_s9 + $0x2b0] sm:$0xff]  ;;  %v5070_v17 = vld [vmem:[%s8211_s9 + $0x368] sm:$0xff]  ;;  %v5056_v15 = vld [vmem:[%s8211_s9 + $0x2f8] sm:$0xff] }
 0x4f4   : > { %v6134_v38 = vpop.f32.mrf.mxu1 }
 0x4f5   : > { %15455 = vst [vmem:[#allocation44_spill] sm:$0xff] %v13720_v52  ;;  %v13725_v31 = vadd.f32 %v6134_v38, %v5685_v40  ;;  %v5701_v55 = vpop.f32.mrf.mxu0  ;;  %6502 = vmatmul.mubr.f32.gmra.mxu0 %v5053_v8 }
 0x4f6   : > { %v6138_v36 = vpop.f32.mrf.mxu1  ;;  %6939 = vmatmul.mubr.f32.gmra.mxu1 %v5039_v10  ;;  %6507 = vmatprep.mubr.f32.mxu0 %v5062_v47  ;;  %v5069_v10 = vld [vmem:[%s8211_s9 + $0x360] sm:$0xff] }
 0x4f7   : > { %15456 = vst [vmem:[#allocation43_spill] sm:$0xff] %v13725_v31  ;;  %v13728_v45 = vadd.f32 %v6138_v36, %v5689_v20  ;;  %v5703_v2 = vpop.f32.mrf.mxu0  ;;  %6944 = vmatprep.mubr.f32.mxu1 %v5048_v5  ;;  %v5055_v5 = vld [vmem:[%s8211_s9 + $0x2f0] sm:$0xff]  ;;  %v5078_v36 = vld [vmem:[%s8211_s9 + $0x3a8] sm:$0xff]  ;;  %v5064_v31 = vld [vmem:[%s8211_s9 + $0x338] sm:$0xff] }
 0x4f8   : > { %v6140_v52 = vpop.f32.mrf.mxu1 }
 0x4f9   : > { %15457 = vst [vmem:[#allocation34_spill] sm:$0xff] %v13728_v45  ;;  %v13733_v40 = vadd.f32 %v6140_v52, %v5691_v61  ;;  %v5707_v38 = vpop.f32.mrf.mxu0  ;;  %6508 = vmatmul.mubr.f32.gmra.mxu0 %v5061_v22 }
 0x4fa   : > { %v6144_v8 = vpop.f32.mrf.mxu1  ;;  %6945 = vmatmul.mubr.f32.gmra.mxu1 %v5047_v13  ;;  %6513 = vmatprep.mubr.f32.mxu0 %v5070_v17  ;;  %v5077_v13 = vld [vmem:[%s8211_s9 + $0x3a0] sm:$0xff] }
 0x4fb   : > { %15458 = vst [vmem:[#allocation25_spill] sm:$0xff] %v13733_v40  ;;  %v13736_v20 = vadd.f32 %v6144_v8, %v5695_v49  ;;  %v5709_v47 = vpop.f32.mrf.mxu0  ;;  %6950 = vmatprep.mubr.f32.mxu1 %v5056_v15  ;;  %v5063_v15 = vld [vmem:[%s8211_s9 + $0x330] sm:$0xff]  ;;  %v5086_v8 = vld [vmem:[%s8211_s9 + $0x3e8] sm:$0xff]  ;;  %v5072_v40 = vld [vmem:[%s8211_s9 + $0x378] sm:$0xff] }
 0x4fc   : > { %v6146_v45 = vpop.f32.mrf.mxu1 }
 0x4fd   : > { %15459 = vst [vmem:[#allocation39_spill] sm:$0xff] %v13736_v20  ;;  %v13741_v61 = vadd.f32 %v6146_v45, %v5697_v56  ;;  %v5713_v52 = vpop.f32.mrf.mxu0  ;;  %6514 = vmatmul.mubr.f32.gmra.mxu0 %v5069_v10 }
 0x4fe   : > { %v6150_v22 = vpop.f32.mrf.mxu1  ;;  %6951 = vmatmul.mubr.f32.gmra.mxu1 %v5055_v5  ;;  %6519 = vmatprep.mubr.f32.mxu0 %v5078_v36  ;;  %v5085_v5 = vld [vmem:[%s8211_s9 + $0x3e0] sm:$0xff] }
 0x4ff   : > { %15460 = vst [vmem:[#allocation47_spill] sm:$0xff] %v13741_v61  ;;  %v13744_v49 = vadd.f32 %v6150_v22, %v5701_v55  ;;  %v5715_v17 = vpop.f32.mrf.mxu0  ;;  %6956 = vmatprep.mubr.f32.mxu1 %v5064_v31  ;;  %v5071_v31 = vld [vmem:[%s8211_s9 + $0x370] sm:$0xff]  ;;  %v5094_v22 = vld [vmem:[%s8211_s9 + $0x428] sm:$0xff]  ;;  %v5080_v61 = vld [vmem:[%s8211_s9 + $0x3b8] sm:$0xff] }
 0x500   : > { %v6152_v20 = vpop.f32.mrf.mxu1 }
 0x501   : > { %15461 = vst [vmem:[#allocation41_spill] sm:$0xff] %v13744_v49  ;;  %v13749_v56 = vadd.f32 %v6152_v20, %v5703_v2  ;;  %v5719_v45 = vpop.f32.mrf.mxu0  ;;  %6520 = vmatmul.mubr.f32.gmra.mxu0 %v5077_v13 }
 0x502   : > { %v6156_v10 = vpop.f32.mrf.mxu1  ;;  %6957 = vmatmul.mubr.f32.gmra.mxu1 %v5063_v15  ;;  %6525 = vmatprep.mubr.f32.mxu0 %v5086_v8  ;;  %v5093_v15 = vld [vmem:[%s8211_s9 + $0x420] sm:$0xff] }
 0x503   : > { %15462 = vst [vmem:[#allocation28_spill] sm:$0xff] %v13749_v56  ;;  %v13752_v55 = vadd.f32 %v6156_v10, %v5707_v38  ;;  %v5721_v36 = vpop.f32.mrf.mxu0  ;;  %6962 = vmatprep.mubr.f32.mxu1 %v5072_v40  ;;  %v5079_v40 = vld [vmem:[%s8211_s9 + $0x3b0] sm:$0xff]  ;;  %v5102_v10 = vld [vmem:[%s8211_s9 + $0x468] sm:$0xff]  ;;  %v5088_v56 = vld [vmem:[%s8211_s9 + $0x3f8] sm:$0xff] }
 0x504   : > { %v6158_v49 = vpop.f32.mrf.mxu1 }
 0x505   : > { %15463 = vst [vmem:[#allocation40_spill] sm:$0xff] %v13752_v55  ;;  %v13757_v2 = vadd.f32 %v6158_v49, %v5709_v47  ;;  %v5725_v20 = vpop.f32.mrf.mxu0  ;;  %6526 = vmatmul.mubr.f32.gmra.mxu0 %v5085_v5 }
 0x506   : > { %v6162_v13 = vpop.f32.mrf.mxu1  ;;  %6963 = vmatmul.mubr.f32.gmra.mxu1 %v5071_v31  ;;  %6531 = vmatprep.mubr.f32.mxu0 %v5094_v22  ;;  %v5101_v31 = vld [vmem:[%s8211_s9 + $0x460] sm:$0xff] }
 0x507   : > { %15464 = vst [vmem:[#allocation7_spill] sm:$0xff] %v13757_v2  ;;  %v13760_v38 = vadd.f32 %v6162_v13, %v5713_v52  ;;  %v5727_v8 = vpop.f32.mrf.mxu0  ;;  %6968 = vmatprep.mubr.f32.mxu1 %v5080_v61  ;;  %v5087_v61 = vld [vmem:[%s8211_s9 + $0x3f0] sm:$0xff]  ;;  %v5110_v13 = vld [vmem:[%s8211_s9 + $0x4a8] sm:$0xff]  ;;  %v5096_v2 = vld [vmem:[%s8211_s9 + $0x438] sm:$0xff] }
 0x508   : > { %v6164_v55 = vpop.f32.mrf.mxu1 }
 0x509   : > { %15465 = vst [vmem:[#allocation108_spill] sm:$0xff] %v13760_v38  ;;  %v13765_v47 = vadd.f32 %v6164_v55, %v5715_v17  ;;  %v5731_v49 = vpop.f32.mrf.mxu0  ;;  %6532 = vmatmul.mubr.f32.gmra.mxu0 %v5093_v15 }
 0x50a   : > { %v6168_v5 = vpop.f32.mrf.mxu1  ;;  %6969 = vmatmul.mubr.f32.gmra.mxu1 %v5079_v40  ;;  %6537 = vmatprep.mubr.f32.mxu0 %v5102_v10  ;;  %v5109_v40 = vld [vmem:[%s8211_s9 + $0x4a0] sm:$0xff] }
 0x50b   : > { %15466 = vst [vmem:[#allocation29_spill] sm:$0xff] %v13765_v47  ;;  %v13768_v52 = vadd.f32 %v6168_v5, %v5719_v45  ;;  %v5733_v22 = vpop.f32.mrf.mxu0  ;;  %6974 = vmatprep.mubr.f32.mxu1 %v5088_v56  ;;  %v5095_v56 = vld [vmem:[%s8211_s9 + $0x430] sm:$0xff]  ;;  %v5118_v5 = vld [vmem:[%s8211_s9 + $0x4e8] sm:$0xff]  ;;  %v5104_v47 = vld [vmem:[%s8211_s9 + $0x478] sm:$0xff] }
 0x50c   : > { %v6170_v38 = vpop.f32.mrf.mxu1 }
 0x50d   : > { %15467 = vst [vmem:[#allocation36_spill] sm:$0xff] %v13768_v52  ;;  %v13773_v17 = vadd.f32 %v6170_v38, %v5721_v36  ;;  %v5737_v55 = vpop.f32.mrf.mxu0  ;;  %6538 = vmatmul.mubr.f32.gmra.mxu0 %v5101_v31 }
 0x50e   : > { %v6174_v15 = vpop.f32.mrf.mxu1  ;;  %6975 = vmatmul.mubr.f32.gmra.mxu1 %v5087_v61  ;;  %6543 = vmatprep.mubr.f32.mxu0 %v5110_v13  ;;  %v5117_v61 = vld [vmem:[%s8211_s9 + $0x4e0] sm:$0xff] }
 0x50f   : > { %15468 = vst [vmem:[#allocation42_spill] sm:$0xff] %v13773_v17  ;;  %v13776_v45 = vadd.f32 %v6174_v15, %v5725_v20  ;;  %v5739_v10 = vpop.f32.mrf.mxu0  ;;  %6980 = vmatprep.mubr.f32.mxu1 %v5096_v2  ;;  %v5103_v2 = vld [vmem:[%s8211_s9 + $0x470] sm:$0xff]  ;;  %v5126_v15 = vld [vmem:[%s8211_s9 + $0x528] sm:$0xff]  ;;  %v5112_v17 = vld [vmem:[%s8211_s9 + $0x4b8] sm:$0xff] }
 0x510   : > { %v6176_v52 = vpop.f32.mrf.mxu1 }
 0x511   : > { %15469 = vst [vmem:[#allocation8_spill] sm:$0xff] %v13776_v45  ;;  %v13781_v36 = vadd.f32 %v6176_v52, %v5727_v8  ;;  %v5743_v38 = vpop.f32.mrf.mxu0  ;;  %6544 = vmatmul.mubr.f32.gmra.mxu0 %v5109_v40 }
 0x512   : > { %v6180_v31 = vpop.f32.mrf.mxu1  ;;  %6981 = vmatmul.mubr.f32.gmra.mxu1 %v5095_v56  ;;  %6549 = vmatprep.mubr.f32.mxu0 %v5118_v5  ;;  %v5125_v56 = vld [vmem:[%s8211_s9 + $0x520] sm:$0xff] }
 0x513   : > { %15470 = vst [vmem:[#allocation111_spill] sm:$0xff] %v13781_v36  ;;  %v13784_v20 = vadd.f32 %v6180_v31, %v5731_v49  ;;  %v5745_v13 = vpop.f32.mrf.mxu0  ;;  %6986 = vmatprep.mubr.f32.mxu1 %v5104_v47  ;;  %v5111_v47 = vld [vmem:[%s8211_s9 + $0x4b0] sm:$0xff]  ;;  %v5134_v31 = vld [vmem:[%s8211_s9 + $0x568] sm:$0xff]  ;;  %v5120_v36 = vld [vmem:[%s8211_s9 + $0x4f8] sm:$0xff] }
 0x514   : > { %v6182_v45 = vpop.f32.mrf.mxu1 }
 0x515   : > { %15471 = vst [vmem:[#allocation32_spill] sm:$0xff] %v13784_v20  ;;  %v13789_v8 = vadd.f32 %v6182_v45, %v5733_v22  ;;  %v5749_v52 = vpop.f32.mrf.mxu0  ;;  %6550 = vmatmul.mubr.f32.gmra.mxu0 %v5117_v61 }
 0x516   : > { %v6186_v40 = vpop.f32.mrf.mxu1  ;;  %6987 = vmatmul.mubr.f32.gmra.mxu1 %v5103_v2  ;;  %6555 = vmatprep.mubr.f32.mxu0 %v5126_v15  ;;  %v5133_v2 = vld [vmem:[%s8211_s9 + $0x560] sm:$0xff] }
 0x517   : > { %15472 = vst [vmem:[#allocation38_spill] sm:$0xff] %v13789_v8  ;;  %v13792_v49 = vadd.f32 %v6186_v40, %v5737_v55  ;;  %v5751_v5 = vpop.f32.mrf.mxu0  ;;  %6992 = vmatprep.mubr.f32.mxu1 %v5112_v17  ;;  %v5119_v17 = vld [vmem:[%s8211_s9 + $0x4f0] sm:$0xff]  ;;  %v5142_v40 = vld [vmem:[%s8211_s9 + $0x5a8] sm:$0xff]  ;;  %v5128_v8 = vld [vmem:[%s8211_s9 + $0x538] sm:$0xff] }
 0x518   : > { %v6188_v20 = vpop.f32.mrf.mxu1 }
 0x519   : > { %15473 = vst [vmem:[#allocation106_spill] sm:$0xff] %v13792_v49  ;;  %v13797_v22 = vadd.f32 %v6188_v20, %v5739_v10  ;;  %v5755_v45 = vpop.f32.mrf.mxu0  ;;  %6556 = vmatmul.mubr.f32.gmra.mxu0 %v5125_v56 }
 0x51a   : > { %v6192_v61 = vpop.f32.mrf.mxu1  ;;  %6993 = vmatmul.mubr.f32.gmra.mxu1 %v5111_v47  ;;  %6561 = vmatprep.mubr.f32.mxu0 %v5134_v31  ;;  %v5141_v47 = vld [vmem:[%s8211_s9 + $0x5a0] sm:$0xff] }
 0x51b   : > { %15474 = vst [vmem:[#allocation105_spill] sm:$0xff] %v13797_v22  ;;  %v13800_v55 = vadd.f32 %v6192_v61, %v5743_v38  ;;  %v5757_v15 = vpop.f32.mrf.mxu0  ;;  %6998 = vmatprep.mubr.f32.mxu1 %v5120_v36  ;;  %v5127_v36 = vld [vmem:[%s8211_s9 + $0x530] sm:$0xff]  ;;  %v5150_v61 = vld [vmem:[%s8211_s9 + $0x5e8] sm:$0xff]  ;;  %v5136_v22 = vld [vmem:[%s8211_s9 + $0x578] sm:$0xff] }
 0x51c   : > { %v6194_v49 = vpop.f32.mrf.mxu1 }
 0x51d   : > { %15475 = vst [vmem:[#allocation27_spill] sm:$0xff] %v13800_v55  ;;  %v13805_v10 = vadd.f32 %v6194_v49, %v5745_v13  ;;  %v5761_v20 = vpop.f32.mrf.mxu0  ;;  %6562 = vmatmul.mubr.f32.gmra.mxu0 %v5133_v2 }
 0x51e   : > { %v6198_v56 = vpop.f32.mrf.mxu1  ;;  %6999 = vmatmul.mubr.f32.gmra.mxu1 %v5119_v17  ;;  %6567 = vmatprep.mubr.f32.mxu0 %v5142_v40  ;;  %v5149_v17 = vld [vmem:[%s8211_s9 + $0x5e0] sm:$0xff] }
 0x51f   : > { %15476 = vst [vmem:[#allocation35_spill] sm:$0xff] %v13805_v10  ;;  %v13808_v38 = vadd.f32 %v6198_v56, %v5749_v52  ;;  %v5763_v31 = vpop.f32.mrf.mxu0  ;;  %7004 = vmatprep.mubr.f32.mxu1 %v5128_v8  ;;  %v5135_v8 = vld [vmem:[%s8211_s9 + $0x570] sm:$0xff]  ;;  %v5158_v56 = vld [vmem:[%s8211_s9 + $0x628] sm:$0xff]  ;;  %v5144_v10 = vld [vmem:[%s8211_s9 + $0x5b8] sm:$0xff] }
 0x520   : > { %v6200_v55 = vpop.f32.mrf.mxu1 }
 0x521   : > { %15477 = vst [vmem:[#allocation110_spill] sm:$0xff] %v13808_v38  ;;  %v13813_v13 = vadd.f32 %v6200_v55, %v5751_v5  ;;  %v5767_v49 = vpop.f32.mrf.mxu0  ;;  %6568 = vmatmul.mubr.f32.gmra.mxu0 %v5141_v47 }
 0x522   : > { %v6204_v2 = vpop.f32.mrf.mxu1  ;;  %7005 = vmatmul.mubr.f32.gmra.mxu1 %v5127_v36  ;;  %6573 = vmatprep.mubr.f32.mxu0 %v5150_v61  ;;  %v5157_v36 = vld [vmem:[%s8211_s9 + $0x620] sm:$0xff] }
 0x523   : > { %15478 = vst [vmem:[#allocation6_spill] sm:$0xff] %v13813_v13  ;;  %v13816_v52 = vadd.f32 %v6204_v2, %v5755_v45  ;;  %v5769_v40 = vpop.f32.mrf.mxu0  ;;  %7010 = vmatprep.mubr.f32.mxu1 %v5136_v22  ;;  %v5143_v22 = vld [vmem:[%s8211_s9 + $0x5b0] sm:$0xff]  ;;  %v5166_v2 = vld [vmem:[%s8211_s9 + $0x668] sm:$0xff]  ;;  %v5152_v13 = vld [vmem:[%s8211_s9 + $0x5f8] sm:$0xff] }
 0x524   : > { %v6206_v38 = vpop.f32.mrf.mxu1 }
 0x525   : > { %15479 = vst [vmem:[#allocation23_spill] sm:$0xff] %v13816_v52  ;;  %v13821_v5 = vadd.f32 %v6206_v38, %v5757_v15  ;;  %v5773_v55 = vpop.f32.mrf.mxu0  ;;  %6574 = vmatmul.mubr.f32.gmra.mxu0 %v5149_v17 }
 0x526   : > { %v6210_v47 = vpop.f32.mrf.mxu1  ;;  %7011 = vmatmul.mubr.f32.gmra.mxu1 %v5135_v8  ;;  %6579 = vmatprep.mubr.f32.mxu0 %v5158_v56  ;;  %v5165_v8 = vld [vmem:[%s8211_s9 + $0x660] sm:$0xff] }
 0x527   : > { %15480 = vst [vmem:[#allocation30_spill] sm:$0xff] %v13821_v5  ;;  %v13824_v45 = vadd.f32 %v6210_v47, %v5761_v20  ;;  %v5775_v61 = vpop.f32.mrf.mxu0  ;;  %7016 = vmatprep.mubr.f32.mxu1 %v5144_v10  ;;  %v5151_v10 = vld [vmem:[%s8211_s9 + $0x5f0] sm:$0xff]  ;;  %v5174_v47 = vld [vmem:[%s8211_s9 + $0x6a8] sm:$0xff]  ;;  %v5160_v5 = vld [vmem:[%s8211_s9 + $0x638] sm:$0xff] }
 0x528   : > { %v6212_v52 = vpop.f32.mrf.mxu1 }
 0x529   : > { %15481 = vst [vmem:[#allocation102_spill] sm:$0xff] %v13824_v45  ;;  %v13829_v15 = vadd.f32 %v6212_v52, %v5763_v31  ;;  %v5779_v38 = vpop.f32.mrf.mxu0  ;;  %6580 = vmatmul.mubr.f32.gmra.mxu0 %v5157_v36 }
 0x52a   : > { %v6216_v17 = vpop.f32.mrf.mxu1  ;;  %7017 = vmatmul.mubr.f32.gmra.mxu1 %v5143_v22  ;;  %6585 = vmatprep.mubr.f32.mxu0 %v5166_v2  ;;  %v5173_v22 = vld [vmem:[%s8211_s9 + $0x6a0] sm:$0xff] }
 0x52b   : > { %15482 = vst [vmem:[#allocation100_spill] sm:$0xff] %v13829_v15  ;;  %v13832_v20 = vadd.f32 %v6216_v17, %v5767_v49  ;;  %v5781_v56 = vpop.f32.mrf.mxu0  ;;  %7022 = vmatprep.mubr.f32.mxu1 %v5152_v13  ;;  %v5159_v13 = vld [vmem:[%s8211_s9 + $0x630] sm:$0xff]  ;;  %v5182_v17 = vld [vmem:[%s8211_s9 + $0x6e8] sm:$0xff]  ;;  %v5168_v15 = vld [vmem:[%s8211_s9 + $0x678] sm:$0xff] }
 0x52c   : > { %v6218_v45 = vpop.f32.mrf.mxu1 }
 0x52d   : > { %15483 = vst [vmem:[#allocation26_spill] sm:$0xff] %v13832_v20  ;;  %v13837_v31 = vadd.f32 %v6218_v45, %v5769_v40  ;;  %v5785_v52 = vpop.f32.mrf.mxu0  ;;  %6586 = vmatmul.mubr.f32.gmra.mxu0 %v5165_v8 }
 0x52e   : > { %v6222_v36 = vpop.f32.mrf.mxu1  ;;  %7023 = vmatmul.mubr.f32.gmra.mxu1 %v5151_v10  ;;  %6591 = vmatprep.mubr.f32.mxu0 %v5174_v47  ;;  %v5181_v10 = vld [vmem:[%s8211_s9 + $0x6e0] sm:$0xff] }
 0x52f   : > { %15484 = vst [vmem:[#allocation24_spill] sm:$0xff] %v13837_v31  ;;  %v13840_v49 = vadd.f32 %v6222_v36, %v5773_v55  ;;  %v5787_v2 = vpop.f32.mrf.mxu0  ;;  %7028 = vmatprep.mubr.f32.mxu1 %v5160_v5  ;;  %v5167_v5 = vld [vmem:[%s8211_s9 + $0x670] sm:$0xff]  ;;  %v5190_v36 = vld [vmem:[%s8211_s9 + $0x728] sm:$0xff]  ;;  %v5176_v31 = vld [vmem:[%s8211_s9 + $0x6b8] sm:$0xff] }
 0x530   : > { %v6224_v20 = vpop.f32.mrf.mxu1 }
 0x531   : > { %15485 = vst [vmem:[#allocation104_spill] sm:$0xff] %v13840_v49  ;;  %v13845_v40 = vadd.f32 %v6224_v20, %v5775_v61  ;;  %v5791_v45 = vpop.f32.mrf.mxu0  ;;  %6592 = vmatmul.mubr.f32.gmra.mxu0 %v5173_v22 }
 0x532   : > { %v6228_v8 = vpop.f32.mrf.mxu1  ;;  %7029 = vmatmul.mubr.f32.gmra.mxu1 %v5159_v13  ;;  %6597 = vmatprep.mubr.f32.mxu0 %v5182_v17  ;;  %v5189_v13 = vld [vmem:[%s8211_s9 + $0x720] sm:$0xff] }
 0x533   : > { %15486 = vst [vmem:[#allocation101_spill] sm:$0xff] %v13845_v40  ;;  %v13848_v55 = vadd.f32 %v6228_v8, %v5779_v38  ;;  %v5793_v47 = vpop.f32.mrf.mxu0  ;;  %7034 = vmatprep.mubr.f32.mxu1 %v5168_v15  ;;  %v5175_v15 = vld [vmem:[%s8211_s9 + $0x6b0] sm:$0xff]  ;;  %v5198_v8 = vld [vmem:[%s8211_s9 + $0x768] sm:$0xff]  ;;  %v5184_v40 = vld [vmem:[%s8211_s9 + $0x6f8] sm:$0xff] }
 0x534   : > { %v6230_v49 = vpop.f32.mrf.mxu1 }
 0x535   : > { %15487 = vst [vmem:[#allocation21_spill] sm:$0xff] %v13848_v55  ;;  %v13853_v61 = vadd.f32 %v6230_v49, %v5781_v56  ;;  %v5797_v20 = vpop.f32.mrf.mxu0  ;;  %6598 = vmatmul.mubr.f32.gmra.mxu0 %v5181_v10 }
 0x536   : > { %v6234_v22 = vpop.f32.mrf.mxu1  ;;  %7035 = vmatmul.mubr.f32.gmra.mxu1 %v5167_v5  ;;  %6603 = vmatprep.mubr.f32.mxu0 %v5190_v36  ;;  %v5197_v5 = vld [vmem:[%s8211_s9 + $0x760] sm:$0xff] }
 0x537   : > { %15488 = vst [vmem:[#allocation16_spill] sm:$0xff] %v13853_v61  ;;  %v13856_v38 = vadd.f32 %v6234_v22, %v5785_v52  ;;  %v5799_v17 = vpop.f32.mrf.mxu0  ;;  %7040 = vmatprep.mubr.f32.mxu1 %v5176_v31  ;;  %v5183_v31 = vld [vmem:[%s8211_s9 + $0x6f0] sm:$0xff]  ;;  %v5206_v22 = vld [vmem:[%s8211_s9 + $0x7a8] sm:$0xff]  ;;  %v5192_v61 = vld [vmem:[%s8211_s9 + $0x738] sm:$0xff] }
 0x538   : > { %v6236_v55 = vpop.f32.mrf.mxu1 }
 0x539   : > { %15489 = vst [vmem:[#allocation97_spill] sm:$0xff] %v13856_v38  ;;  %v13861_v56 = vadd.f32 %v6236_v55, %v5787_v2  ;;  %v5803_v49 = vpop.f32.mrf.mxu0  ;;  %6604 = vmatmul.mubr.f32.gmra.mxu0 %v5189_v13 }
 0x53a   : > { %v6240_v10 = vpop.f32.mrf.mxu1  ;;  %7041 = vmatmul.mubr.f32.gmra.mxu1 %v5175_v15  ;;  %6609 = vmatprep.mubr.f32.mxu0 %v5198_v8  ;;  %v5205_v15 = vld [vmem:[%s8211_s9 + $0x7a0] sm:$0xff] }
 0x53b   : > { %15490 = vst [vmem:[#allocation94_spill] sm:$0xff] %v13861_v56  ;;  %v13864_v52 = vadd.f32 %v6240_v10, %v5791_v45  ;;  %v5805_v36 = vpop.f32.mrf.mxu0  ;;  %7046 = vmatprep.mubr.f32.mxu1 %v5184_v40  ;;  %v5191_v40 = vld [vmem:[%s8211_s9 + $0x730] sm:$0xff]  ;;  %v5214_v10 = vld [vmem:[%s8211_s9 + $0x7e8] sm:$0xff]  ;;  %v5200_v56 = vld [vmem:[%s8211_s9 + $0x778] sm:$0xff] }
 0x53c   : > { %v6242_v38 = vpop.f32.mrf.mxu1 }
 0x53d   : > { %15491 = vst [vmem:[#allocation22_spill] sm:$0xff] %v13864_v52  ;;  %v13869_v2 = vadd.f32 %v6242_v38, %v5793_v47  ;;  %v5809_v55 = vpop.f32.mrf.mxu0  ;;  %6610 = vmatmul.mubr.f32.gmra.mxu0 %v5197_v5 }
 0x53e   : > { %v6246_v13 = vpop.f32.mrf.mxu1  ;;  %7047 = vmatmul.mubr.f32.gmra.mxu1 %v5183_v31  ;;  %6615 = vmatprep.mubr.f32.mxu0 %v5206_v22  ;;  %v5213_v31 = vld [vmem:[%s8211_s9 + $0x7e0] sm:$0xff] }
 0x53f   : > { %15492 = vst [vmem:[#allocation20_spill] sm:$0xff] %v13869_v2  ;;  %v13872_v45 = vadd.f32 %v6246_v13, %v5797_v20  ;;  %v5811_v8 = vpop.f32.mrf.mxu0  ;;  %7052 = vmatprep.mubr.f32.mxu1 %v5192_v61  ;;  %v5199_v61 = vld [vmem:[%s8211_s9 + $0x770] sm:$0xff]  ;;  %v5222_v13 = vld [vmem:[%s8211_s9 + $0x828] sm:$0xff]  ;;  %v5208_v2 = vld [vmem:[%s8211_s9 + $0x7b8] sm:$0xff] }
 0x540   : > { %v6248_v52 = vpop.f32.mrf.mxu1 }
 0x541   : > { %15493 = vst [vmem:[#allocation98_spill] sm:$0xff] %v13872_v45  ;;  %v13877_v47 = vadd.f32 %v6248_v52, %v5799_v17  ;;  %v5815_v38 = vpop.f32.mrf.mxu0  ;;  %6616 = vmatmul.mubr.f32.gmra.mxu0 %v5205_v15 }
 0x542   : > { %v6252_v5 = vpop.f32.mrf.mxu1  ;;  %7053 = vmatmul.mubr.f32.gmra.mxu1 %v5191_v40  ;;  %6621 = vmatprep.mubr.f32.mxu0 %v5214_v10  ;;  %v5221_v40 = vld [vmem:[%s8211_s9 + $0x820] sm:$0xff] }
 0x543   : > { %15494 = vst [vmem:[#allocation96_spill] sm:$0xff] %v13877_v47  ;;  %v13880_v20 = vadd.f32 %v6252_v5, %v5803_v49  ;;  %v5817_v22 = vpop.f32.mrf.mxu0  ;;  %7058 = vmatprep.mubr.f32.mxu1 %v5200_v56  ;;  %v5207_v56 = vld [vmem:[%s8211_s9 + $0x7b0] sm:$0xff]  ;;  %v5230_v5 = vld [vmem:[%s8211_s9 + $0x868] sm:$0xff]  ;;  %v5216_v47 = vld [vmem:[%s8211_s9 + $0x7f8] sm:$0xff] }
 0x544   : > { %v6254_v45 = vpop.f32.mrf.mxu1 }
 0x545   : > { %15495 = vst [vmem:[#allocation17_spill] sm:$0xff] %v13880_v20  ;;  %v13885_v17 = vadd.f32 %v6254_v45, %v5805_v36  ;;  %v5821_v52 = vpop.f32.mrf.mxu0  ;;  %6622 = vmatmul.mubr.f32.gmra.mxu0 %v5213_v31 }
 0x546   : > { %v6258_v15 = vpop.f32.mrf.mxu1  ;;  %7059 = vmatmul.mubr.f32.gmra.mxu1 %v5199_v61  ;;  %6627 = vmatprep.mubr.f32.mxu0 %v5222_v13  ;;  %v5229_v61 = vld [vmem:[%s8211_s9 + $0x860] sm:$0xff] }
 0x547   : > { %15496 = vst [vmem:[#allocation13_spill] sm:$0xff] %v13885_v17  ;;  %v13888_v49 = vadd.f32 %v6258_v15, %v5809_v55  ;;  %v5823_v10 = vpop.f32.mrf.mxu0  ;;  %7064 = vmatprep.mubr.f32.mxu1 %v5208_v2  ;;  %v5215_v2 = vld [vmem:[%s8211_s9 + $0x7f0] sm:$0xff]  ;;  %v5238_v15 = vld [vmem:[%s8211_s9 + $0x8a8] sm:$0xff]  ;;  %v5224_v17 = vld [vmem:[%s8211_s9 + $0x838] sm:$0xff] }
 0x548   : > { %v6260_v20 = vpop.f32.mrf.mxu1 }
 0x549   : > { %15497 = vst [vmem:[#allocation93_spill] sm:$0xff] %v13888_v49  ;;  %v13893_v36 = vadd.f32 %v6260_v20, %v5811_v8  ;;  %v5827_v45 = vpop.f32.mrf.mxu0  ;;  %6628 = vmatmul.mubr.f32.gmra.mxu0 %v5221_v40 }
 0x54a   : > { %v6264_v31 = vpop.f32.mrf.mxu1  ;;  %7065 = vmatmul.mubr.f32.gmra.mxu1 %v5207_v56  ;;  %6633 = vmatprep.mubr.f32.mxu0 %v5230_v5  ;;  %v5237_v56 = vld [vmem:[%s8211_s9 + $0x8a0] sm:$0xff] }
 0x54b   : > { %15498 = vst [vmem:[#allocation91_spill] sm:$0xff] %v13893_v36  ;;  %v13896_v55 = vadd.f32 %v6264_v31, %v5815_v38  ;;  %v5829_v13 = vpop.f32.mrf.mxu0  ;;  %7070 = vmatprep.mubr.f32.mxu1 %v5216_v47  ;;  %v5223_v47 = vld [vmem:[%s8211_s9 + $0x830] sm:$0xff]  ;;  %v5246_v31 = vld [vmem:[%s8211_s9 + $0x8e8] sm:$0xff]  ;;  %v5232_v36 = vld [vmem:[%s8211_s9 + $0x878] sm:$0xff] }
 0x54c   : > { %v6266_v49 = vpop.f32.mrf.mxu1 }
 0x54d   : > { %15499 = vst [vmem:[#allocation19_spill] sm:$0xff] %v13896_v55  ;;  %v13901_v8 = vadd.f32 %v6266_v49, %v5817_v22  ;;  %v5833_v20 = vpop.f32.mrf.mxu0  ;;  %6634 = vmatmul.mubr.f32.gmra.mxu0 %v5229_v61 }
 0x54e   : > { %v6270_v40 = vpop.f32.mrf.mxu1  ;;  %7071 = vmatmul.mubr.f32.gmra.mxu1 %v5215_v2  ;;  %6639 = vmatprep.mubr.f32.mxu0 %v5238_v15  ;;  %v5245_v2 = vld [vmem:[%s8211_s9 + $0x8e0] sm:$0xff] }
 0x54f   : > { %15500 = vst [vmem:[#allocation14_spill] sm:$0xff] %v13901_v8  ;;  %v13904_v38 = vadd.f32 %v6270_v40, %v5821_v52  ;;  %v5835_v5 = vpop.f32.mrf.mxu0  ;;  %7076 = vmatprep.mubr.f32.mxu1 %v5224_v17  ;;  %v5231_v17 = vld [vmem:[%s8211_s9 + $0x870] sm:$0xff]  ;;  %v5254_v40 = vld [vmem:[%s8211_s9 + $0x928] sm:$0xff]  ;;  %v5240_v8 = vld [vmem:[%s8211_s9 + $0x8b8] sm:$0xff] }
 0x550   : > { %v6272_v55 = vpop.f32.mrf.mxu1 }
 0x551   : > { %15501 = vst [vmem:[#allocation296_spill] sm:$0xff] %v13904_v38  ;;  %v13909_v22 = vadd.f32 %v6272_v55, %v5823_v10  ;;  %v5839_v49 = vpop.f32.mrf.mxu0  ;;  %6640 = vmatmul.mubr.f32.gmra.mxu0 %v5237_v56 }
 0x552   : > { %v6276_v61 = vpop.f32.mrf.mxu1  ;;  %7077 = vmatmul.mubr.f32.gmra.mxu1 %v5223_v47  ;;  %6645 = vmatprep.mubr.f32.mxu0 %v5246_v31  ;;  %v5253_v47 = vld [vmem:[%s8211_s9 + $0x920] sm:$0xff] }
 0x553   : > { %15502 = vst [vmem:[#allocation95_spill] sm:$0xff] %v13909_v22  ;;  %v13912_v52 = vadd.f32 %v6276_v61, %v5827_v45  ;;  %v5841_v15 = vpop.f32.mrf.mxu0  ;;  %7082 = vmatprep.mubr.f32.mxu1 %v5232_v36  ;;  %v5239_v36 = vld [vmem:[%s8211_s9 + $0x8b0] sm:$0xff]  ;;  %v5262_v61 = vld [vmem:[%s8211_s9 + $0x968] sm:$0xff]  ;;  %v5248_v22 = vld [vmem:[%s8211_s9 + $0x8f8] sm:$0xff] }
 0x554   : > { %v6278_v38 = vpop.f32.mrf.mxu1 }
 0x555   : > { %15503 = vst [vmem:[#allocation336_spill] sm:$0xff] %v13912_v52  ;;  %v13917_v10 = vadd.f32 %v6278_v38, %v5829_v13  ;;  %v5845_v55 = vpop.f32.mrf.mxu0  ;;  %6646 = vmatmul.mubr.f32.gmra.mxu0 %v5245_v2 }
 0x556   : > { %v6282_v56 = vpop.f32.mrf.mxu1  ;;  %7083 = vmatmul.mubr.f32.gmra.mxu1 %v5231_v17  ;;  %6651 = vmatprep.mubr.f32.mxu0 %v5254_v40  ;;  %v5261_v17 = vld [vmem:[%s8211_s9 + $0x960] sm:$0xff] }
 0x557   : > { %15504 = vst [vmem:[#allocation92_spill] sm:$0xff] %v13917_v10  ;;  %v13920_v45 = vadd.f32 %v6282_v56, %v5833_v20  ;;  %v5847_v31 = vpop.f32.mrf.mxu0  ;;  %7088 = vmatprep.mubr.f32.mxu1 %v5240_v8  ;;  %v5247_v8 = vld [vmem:[%s8211_s9 + $0x8f0] sm:$0xff]  ;;  %v5270_v56 = vld [vmem:[%s8211_s9 + $0x9a8] sm:$0xff]  ;;  %v5256_v10 = vld [vmem:[%s8211_s9 + $0x938] sm:$0xff] }
 0x558   : > { %v6284_v52 = vpop.f32.mrf.mxu1 }
 0x559   : > { %15505 = vst [vmem:[#allocation197_spill] sm:$0xff] %v13920_v45  ;;  %v13925_v13 = vadd.f32 %v6284_v52, %v5835_v5  ;;  %v5851_v38 = vpop.f32.mrf.mxu0  ;;  %6652 = vmatmul.mubr.f32.gmra.mxu0 %v5253_v47 }
 0x55a   : > { %v6288_v2 = vpop.f32.mrf.mxu1  ;;  %7089 = vmatmul.mubr.f32.gmra.mxu1 %v5239_v36  ;;  %6657 = vmatprep.mubr.f32.mxu0 %v5262_v61  ;;  %v5269_v36 = vld [vmem:[%s8211_s9 + $0x9a0] sm:$0xff] }
 0x55b   : > { %15506 = vst [vmem:[#allocation89_spill] sm:$0xff] %v13925_v13  ;;  %v13928_v20 = vadd.f32 %v6288_v2, %v5839_v49  ;;  %v5853_v40 = vpop.f32.mrf.mxu0  ;;  %7094 = vmatprep.mubr.f32.mxu1 %v5248_v22  ;;  %v5255_v22 = vld [vmem:[%s8211_s9 + $0x930] sm:$0xff]  ;;  %v5278_v2 = vld [vmem:[%s8211_s9 + $0x9e8] sm:$0xff]  ;;  %v5264_v13 = vld [vmem:[%s8211_s9 + $0x978] sm:$0xff] }
 0x55c   : > { %v6290_v45 = vpop.f32.mrf.mxu1 }
 0x55d   : > { %15507 = vst [vmem:[#allocation330_spill] sm:$0xff] %v13928_v20  ;;  %v13933_v5 = vadd.f32 %v6290_v45, %v5841_v15  ;;  %v5857_v52 = vpop.f32.mrf.mxu0  ;;  %6658 = vmatmul.mubr.f32.gmra.mxu0 %v5261_v17 }
 0x55e   : > { %v6294_v47 = vpop.f32.mrf.mxu1  ;;  %7095 = vmatmul.mubr.f32.gmra.mxu1 %v5247_v8  ;;  %6663 = vmatprep.mubr.f32.mxu0 %v5270_v56  ;;  %v5277_v8 = vld [vmem:[%s8211_s9 + $0x9e0] sm:$0xff] }
 0x55f   : > { %15508 = vst [vmem:[#allocation87_spill] sm:$0xff] %v13933_v5  ;;  %v13936_v49 = vadd.f32 %v6294_v47, %v5845_v55  ;;  %v5859_v61 = vpop.f32.mrf.mxu0  ;;  %7100 = vmatprep.mubr.f32.mxu1 %v5256_v10  ;;  %v5263_v10 = vld [vmem:[%s8211_s9 + $0x970] sm:$0xff]  ;;  %v5286_v47 = vld [vmem:[%s8211_s9 + $0xa28] sm:$0xff]  ;;  %v5272_v5 = vld [vmem:[%s8211_s9 + $0x9b8] sm:$0xff] }
 0x560   : > { %v6296_v20 = vpop.f32.mrf.mxu1 }
 0x561   : > { %15509 = vst [vmem:[#allocation90_spill] sm:$0xff] %v13936_v49  ;;  %v13941_v15 = vadd.f32 %v6296_v20, %v5847_v31  ;;  %v5863_v45 = vpop.f32.mrf.mxu0  ;;  %6664 = vmatmul.mubr.f32.gmra.mxu0 %v5269_v36 }
 0x562   : > { %v6300_v17 = vpop.f32.mrf.mxu1  ;;  %7101 = vmatmul.mubr.f32.gmra.mxu1 %v5255_v22  ;;  %6669 = vmatprep.mubr.f32.mxu0 %v5278_v2  ;;  %v5285_v22 = vld [vmem:[%s8211_s9 + $0xa20] sm:$0xff] }
 0x563   : > { %15510 = vst [vmem:[#allocation335_spill] sm:$0xff] %v13941_v15  ;;  %v13944_v55 = vadd.f32 %v6300_v17, %v5851_v38  ;;  %v5865_v56 = vpop.f32.mrf.mxu0  ;;  %7106 = vmatprep.mubr.f32.mxu1 %v5264_v13  ;;  %v5271_v13 = vld [vmem:[%s8211_s9 + $0x9b0] sm:$0xff]  ;;  %v5294_v17 = vld [vmem:[%s8211_s9 + $0xa68] sm:$0xff]  ;;  %v5280_v15 = vld [vmem:[%s8211_s9 + $0x9f8] sm:$0xff] }
 0x564   : > { %v6302_v49 = vpop.f32.mrf.mxu1 }
 0x565   : > { %15511 = vst [vmem:[#allocation88_spill] sm:$0xff] %v13944_v55  ;;  %v13949_v31 = vadd.f32 %v6302_v49, %v5853_v40  ;;  %v5869_v20 = vpop.f32.mrf.mxu0  ;;  %6670 = vmatmul.mubr.f32.gmra.mxu0 %v5277_v8 }
 0x566   : > { %v6306_v36 = vpop.f32.mrf.mxu1  ;;  %7107 = vmatmul.mubr.f32.gmra.mxu1 %v5263_v10  ;;  %6675 = vmatprep.mubr.f32.mxu0 %v5286_v47  ;;  %v5293_v10 = vld [vmem:[%s8211_s9 + $0xa60] sm:$0xff] }
 0x567   : > { %15512 = vst [vmem:[#allocation297_spill] sm:$0xff] %v13949_v31  ;;  %v13952_v38 = vadd.f32 %v6306_v36, %v5857_v52  ;;  %v5871_v2 = vpop.f32.mrf.mxu0  ;;  %7112 = vmatprep.mubr.f32.mxu1 %v5272_v5  ;;  %v5279_v5 = vld [vmem:[%s8211_s9 + $0x9f0] sm:$0xff]  ;;  %v5302_v36 = vld [vmem:[%s8211_s9 + $0xaa8] sm:$0xff]  ;;  %v5288_v31 = vld [vmem:[%s8211_s9 + $0xa38] sm:$0xff] }
 0x568   : > { %v6308_v55 = vpop.f32.mrf.mxu1 }
 0x569   : > { %15513 = vst [vmem:[#allocation192_spill] sm:$0xff] %v13952_v38  ;;  %v13957_v40 = vadd.f32 %v6308_v55, %v5859_v61  ;;  %v5875_v49 = vpop.f32.mrf.mxu0  ;;  %6676 = vmatmul.mubr.f32.gmra.mxu0 %v5285_v22 }
 0x56a   : > { %v6312_v8 = vpop.f32.mrf.mxu1  ;;  %7113 = vmatmul.mubr.f32.gmra.mxu1 %v5271_v13  ;;  %6681 = vmatprep.mubr.f32.mxu0 %v5294_v17  ;;  %v5301_v13 = vld [vmem:[%s8211_s9 + $0xaa0] sm:$0xff] }
 0x56b   : > { %15514 = vst [vmem:[#allocation85_spill] sm:$0xff] %v13957_v40  ;;  %v13960_v52 = vadd.f32 %v6312_v8, %v5863_v45  ;;  %v5877_v47 = vpop.f32.mrf.mxu0  ;;  %7118 = vmatprep.mubr.f32.mxu1 %v5280_v15  ;;  %v5287_v15 = vld [vmem:[%s8211_s9 + $0xa30] sm:$0xff]  ;;  %v5310_v8 = vld [vmem:[%s8211_s9 + $0xae8] sm:$0xff]  ;;  %v5296_v40 = vld [vmem:[%s8211_s9 + $0xa78] sm:$0xff] }
 0x56c   : > { %v6314_v38 = vpop.f32.mrf.mxu1 }
 0x56d   : > { %15515 = vst [vmem:[#allocation328_spill] sm:$0xff] %v13960_v52  ;;  %v13965_v61 = vadd.f32 %v6314_v38, %v5865_v56  ;;  %v5881_v55 = vpop.f32.mrf.mxu0  ;;  %6682 = vmatmul.mubr.f32.gmra.mxu0 %v5293_v10 }
 0x56e   : > { %v6318_v22 = vpop.f32.mrf.mxu1  ;;  %7119 = vmatmul.mubr.f32.gmra.mxu1 %v5279_v5  ;;  %6687 = vmatprep.mubr.f32.mxu0 %v5302_v36  ;;  %v5309_v5 = vld [vmem:[%s8211_s9 + $0xae0] sm:$0xff] }
 0x56f   : > { %15516 = vst [vmem:[#allocation82_spill] sm:$0xff] %v13965_v61  ;;  %v13968_v45 = vadd.f32 %v6318_v22, %v5869_v20  ;;  %v5883_v17 = vpop.f32.mrf.mxu0  ;;  %7124 = vmatprep.mubr.f32.mxu1 %v5288_v31  ;;  %v5295_v31 = vld [vmem:[%s8211_s9 + $0xa70] sm:$0xff]  ;;  %v5318_v22 = vld [vmem:[%s8211_s9 + $0xb28] sm:$0xff]  ;;  %v5304_v61 = vld [vmem:[%s8211_s9 + $0xab8] sm:$0xff] }
 0x570   : > { %v6320_v52 = vpop.f32.mrf.mxu1 }
 0x571   : > { %15517 = vst [vmem:[#allocation86_spill] sm:$0xff] %v13968_v45  ;;  %v13973_v56 = vadd.f32 %v6320_v52, %v5871_v2  ;;  %v5887_v38 = vpop.f32.mrf.mxu0  ;;  %6688 = vmatmul.mubr.f32.gmra.mxu0 %v5301_v13 }
 0x572   : > { %v6324_v10 = vpop.f32.mrf.mxu1  ;;  %7125 = vmatmul.mubr.f32.gmra.mxu1 %v5287_v15  ;;  %6693 = vmatprep.mubr.f32.mxu0 %v5310_v8  ;;  %v5317_v15 = vld [vmem:[%s8211_s9 + $0xb20] sm:$0xff] }
 0x573   : > { %15518 = vst [vmem:[#allocation334_spill] sm:$0xff] %v13973_v56  ;;  %v13976_v20 = vadd.f32 %v6324_v10, %v5875_v49  ;;  %v5889_v36 = vpop.f32.mrf.mxu0  ;;  %7130 = vmatprep.mubr.f32.mxu1 %v5296_v40  ;;  %v5303_v40 = vld [vmem:[%s8211_s9 + $0xab0] sm:$0xff]  ;;  %v5326_v10 = vld [vmem:[%s8211_s9 + $0xb68] sm:$0xff]  ;;  %v5312_v56 = vld [vmem:[%s8211_s9 + $0xaf8] sm:$0xff] }
 0x574   : > { %v6326_v45 = vpop.f32.mrf.mxu1 }
 0x575   : > { %15519 = vst [vmem:[#allocation84_spill] sm:$0xff] %v13976_v20  ;;  %v13981_v2 = vadd.f32 %v6326_v45, %v5877_v47  ;;  %v5893_v52 = vpop.f32.mrf.mxu0  ;;  %6694 = vmatmul.mubr.f32.gmra.mxu0 %v5309_v5 }
 0x576   : > { %v6330_v13 = vpop.f32.mrf.mxu1  ;;  %7131 = vmatmul.mubr.f32.gmra.mxu1 %v5295_v31  ;;  %6699 = vmatprep.mubr.f32.mxu0 %v5318_v22  ;;  %v5325_v31 = vld [vmem:[%s8211_s9 + $0xb60] sm:$0xff] }
 0x577   : > { %15520 = vst [vmem:[#allocation294_spill] sm:$0xff] %v13981_v2  ;;  %v13984_v49 = vadd.f32 %v6330_v13, %v5881_v55  ;;  %v5895_v8 = vpop.f32.mrf.mxu0  ;;  %7136 = vmatprep.mubr.f32.mxu1 %v5304_v61  ;;  %v5311_v61 = vld [vmem:[%s8211_s9 + $0xaf0] sm:$0xff]  ;;  %v5334_v13 = vld [vmem:[%s8211_s9 + $0xba8] sm:$0xff]  ;;  %v5320_v2 = vld [vmem:[%s8211_s9 + $0xb38] sm:$0xff] }
 0x578   : > { %v6332_v20 = vpop.f32.mrf.mxu1 }
 0x579   : > { %15521 = vst [vmem:[#allocation211_spill] sm:$0xff] %v13984_v49  ;;  %v13989_v47 = vadd.f32 %v6332_v20, %v5883_v17  ;;  %v5899_v45 = vpop.f32.mrf.mxu0  ;;  %6700 = vmatmul.mubr.f32.gmra.mxu0 %v5317_v15 }
 0x57a   : > { %v6336_v5 = vpop.f32.mrf.mxu1  ;;  %7137 = vmatmul.mubr.f32.gmra.mxu1 %v5303_v40  ;;  %6705 = vmatprep.mubr.f32.mxu0 %v5326_v10  ;;  %v5333_v40 = vld [vmem:[%s8211_s9 + $0xba0] sm:$0xff] }
 0x57b   : > { %15522 = vst [vmem:[#allocation81_spill] sm:$0xff] %v13989_v47  ;;  %v13992_v55 = vadd.f32 %v6336_v5, %v5887_v38  ;;  %v5901_v22 = vpop.f32.mrf.mxu0  ;;  %7142 = vmatprep.mubr.f32.mxu1 %v5312_v56  ;;  %v5319_v56 = vld [vmem:[%s8211_s9 + $0xb30] sm:$0xff]  ;;  %v5342_v5 = vld [vmem:[%s8211_s9 + $0xbe8] sm:$0xff]  ;;  %v5336_v47 = vld [vmem:[%s8211_s9 + $0xbb8] sm:$0xff] }
 0x57c   : > { %v6338_v49 = vpop.f32.mrf.mxu1 }
 0x57d   : > { %15523 = vst [vmem:[#allocation326_spill] sm:$0xff] %v13992_v55  ;;  %v13997_v17 = vadd.f32 %v6338_v49, %v5889_v36  ;;  %v5905_v20 = vpop.f32.mrf.mxu0  ;;  %6706 = vmatmul.mubr.f32.gmra.mxu0 %v5325_v31  ;;  %v5328_v36 = vld [vmem:[%s8211_s9 + $0xb78] sm:$0xff] }
 0x57e   : > { %v6342_v15 = vpop.f32.mrf.mxu1  ;;  %7143 = vmatmul.mubr.f32.gmra.mxu1 %v5311_v61  ;;  %6711 = vmatprep.mubr.f32.mxu0 %v5334_v13 }
 0x57f   : > { %15524 = vst [vmem:[#allocation79_spill] sm:$0xff] %v13997_v17  ;;  %v14000_v38 = vadd.f32 %v6342_v15, %v5893_v52  ;;  %v5907_v10 = vpop.f32.mrf.mxu0  ;;  %7148 = vmatprep.mubr.f32.mxu1 %v5320_v2  ;;  %v5341_v52 = vld [vmem:[%s8211_s9 + $0xbe0] sm:$0xff]  ;;  %v5327_v2 = vld [vmem:[%s8211_s9 + $0xb70] sm:$0xff] }
 0x580   : > { %v6344_v55 = vpop.f32.mrf.mxu1 }
 0x581   : > { %15525 = vst [vmem:[#allocation80_spill] sm:$0xff] %v14000_v38  ;;  %v14005_v49 = vadd.f32 %v6344_v55, %v5895_v8  ;;  %v5911_v31 = vpop.f32.mrf.mxu0  ;;  %6712 = vmatmul.mubr.f32.gmra.mxu0 %v5333_v40  ;;  %v5350_v38 = vld [vmem:[%s8211_s9 + $0xc28] sm:$0xff] }
 0x582   : > { %v6348_v61 = vpop.f32.mrf.mxu1  ;;  %7149 = vmatmul.mubr.f32.gmra.mxu1 %v5319_v56  ;;  %6717 = vmatprep.mubr.f32.mxu0 %v5342_v5 }
 0x583   : > { %15526 = vst [vmem:[#allocation333_spill] sm:$0xff] %v14005_v49  ;;  %v14008_v13 = vadd.f32 %v6348_v61, %v5899_v45  ;;  %v5913_v15 = vpop.f32.mrf.mxu0  ;;  %7154 = vmatprep.mubr.f32.mxu1 %v5328_v36  ;;  %v5349_v45 = vld [vmem:[%s8211_s9 + $0xc20] sm:$0xff]  ;;  %v5335_v36 = vld [vmem:[%s8211_s9 + $0xbb0] sm:$0xff]  ;;  %v5358_v61 = vld [vmem:[%s8211_s9 + $0xc68] sm:$0xff] }
 0x584   : > { %v6350_v17 = vpop.f32.mrf.mxu1  ;;  %v5360_v49 = vld [vmem:[%s8211_s9 + $0xc78] sm:$0xff] }
 0x585   : > { %15527 = vst [vmem:[#allocation83_spill] sm:$0xff] %v14008_v13  ;;  %v14015_v8 = vadd.f32 %v6350_v17, %v5901_v22  ;;  %v5917_v55 = vpop.f32.mrf.mxu0  ;;  %6718 = vmatmul.mubr.f32.gmra.mxu0 %v5341_v52  ;;  %v5344_v22 = vld [vmem:[%s8211_s9 + $0xbf8] sm:$0xff] }
 0x586   : > { %v6354_v40 = vpop.f32.mrf.mxu1  ;;  %7155 = vmatmul.mubr.f32.gmra.mxu1 %v5327_v2  ;;  %6723 = vmatprep.mubr.f32.mxu0 %v5350_v38 }
 0x587   : > { %15528 = vst [vmem:[#allocation278_spill] sm:$0xff] %v14015_v8  ;;  %v14018_v56 = vadd.f32 %v6354_v40, %v5905_v20  ;;  %v5919_v5 = vpop.f32.mrf.mxu0  ;;  %7160 = vmatprep.mubr.f32.mxu1 %v5336_v47  ;;  %v5357_v20 = vld [vmem:[%s8211_s9 + $0xc60] sm:$0xff]  ;;  %v5343_v40 = vld [vmem:[%s8211_s9 + $0xbf0] sm:$0xff] }
 0x588   : > { %v6356_v13 = vpop.f32.mrf.mxu1 }
 0x589   : > { %15529 = vst [vmem:[#allocation77_spill] sm:$0xff] %v14018_v56  ;;  %v14023_v17 = vadd.f32 %v6356_v13, %v5907_v10  ;;  %v6437_v52 = vpop.f32.mrf.mxu0  ;;  %6724 = vmatmul.mubr.f32.gmra.mxu0 %v5349_v45  ;;  %v5366_v56 = vld [vmem:[%s8211_s9 + $0xca8] sm:$0xff]  ;;  %v5352_v10 = vld [vmem:[%s8211_s9 + $0xc38] sm:$0xff] }
 0x58a   : > { %v6360_v2 = vpop.f32.mrf.mxu1  ;;  %7161 = vmatmul.mubr.f32.gmra.mxu1 %v5335_v36  ;;  %6729 = vmatprep.mubr.f32.mxu0 %v5358_v61 }
 0x58b   : > { %15530 = vst [vmem:[#allocation324_spill] sm:$0xff] %v14023_v17  ;;  %v14026_v38 = vadd.f32 %v6360_v2, %v5911_v31  ;;  %v6439_v47 = vpop.f32.mrf.mxu0  ;;  %7166 = vmatprep.mubr.f32.mxu1 %v5344_v22  ;;  %v5365_v31 = vld [vmem:[%s8211_s9 + $0xca0] sm:$0xff]  ;;  %v5351_v2 = vld [vmem:[%s8211_s9 + $0xc30] sm:$0xff] }
 0x58c   : > { %v6362_v8 = vpop.f32.mrf.mxu1 }
 0x58d   : > { %15531 = vst [vmem:[#allocation75_spill] sm:$0xff] %v14026_v38  ;;  %v14032_v13 = vadd.f32 %v6362_v8, %v5913_v15  ;;  %v6443_v45 = vpop.f32.mrf.mxu0  ;;  %6730 = vmatmul.mubr.f32.gmra.mxu0 %v5357_v20  ;;  %v5374_v38 = vld [vmem:[%s8211_s9 + $0xce8] sm:$0xff]  ;;  %v6438_v15 = vadd.f32 %v6437_v52, %v13482_v34 }
 0x58e   : > { %v6366_v36 = vpop.f32.mrf.mxu1  ;;  %7167 = vmatmul.mubr.f32.gmra.mxu1 %v5343_v40  ;;  %6735 = vmatprep.mubr.f32.mxu0 %v5366_v56  ;;  %v5373_v56 = vld [vmem:[%s8211_s9 + $0xce0] sm:$0xff]  ;;  %v6440_v40 = vadd.f32 %v6439_v47, %v13486_v57 }
 0x58f   : > { %v14035_v61 = vadd.f32 %v6366_v36, %v5917_v55  ;;  %v6445_v22 = vpop.f32.mrf.mxu0  ;;  %7172 = vmatprep.mubr.f32.mxu1 %v5352_v10  ;;  %v5368_v36 = vld [vmem:[%s8211_s9 + $0xcb8] sm:$0xff]  ;;  %v5381_v47 = vld [vmem:[%s8211_s9 + $0xd20] sm:$0xff] }
 0x590   : > { %v6368_v17 = vpop.f32.mrf.mxu1 }
 0x591   : > { %v14041_v8 = vadd.f32 %v6368_v17, %v5919_v5  ;;  %v6449_v20 = vpop.f32.mrf.mxu0  ;;  %6736 = vmatmul.mubr.f32.gmra.mxu0 %v5365_v31  ;;  %v5359_v5 = vld [vmem:[%s8211_s9 + $0xc70] sm:$0xff]  ;;  %v5382_v17 = vld [vmem:[%s8211_s9 + $0xd28] sm:$0xff]  ;;  %v6444_v31 = vadd.f32 %v6443_v45, %v13494_v23 }
 0x592   : > { %v6886_v55 = vpop.f32.mrf.mxu1  ;;  %7173 = vmatmul.mubr.f32.gmra.mxu1 %v5351_v2  ;;  %6741 = vmatprep.mubr.f32.mxu0 %v5374_v38  ;;  %v5367_v23 = vld [vmem:[%s8211_s9 + $0xcb0] sm:$0xff]  ;;  %v5390_v45 = vld [vmem:[%s8211_s9 + $0xd68] sm:$0xff] }
 0x593   : > { %v6887_v10 = vadd.f32 %v6886_v55, %v6438_v15  ;;  %v6451_v34 = vpop.f32.mrf.mxu0  ;;  %7178 = vmatprep.mubr.f32.mxu1 %v5360_v49  ;;  %v6446_v49 = vadd.f32 %v6445_v22, %v13498_v14  ;;  %v5389_v22 = vld [vmem:[%s8211_s9 + $0xd60] sm:$0xff] }
 0x594   : > { %v6888_v52 = vpop.f32.mrf.mxu1 }
 0x595   : > { %7269 = vst [vmem:[%s14046_s5] sm:$0xff] %v6887_v10  ;;  %v6889_v2 = vadd.f32 %v6888_v52, %v6440_v40  ;;  %v6455_v38 = vpop.f32.mrf.mxu0  ;;  %6742 = vmatmul.mubr.f32.gmra.mxu0 %v5373_v56  ;;  %v5376_v40 = vld [vmem:[%s8211_s9 + $0xcf8] sm:$0xff]  ;;  %v6450_v56 = vadd.f32 %v6449_v20, %v13504_v30  ;;  %v6452_v52 = vadd.f32 %v6451_v34, %v13508_v32  ;;  %v5375_v30 = vld [vmem:[%s8211_s9 + $0xcf0] sm:$0xff]  ;;  %v5398_v20 = vld [vmem:[%s8211_s9 + $0xda8] sm:$0xff] }
 0x596   : > { %v6892_v57 = vpop.f32.mrf.mxu1  ;;  %7179 = vmatmul.mubr.f32.gmra.mxu1 %v5359_v5  ;;  %6747 = vmatprep.mubr.f32.mxu0 %v5382_v17  ;;  %v5397_v34 = vld [vmem:[%s8211_s9 + $0xda0] sm:$0xff] }
 0x597   : > { %7270 = vst.msk [vmem:[%s14046_s5 + $0x8] sm:$0xff] %vm479_vm0, %v6889_v2  ;;  %v6893_v15 = vadd.f32 %v6892_v57, %v6444_v31  ;;  %v6457_v55 = vpop.f32.mrf.mxu0  ;;  %7184 = vmatprep.mubr.f32.mxu1 %v5368_v36  ;;  %v5384_v57 = vld [vmem:[%s8211_s9 + $0xd38] sm:$0xff] }
 0x598   : > { %v6894_v10 = vpop.f32.mrf.mxu1 }
 0x599   : > { %7271 = vst [vmem:[%s14046_s5 + $0x10] sm:$0xff] %v6893_v15  ;;  %v6895_v5 = vadd.f32 %v6894_v10, %v6446_v49  ;;  %v6461_v17 = vpop.f32.mrf.mxu0  ;;  %6748 = vmatmul.mubr.f32.gmra.mxu0 %v5381_v47  ;;  %v6456_v47 = vadd.f32 %v6455_v38, %v13520_v41  ;;  %v5383_v41 = vld [vmem:[%s8211_s9 + $0xd30] sm:$0xff]  ;;  %v5406_v38 = vld [vmem:[%s8211_s9 + $0xde8] sm:$0xff] }
 0x59a   : > { %v6898_v14 = vpop.f32.mrf.mxu1  ;;  %7185 = vmatmul.mubr.f32.gmra.mxu1 %v5367_v23  ;;  %6753 = vmatprep.mubr.f32.mxu0 %v5390_v45  ;;  %v6458_v23 = vadd.f32 %v6457_v55, %v13524_v42  ;;  %v5405_v55 = vld [vmem:[%s8211_s9 + $0xde0] sm:$0xff] }
 0x59b   : > { %7272 = vst.msk [vmem:[%s14046_s5 + $0x18] sm:$0xff] %vm479_vm0, %v6895_v5  ;;  %v6899_v36 = vadd.f32 %v6898_v14, %v6450_v56  ;;  %v6463_v31 = vpop.f32.mrf.mxu0  ;;  %7190 = vmatprep.mubr.f32.mxu1 %v5376_v40  ;;  %v5392_v56 = vld [vmem:[%s8211_s9 + $0xd78] sm:$0xff]  ;;  %v6462_v5 = vadd.f32 %v6461_v17, %v13530_v48  ;;  %v5391_v48 = vld [vmem:[%s8211_s9 + $0xd70] sm:$0xff]  ;;  %v5414_v17 = vld [vmem:[%s8211_s9 + $0xe28] sm:$0xff] }
 0x59c   : > { %v6900_v2 = vpop.f32.mrf.mxu1 }
 0x59d   : > { %7273 = vst [vmem:[%s14046_s5 + $0x20] sm:$0xff] %v6899_v36  ;;  %v6901_v49 = vadd.f32 %v6900_v2, %v6452_v52  ;;  %v6467_v15 = vpop.f32.mrf.mxu0  ;;  %6754 = vmatmul.mubr.f32.gmra.mxu0 %v5389_v22  ;;  %v6464_v52 = vadd.f32 %v6463_v31, %v13542_v63  ;;  %v5400_v2 = vld [vmem:[%s8211_s9 + $0xdb8] sm:$0xff]  ;;  %v5413_v31 = vld [vmem:[%s8211_s9 + $0xe20] sm:$0xff] }
 0x59e   : > { %v6904_v32 = vpop.f32.mrf.mxu1  ;;  %7191 = vmatmul.mubr.f32.gmra.mxu1 %v5375_v30  ;;  %6759 = vmatprep.mubr.f32.mxu0 %v5398_v20 }
 0x59f   : > { %7274 = vst.msk [vmem:[%s14046_s5 + $0x28] sm:$0xff] %vm479_vm0, %v6901_v49  ;;  %v6905_v45 = vadd.f32 %v6904_v32, %v6456_v47  ;;  %v6469_v10 = vpop.f32.mrf.mxu0  ;;  %7196 = vmatprep.mubr.f32.mxu1 %v5384_v57  ;;  %v6468_v57 = vadd.f32 %v6467_v15, %v13546_v25  ;;  %v5399_v25 = vld [vmem:[%s8211_s9 + $0xdb0] sm:$0xff]  ;;  %v5422_v15 = vld [vmem:[%s8211_s9 + $0xe68] sm:$0xff] }
 0x5a0   : > { %v6906_v40 = vpop.f32.mrf.mxu1  ;;  %v6470_v32 = vadd.f32 %v6469_v10, %v13550_v39  ;;  %v5421_v10 = vld [vmem:[%s8211_s9 + $0xe60] sm:$0xff] }
 0x5a1   : > { %7275 = vst [vmem:[%s14046_s5 + $0x30] sm:$0xff] %v6905_v45  ;;  %v6907_v14 = vadd.f32 %v6906_v40, %v6458_v23  ;;  %v6473_v22 = vpop.f32.mrf.mxu0  ;;  %6760 = vmatmul.mubr.f32.gmra.mxu0 %v5397_v34 }
 0x5a2   : > { %v6910_v42 = vpop.f32.mrf.mxu1  ;;  %7197 = vmatmul.mubr.f32.gmra.mxu1 %v5383_v41  ;;  %6765 = vmatprep.mubr.f32.mxu0 %v5406_v38  ;;  %v5408_v41 = vld [vmem:[%s8211_s9 + $0xdf8] sm:$0xff]  ;;  %v6474_v38 = vadd.f32 %v6473_v22, %v13556_v54  ;;  %v5407_v54 = vld [vmem:[%s8211_s9 + $0xdf0] sm:$0xff]  ;;  %v5430_v22 = vld [vmem:[%s8211_s9 + $0xea8] sm:$0xff] }
 0x5a3   : > { %7276 = vst.msk [vmem:[%s14046_s5 + $0x38] sm:$0xff] %vm479_vm0, %v6907_v14  ;;  %v6911_v36 = vadd.f32 %v6910_v42, %v6462_v5  ;;  %v6475_v30 = vpop.f32.mrf.mxu0  ;;  %7202 = vmatprep.mubr.f32.mxu1 %v5392_v56 }
 0x5a4   : > { %v6912_v20 = vpop.f32.mrf.mxu1  ;;  %v6476_v5 = vadd.f32 %v6475_v30, %v13567_v27  ;;  %v5429_v30 = vld [vmem:[%s8211_s9 + $0xea0] sm:$0xff] }
 0x5a5   : > { %7277 = vst [vmem:[%s14046_s5 + $0x40] sm:$0xff] %v6911_v36  ;;  %v6913_v47 = vadd.f32 %v6912_v20, %v6464_v52  ;;  %v6479_v49 = vpop.f32.mrf.mxu0  ;;  %6766 = vmatmul.mubr.f32.gmra.mxu0 %v5405_v55  ;;  %v5416_v52 = vld [vmem:[%s8211_s9 + $0xe38] sm:$0xff] }
 0x5a6   : > { %v6916_v63 = vpop.f32.mrf.mxu1  ;;  %7203 = vmatmul.mubr.f32.gmra.mxu1 %v5391_v48  ;;  %6771 = vmatprep.mubr.f32.mxu0 %v5414_v17  ;;  %v6480_v36 = vadd.f32 %v6479_v49, %v13572_v28  ;;  %v5415_v28 = vld [vmem:[%s8211_s9 + $0xe30] sm:$0xff] }
 0x5a7   : > { %7278 = vst.msk [vmem:[%s14046_s5 + $0x48] sm:$0xff] %vm479_vm0, %v6913_v47  ;;  %v6917_v34 = vadd.f32 %v6916_v63, %v6468_v57  ;;  %v6481_v23 = vpop.f32.mrf.mxu0  ;;  %7208 = vmatprep.mubr.f32.mxu1 %v5400_v2  ;;  %v5438_v47 = vld [vmem:[%s8211_s9 + $0xee8] sm:$0xff]  ;;  %v5424_v63 = vld [vmem:[%s8211_s9 + $0xe78] sm:$0xff] }
 0x5a8   : > { %v6918_v45 = vpop.f32.mrf.mxu1  ;;  %v6482_v20 = vadd.f32 %v6481_v23, %v13576_v21  ;;  %v5437_v23 = vld [vmem:[%s8211_s9 + $0xee0] sm:$0xff] }
 0x5a9   : > { %7279 = vst [vmem:[%s14046_s5 + $0x50] sm:$0xff] %v6917_v34  ;;  %v6919_v40 = vadd.f32 %v6918_v45, %v6470_v32  ;;  %v6485_v56 = vpop.f32.mrf.mxu0  ;;  %6772 = vmatmul.mubr.f32.gmra.mxu0 %v5413_v31 }
 0x5aa   : > { %v6922_v39 = vpop.f32.mrf.mxu1  ;;  %7209 = vmatmul.mubr.f32.gmra.mxu1 %v5399_v25  ;;  %6777 = vmatprep.mubr.f32.mxu0 %v5422_v15  ;;  %v6486_v31 = vadd.f32 %v6485_v56, %v13580_v12  ;;  %v5423_v12 = vld [vmem:[%s8211_s9 + $0xe70] sm:$0xff] }
 0x5ab   : > { %7280 = vst.msk [vmem:[%s14046_s5 + $0x58] sm:$0xff] %vm479_vm0, %v6919_v40  ;;  %v6923_v14 = vadd.f32 %v6922_v39, %v6474_v38  ;;  %v6487_v42 = vpop.f32.mrf.mxu0  ;;  %7214 = vmatprep.mubr.f32.mxu1 %v5408_v41  ;;  %v5446_v41 = vld [vmem:[%s8211_s9 + $0xf28] sm:$0xff]  ;;  %v5432_v40 = vld [vmem:[%s8211_s9 + $0xeb8] sm:$0xff] }
 0x5ac   : > { %v6924_v55 = vpop.f32.mrf.mxu1  ;;  %v6488_v25 = vadd.f32 %v6487_v42, %v13585_v16 }
 0x5ad   : > { %7281 = vst [vmem:[%s14046_s5 + $0x60] sm:$0xff] %v6923_v14  ;;  %v6925_v48 = vadd.f32 %v6924_v55, %v6476_v5  ;;  %v6491_v17 = vpop.f32.mrf.mxu0  ;;  %6778 = vmatmul.mubr.f32.gmra.mxu0 %v5421_v10  ;;  %v5445_v5 = vld [vmem:[%s8211_s9 + $0xf20] sm:$0xff] }
 0x5ae   : > { %v6928_v27 = vpop.f32.mrf.mxu1  ;;  %7215 = vmatmul.mubr.f32.gmra.mxu1 %v5407_v54  ;;  %6783 = vmatprep.mubr.f32.mxu0 %v5430_v22  ;;  %v6492_v56 = vadd.f32 %v6491_v17, %v13590_v58  ;;  %v5431_v58 = vld [vmem:[%s8211_s9 + $0xeb0] sm:$0xff]  ;;  %v5454_v22 = vld [vmem:[%s8211_s9 + $0xf68] sm:$0xff] }
 0x5af   : > { %7282 = vst.msk [vmem:[%s14046_s5 + $0x68] sm:$0xff] %vm479_vm0, %v6925_v48  ;;  %v6929_v2 = vadd.f32 %v6928_v27, %v6480_v36  ;;  %v6493_v57 = vpop.f32.mrf.mxu0  ;;  %7220 = vmatprep.mubr.f32.mxu1 %v5416_v52  ;;  %v5440_v52 = vld [vmem:[%s8211_s9 + $0xef8] sm:$0xff]  ;;  %v5453_v27 = vld [vmem:[%s8211_s9 + $0xf60] sm:$0xff] }
 0x5b0   : > { %v6930_v49 = vpop.f32.mrf.mxu1  ;;  %v6494_v14 = vadd.f32 %v6493_v57, %v13595_v35  ;;  %v5462_v57 = vld [vmem:[%s8211_s9 + $0xfa8] sm:$0xff] }
 0x5b1   : > { %7283 = vst [vmem:[%s14046_s5 + $0x70] sm:$0xff] %v6929_v2  ;;  %v6931_v32 = vadd.f32 %v6930_v49, %v6482_v20  ;;  %v6497_v34 = vpop.f32.mrf.mxu0  ;;  %6784 = vmatmul.mubr.f32.gmra.mxu0 %v5429_v30 }
 0x5b2   : > { %v6934_v21 = vpop.f32.mrf.mxu1  ;;  %7221 = vmatmul.mubr.f32.gmra.mxu1 %v5415_v28  ;;  %6789 = vmatprep.mubr.f32.mxu0 %v5438_v47  ;;  %v6498_v36 = vadd.f32 %v6497_v34, %v13598_v62  ;;  %v5439_v62 = vld [vmem:[%s8211_s9 + $0xef0] sm:$0xff]  ;;  %v5448_v47 = vld [vmem:[%s8211_s9 + $0xf38] sm:$0xff] }
 0x5b3   : > { %7284 = vst.msk [vmem:[%s14046_s5 + $0x78] sm:$0xff] %vm479_vm0, %v6931_v32  ;;  %v6935_v15 = vadd.f32 %v6934_v21, %v6486_v31  ;;  %v6499_v45 = vpop.f32.mrf.mxu0  ;;  %7226 = vmatprep.mubr.f32.mxu1 %v5424_v63  ;;  %v5461_v32 = vld [vmem:[%s8211_s9 + $0xfa0] sm:$0xff] }
 0x5b4   : > { %v6936_v38 = vpop.f32.mrf.mxu1  ;;  %v6500_v30 = vadd.f32 %v6499_v45, %v13603_v60  ;;  %v5456_v45 = vld [vmem:[%s8211_s9 + $0xf78] sm:$0xff] }
 0x5b5   : > { %7285 = vst [vmem:[%s14046_s5 + $0x80] sm:$0xff] %v6935_v15  ;;  %v6937_v39 = vadd.f32 %v6936_v38, %v6488_v25  ;;  %v6503_v10 = vpop.f32.mrf.mxu0  ;;  %6790 = vmatmul.mubr.f32.gmra.mxu0 %v5437_v23  ;;  %v5470_v25 = vld [vmem:[%s8211_s9 + $0xfe8] sm:$0xff] }
 0x5b6   : > { %v6940_v16 = vpop.f32.mrf.mxu1  ;;  %7227 = vmatmul.mubr.f32.gmra.mxu1 %v5423_v12  ;;  %6795 = vmatprep.mubr.f32.mxu0 %v5446_v41  ;;  %v6504_v49 = vadd.f32 %v6503_v10, %v13610_v53  ;;  %v5447_v53 = vld [vmem:[%s8211_s9 + $0xf30] sm:$0xff] }
 0x5b7   : > { %7286 = vst.msk [vmem:[%s14046_s5 + $0x88] sm:$0xff] %vm479_vm0, %v6937_v39  ;;  %v6941_v42 = vadd.f32 %v6940_v16, %v6492_v56  ;;  %v6505_v54 = vpop.f32.mrf.mxu0  ;;  %7232 = vmatprep.mubr.f32.mxu1 %v5432_v40  ;;  %v5469_v40 = vld [vmem:[%s8211_s9 + $0xfe0] sm:$0xff] }
 0x5b8   : > { %v6942_v55 = vpop.f32.mrf.mxu1  ;;  %v6506_v34 = vadd.f32 %v6505_v54, %v13615_v6 }
 0x5b9   : > { %7287 = vst [vmem:[%s14046_s5 + $0x90] sm:$0xff] %v6941_v42  ;;  %v6943_v48 = vadd.f32 %v6942_v55, %v6494_v14  ;;  %v6509_v17 = vpop.f32.mrf.mxu0  ;;  %6796 = vmatmul.mubr.f32.gmra.mxu0 %v5445_v5  ;;  %v5464_v5 = vld [vmem:[%s8211_s9 + $0xfb8] sm:$0xff] }
 0x5ba   : > { %v6946_v35 = vpop.f32.mrf.mxu1  ;;  %7233 = vmatmul.mubr.f32.gmra.mxu1 %v5431_v58  ;;  %6801 = vmatprep.mubr.f32.mxu0 %v5454_v22  ;;  %v6510_v12 = vadd.f32 %v6509_v17, %v13618_v59  ;;  %v5455_v59 = vld [vmem:[%s8211_s9 + $0xf70] sm:$0xff] }
 0x5bb   : > { %7288 = vst.msk [vmem:[%s14046_s5 + $0x98] sm:$0xff] %vm479_vm0, %v6943_v48  ;;  %v6947_v20 = vadd.f32 %v6946_v35, %v6498_v36  ;;  %v6511_v2 = vpop.f32.mrf.mxu0  ;;  %7238 = vmatprep.mubr.f32.mxu1 %v5440_v52  ;;  %v5463_v52 = vld [vmem:[%s8211_s9 + $0xfb0] sm:$0xff] }
 0x5bc   : > { %v6948_v28 = vpop.f32.mrf.mxu1  ;;  %v6512_v56 = vadd.f32 %v6511_v2, %v13623_v51  ;;  %v5471_v2 = vld [vmem:[%s8211_s9 + $0xff0] sm:$0xff] }
 0x5bd   : > { %7289 = vst [vmem:[%s14046_s5 + $0xa0] sm:$0xff] %v6947_v20  ;;  %v6949_v63 = vadd.f32 %v6948_v28, %v6500_v30  ;;  %v6515_v31 = vpop.f32.mrf.mxu0  ;;  %6802 = vmatmul.mubr.f32.gmra.mxu0 %v5453_v27 }
 0x5be   : > { %v6952_v60 = vpop.f32.mrf.mxu1  ;;  %7239 = vmatmul.mubr.f32.gmra.mxu1 %v5439_v62  ;;  %6807 = vmatprep.mubr.f32.mxu0 %v5462_v57  ;;  %v6516_v14 = vadd.f32 %v6515_v31, %v13632_v4  ;;  %v5472_v4 = vld [vmem:[%s8211_s9 + $0xff8] sm:$0xff] }
 0x5bf   : > { %7290 = vst.msk [vmem:[%s14046_s5 + $0xa8] sm:$0xff] %vm479_vm0, %v6949_v63  ;;  %v6953_v21 = vadd.f32 %v6952_v60, %v6504_v49  ;;  %v6517_v23 = vpop.f32.mrf.mxu0  ;;  %7244 = vmatprep.mubr.f32.mxu1 %v5448_v47 }
 0x5c0   : > { %v6954_v15 = vpop.f32.mrf.mxu1  ;;  %v6518_v51 = vadd.f32 %v6517_v23, %v13637_v43 }
 0x5c1   : > { %7291 = vst [vmem:[%s14046_s5 + $0xb0] sm:$0xff] %v6953_v21  ;;  %v6955_v41 = vadd.f32 %v6954_v15, %v6506_v34  ;;  %v6521_v38 = vpop.f32.mrf.mxu0  ;;  %6808 = vmatmul.mubr.f32.gmra.mxu0 %v5461_v32 }
 0x5c2   : > { %v6958_v6 = vpop.f32.mrf.mxu1  ;;  %7245 = vmatmul.mubr.f32.gmra.mxu1 %v5447_v53  ;;  %6813 = vmatprep.mubr.f32.mxu0 %v5470_v25  ;;  %v6522_v48 = vadd.f32 %v6521_v38, %v13640_v7 }
 0x5c3   : > { %7292 = vst.msk [vmem:[%s14046_s5 + $0xb8] sm:$0xff] %vm479_vm0, %v6955_v41  ;;  %v6959_v39 = vadd.f32 %v6958_v6, %v6510_v12  ;;  %v6523_v10 = vpop.f32.mrf.mxu0  ;;  %7250 = vmatprep.mubr.f32.mxu1 %v5456_v45 }
 0x5c4   : > { %v6960_v16 = vpop.f32.mrf.mxu1  ;;  %v6524_v43 = vadd.f32 %v6523_v10, %v13644_v33 }
 0x5c5   : > { %7293 = vst [vmem:[%s14046_s5 + $0xc0] sm:$0xff] %v6959_v39  ;;  %v6961_v42 = vadd.f32 %v6960_v16, %v6512_v56  ;;  %v6527_v54 = vpop.f32.mrf.mxu0  ;;  %6814 = vmatmul.mubr.f32.gmra.mxu0 %v5469_v40 }
 0x5c6   : > { %v6964_v58 = vpop.f32.mrf.mxu1  ;;  %7251 = vmatmul.mubr.f32.gmra.mxu1 %v5455_v59  ;;  %v6528_v57 = vadd.f32 %v6527_v54, %v13648_v9 }
 0x5c7   : > { %7294 = vst.msk [vmem:[%s14046_s5 + $0xc8] sm:$0xff] %vm479_vm0, %v6961_v42  ;;  %v6965_v22 = vadd.f32 %v6964_v58, %v6516_v14  ;;  %v6529_v55 = vpop.f32.mrf.mxu0  ;;  %7256 = vmatprep.mubr.f32.mxu1 %v5464_v5 }
 0x5c8   : > { %v6966_v36 = vpop.f32.mrf.mxu1  ;;  %v6530_v49 = vadd.f32 %v6529_v55, %v13653_v44 }
 0x5c9   : > { %7295 = vst [vmem:[%s14046_s5 + $0xd0] sm:$0xff] %v6965_v22  ;;  %v6967_v17 = vadd.f32 %v6966_v36, %v6518_v51  ;;  %v6533_v35 = vpop.f32.mrf.mxu0 }
 0x5ca   : > { %v6970_v27 = vpop.f32.mrf.mxu1  ;;  %7257 = vmatmul.mubr.f32.gmra.mxu1 %v5463_v52  ;;  %v6534_v60 = vadd.f32 %v6533_v35, %v13656_v11 }
 0x5cb   : > { %7296 = vst.msk [vmem:[%s14046_s5 + $0xd8] sm:$0xff] %vm479_vm0, %v6967_v17  ;;  %v6971_v30 = vadd.f32 %v6970_v27, %v6522_v48  ;;  %v6535_v20 = vpop.f32.mrf.mxu0  ;;  %7262 = vmatprep.mubr.f32.mxu1 %v5472_v4 }
 0x5cc   : > { %v6972_v62 = vpop.f32.mrf.mxu1  ;;  %v6536_v21 = vadd.f32 %v6535_v20, %v13661_v3  ;;  %v15532_v20 = vld [vmem:[#allocation33_spill] sm:$0xff] }
 0x5cd   : > { %7297 = vst [vmem:[%s14046_s5 + $0xe0] sm:$0xff] %v6971_v30  ;;  %v6973_v7 = vadd.f32 %v6972_v62, %v6524_v43  ;;  %v6539_v28 = vpop.f32.mrf.mxu0 }
 0x5ce   : > { %v6976_v47 = vpop.f32.mrf.mxu1  ;;  %7263 = vmatmul.mubr.f32.gmra.mxu1 %v5471_v2  ;;  %v6540_v25 = vadd.f32 %v6539_v28, %v13664_v0 }
 0x5cf   : > { %7298 = vst.msk [vmem:[%s14046_s5 + $0xe8] sm:$0xff] %vm479_vm0, %v6973_v7  ;;  %v6977_v33 = vadd.f32 %v6976_v47, %v6528_v57  ;;  %v6541_v63 = vpop.f32.mrf.mxu0  ;;  %v15533_v7 = vld [vmem:[#allocation31_spill] sm:$0xff] }
 0x5d0   : > { %v6978_v31 = vpop.f32.mrf.mxu1  ;;  %v6542_v12 = vadd.f32 %v6541_v63, %v13669_v37 }
 0x5d1   : > { %7299 = vst [vmem:[%s14046_s5 + $0xf0] sm:$0xff] %v6977_v33  ;;  %v6979_v32 = vadd.f32 %v6978_v31, %v6530_v49  ;;  %v6545_v9 = vpop.f32.mrf.mxu0  ;;  %v15534_v33 = vld [vmem:[#allocation37_spill] sm:$0xff] }
 0x5d2   : > { %v6982_v34 = vpop.f32.mrf.mxu1  ;;  %v6546_v6 = vadd.f32 %v6545_v9, %v13672_v46  ;;  %v15535_v9 = vld [vmem:[#allocation45_spill] sm:$0xff] }
 0x5d3   : > { %7300 = vst.msk [vmem:[%s14046_s5 + $0xf8] sm:$0xff] %vm479_vm0, %v6979_v32  ;;  %v6983_v23 = vadd.f32 %v6982_v34, %v6534_v60  ;;  %v6547_v44 = vpop.f32.mrf.mxu0 }
 0x5d4   : > { %v6984_v53 = vpop.f32.mrf.mxu1  ;;  %v6548_v39 = vadd.f32 %v6547_v44, %v13677_v29 }
 0x5d5   : > { %7301 = vst [vmem:[%s14046_s5 + $0x100] sm:$0xff] %v6983_v23  ;;  %v6985_v15 = vadd.f32 %v6984_v53, %v6536_v21  ;;  %v6551_v45 = vpop.f32.mrf.mxu0  ;;  %v15536_v53 = vld [vmem:[#allocation44_spill] sm:$0xff] }
 0x5d6   : > { %v6988_v11 = vpop.f32.mrf.mxu1  ;;  %v6552_v16 = vadd.f32 %v6551_v45, %v13680_v26 }
 0x5d7   : > { %7302 = vst.msk [vmem:[%s14046_s5 + $0x108] sm:$0xff] %vm479_vm0, %v6985_v15  ;;  %v6989_v41 = vadd.f32 %v6988_v11, %v6540_v25  ;;  %v6553_v3 = vpop.f32.mrf.mxu0 }
 0x5d8   : > { %v6990_v38 = vpop.f32.mrf.mxu1  ;;  %v6554_v42 = vadd.f32 %v6553_v3, %v13685_v50 }
 0x5d9   : > { %7303 = vst [vmem:[%s14046_s5 + $0x110] sm:$0xff] %v6989_v41  ;;  %v6991_v40 = vadd.f32 %v6990_v38, %v6542_v12  ;;  %v6557_v56 = vpop.f32.mrf.mxu0  ;;  %v15537_v12 = vld [vmem:[#allocation43_spill] sm:$0xff] }
 0x5da   : > { %v6994_v0 = vpop.f32.mrf.mxu1  ;;  %v6558_v51 = vadd.f32 %v6557_v56, %v13688_v18 }
 0x5db   : > { %7304 = vst.msk [vmem:[%s14046_s5 + $0x118] sm:$0xff] %vm479_vm0, %v6991_v40  ;;  %v6995_v10 = vadd.f32 %v6994_v0, %v6546_v6  ;;  %v6559_v37 = vpop.f32.mrf.mxu0  ;;  %v15538_v40 = vld [vmem:[#allocation34_spill] sm:$0xff] }
 0x5dc   : > { %v6996_v59 = vpop.f32.mrf.mxu1  ;;  %v6560_v52 = vadd.f32 %v6559_v37, %v13693_v24  ;;  %v15539_v37 = vld [vmem:[#allocation25_spill] sm:$0xff] }
 0x5dd   : > { %7305 = vst [vmem:[%s14046_s5 + $0x120] sm:$0xff] %v6995_v10  ;;  %v6997_v5 = vadd.f32 %v6996_v59, %v6548_v39  ;;  %v6563_v14 = vpop.f32.mrf.mxu0 }
 0x5de   : > { %v7000_v46 = vpop.f32.mrf.mxu1  ;;  %v6564_v48 = vadd.f32 %v6563_v14, %v13696_v19 }
 0x5df   : > { %7306 = vst.msk [vmem:[%s14046_s5 + $0x128] sm:$0xff] %vm479_vm0, %v6997_v5  ;;  %v7001_v54 = vadd.f32 %v7000_v46, %v6552_v16  ;;  %v6565_v29 = vpop.f32.mrf.mxu0  ;;  %v15540_v46 = vld [vmem:[#allocation39_spill] sm:$0xff] }
 0x5e0   : > { %v7002_v58 = vpop.f32.mrf.mxu1  ;;  %v6566_v27 = vadd.f32 %v6565_v29, %v13701_v1 }
 0x5e1   : > { %7307 = vst [vmem:[%s14046_s5 + $0x130] sm:$0xff] %v7001_v54  ;;  %v7003_v22 = vadd.f32 %v7002_v58, %v6554_v42  ;;  %v6569_v55 = vpop.f32.mrf.mxu0 }
 0x5e2   : > { %v7006_v26 = vpop.f32.mrf.mxu1  ;;  %v6570_v2 = vadd.f32 %v6569_v55, %v15532_v20 }
 0x5e3   : > { %7308 = vst.msk [vmem:[%s14046_s5 + $0x138] sm:$0xff] %vm479_vm0, %v7003_v22  ;;  %v7007_v36 = vadd.f32 %v7006_v26, %v6558_v51  ;;  %v6571_v50 = vpop.f32.mrf.mxu0  ;;  %v15541_v51 = vld [vmem:[#allocation47_spill] sm:$0xff] }
 0x5e4   : > { %v7008_v4 = vpop.f32.mrf.mxu1  ;;  %v6572_v28 = vadd.f32 %v6571_v50, %v15533_v7 }
 0x5e5   : > { %7309 = vst [vmem:[%s14046_s5 + $0x140] sm:$0xff] %v7007_v36  ;;  %v7009_v17 = vadd.f32 %v7008_v4, %v6560_v52  ;;  %v6575_v35 = vpop.f32.mrf.mxu0  ;;  %v15542_v36 = vld [vmem:[#allocation41_spill] sm:$0xff] }
 0x5e6   : > { %v7012_v18 = vpop.f32.mrf.mxu1  ;;  %v6576_v63 = vadd.f32 %v6575_v35, %v15534_v33  ;;  %v15543_v35 = vld [vmem:[#allocation28_spill] sm:$0xff] }
 0x5e7   : > { %7310 = vst.msk [vmem:[%s14046_s5 + $0x148] sm:$0xff] %vm479_vm0, %v7009_v17  ;;  %v7013_v43 = vadd.f32 %v7012_v18, %v6564_v48  ;;  %v6577_v24 = vpop.f32.mrf.mxu0 }
 0x5e8   : > { %v7014_v30 = vpop.f32.mrf.mxu1  ;;  %v6578_v34 = vadd.f32 %v6577_v24, %v15535_v9 }
 0x5e9   : > { %7311 = vst [vmem:[%s14046_s5 + $0x150] sm:$0xff] %v7013_v43  ;;  %v7015_v62 = vadd.f32 %v7014_v30, %v6566_v27  ;;  %v6581_v57 = vpop.f32.mrf.mxu0  ;;  %v15544_v30 = vld [vmem:[#allocation40_spill] sm:$0xff] }
 0x5ea   : > { %v7018_v19 = vpop.f32.mrf.mxu1  ;;  %v6582_v25 = vadd.f32 %v6581_v57, %v15536_v53 }
 0x5eb   : > { %7312 = vst.msk [vmem:[%s14046_s5 + $0x158] sm:$0xff] %vm479_vm0, %v7015_v62  ;;  %v7019_v47 = vadd.f32 %v7018_v19, %v6570_v2  ;;  %v6583_v1 = vpop.f32.mrf.mxu0  ;;  %v15545_v19 = vld [vmem:[#allocation7_spill] sm:$0xff] }
 0x5ec   : > { %v7020_v49 = vpop.f32.mrf.mxu1  ;;  %v6584_v41 = vadd.f32 %v6583_v1, %v15537_v12 }
 0x5ed   : > { %7313 = vst [vmem:[%s14046_s5 + $0x160] sm:$0xff] %v7019_v47  ;;  %v7021_v31 = vadd.f32 %v7020_v49, %v6572_v28  ;;  %v6587_v60 = vpop.f32.mrf.mxu0  ;;  %v15546_v49 = vld [vmem:[#allocation108_spill] sm:$0xff] }
 0x5ee   : > { %v7024_v32 = vpop.f32.mrf.mxu1  ;;  %v6588_v56 = vadd.f32 %v6587_v60, %v15538_v40 }
 0x5ef   : > { %7314 = vst.msk [vmem:[%s14046_s5 + $0x168] sm:$0xff] %vm479_vm0, %v7021_v31  ;;  %v7025_v21 = vadd.f32 %v7024_v32, %v6576_v63  ;;  %v6589_v23 = vpop.f32.mrf.mxu0  ;;  %v15547_v32 = vld [vmem:[#allocation29_spill] sm:$0xff] }
 0x5f0   : > { %v7026_v44 = vpop.f32.mrf.mxu1  ;;  %v6590_v59 = vadd.f32 %v6589_v23, %v15539_v37 }
 0x5f1   : > { %7315 = vst [vmem:[%s14046_s5 + $0x170] sm:$0xff] %v7025_v21  ;;  %v7027_v15 = vadd.f32 %v7026_v44, %v6578_v34  ;;  %v6593_v45 = vpop.f32.mrf.mxu0  ;;  %v15548_v44 = vld [vmem:[#allocation36_spill] sm:$0xff] }
 0x5f2   : > { %v7030_v11 = vpop.f32.mrf.mxu1  ;;  %v6594_v42 = vadd.f32 %v6593_v45, %v15540_v46 }
 0x5f3   : > { %7316 = vst.msk [vmem:[%s14046_s5 + $0x178] sm:$0xff] %vm479_vm0, %v7027_v15  ;;  %v7031_v3 = vadd.f32 %v7030_v11, %v6582_v25  ;;  %v6595_v38 = vpop.f32.mrf.mxu0  ;;  %v15549_v11 = vld [vmem:[#allocation42_spill] sm:$0xff] }
 0x5f4   : > { %v7032_v6 = vpop.f32.mrf.mxu1  ;;  %v6596_v22 = vadd.f32 %v6595_v38, %v15541_v51 }
 0x5f5   : > { %7317 = vst [vmem:[%s14046_s5 + $0x180] sm:$0xff] %v7031_v3  ;;  %v7033_v0 = vadd.f32 %v7032_v6, %v6584_v41  ;;  %v6599_v39 = vpop.f32.mrf.mxu0  ;;  %v15550_v6 = vld [vmem:[#allocation8_spill] sm:$0xff] }
 0x5f6   : > { %v7036_v10 = vpop.f32.mrf.mxu1  ;;  %v6600_v50 = vadd.f32 %v6599_v39, %v15542_v36 }
 0x5f7   : > { %7318 = vst.msk [vmem:[%s14046_s5 + $0x188] sm:$0xff] %vm479_vm0, %v7033_v0  ;;  %v7037_v16 = vadd.f32 %v7036_v10, %v6588_v56  ;;  %v6601_v5 = vpop.f32.mrf.mxu0  ;;  %v15551_v10 = vld [vmem:[#allocation111_spill] sm:$0xff] }
 0x5f8   : > { %v7038_v14 = vpop.f32.mrf.mxu1  ;;  %v6602_v18 = vadd.f32 %v6601_v5, %v15543_v35 }
 0x5f9   : > { %7319 = vst [vmem:[%s14046_s5 + $0x190] sm:$0xff] %v7037_v16  ;;  %v7039_v54 = vadd.f32 %v7038_v14, %v6590_v59  ;;  %v6605_v29 = vpop.f32.mrf.mxu0  ;;  %v15552_v14 = vld [vmem:[#allocation32_spill] sm:$0xff] }
 0x5fa   : > { %v7042_v58 = vpop.f32.mrf.mxu1  ;;  %v6606_v20 = vadd.f32 %v6605_v29, %v15544_v30 }
 0x5fb   : > { %7320 = vst.msk [vmem:[%s14046_s5 + $0x198] sm:$0xff] %vm479_vm0, %v7039_v54  ;;  %v7043_v55 = vadd.f32 %v7042_v58, %v6594_v42  ;;  %v6607_v26 = vpop.f32.mrf.mxu0  ;;  %v15553_v58 = vld [vmem:[#allocation38_spill] sm:$0xff] }
 0x5fc   : > { %v7044_v52 = vpop.f32.mrf.mxu1  ;;  %v6608_v7 = vadd.f32 %v6607_v26, %v15545_v19 }
 0x5fd   : > { %7321 = vst [vmem:[%s14046_s5 + $0x1a0] sm:$0xff] %v7043_v55  ;;  %v7045_v4 = vadd.f32 %v7044_v52, %v6596_v22  ;;  %v6611_v48 = vpop.f32.mrf.mxu0  ;;  %v15554_v52 = vld [vmem:[#allocation106_spill] sm:$0xff] }
 0x5fe   : > { %v7048_v17 = vpop.f32.mrf.mxu1  ;;  %v6612_v33 = vadd.f32 %v6611_v48, %v15546_v49 }
 0x5ff   : > { %7322 = vst.msk [vmem:[%s14046_s5 + $0x1a8] sm:$0xff] %vm479_vm0, %v7045_v4  ;;  %v7049_v27 = vadd.f32 %v7048_v17, %v6600_v50  ;;  %v6613_v43 = vpop.f32.mrf.mxu0  ;;  %v15555_v17 = vld [vmem:[#allocation105_spill] sm:$0xff] }
 0x600   : > { %v7050_v24 = vpop.f32.mrf.mxu1  ;;  %v6614_v9 = vadd.f32 %v6613_v43, %v15547_v32 }
 0x601   : > { %7323 = vst [vmem:[%s14046_s5 + $0x1b0] sm:$0xff] %v7049_v27  ;;  %v7051_v2 = vadd.f32 %v7050_v24, %v6602_v18  ;;  %v6617_v62 = vpop.f32.mrf.mxu0  ;;  %v15556_v24 = vld [vmem:[#allocation27_spill] sm:$0xff] }
 0x602   : > { %v7054_v57 = vpop.f32.mrf.mxu1  ;;  %v6618_v53 = vadd.f32 %v6617_v62, %v15548_v44 }
 0x603   : > { %7324 = vst.msk [vmem:[%s14046_s5 + $0x1b8] sm:$0xff] %vm479_vm0, %v7051_v2  ;;  %v7055_v28 = vadd.f32 %v7054_v57, %v6606_v20  ;;  %v6619_v47 = vpop.f32.mrf.mxu0  ;;  %v15557_v57 = vld [vmem:[#allocation35_spill] sm:$0xff] }
 0x604   : > { %v7056_v1 = vpop.f32.mrf.mxu1  ;;  %v6620_v12 = vadd.f32 %v6619_v47, %v15549_v11 }
 0x605   : > { %7325 = vst [vmem:[%s14046_s5 + $0x1c0] sm:$0xff] %v7055_v28  ;;  %v7057_v63 = vadd.f32 %v7056_v1, %v6608_v7  ;;  %v6623_v31 = vpop.f32.mrf.mxu0  ;;  %v15558_v1 = vld [vmem:[#allocation110_spill] sm:$0xff] }
 0x606   : > { %v7060_v60 = vpop.f32.mrf.mxu1  ;;  %v6624_v40 = vadd.f32 %v6623_v31, %v15550_v6 }
 0x607   : > { %7326 = vst.msk [vmem:[%s14046_s5 + $0x1c8] sm:$0xff] %vm479_vm0, %v7057_v63  ;;  %v7061_v34 = vadd.f32 %v7060_v60, %v6612_v33  ;;  %v6625_v21 = vpop.f32.mrf.mxu0  ;;  %v15559_v60 = vld [vmem:[#allocation6_spill] sm:$0xff] }
 0x608   : > { %v7062_v23 = vpop.f32.mrf.mxu1  ;;  %v6626_v37 = vadd.f32 %v6625_v21, %v15551_v10 }
 0x609   : > { %7327 = vst [vmem:[%s14046_s5 + $0x1d0] sm:$0xff] %v7061_v34  ;;  %v7063_v25 = vadd.f32 %v7062_v23, %v6614_v9  ;;  %v6629_v15 = vpop.f32.mrf.mxu0  ;;  %v15560_v23 = vld [vmem:[#allocation23_spill] sm:$0xff] }
 0x60a   : > { %v7066_v45 = vpop.f32.mrf.mxu1  ;;  %v6630_v46 = vadd.f32 %v6629_v15, %v15552_v14 }
 0x60b   : > { %7328 = vst.msk [vmem:[%s14046_s5 + $0x1d8] sm:$0xff] %vm479_vm0, %v7063_v25  ;;  %v7067_v41 = vadd.f32 %v7066_v45, %v6618_v53  ;;  %v6631_v3 = vpop.f32.mrf.mxu0  ;;  %v15561_v45 = vld [vmem:[#allocation30_spill] sm:$0xff] }
 0x60c   : > { %v7068_v38 = vpop.f32.mrf.mxu1  ;;  %v6632_v51 = vadd.f32 %v6631_v3, %v15553_v58 }
 0x60d   : > { %7329 = vst [vmem:[%s14046_s5 + $0x1e0] sm:$0xff] %v7067_v41  ;;  %v7069_v56 = vadd.f32 %v7068_v38, %v6620_v12  ;;  %v6635_v0 = vpop.f32.mrf.mxu0  ;;  %v15562_v38 = vld [vmem:[#allocation102_spill] sm:$0xff] }
 0x60e   : > { %v7072_v39 = vpop.f32.mrf.mxu1  ;;  %v6636_v36 = vadd.f32 %v6635_v0, %v15554_v52 }
 0x60f   : > { %7330 = vst.msk [vmem:[%s14046_s5 + $0x1e8] sm:$0xff] %vm479_vm0, %v7069_v56  ;;  %v7073_v59 = vadd.f32 %v7072_v39, %v6624_v40  ;;  %v6637_v16 = vpop.f32.mrf.mxu0  ;;  %v15563_v39 = vld [vmem:[#allocation100_spill] sm:$0xff] }
 0x610   : > { %v7074_v5 = vpop.f32.mrf.mxu1  ;;  %v6638_v35 = vadd.f32 %v6637_v16, %v15555_v17 }
 0x611   : > { %7331 = vst [vmem:[%s14046_s5 + $0x1f0] sm:$0xff] %v7073_v59  ;;  %v7075_v42 = vadd.f32 %v7074_v5, %v6626_v37  ;;  %v6641_v54 = vpop.f32.mrf.mxu0  ;;  %v15564_v5 = vld [vmem:[#allocation26_spill] sm:$0xff] }
 0x612   : > { %v7078_v29 = vpop.f32.mrf.mxu1  ;;  %v6642_v30 = vadd.f32 %v6641_v54, %v15556_v24 }
 0x613   : > { %7332 = vst.msk [vmem:[%s14046_s5 + $0x1f8] sm:$0xff] %vm479_vm0, %v7075_v42  ;;  %v7079_v22 = vadd.f32 %v7078_v29, %v6630_v46  ;;  %v6643_v55 = vpop.f32.mrf.mxu0  ;;  %v15565_v29 = vld [vmem:[#allocation24_spill] sm:$0xff] }
 0x614   : > { %v7080_v26 = vpop.f32.mrf.mxu1  ;;  %v6644_v19 = vadd.f32 %v6643_v55, %v15557_v57 }
 0x615   : > { %7333 = vst [vmem:[%s14046_s5 + $0x200] sm:$0xff] %v7079_v22  ;;  %v7081_v50 = vadd.f32 %v7080_v26, %v6632_v51  ;;  %v6647_v4 = vpop.f32.mrf.mxu0  ;;  %v15566_v26 = vld [vmem:[#allocation104_spill] sm:$0xff] }
 0x616   : > { %v7084_v48 = vpop.f32.mrf.mxu1  ;;  %v6648_v49 = vadd.f32 %v6647_v4, %v15558_v1 }
 0x617   : > { %7334 = vst.msk [vmem:[%s14046_s5 + $0x208] sm:$0xff] %vm479_vm0, %v7081_v50  ;;  %v7085_v18 = vadd.f32 %v7084_v48, %v6636_v36  ;;  %v6649_v27 = vpop.f32.mrf.mxu0  ;;  %v15567_v48 = vld [vmem:[#allocation101_spill] sm:$0xff] }
 0x618   : > { %v7086_v43 = vpop.f32.mrf.mxu1  ;;  %v6650_v32 = vadd.f32 %v6649_v27, %v15559_v60 }
 0x619   : > { %7335 = vst [vmem:[%s14046_s5 + $0x210] sm:$0xff] %v7085_v18  ;;  %v7087_v20 = vadd.f32 %v7086_v43, %v6638_v35  ;;  %v6653_v2 = vpop.f32.mrf.mxu0  ;;  %v15568_v43 = vld [vmem:[#allocation21_spill] sm:$0xff] }
 0x61a   : > { %v7090_v62 = vpop.f32.mrf.mxu1  ;;  %v6654_v44 = vadd.f32 %v6653_v2, %v15560_v23 }
 0x61b   : > { %7336 = vst.msk [vmem:[%s14046_s5 + $0x218] sm:$0xff] %vm479_vm0, %v7087_v20  ;;  %v7091_v7 = vadd.f32 %v7090_v62, %v6642_v30  ;;  %v6655_v28 = vpop.f32.mrf.mxu0  ;;  %v15569_v62 = vld [vmem:[#allocation16_spill] sm:$0xff] }
 0x61c   : > { %v7092_v47 = vpop.f32.mrf.mxu1  ;;  %v6656_v11 = vadd.f32 %v6655_v28, %v15561_v45 }
 0x61d   : > { %7337 = vst [vmem:[%s14046_s5 + $0x220] sm:$0xff] %v7091_v7  ;;  %v7093_v33 = vadd.f32 %v7092_v47, %v6644_v19  ;;  %v6659_v63 = vpop.f32.mrf.mxu0  ;;  %v15570_v47 = vld [vmem:[#allocation97_spill] sm:$0xff] }
 0x61e   : > { %v7096_v31 = vpop.f32.mrf.mxu1  ;;  %v6660_v6 = vadd.f32 %v6659_v63, %v15562_v38 }
 0x61f   : > { %7338 = vst.msk [vmem:[%s14046_s5 + $0x228] sm:$0xff] %vm479_vm0, %v7093_v33  ;;  %v7097_v9 = vadd.f32 %v7096_v31, %v6648_v49  ;;  %v6661_v34 = vpop.f32.mrf.mxu0  ;;  %v15571_v31 = vld [vmem:[#allocation94_spill] sm:$0xff] }
 0x620   : > { %v7098_v21 = vpop.f32.mrf.mxu1  ;;  %v6662_v10 = vadd.f32 %v6661_v34, %v15563_v39 }
 0x621   : > { %7339 = vst [vmem:[%s14046_s5 + $0x230] sm:$0xff] %v7097_v9  ;;  %v7099_v53 = vadd.f32 %v7098_v21, %v6650_v32  ;;  %v6665_v25 = vpop.f32.mrf.mxu0  ;;  %v15572_v21 = vld [vmem:[#allocation22_spill] sm:$0xff] }
 0x622   : > { %v7102_v15 = vpop.f32.mrf.mxu1  ;;  %v6666_v14 = vadd.f32 %v6665_v25, %v15564_v5 }
 0x623   : > { %7340 = vst.msk [vmem:[%s14046_s5 + $0x238] sm:$0xff] %vm479_vm0, %v7099_v53  ;;  %v7103_v12 = vadd.f32 %v7102_v15, %v6654_v44  ;;  %v6667_v41 = vpop.f32.mrf.mxu0  ;;  %v15573_v15 = vld [vmem:[#allocation20_spill] sm:$0xff] }
 0x624   : > { %v7104_v3 = vpop.f32.mrf.mxu1  ;;  %v6668_v58 = vadd.f32 %v6667_v41, %v15565_v29 }
 0x625   : > { %7341 = vst [vmem:[%s14046_s5 + $0x240] sm:$0xff] %v7103_v12  ;;  %v7105_v40 = vadd.f32 %v7104_v3, %v6656_v11  ;;  %v6671_v56 = vpop.f32.mrf.mxu0  ;;  %v15574_v3 = vld [vmem:[#allocation98_spill] sm:$0xff] }
 0x626   : > { %v7108_v0 = vpop.f32.mrf.mxu1  ;;  %v6672_v52 = vadd.f32 %v6671_v56, %v15566_v26 }
 0x627   : > { %7342 = vst.msk [vmem:[%s14046_s5 + $0x248] sm:$0xff] %vm479_vm0, %v7105_v40  ;;  %v7109_v37 = vadd.f32 %v7108_v0, %v6660_v6  ;;  %v6673_v59 = vpop.f32.mrf.mxu0  ;;  %v15575_v0 = vld [vmem:[#allocation96_spill] sm:$0xff] }
 0x628   : > { %v7110_v16 = vpop.f32.mrf.mxu1  ;;  %v6674_v17 = vadd.f32 %v6673_v59, %v15567_v48 }
 0x629   : > { %7343 = vst [vmem:[%s14046_s5 + $0x250] sm:$0xff] %v7109_v37  ;;  %v7111_v46 = vadd.f32 %v7110_v16, %v6662_v10  ;;  %v6677_v42 = vpop.f32.mrf.mxu0  ;;  %v15576_v16 = vld [vmem:[#allocation17_spill] sm:$0xff] }
 0x62a   : > { %v7114_v54 = vpop.f32.mrf.mxu1  ;;  %v6678_v24 = vadd.f32 %v6677_v42, %v15568_v43 }
 0x62b   : > { %7344 = vst.msk [vmem:[%s14046_s5 + $0x258] sm:$0xff] %vm479_vm0, %v7111_v46  ;;  %v7115_v51 = vadd.f32 %v7114_v54, %v6666_v14  ;;  %v6679_v22 = vpop.f32.mrf.mxu0  ;;  %v15577_v54 = vld [vmem:[#allocation13_spill] sm:$0xff] }
 0x62c   : > { %v7116_v55 = vpop.f32.mrf.mxu1  ;;  %v6680_v57 = vadd.f32 %v6679_v22, %v15569_v62 }
 0x62d   : > { %7345 = vst [vmem:[%s14046_s5 + $0x260] sm:$0xff] %v7115_v51  ;;  %v7117_v36 = vadd.f32 %v7116_v55, %v6668_v58  ;;  %v6683_v50 = vpop.f32.mrf.mxu0  ;;  %v15578_v55 = vld [vmem:[#allocation93_spill] sm:$0xff] }
 0x62e   : > { %v7120_v4 = vpop.f32.mrf.mxu1  ;;  %v6684_v1 = vadd.f32 %v6683_v50, %v15570_v47 }
 0x62f   : > { %7346 = vst.msk [vmem:[%s14046_s5 + $0x268] sm:$0xff] %vm479_vm0, %v7117_v36  ;;  %v7121_v35 = vadd.f32 %v7120_v4, %v6672_v52  ;;  %v6685_v18 = vpop.f32.mrf.mxu0  ;;  %v15579_v4 = vld [vmem:[#allocation91_spill] sm:$0xff] }
 0x630   : > { %v7122_v27 = vpop.f32.mrf.mxu1  ;;  %v6686_v60 = vadd.f32 %v6685_v18, %v15571_v31 }
 0x631   : > { %7347 = vst [vmem:[%s14046_s5 + $0x270] sm:$0xff] %v7121_v35  ;;  %v7123_v30 = vadd.f32 %v7122_v27, %v6674_v17  ;;  %v6689_v20 = vpop.f32.mrf.mxu0  ;;  %v15580_v27 = vld [vmem:[#allocation19_spill] sm:$0xff] }
 0x632   : > { %v7126_v2 = vpop.f32.mrf.mxu1  ;;  %v6690_v23 = vadd.f32 %v6689_v20, %v15572_v21 }
 0x633   : > { %7348 = vst.msk [vmem:[%s14046_s5 + $0x278] sm:$0xff] %vm479_vm0, %v7123_v30  ;;  %v7127_v19 = vadd.f32 %v7126_v2, %v6678_v24  ;;  %v6691_v7 = vpop.f32.mrf.mxu0  ;;  %v15581_v2 = vld [vmem:[#allocation14_spill] sm:$0xff] }
 0x634   : > { %v7128_v28 = vpop.f32.mrf.mxu1  ;;  %v6692_v45 = vadd.f32 %v6691_v7, %v15573_v15 }
 0x635   : > { %7349 = vst [vmem:[%s14046_s5 + $0x280] sm:$0xff] %v7127_v19  ;;  %v7129_v49 = vadd.f32 %v7128_v28, %v6680_v57  ;;  %v6695_v33 = vpop.f32.mrf.mxu0  ;;  %v15582_v28 = vld [vmem:[#allocation296_spill] sm:$0xff] }
 0x636   : > { %v7132_v63 = vpop.f32.mrf.mxu1  ;;  %v6696_v38 = vadd.f32 %v6695_v33, %v15574_v3 }
 0x637   : > { %7350 = vst.msk [vmem:[%s14046_s5 + $0x288] sm:$0xff] %vm479_vm0, %v7129_v49  ;;  %v7133_v32 = vadd.f32 %v7132_v63, %v6684_v1  ;;  %v6697_v9 = vpop.f32.mrf.mxu0  ;;  %v15583_v63 = vld [vmem:[#allocation95_spill] sm:$0xff] }
 0x638   : > { %v7134_v34 = vpop.f32.mrf.mxu1  ;;  %v6698_v39 = vadd.f32 %v6697_v9, %v15575_v0 }
 0x639   : > { %7351 = vst [vmem:[%s14046_s5 + $0x290] sm:$0xff] %v7133_v32  ;;  %v7135_v44 = vadd.f32 %v7134_v34, %v6686_v60  ;;  %v6701_v53 = vpop.f32.mrf.mxu0  ;;  %v15584_v34 = vld [vmem:[#allocation336_spill] sm:$0xff] }
 0x63a   : > { %v7138_v25 = vpop.f32.mrf.mxu1  ;;  %v6702_v5 = vadd.f32 %v6701_v53, %v15576_v16 }
 0x63b   : > { %7352 = vst.msk [vmem:[%s14046_s5 + $0x298] sm:$0xff] %vm479_vm0, %v7135_v44  ;;  %v7139_v11 = vadd.f32 %v7138_v25, %v6690_v23  ;;  %v6703_v12 = vpop.f32.mrf.mxu0  ;;  %v15585_v25 = vld [vmem:[#allocation92_spill] sm:$0xff] }
 0x63c   : > { %v7140_v41 = vpop.f32.mrf.mxu1  ;;  %v6704_v29 = vadd.f32 %v6703_v12, %v15577_v54 }
 0x63d   : > { %7353 = vst [vmem:[%s14046_s5 + $0x2a0] sm:$0xff] %v7139_v11  ;;  %v7141_v6 = vadd.f32 %v7140_v41, %v6692_v45  ;;  %v6707_v40 = vpop.f32.mrf.mxu0  ;;  %v15586_v41 = vld [vmem:[#allocation197_spill] sm:$0xff] }
 0x63e   : > { %v7144_v56 = vpop.f32.mrf.mxu1  ;;  %v6708_v26 = vadd.f32 %v6707_v40, %v15578_v55 }
 0x63f   : > { %7354 = vst.msk [vmem:[%s14046_s5 + $0x2a8] sm:$0xff] %vm479_vm0, %v7141_v6  ;;  %v7145_v10 = vadd.f32 %v7144_v56, %v6696_v38  ;;  %v6709_v37 = vpop.f32.mrf.mxu0  ;;  %v15587_v56 = vld [vmem:[#allocation89_spill] sm:$0xff] }
 0x640   : > { %v7146_v59 = vpop.f32.mrf.mxu1  ;;  %v6710_v48 = vadd.f32 %v6709_v37, %v15579_v4 }
 0x641   : > { %7355 = vst [vmem:[%s14046_s5 + $0x2b0] sm:$0xff] %v7145_v10  ;;  %v7147_v14 = vadd.f32 %v7146_v59, %v6698_v39  ;;  %v6713_v46 = vpop.f32.mrf.mxu0  ;;  %v15588_v59 = vld [vmem:[#allocation330_spill] sm:$0xff] }
 0x642   : > { %v7150_v42 = vpop.f32.mrf.mxu1  ;;  %v6714_v43 = vadd.f32 %v6713_v46, %v15580_v27 }
 0x643   : > { %7356 = vst.msk [vmem:[%s14046_s5 + $0x2b8] sm:$0xff] %vm479_vm0, %v7147_v14  ;;  %v7151_v58 = vadd.f32 %v7150_v42, %v6702_v5  ;;  %v6715_v51 = vpop.f32.mrf.mxu0  ;;  %v15589_v42 = vld [vmem:[#allocation87_spill] sm:$0xff] }
 0x644   : > { %v7152_v22 = vpop.f32.mrf.mxu1  ;;  %v6716_v62 = vadd.f32 %v6715_v51, %v15581_v2 }
 0x645   : > { %7357 = vst [vmem:[%s14046_s5 + $0x2c0] sm:$0xff] %v7151_v58  ;;  %v7153_v52 = vadd.f32 %v7152_v22, %v6704_v29  ;;  %v6719_v36 = vpop.f32.mrf.mxu0  ;;  %v15590_v22 = vld [vmem:[#allocation90_spill] sm:$0xff] }
 0x646   : > { %v7156_v50 = vpop.f32.mrf.mxu1  ;;  %v6720_v47 = vadd.f32 %v6719_v36, %v15582_v28 }
 0x647   : > { %7358 = vst.msk [vmem:[%s14046_s5 + $0x2c8] sm:$0xff] %vm479_vm0, %v7153_v52  ;;  %v7157_v17 = vadd.f32 %v7156_v50, %v6708_v26  ;;  %v6721_v35 = vpop.f32.mrf.mxu0  ;;  %v15591_v50 = vld [vmem:[#allocation335_spill] sm:$0xff] }
 0x648   : > { %v7158_v18 = vpop.f32.mrf.mxu1  ;;  %v6722_v31 = vadd.f32 %v6721_v35, %v15583_v63 }
 0x649   : > { %7359 = vst [vmem:[%s14046_s5 + $0x2d0] sm:$0xff] %v7157_v17  ;;  %v7159_v24 = vadd.f32 %v7158_v18, %v6710_v48  ;;  %v6725_v30 = vpop.f32.mrf.mxu0  ;;  %v15592_v18 = vld [vmem:[#allocation88_spill] sm:$0xff] }
 0x64a   : > { %v7162_v20 = vpop.f32.mrf.mxu1  ;;  %v6726_v21 = vadd.f32 %v6725_v30, %v15584_v34 }
 0x64b   : > { %7360 = vst.msk [vmem:[%s14046_s5 + $0x2d8] sm:$0xff] %vm479_vm0, %v7159_v24  ;;  %v7163_v57 = vadd.f32 %v7162_v20, %v6714_v43  ;;  %v6727_v19 = vpop.f32.mrf.mxu0  ;;  %v15593_v20 = vld [vmem:[#allocation297_spill] sm:$0xff] }
 0x64c   : > { %v7164_v7 = vpop.f32.mrf.mxu1  ;;  %v6728_v15 = vadd.f32 %v6727_v19, %v15585_v25 }
 0x64d   : > { %7361 = vst [vmem:[%s14046_s5 + $0x2e0] sm:$0xff] %v7163_v57  ;;  %v7165_v1 = vadd.f32 %v7164_v7, %v6716_v62  ;;  %v6731_v49 = vpop.f32.mrf.mxu0  ;;  %v15594_v7 = vld [vmem:[#allocation192_spill] sm:$0xff] }
 0x64e   : > { %v7168_v33 = vpop.f32.mrf.mxu1  ;;  %v6732_v3 = vadd.f32 %v6731_v49, %v15586_v41 }
 0x64f   : > { %7362 = vst.msk [vmem:[%s14046_s5 + $0x2e8] sm:$0xff] %vm479_vm0, %v7165_v1  ;;  %v7169_v60 = vadd.f32 %v7168_v33, %v6720_v47  ;;  %v6733_v32 = vpop.f32.mrf.mxu0  ;;  %v15595_v33 = vld [vmem:[#allocation85_spill] sm:$0xff] }
 0x650   : > { %v7170_v9 = vpop.f32.mrf.mxu1  ;;  %v6734_v0 = vadd.f32 %v6733_v32, %v15587_v56 }
 0x651   : > { %7363 = vst [vmem:[%s14046_s5 + $0x2f0] sm:$0xff] %v7169_v60  ;;  %v7171_v23 = vadd.f32 %v7170_v9, %v6722_v31  ;;  %v6737_v44 = vpop.f32.mrf.mxu0  ;;  %v15596_v9 = vld [vmem:[#allocation328_spill] sm:$0xff] }
 0x652   : > { %v7174_v53 = vpop.f32.mrf.mxu1  ;;  %v6738_v16 = vadd.f32 %v6737_v44, %v15588_v59 }
 0x653   : > { %7364 = vst.msk [vmem:[%s14046_s5 + $0x2f8] sm:$0xff] %vm479_vm0, %v7171_v23  ;;  %v7175_v45 = vadd.f32 %v7174_v53, %v6726_v21  ;;  %v6739_v11 = vpop.f32.mrf.mxu0  ;;  %v15597_v53 = vld [vmem:[#allocation82_spill] sm:$0xff] }
 0x654   : > { %v7176_v12 = vpop.f32.mrf.mxu1  ;;  %v6740_v54 = vadd.f32 %v6739_v11, %v15589_v42 }
 0x655   : > { %7365 = vst [vmem:[%s14046_s5 + $0x300] sm:$0xff] %v7175_v45  ;;  %v7177_v38 = vadd.f32 %v7176_v12, %v6728_v15  ;;  %v6743_v6 = vpop.f32.mrf.mxu0  ;;  %v15598_v12 = vld [vmem:[#allocation86_spill] sm:$0xff] }
 0x656   : > { %v7180_v40 = vpop.f32.mrf.mxu1  ;;  %v6744_v55 = vadd.f32 %v6743_v6, %v15590_v22 }
 0x657   : > { %7366 = vst.msk [vmem:[%s14046_s5 + $0x308] sm:$0xff] %vm479_vm0, %v7177_v38  ;;  %v7181_v39 = vadd.f32 %v7180_v40, %v6732_v3  ;;  %v6745_v10 = vpop.f32.mrf.mxu0  ;;  %v15599_v40 = vld [vmem:[#allocation334_spill] sm:$0xff] }
 0x658   : > { %v7182_v37 = vpop.f32.mrf.mxu1  ;;  %v6746_v4 = vadd.f32 %v6745_v10, %v15591_v50 }
 0x659   : > { %7367 = vst [vmem:[%s14046_s5 + $0x310] sm:$0xff] %v7181_v39  ;;  %v7183_v5 = vadd.f32 %v7182_v37, %v6734_v0  ;;  %v6749_v14 = vpop.f32.mrf.mxu0  ;;  %v15600_v37 = vld [vmem:[#allocation84_spill] sm:$0xff] }
 0x65a   : > { %v7186_v46 = vpop.f32.mrf.mxu1  ;;  %v6750_v27 = vadd.f32 %v6749_v14, %v15592_v18 }
 0x65b   : > { %7368 = vst.msk [vmem:[%s14046_s5 + $0x318] sm:$0xff] %vm479_vm0, %v7183_v5  ;;  %v7187_v29 = vadd.f32 %v7186_v46, %v6738_v16  ;;  %v6751_v58 = vpop.f32.mrf.mxu0  ;;  %v15601_v46 = vld [vmem:[#allocation294_spill] sm:$0xff] }
 0x65c   : > { %v7188_v51 = vpop.f32.mrf.mxu1  ;;  %v6752_v2 = vadd.f32 %v6751_v58, %v15593_v20 }
 0x65d   : > { %7369 = vst [vmem:[%s14046_s5 + $0x320] sm:$0xff] %v7187_v29  ;;  %v7189_v26 = vadd.f32 %v7188_v51, %v6740_v54  ;;  %v6755_v52 = vpop.f32.mrf.mxu0  ;;  %v15602_v51 = vld [vmem:[#allocation211_spill] sm:$0xff] }
 0x65e   : > { %v7192_v36 = vpop.f32.mrf.mxu1  ;;  %v6756_v28 = vadd.f32 %v6755_v52, %v15594_v7 }
 0x65f   : > { %7370 = vst.msk [vmem:[%s14046_s5 + $0x328] sm:$0xff] %vm479_vm0, %v7189_v26  ;;  %v7193_v48 = vadd.f32 %v7192_v36, %v6744_v55  ;;  %v6757_v17 = vpop.f32.mrf.mxu0  ;;  %v15603_v36 = vld [vmem:[#allocation81_spill] sm:$0xff] }
 0x660   : > { %v7194_v35 = vpop.f32.mrf.mxu1  ;;  %v6758_v63 = vadd.f32 %v6757_v17, %v15595_v33 }
 0x661   : > { %7371 = vst [vmem:[%s14046_s5 + $0x330] sm:$0xff] %v7193_v48  ;;  %v7195_v43 = vadd.f32 %v7194_v35, %v6746_v4  ;;  %v6761_v24 = vpop.f32.mrf.mxu0  ;;  %v15604_v35 = vld [vmem:[#allocation326_spill] sm:$0xff] }
 0x662   : > { %v7198_v30 = vpop.f32.mrf.mxu1  ;;  %v6762_v34 = vadd.f32 %v6761_v24, %v15596_v9 }
 0x663   : > { %7372 = vst.msk [vmem:[%s14046_s5 + $0x338] sm:$0xff] %vm479_vm0, %v7195_v43  ;;  %v7199_v62 = vadd.f32 %v7198_v30, %v6750_v27  ;;  %v6763_v57 = vpop.f32.mrf.mxu0  ;;  %v15605_v30 = vld [vmem:[#allocation79_spill] sm:$0xff] }
 0x664   : > { %v7200_v19 = vpop.f32.mrf.mxu1  ;;  %v6764_v25 = vadd.f32 %v6763_v57, %v15597_v53 }
 0x665   : > { %7373 = vst [vmem:[%s14046_s5 + $0x340] sm:$0xff] %v7199_v62  ;;  %v7201_v47 = vadd.f32 %v7200_v19, %v6752_v2  ;;  %v6767_v1 = vpop.f32.mrf.mxu0  ;;  %v15606_v19 = vld [vmem:[#allocation80_spill] sm:$0xff] }
 0x666   : > { %v7204_v49 = vpop.f32.mrf.mxu1  ;;  %v6768_v41 = vadd.f32 %v6767_v1, %v15598_v12 }
 0x667   : > { %7374 = vst.msk [vmem:[%s14046_s5 + $0x348] sm:$0xff] %vm479_vm0, %v7201_v47  ;;  %v7205_v31 = vadd.f32 %v7204_v49, %v6756_v28  ;;  %v6769_v60 = vpop.f32.mrf.mxu0  ;;  %v15607_v49 = vld [vmem:[#allocation333_spill] sm:$0xff] }
 0x668   : > { %v7206_v32 = vpop.f32.mrf.mxu1  ;;  %v6770_v56 = vadd.f32 %v6769_v60, %v15599_v40 }
 0x669   : > { %7375 = vst [vmem:[%s14046_s5 + $0x350] sm:$0xff] %v7205_v31  ;;  %v7207_v21 = vadd.f32 %v7206_v32, %v6758_v63  ;;  %v6773_v23 = vpop.f32.mrf.mxu0  ;;  %v15608_v32 = vld [vmem:[#allocation83_spill] sm:$0xff] }
 0x66a   : > { %v7210_v44 = vpop.f32.mrf.mxu1  ;;  %v6774_v59 = vadd.f32 %v6773_v23, %v15600_v37 }
 0x66b   : > { %7376 = vst.msk [vmem:[%s14046_s5 + $0x358] sm:$0xff] %vm479_vm0, %v7207_v21  ;;  %v7211_v15 = vadd.f32 %v7210_v44, %v6762_v34  ;;  %v6775_v45 = vpop.f32.mrf.mxu0  ;;  %v15609_v44 = vld [vmem:[#allocation278_spill] sm:$0xff] }
 0x66c   : > { %v7212_v11 = vpop.f32.mrf.mxu1  ;;  %v6776_v42 = vadd.f32 %v6775_v45, %v15601_v46 }
 0x66d   : > { %7377 = vst [vmem:[%s14046_s5 + $0x360] sm:$0xff] %v7211_v15  ;;  %v7213_v3 = vadd.f32 %v7212_v11, %v6764_v25  ;;  %v6779_v38 = vpop.f32.mrf.mxu0  ;;  %v15610_v11 = vld [vmem:[#allocation77_spill] sm:$0xff] }
 0x66e   : > { %v7216_v6 = vpop.f32.mrf.mxu1  ;;  %v6780_v22 = vadd.f32 %v6779_v38, %v15602_v51  ;;  %v15611_v38 = vld [vmem:[#allocation324_spill] sm:$0xff] }
 0x66f   : > { %7378 = vst.msk [vmem:[%s14046_s5 + $0x368] sm:$0xff] %vm479_vm0, %v7213_v3  ;;  %v7217_v0 = vadd.f32 %v7216_v6, %v6768_v41  ;;  %v6781_v39 = vpop.f32.mrf.mxu0 }
 0x670   : > { %v7218_v10 = vpop.f32.mrf.mxu1  ;;  %v6782_v50 = vadd.f32 %v6781_v39, %v15603_v36  ;;  %v15612_v39 = vld [vmem:[#allocation75_spill] sm:$0xff] }
 0x671   : > { %7379 = vst [vmem:[%s14046_s5 + $0x370] sm:$0xff] %v7217_v0  ;;  %v7219_v16 = vadd.f32 %v7218_v10, %v6770_v56  ;;  %v6785_v5 = vpop.f32.mrf.mxu0 }
 0x672   : > { %v7222_v14 = vpop.f32.mrf.mxu1  ;;  %v6786_v18 = vadd.f32 %v6785_v5, %v15604_v35 }
 0x673   : > { %7380 = vst.msk [vmem:[%s14046_s5 + $0x378] sm:$0xff] %vm479_vm0, %v7219_v16  ;;  %v7223_v54 = vadd.f32 %v7222_v14, %v6774_v59  ;;  %v6787_v29 = vpop.f32.mrf.mxu0 }
 0x674   : > { %v7224_v58 = vpop.f32.mrf.mxu1  ;;  %v6788_v20 = vadd.f32 %v6787_v29, %v15605_v30 }
 0x675   : > { %7381 = vst [vmem:[%s14046_s5 + $0x380] sm:$0xff] %v7223_v54  ;;  %v7225_v55 = vadd.f32 %v7224_v58, %v6776_v42  ;;  %v6791_v26 = vpop.f32.mrf.mxu0 }
 0x676   : > { %v7228_v52 = vpop.f32.mrf.mxu1  ;;  %v6792_v7 = vadd.f32 %v6791_v26, %v15606_v19 }
 0x677   : > { %7382 = vst.msk [vmem:[%s14046_s5 + $0x388] sm:$0xff] %vm479_vm0, %v7225_v55  ;;  %v7229_v4 = vadd.f32 %v7228_v52, %v6780_v22  ;;  %v6793_v48 = vpop.f32.mrf.mxu0 }
 0x678   : > { %v7230_v17 = vpop.f32.mrf.mxu1  ;;  %v6794_v33 = vadd.f32 %v6793_v48, %v15607_v49 }
 0x679   : > { %7383 = vst [vmem:[%s14046_s5 + $0x390] sm:$0xff] %v7229_v4  ;;  %v7231_v27 = vadd.f32 %v7230_v17, %v6782_v50  ;;  %v6797_v43 = vpop.f32.mrf.mxu0 }
 0x67a   : > { %v7234_v24 = vpop.f32.mrf.mxu1  ;;  %v6798_v9 = vadd.f32 %v6797_v43, %v15608_v32 }
 0x67b   : > { %7384 = vst.msk [vmem:[%s14046_s5 + $0x398] sm:$0xff] %vm479_vm0, %v7231_v27  ;;  %v7235_v2 = vadd.f32 %v7234_v24, %v6786_v18  ;;  %v6799_v62 = vpop.f32.mrf.mxu0 }
 0x67c   : > { %v7236_v57 = vpop.f32.mrf.mxu1  ;;  %v6800_v53 = vadd.f32 %v6799_v62, %v15609_v44 }
 0x67d   : > { %7385 = vst [vmem:[%s14046_s5 + $0x3a0] sm:$0xff] %v7235_v2  ;;  %v7237_v28 = vadd.f32 %v7236_v57, %v6788_v20  ;;  %v6803_v47 = vpop.f32.mrf.mxu0 }
 0x67e   : > { %v7240_v1 = vpop.f32.mrf.mxu1  ;;  %v6804_v12 = vadd.f32 %v6803_v47, %v15610_v11 }
 0x67f   : > { %7386 = vst.msk [vmem:[%s14046_s5 + $0x3a8] sm:$0xff] %vm479_vm0, %v7237_v28  ;;  %v7241_v63 = vadd.f32 %v7240_v1, %v6792_v7  ;;  %v6805_v31 = vpop.f32.mrf.mxu0 }
 0x680   : > { %v7242_v60 = vpop.f32.mrf.mxu1  ;;  %v6806_v6 = vadd.f32 %v6805_v31, %v15611_v38 }
 0x681   : > { %7387 = vst [vmem:[%s14046_s5 + $0x3b0] sm:$0xff] %v7241_v63  ;;  %v7243_v34 = vadd.f32 %v7242_v60, %v6794_v33  ;;  %v6809_v21 = vpop.f32.mrf.mxu0 }
 0x682   : > { %v7246_v23 = vpop.f32.mrf.mxu1  ;;  %v6810_v10 = vadd.f32 %v6809_v21, %v15612_v39 }
 0x683   : > { %7388 = vst.msk [vmem:[%s14046_s5 + $0x3b8] sm:$0xff] %vm479_vm0, %v7243_v34  ;;  %v7247_v25 = vadd.f32 %v7246_v23, %v6798_v9  ;;  %v6811_v15 = vpop.f32.mrf.mxu0 }
 0x684   : > { %v7248_v45 = vpop.f32.mrf.mxu1  ;;  %v6812_v16 = vadd.f32 %v6811_v15, %v14032_v13 }
 0x685   : > { %7389 = vst [vmem:[%s14046_s5 + $0x3c0] sm:$0xff] %v7247_v25  ;;  %v7249_v41 = vadd.f32 %v7248_v45, %v6800_v53  ;;  %v6815_v56 = vpop.f32.mrf.mxu0 }
 0x686   : > { %v7252_v3 = vpop.f32.mrf.mxu1  ;;  %v6816_v42 = vadd.f32 %v6815_v56, %v14035_v61 }
 0x687   : > { %7390 = vst.msk [vmem:[%s14046_s5 + $0x3c8] sm:$0xff] %vm479_vm0, %v7249_v41  ;;  %v7253_v40 = vadd.f32 %v7252_v3, %v6804_v12  ;;  %v6817_v14 = vpop.f32.mrf.mxu0 }
 0x688   : > { %v7254_v0 = vpop.f32.mrf.mxu1  ;;  %v6818_v58 = vadd.f32 %v6817_v14, %v14041_v8 }
 0x689   : > { %7391 = vst [vmem:[%s14046_s5 + $0x3d0] sm:$0xff] %v7253_v40  ;;  %v7255_v37 = vadd.f32 %v7254_v0, %v6806_v6 }
 0x68a   : > { %v7258_v59 = vpop.f32.mrf.mxu1 }
 0x68b   : > { %7392 = vst.msk [vmem:[%s14046_s5 + $0x3d8] sm:$0xff] %vm479_vm0, %v7255_v37  ;;  %v7259_v5 = vadd.f32 %v7258_v59, %v6810_v10 }
 0x68c   : > { %v7260_v46 = vpop.f32.mrf.mxu1 }
 0x68d   : > { %7393 = vst [vmem:[%s14046_s5 + $0x3e0] sm:$0xff] %v7259_v5  ;;  %v7261_v54 = vadd.f32 %v7260_v46, %v6812_v16 }
 0x68e   : > { %v7264_v29 = vpop.f32.mrf.mxu1 }
 0x68f   : > { %7394 = vst.msk [vmem:[%s14046_s5 + $0x3e8] sm:$0xff] %vm479_vm0, %v7261_v54  ;;  %v7265_v51 = vadd.f32 %v7264_v29, %v6816_v42 }
 0x690   : > { %v7266_v22 = vpop.f32.mrf.mxu1 }
 0x691   : > { %7395 = vst [vmem:[%s14046_s5 + $0x3f0] sm:$0xff] %v7265_v51  ;;  %v7267_v55 = vadd.f32 %v7266_v22, %v6818_v58 }
 0x693   : > { %7396 = vst.msk [vmem:[%s14046_s5 + $0x3f8] sm:$0xff] %vm479_vm0, %v7267_v55 }
 0x694 PF: > { %p14_p9 = scmp.ge.s32.totalorder %s8153_s20, 4   ;;  %s15613_s15 = smov %s8094_s16 }
 0x695   : > { %s15614_s16 = smov %s8098_s17  ;;  %s15615_s17 = smov %s8163_s23 }
 0x696   : > { %s15616_s18 = smov %s8153_s20  ;;  %16 = sbr.rel (!%p14_p9) target bundleno = 3 (0x3), region = 76 }
 0x69b   :  { %7421 = vsyncpa [#allocation3], 1 }
 0x69c   :  { %7423 = vsyncpa [#allocation3 + $0x1], 1 }

</bundles_post_ra>
